<compile_context>
chip_gen: v6e
topology: v6e:2x2x1
jax: 0.10.0
libtpu: 0.0.40
codegen_flags: <defaults>
</compile_context>

<pallas_src>
import functools

import jax
import jax.numpy as jnp
from jax.experimental import pallas as pl
from jax.experimental.pallas import tpu as pltpu


# ------------------------------ Fused kernel -------------------------------- #

def _fused_head_kernel(x_ref, wl_ref, bl_ref, gl_ref, betal_ref, p_ref,
                       wo_ref, bo_ref, o_ref, act_ref, *,
                       H, W, Cin, Chid, Cmax, num_layers, groups, eps):
    # x_ref:   (1, H, W, Cin)  one sample, NHWC, bf16
    # wl_ref:  (9*L, Cmax, Chid) per-tap conv weights, bf16 (zero-padded chans)
    # bl/gl/betal_ref: (L, Chid) conv bias / GN gamma / GN beta, f32
    # p_ref:   (Chid, Chid)    block-diagonal group-membership matrix (m @ m.T)
    # wo_ref:  (9, Cmax, num_out) bf16;  bo_ref: (1, num_out) f32
    # o_ref:   (1, H, W, num_out) f32
    # act_ref: (H+2, W+2, Cmax) bf16    padded activation scratch (halo = 0)
    HW = H * W
    num_out = o_ref.shape[-1]

    # Zero the whole padded scratch ONCE (first grid step): stale VMEM NaNs in
    # halo / padded-channel lanes must not propagate via 0 * NaN through the
    # zero-padded weight rows.  Later samples only overwrite the interior.
    @pl.when(pl.program_id(0) == 0)
    def _():
        act_ref[...] = jnp.zeros_like(act_ref)

    # Stage this sample into the interior of the padded scratch (bf16).
    act_ref[1:H + 1, 1:W + 1, :Cin] = x_ref[0]

    def conv3x3(w_ref, base, cout):
        # 3x3 "same" conv as 9 accumulated per-tap matmuls (K = Cmax each);
        # only the (HW, cout) f32 accumulator stays live (no im2col buffer).
        act = act_ref[...]                                  # (H+2, W+2, Cmax) bf16
        acc = jnp.zeros((HW, cout), jnp.float32)
        for dy in range(3):
            for dx in range(3):
                tap = act[dy:dy + H, dx:dx + W, :].reshape(HW, Cmax)
                acc = acc + jnp.dot(tap, w_ref[base + dy * 3 + dx],
                                    preferred_element_type=jnp.float32)
        return acc

    inv_n = 1.0 / float(HW * (Chid // groups))
    P = p_ref[...]                                          # (Chid, Chid) f32

    for l in range(num_layers):
        acc = conv3x3(wl_ref, 9 * l, Chid) + bl_ref[l:l + 1, :]   # (HW, Chid)

        # GroupNorm over (H, W, channels-in-group): one stats matmul.
        stats = jnp.concatenate(
            [jnp.sum(acc, axis=0, keepdims=True),
             jnp.sum(acc * acc, axis=0, keepdims=True)], axis=0)  # (2, Chid)
        per_c = jnp.dot(stats, P, preferred_element_type=jnp.float32)  # (2, Chid)
        mean = per_c[0:1, :] * inv_n
        var = jnp.maximum(per_c[1:2, :] * inv_n - mean * mean, 0.0)   # clamped
        y = (acc - mean) * jax.lax.rsqrt(var + eps)
        y = y * gl_ref[l:l + 1, :] + betal_ref[l:l + 1, :]
        y = jnp.maximum(y, 0.0)          # ReLU; Dropout2d(p) eval = identity

        # Single f32->bf16 cast per layer; write back into the interior only.
        act_ref[1:H + 1, 1:W + 1, :Chid] = (
            y.reshape(H, W, Chid).astype(jnp.bfloat16))

    out = conv3x3(wo_ref, 0, num_out) + bo_ref[...]          # (HW, num_out) f32
    o_ref[...] = out.reshape(1, H, W, num_out)


# ------------------------------ Wrappers ------------------------------------ #

def _pack_head_params(params, groups):
    """Pre-pack conv weights as (9 taps, Cmax, Cout) bf16 + GN fold matrix."""
    layers = params["layers"]
    Cin0 = layers[0]["w"].shape[2]
    Chid = layers[0]["w"].shape[3]
    Cmax = max(Cin0, Chid)
    assert Chid % groups == 0, "hidden_channels must be divisible by groups"

    def pack_w(w):
        # (3, 3, Cin_l, Cout) -> (9, Cmax, Cout) bf16, zero-padded input chans.
        pad_c = Cmax - w.shape[2]
        wp = jnp.pad(w, ((0, 0), (0, 0), (0, pad_c), (0, 0)))
        return wp.reshape(9, Cmax, w.shape[3]).astype(jnp.bfloat16)

    gid = jnp.arange(Chid) // (Chid // groups)
    P = (gid[:, None] == gid[None, :]).astype(jnp.float32)   # = m @ m.T
    num_out = params["out_w"].shape[3]
    return {
        "wl": jnp.concatenate([pack_w(l["w"]) for l in layers], axis=0),  # (9L, Cmax, Chid)
        "bl": jnp.stack([l["b"] for l in layers]),             # (L, Chid)
        "gl": jnp.stack([l["gamma"] for l in layers]),
        "betal": jnp.stack([l["beta"] for l in layers]),
        "P": P,                                                # (Chid, Chid)
        "wo": pack_w(params["out_w"]),                         # (9, Cmax, num_out)
        "bo": params["out_b"].reshape(1, num_out),
        "dims": (Cin0, Chid, Cmax, num_out, len(layers)),
    }


def _run_level(x_nhwc, packed, *, groups, eps=1e-5):
    """Fused head for one FPN level. x_nhwc: (N, H, W, Cin) bf16 -> (N, H, W, A*4)."""
    N, H, W, Cin = x_nhwc.shape
    Cin0, Chid, Cmax, num_out, L = packed["dims"]
    assert Cin == Cin0
    kernel = functools.partial(
        _fused_head_kernel, H=H, W=W, Cin=Cin, Chid=Chid, Cmax=Cmax,
        num_layers=L, groups=groups, eps=eps)
    return pl.pallas_call(
        kernel,
        out_shape=jax.ShapeDtypeStruct((N, H, W, num_out), jnp.float32),
        grid_spec=pltpu.PrefetchScalarGridSpec(
            num_scalar_prefetch=0,
            grid=(N,),
            in_specs=[
                pl.BlockSpec((1, H, W, Cin), lambda n: (n, 0, 0, 0)),
                pl.BlockSpec((9 * L, Cmax, Chid), lambda n: (0, 0, 0)),
                pl.BlockSpec((L, Chid), lambda n: (0, 0)),
                pl.BlockSpec((L, Chid), lambda n: (0, 0)),
                pl.BlockSpec((L, Chid), lambda n: (0, 0)),
                pl.BlockSpec((Chid, Chid), lambda n: (0, 0)),
                pl.BlockSpec((9, Cmax, num_out), lambda n: (0, 0, 0)),
                pl.BlockSpec((1, num_out), lambda n: (0, 0)),
            ],
            out_specs=pl.BlockSpec((1, H, W, num_out), lambda n: (n, 0, 0, 0)),
            scratch_shapes=[pltpu.VMEM((H + 2, W + 2, Cmax), jnp.bfloat16)],
        ),
        # "arbitrary" (sequential) batch axis: required so the zero-once scratch
        # init on program_id==0 covers every sample that reuses the scratch.
        compiler_params=pltpu.CompilerParams(
            dimension_semantics=("arbitrary",),
            vmem_limit_bytes=64 * 1024 * 1024),
    )(x_nhwc, packed["wl"], packed["bl"], packed["gl"], packed["betal"],
      packed["P"], packed["wo"], packed["bo"])


# --------------------------- RegressionHead --------------------------------- #

def init_regression_head_params(key, *, in_channels, hidden_channels,
                                num_layers, num_anchors):
    params = {"layers": []}
    for i in range(num_layers):
        cin = in_channels if i == 0 else hidden_channels
        cout = hidden_channels
        key, sub = jax.random.split(key)
        # kaiming_normal_(mode='fan_out', nonlinearity='relu')
        std = (2.0 / (cout * 3 * 3)) ** 0.5
        w = std * jax.random.normal(sub, (3, 3, cin, cout), jnp.float32)
        params["layers"].append({
            "w": w,
            "b": jnp.zeros((cout,), jnp.float32),          # constant_(bias, 0)
            "gamma": jnp.ones((cout,), jnp.float32),       # GN default affine
            "beta": jnp.zeros((cout,), jnp.float32),
        })
    num_outputs = num_anchors * 4                          # use_centerness=False
    key, sub = jax.random.split(key)
    # kaiming_normal_ default: mode='fan_in', gain=sqrt(2)
    std = (2.0 / (hidden_channels * 3 * 3)) ** 0.5
    params["out_w"] = std * jax.random.normal(
        sub, (3, 3, hidden_channels, num_outputs), jnp.float32)
    params["out_b"] = jnp.zeros((num_outputs,), jnp.float32)
    return params


def regression_head_forward(params, features_nchw, *, num_anchors, groups):
    """features_nchw: list of (N, C, H, W). Returns list of (N, A*H*W, 4)."""
    packed = _pack_head_params(params, groups)
    predictions = []
    for feat in features_nchw:
        # NCHW -> NHWC; bf16 at the kernel boundary (MXU operands are bf16).
        x = jnp.transpose(feat, (0, 2, 3, 1)).astype(jnp.bfloat16)
        pred = _run_level(x, packed, groups=groups)        # (N, H, W, A*4) f32
        N, H, W, _ = pred.shape
        # Equivalent of NCHW view(N,A,4,H,W) -> permute(0,1,3,4,2) -> view(N,-1,4)
        pred = pred.reshape(N, H, W, num_anchors, 4)
        pred = jnp.transpose(pred, (0, 3, 1, 2, 4))
        pred = pred.reshape(N, num_anchors * H * W, 4)
        predictions.append(pred)
    return predictions


# ---------------------------- Pure-JAX reference ----------------------------- #

def _ref_conv(x, w, b):
    y = jax.lax.conv_general_dilated(
        x, w, window_strides=(1, 1), padding="SAME",
        dimension_numbers=("NHWC", "HWIO", "NHWC"),
        precision=jax.lax.Precision.HIGHEST)
    return y + b


def _ref_gn_relu(x, gamma, beta, groups, eps=1e-5):
    N, H, W, C = x.shape
    xg = x.reshape(N, H, W, groups, C // groups)
    mean = xg.mean(axis=(1, 2, 4), keepdims=True)
    var = xg.var(axis=(1, 2, 4), keepdims=True)
    xn = ((xg - mean) / jnp.sqrt(var + eps)).reshape(N, H, W, C)
    return jnp.maximum(xn * gamma + beta, 0.0)


def _ref_forward(params, features_nchw, *, num_anchors, groups):
    preds = []
    for feat in features_nchw:
        x = jnp.transpose(feat, (0, 2, 3, 1))
        for layer in params["layers"]:
            x = _ref_gn_relu(_ref_conv(x, layer["w"], layer["b"]),
                             layer["gamma"], layer["beta"], groups)
        pred = _ref_conv(x, params["out_w"], params["out_b"])
        N, H, W, _ = pred.shape
        pred = pred.reshape(N, H, W, num_anchors, 4)
        pred = jnp.transpose(pred, (0, 3, 1, 2, 4)).reshape(N, num_anchors * H * W, 4)
        preds.append(pred)
    return preds


# ---------------------------------- main ------------------------------------- #

if __name__ == "__main__":
    # Small config consistent with PredictionConfig semantics.
    IN_CH, HID_CH, NUM_LAYERS = 32, 32, 2
    NUM_ANCHORS, GROUPS = 4, 8                 # use_centerness=False -> 4 coords
    N = 2

    key = jax.random.PRNGKey(0)
    key, k_feat0, k_feat1 = jax.random.split(key, 3)
    # Two FPN-style feature levels, NCHW like PyTorch.
    features = [
        jax.random.normal(k_feat0, (N, IN_CH, 16, 16), jnp.float32),
        jax.random.normal(k_feat1, (N, IN_CH, 8, 8), jnp.float32),
    ]

    params = init_regression_head_params(
        key, in_channels=IN_CH, hidden_channels=HID_CH,
        num_layers=NUM_LAYERS, num_anchors=NUM_ANCHORS)

    preds = regression_head_forward(
        params, features, num_anchors=NUM_ANCHORS, groups=GROUPS)
    preds = [jax.block_until_ready(p) for p in preds]

    refs = _ref_forward(params, features, num_anchors=NUM_ANCHORS, groups=GROUPS)
    for p, r, feat in zip(preds, refs, features):
        H, W = feat.shape[2], feat.shape[3]
        assert p.shape == (N, NUM_ANCHORS * H * W, 4), p.shape
        # Kernel uses bf16 MXU operands (f32 accumulate); reference is f32
        # HIGHEST precision, so allow bf16-level tolerance.
        assert jnp.allclose(p, r, rtol=5e-2, atol=5e-2), float(
            jnp.max(jnp.abs(p - r)))

    print("KERNEL_OK")
</pallas_src>

<mosaic_0001>
module attributes {stable_mosaic.version = 11 : i64} {
  func.func @_fused_head_kernel(%arg0: i32, %arg1: memref<1x16x16x32xbf16, #tpu.memory_space<vmem>>, %arg2: memref<18x32x32xbf16, #tpu.memory_space<vmem>>, %arg3: memref<2x32xf32, #tpu.memory_space<vmem>>, %arg4: memref<2x32xf32, #tpu.memory_space<vmem>>, %arg5: memref<2x32xf32, #tpu.memory_space<vmem>>, %arg6: memref<32x32xf32, #tpu.memory_space<vmem>>, %arg7: memref<9x32x16xbf16, #tpu.memory_space<vmem>>, %arg8: memref<1x16xf32, #tpu.memory_space<vmem>>, %arg9: memref<1x16x16x16xf32, #tpu.memory_space<vmem>>, %arg10: memref<18x18x32xbf16, #tpu.memory_space<vmem>>) attributes {dimension_semantics = [#tpu.dimension_semantics<arbitrary>], iteration_bounds = array<i64: 2>, scalar_prefetch = 0 : i64, scratch_operands = 1 : i64, tpu.core_type = #tpu.core_type<tc>, window_params = [{transform_indices = @transform_0, window_bounds = array<i64: 1, 16, 16, 32>}, {pipeline_mode = #tpu.pipeline_mode<synchronous>, transform_indices = @transform_1, window_bounds = array<i64: 18, 32, 32>}, {pipeline_mode = #tpu.pipeline_mode<synchronous>, transform_indices = @transform_2, window_bounds = array<i64: 2, 32>}, {pipeline_mode = #tpu.pipeline_mode<synchronous>, transform_indices = @transform_3, window_bounds = array<i64: 2, 32>}, {pipeline_mode = #tpu.pipeline_mode<synchronous>, transform_indices = @transform_4, window_bounds = array<i64: 2, 32>}, {pipeline_mode = #tpu.pipeline_mode<synchronous>, transform_indices = @transform_5, window_bounds = array<i64: 32, 32>}, {pipeline_mode = #tpu.pipeline_mode<synchronous>, transform_indices = @transform_6, window_bounds = array<i64: 9, 32, 16>}, {pipeline_mode = #tpu.pipeline_mode<synchronous>, transform_indices = @transform_7, window_bounds = array<i64: 1, 16>}, {transform_indices = @transform_8, window_bounds = array<i64: 1, 16, 16, 16>}]} {
    %c0_i32 = arith.constant 0 : i32
    %0 = arith.cmpi eq, %arg0, %c0_i32 : i32
    %1 = arith.extui %0 : i1 to i32
    %c0_i32_0 = arith.constant 0 : i32
    %2 = arith.cmpi ne, %1, %c0_i32_0 : i32
    scf.if %2 {
      %cst_151 = arith.constant 0.000000e+00 : bf16
      %256 = vector.broadcast %cst_151 : bf16 to vector<18x18x32xbf16>
      %c0_152 = arith.constant 0 : index
      %c0_153 = arith.constant 0 : index
      %c0_154 = arith.constant 0 : index
      %257 = vector.load %arg10[%c0_152, %c0_153, %c0_154] : memref<18x18x32xbf16, #tpu.memory_space<vmem>>, vector<18x18x32xbf16>
      tpu.vector_store %arg10[%c0_152, %c0_153, %c0_154], %256 {strides = array<i32>} : memref<18x18x32xbf16, #tpu.memory_space<vmem>>, vector<18x18x32xbf16>,
    } else {
    }
    %c0 = arith.constant 0 : index
    %c0_1 = arith.constant 0 : index
    %c0_2 = arith.constant 0 : index
    %c0_3 = arith.constant 0 : index
    %3 = vector.load %arg1[%c0, %c0_1, %c0_2, %c0_3] : memref<1x16x16x32xbf16, #tpu.memory_space<vmem>>, vector<1x16x16x32xbf16>
    %4 = vector.shape_cast %3 : vector<1x16x16x32xbf16> to vector<16x16x32xbf16>
    %c1 = arith.constant 1 : index
    %c1_4 = arith.constant 1 : index
    %c0_5 = arith.constant 0 : index
    %5 = vector.load %arg10[%c1, %c1_4, %c0_5] : memref<18x18x32xbf16, #tpu.memory_space<vmem>>, vector<16x16x32xbf16>
    tpu.vector_store %arg10[%c1, %c1_4, %c0_5], %4 {strides = array<i32>} : memref<18x18x32xbf16, #tpu.memory_space<vmem>>, vector<16x16x32xbf16>,
    %c0_6 = arith.constant 0 : index
    %c0_7 = arith.constant 0 : index
    %6 = vector.load %arg6[%c0_6, %c0_7] : memref<32x32xf32, #tpu.memory_space<vmem>>, vector<32x32xf32>
    %c0_8 = arith.constant 0 : index
    %c0_9 = arith.constant 0 : index
    %c0_10 = arith.constant 0 : index
    %7 = vector.load %arg10[%c0_8, %c0_9, %c0_10] : memref<18x18x32xbf16, #tpu.memory_space<vmem>>, vector<18x18x32xbf16>
    %cst = arith.constant 0.000000e+00 : f32
    %8 = vector.broadcast %cst : f32 to vector<256x32xf32>
    %9 = vector.extract_strided_slice %7 {offsets = [0, 0, 0], sizes = [16, 16, 32], strides = [1, 1, 1]} : vector<18x18x32xbf16> to vector<16x16x32xbf16>
    %10 = vector.shape_cast %9 : vector<16x16x32xbf16> to vector<256x32xbf16>
    %c0_11 = arith.constant 0 : index
    %c0_12 = arith.constant 0 : index
    %c0_13 = arith.constant 0 : index
    %11 = vector.load %arg2[%c0_11, %c0_12, %c0_13] : memref<18x32x32xbf16, #tpu.memory_space<vmem>>, vector<1x32x32xbf16>
    %12 = vector.shape_cast %11 : vector<1x32x32xbf16> to vector<32x32xbf16>
    %cst_14 = arith.constant dense<0.000000e+00> : vector<256x32xf32>
    %13 = tpu.matmul %10, %12, %cst_14 {dimension_numbers = #tpu.dot_dimension_numbers<[1], [0], [0], [1], [0, 0, 1, 1], [], []>} : vector<256x32xbf16>, vector<32x32xbf16>, vector<256x32xf32> -> vector<256x32xf32>
    %14 = arith.addf %8, %13 : vector<256x32xf32>
    %15 = vector.extract_strided_slice %7 {offsets = [0, 1, 0], sizes = [16, 16, 32], strides = [1, 1, 1]} : vector<18x18x32xbf16> to vector<16x16x32xbf16>
    %16 = vector.shape_cast %15 : vector<16x16x32xbf16> to vector<256x32xbf16>
    %c1_15 = arith.constant 1 : index
    %c0_16 = arith.constant 0 : index
    %c0_17 = arith.constant 0 : index
    %17 = vector.load %arg2[%c1_15, %c0_16, %c0_17] : memref<18x32x32xbf16, #tpu.memory_space<vmem>>, vector<1x32x32xbf16>
    %18 = vector.shape_cast %17 : vector<1x32x32xbf16> to vector<32x32xbf16>
    %cst_18 = arith.constant dense<0.000000e+00> : vector<256x32xf32>
    %19 = tpu.matmul %16, %18, %cst_18 {dimension_numbers = #tpu.dot_dimension_numbers<[1], [0], [0], [1], [0, 0, 1, 1], [], []>} : vector<256x32xbf16>, vector<32x32xbf16>, vector<256x32xf32> -> vector<256x32xf32>
    %20 = arith.addf %14, %19 : vector<256x32xf32>
    %21 = vector.extract_strided_slice %7 {offsets = [0, 2, 0], sizes = [16, 16, 32], strides = [1, 1, 1]} : vector<18x18x32xbf16> to vector<16x16x32xbf16>
    %22 = vector.shape_cast %21 : vector<16x16x32xbf16> to vector<256x32xbf16>
    %c2 = arith.constant 2 : index
    %c0_19 = arith.constant 0 : index
    %c0_20 = arith.constant 0 : index
    %23 = vector.load %arg2[%c2, %c0_19, %c0_20] : memref<18x32x32xbf16, #tpu.memory_space<vmem>>, vector<1x32x32xbf16>
    %24 = vector.shape_cast %23 : vector<1x32x32xbf16> to vector<32x32xbf16>
    %cst_21 = arith.constant dense<0.000000e+00> : vector<256x32xf32>
    %25 = tpu.matmul %22, %24, %cst_21 {dimension_numbers = #tpu.dot_dimension_numbers<[1], [0], [0], [1], [0, 0, 1, 1], [], []>} : vector<256x32xbf16>, vector<32x32xbf16>, vector<256x32xf32> -> vector<256x32xf32>
    %26 = arith.addf %20, %25 : vector<256x32xf32>
    %27 = vector.extract_strided_slice %7 {offsets = [1, 0, 0], sizes = [16, 16, 32], strides = [1, 1, 1]} : vector<18x18x32xbf16> to vector<16x16x32xbf16>
    %28 = vector.shape_cast %27 : vector<16x16x32xbf16> to vector<256x32xbf16>
    %c3 = arith.constant 3 : index
    %c0_22 = arith.constant 0 : index
    %c0_23 = arith.constant 0 : index
    %29 = vector.load %arg2[%c3, %c0_22, %c0_23] : memref<18x32x32xbf16, #tpu.memory_space<vmem>>, vector<1x32x32xbf16>
    %30 = vector.shape_cast %29 : vector<1x32x32xbf16> to vector<32x32xbf16>
    %cst_24 = arith.constant dense<0.000000e+00> : vector<256x32xf32>
    %31 = tpu.matmul %28, %30, %cst_24 {dimension_numbers = #tpu.dot_dimension_numbers<[1], [0], [0], [1], [0, 0, 1, 1], [], []>} : vector<256x32xbf16>, vector<32x32xbf16>, vector<256x32xf32> -> vector<256x32xf32>
    %32 = arith.addf %26, %31 : vector<256x32xf32>
    %33 = vector.extract_strided_slice %7 {offsets = [1, 1, 0], sizes = [16, 16, 32], strides = [1, 1, 1]} : vector<18x18x32xbf16> to vector<16x16x32xbf16>
    %34 = vector.shape_cast %33 : vector<16x16x32xbf16> to vector<256x32xbf16>
    %c4 = arith.constant 4 : index
    %c0_25 = arith.constant 0 : index
    %c0_26 = arith.constant 0 : index
    %35 = vector.load %arg2[%c4, %c0_25, %c0_26] : memref<18x32x32xbf16, #tpu.memory_space<vmem>>, vector<1x32x32xbf16>
    %36 = vector.shape_cast %35 : vector<1x32x32xbf16> to vector<32x32xbf16>
    %cst_27 = arith.constant dense<0.000000e+00> : vector<256x32xf32>
    %37 = tpu.matmul %34, %36, %cst_27 {dimension_numbers = #tpu.dot_dimension_numbers<[1], [0], [0], [1], [0, 0, 1, 1], [], []>} : vector<256x32xbf16>, vector<32x32xbf16>, vector<256x32xf32> -> vector<256x32xf32>
    %38 = arith.addf %32, %37 : vector<256x32xf32>
    %39 = vector.extract_strided_slice %7 {offsets = [1, 2, 0], sizes = [16, 16, 32], strides = [1, 1, 1]} : vector<18x18x32xbf16> to vector<16x16x32xbf16>
    %40 = vector.shape_cast %39 : vector<16x16x32xbf16> to vector<256x32xbf16>
    %c5 = arith.constant 5 : index
    %c0_28 = arith.constant 0 : index
    %c0_29 = arith.constant 0 : index
    %41 = vector.load %arg2[%c5, %c0_28, %c0_29] : memref<18x32x32xbf16, #tpu.memory_space<vmem>>, vector<1x32x32xbf16>
    %42 = vector.shape_cast %41 : vector<1x32x32xbf16> to vector<32x32xbf16>
    %cst_30 = arith.constant dense<0.000000e+00> : vector<256x32xf32>
    %43 = tpu.matmul %40, %42, %cst_30 {dimension_numbers = #tpu.dot_dimension_numbers<[1], [0], [0], [1], [0, 0, 1, 1], [], []>} : vector<256x32xbf16>, vector<32x32xbf16>, vector<256x32xf32> -> vector<256x32xf32>
    %44 = arith.addf %38, %43 : vector<256x32xf32>
    %45 = vector.extract_strided_slice %7 {offsets = [2, 0, 0], sizes = [16, 16, 32], strides = [1, 1, 1]} : vector<18x18x32xbf16> to vector<16x16x32xbf16>
    %46 = vector.shape_cast %45 : vector<16x16x32xbf16> to vector<256x32xbf16>
    %c6 = arith.constant 6 : index
    %c0_31 = arith.constant 0 : index
    %c0_32 = arith.constant 0 : index
    %47 = vector.load %arg2[%c6, %c0_31, %c0_32] : memref<18x32x32xbf16, #tpu.memory_space<vmem>>, vector<1x32x32xbf16>
    %48 = vector.shape_cast %47 : vector<1x32x32xbf16> to vector<32x32xbf16>
    %cst_33 = arith.constant dense<0.000000e+00> : vector<256x32xf32>
    %49 = tpu.matmul %46, %48, %cst_33 {dimension_numbers = #tpu.dot_dimension_numbers<[1], [0], [0], [1], [0, 0, 1, 1], [], []>} : vector<256x32xbf16>, vector<32x32xbf16>, vector<256x32xf32> -> vector<256x32xf32>
    %50 = arith.addf %44, %49 : vector<256x32xf32>
    %51 = vector.extract_strided_slice %7 {offsets = [2, 1, 0], sizes = [16, 16, 32], strides = [1, 1, 1]} : vector<18x18x32xbf16> to vector<16x16x32xbf16>
    %52 = vector.shape_cast %51 : vector<16x16x32xbf16> to vector<256x32xbf16>
    %c7 = arith.constant 7 : index
    %c0_34 = arith.constant 0 : index
    %c0_35 = arith.constant 0 : index
    %53 = vector.load %arg2[%c7, %c0_34, %c0_35] : memref<18x32x32xbf16, #tpu.memory_space<vmem>>, vector<1x32x32xbf16>
    %54 = vector.shape_cast %53 : vector<1x32x32xbf16> to vector<32x32xbf16>
    %cst_36 = arith.constant dense<0.000000e+00> : vector<256x32xf32>
    %55 = tpu.matmul %52, %54, %cst_36 {dimension_numbers = #tpu.dot_dimension_numbers<[1], [0], [0], [1], [0, 0, 1, 1], [], []>} : vector<256x32xbf16>, vector<32x32xbf16>, vector<256x32xf32> -> vector<256x32xf32>
    %56 = arith.addf %50, %55 : vector<256x32xf32>
    %57 = vector.extract_strided_slice %7 {offsets = [2, 2, 0], sizes = [16, 16, 32], strides = [1, 1, 1]} : vector<18x18x32xbf16> to vector<16x16x32xbf16>
    %58 = vector.shape_cast %57 : vector<16x16x32xbf16> to vector<256x32xbf16>
    %c8 = arith.constant 8 : index
    %c0_37 = arith.constant 0 : index
    %c0_38 = arith.constant 0 : index
    %59 = vector.load %arg2[%c8, %c0_37, %c0_38] : memref<18x32x32xbf16, #tpu.memory_space<vmem>>, vector<1x32x32xbf16>
    %60 = vector.shape_cast %59 : vector<1x32x32xbf16> to vector<32x32xbf16>
    %cst_39 = arith.constant dense<0.000000e+00> : vector<256x32xf32>
    %61 = tpu.matmul %58, %60, %cst_39 {dimension_numbers = #tpu.dot_dimension_numbers<[1], [0], [0], [1], [0, 0, 1, 1], [], []>} : vector<256x32xbf16>, vector<32x32xbf16>, vector<256x32xf32> -> vector<256x32xf32>
    %62 = arith.addf %56, %61 : vector<256x32xf32>
    %c0_40 = arith.constant 0 : index
    %c0_41 = arith.constant 0 : index
    %63 = vector.load %arg3[%c0_40, %c0_41] : memref<2x32xf32, #tpu.memory_space<vmem>>, vector<1x32xf32>
    %64 = vector.broadcast %63 : vector<1x32xf32> to vector<256x32xf32>
    %65 = arith.addf %62, %64 : vector<256x32xf32>
    %cst_42 = arith.constant dense<0.000000e+00> : vector<32xf32>
    %66 = vector.multi_reduction <add>, %65, %cst_42 [0] : vector<256x32xf32> to vector<32xf32>
    %67 = vector.shape_cast %66 : vector<32xf32> to vector<1x32xf32>
    %68 = arith.mulf %65, %65 : vector<256x32xf32>
    %cst_43 = arith.constant dense<0.000000e+00> : vector<32xf32>
    %69 = vector.multi_reduction <add>, %68, %cst_43 [0] : vector<256x32xf32> to vector<32xf32>
    %70 = vector.shape_cast %69 : vector<32xf32> to vector<1x32xf32>
    %71 = tpu.concatenate %67, %70 in 0 : vector<1x32xf32>, vector<1x32xf32> -> vector<2x32xf32>
    %cst_44 = arith.constant dense<0.000000e+00> : vector<2x32xf32>
    %72 = tpu.matmul %71, %6, %cst_44 {dimension_numbers = #tpu.dot_dimension_numbers<[1], [0], [0], [1], [0, 0, 1, 1], [], []>} : vector<2x32xf32>, vector<32x32xf32>, vector<2x32xf32> -> vector<2x32xf32>
    %73 = vector.extract_strided_slice %72 {offsets = [0, 0], sizes = [1, 32], strides = [1, 1]} : vector<2x32xf32> to vector<1x32xf32>
    %cst_45 = arith.constant 9.765625E-4 : f32
    %74 = vector.broadcast %cst_45 : f32 to vector<1x32xf32>
    %75 = arith.mulf %73, %74 : vector<1x32xf32>
    %76 = vector.extract_strided_slice %72 {offsets = [1, 0], sizes = [1, 32], strides = [1, 1]} : vector<2x32xf32> to vector<1x32xf32>
    %cst_46 = arith.constant 9.765625E-4 : f32
    %77 = vector.broadcast %cst_46 : f32 to vector<1x32xf32>
    %78 = arith.mulf %76, %77 : vector<1x32xf32>
    %79 = arith.mulf %75, %75 : vector<1x32xf32>
    %80 = arith.subf %78, %79 : vector<1x32xf32>
    %cst_47 = arith.constant 0.000000e+00 : f32
    %81 = vector.broadcast %cst_47 : f32 to vector<1x32xf32>
    %82 = arith.maximumf %80, %81 : vector<1x32xf32>
    %83 = vector.broadcast %75 : vector<1x32xf32> to vector<256x32xf32>
    %84 = arith.subf %65, %83 : vector<256x32xf32>
    %cst_48 = arith.constant 9.99999974E-6 : f32
    %85 = vector.broadcast %cst_48 : f32 to vector<1x32xf32>
    %86 = arith.addf %82, %85 : vector<1x32xf32>
    %87 = math.rsqrt %86 : vector<1x32xf32>
    %88 = vector.broadcast %87 : vector<1x32xf32> to vector<256x32xf32>
    %89 = arith.mulf %84, %88 : vector<256x32xf32>
    %c0_49 = arith.constant 0 : index
    %c0_50 = arith.constant 0 : index
    %90 = vector.load %arg4[%c0_49, %c0_50] : memref<2x32xf32, #tpu.memory_space<vmem>>, vector<1x32xf32>
    %91 = vector.broadcast %90 : vector<1x32xf32> to vector<256x32xf32>
    %92 = arith.mulf %89, %91 : vector<256x32xf32>
    %c0_51 = arith.constant 0 : index
    %c0_52 = arith.constant 0 : index
    %93 = vector.load %arg5[%c0_51, %c0_52] : memref<2x32xf32, #tpu.memory_space<vmem>>, vector<1x32xf32>
    %94 = vector.broadcast %93 : vector<1x32xf32> to vector<256x32xf32>
    %95 = arith.addf %92, %94 : vector<256x32xf32>
    %cst_53 = arith.constant 0.000000e+00 : f32
    %96 = vector.broadcast %cst_53 : f32 to vector<256x32xf32>
    %97 = arith.maximumf %95, %96 : vector<256x32xf32>
    %98 = vector.shape_cast %97 : vector<256x32xf32> to vector<16x16x32xf32>
    %99 = arith.truncf %98 : vector<16x16x32xf32> to vector<16x16x32xbf16>
    %c1_54 = arith.constant 1 : index
    %c1_55 = arith.constant 1 : index
    %c0_56 = arith.constant 0 : index
    %100 = vector.load %arg10[%c1_54, %c1_55, %c0_56] : memref<18x18x32xbf16, #tpu.memory_space<vmem>>, vector<16x16x32xbf16>
    tpu.vector_store %arg10[%c1_54, %c1_55, %c0_56], %99 {strides = array<i32>} : memref<18x18x32xbf16, #tpu.memory_space<vmem>>, vector<16x16x32xbf16>,
    %c0_57 = arith.constant 0 : index
    %c0_58 = arith.constant 0 : index
    %c0_59 = arith.constant 0 : index
    %101 = vector.load %arg10[%c0_57, %c0_58, %c0_59] : memref<18x18x32xbf16, #tpu.memory_space<vmem>>, vector<18x18x32xbf16>
    %cst_60 = arith.constant 0.000000e+00 : f32
    %102 = vector.broadcast %cst_60 : f32 to vector<256x32xf32>
    %103 = vector.extract_strided_slice %101 {offsets = [0, 0, 0], sizes = [16, 16, 32], strides = [1, 1, 1]} : vector<18x18x32xbf16> to vector<16x16x32xbf16>
    %104 = vector.shape_cast %103 : vector<16x16x32xbf16> to vector<256x32xbf16>
    %c9 = arith.constant 9 : index
    %c0_61 = arith.constant 0 : index
    %c0_62 = arith.constant 0 : index
    %105 = vector.load %arg2[%c9, %c0_61, %c0_62] : memref<18x32x32xbf16, #tpu.memory_space<vmem>>, vector<1x32x32xbf16>
    %106 = vector.shape_cast %105 : vector<1x32x32xbf16> to vector<32x32xbf16>
    %cst_63 = arith.constant dense<0.000000e+00> : vector<256x32xf32>
    %107 = tpu.matmul %104, %106, %cst_63 {dimension_numbers = #tpu.dot_dimension_numbers<[1], [0], [0], [1], [0, 0, 1, 1], [], []>} : vector<256x32xbf16>, vector<32x32xbf16>, vector<256x32xf32> -> vector<256x32xf32>
    %108 = arith.addf %102, %107 : vector<256x32xf32>
    %109 = vector.extract_strided_slice %101 {offsets = [0, 1, 0], sizes = [16, 16, 32], strides = [1, 1, 1]} : vector<18x18x32xbf16> to vector<16x16x32xbf16>
    %110 = vector.shape_cast %109 : vector<16x16x32xbf16> to vector<256x32xbf16>
    %c10 = arith.constant 10 : index
    %c0_64 = arith.constant 0 : index
    %c0_65 = arith.constant 0 : index
    %111 = vector.load %arg2[%c10, %c0_64, %c0_65] : memref<18x32x32xbf16, #tpu.memory_space<vmem>>, vector<1x32x32xbf16>
    %112 = vector.shape_cast %111 : vector<1x32x32xbf16> to vector<32x32xbf16>
    %cst_66 = arith.constant dense<0.000000e+00> : vector<256x32xf32>
    %113 = tpu.matmul %110, %112, %cst_66 {dimension_numbers = #tpu.dot_dimension_numbers<[1], [0], [0], [1], [0, 0, 1, 1], [], []>} : vector<256x32xbf16>, vector<32x32xbf16>, vector<256x32xf32> -> vector<256x32xf32>
    %114 = arith.addf %108, %113 : vector<256x32xf32>
    %115 = vector.extract_strided_slice %101 {offsets = [0, 2, 0], sizes = [16, 16, 32], strides = [1, 1, 1]} : vector<18x18x32xbf16> to vector<16x16x32xbf16>
    %116 = vector.shape_cast %115 : vector<16x16x32xbf16> to vector<256x32xbf16>
    %c11 = arith.constant 11 : index
    %c0_67 = arith.constant 0 : index
    %c0_68 = arith.constant 0 : index
    %117 = vector.load %arg2[%c11, %c0_67, %c0_68] : memref<18x32x32xbf16, #tpu.memory_space<vmem>>, vector<1x32x32xbf16>
    %118 = vector.shape_cast %117 : vector<1x32x32xbf16> to vector<32x32xbf16>
    %cst_69 = arith.constant dense<0.000000e+00> : vector<256x32xf32>
    %119 = tpu.matmul %116, %118, %cst_69 {dimension_numbers = #tpu.dot_dimension_numbers<[1], [0], [0], [1], [0, 0, 1, 1], [], []>} : vector<256x32xbf16>, vector<32x32xbf16>, vector<256x32xf32> -> vector<256x32xf32>
    %120 = arith.addf %114, %119 : vector<256x32xf32>
    %121 = vector.extract_strided_slice %101 {offsets = [1, 0, 0], sizes = [16, 16, 32], strides = [1, 1, 1]} : vector<18x18x32xbf16> to vector<16x16x32xbf16>
    %122 = vector.shape_cast %121 : vector<16x16x32xbf16> to vector<256x32xbf16>
    %c12 = arith.constant 12 : index
    %c0_70 = arith.constant 0 : index
    %c0_71 = arith.constant 0 : index
    %123 = vector.load %arg2[%c12, %c0_70, %c0_71] : memref<18x32x32xbf16, #tpu.memory_space<vmem>>, vector<1x32x32xbf16>
    %124 = vector.shape_cast %123 : vector<1x32x32xbf16> to vector<32x32xbf16>
    %cst_72 = arith.constant dense<0.000000e+00> : vector<256x32xf32>
    %125 = tpu.matmul %122, %124, %cst_72 {dimension_numbers = #tpu.dot_dimension_numbers<[1], [0], [0], [1], [0, 0, 1, 1], [], []>} : vector<256x32xbf16>, vector<32x32xbf16>, vector<256x32xf32> -> vector<256x32xf32>
    %126 = arith.addf %120, %125 : vector<256x32xf32>
    %127 = vector.extract_strided_slice %101 {offsets = [1, 1, 0], sizes = [16, 16, 32], strides = [1, 1, 1]} : vector<18x18x32xbf16> to vector<16x16x32xbf16>
    %128 = vector.shape_cast %127 : vector<16x16x32xbf16> to vector<256x32xbf16>
    %c13 = arith.constant 13 : index
    %c0_73 = arith.constant 0 : index
    %c0_74 = arith.constant 0 : index
    %129 = vector.load %arg2[%c13, %c0_73, %c0_74] : memref<18x32x32xbf16, #tpu.memory_space<vmem>>, vector<1x32x32xbf16>
    %130 = vector.shape_cast %129 : vector<1x32x32xbf16> to vector<32x32xbf16>
    %cst_75 = arith.constant dense<0.000000e+00> : vector<256x32xf32>
    %131 = tpu.matmul %128, %130, %cst_75 {dimension_numbers = #tpu.dot_dimension_numbers<[1], [0], [0], [1], [0, 0, 1, 1], [], []>} : vector<256x32xbf16>, vector<32x32xbf16>, vector<256x32xf32> -> vector<256x32xf32>
    %132 = arith.addf %126, %131 : vector<256x32xf32>
    %133 = vector.extract_strided_slice %101 {offsets = [1, 2, 0], sizes = [16, 16, 32], strides = [1, 1, 1]} : vector<18x18x32xbf16> to vector<16x16x32xbf16>
    %134 = vector.shape_cast %133 : vector<16x16x32xbf16> to vector<256x32xbf16>
    %c14 = arith.constant 14 : index
    %c0_76 = arith.constant 0 : index
    %c0_77 = arith.constant 0 : index
    %135 = vector.load %arg2[%c14, %c0_76, %c0_77] : memref<18x32x32xbf16, #tpu.memory_space<vmem>>, vector<1x32x32xbf16>
    %136 = vector.shape_cast %135 : vector<1x32x32xbf16> to vector<32x32xbf16>
    %cst_78 = arith.constant dense<0.000000e+00> : vector<256x32xf32>
    %137 = tpu.matmul %134, %136, %cst_78 {dimension_numbers = #tpu.dot_dimension_numbers<[1], [0], [0], [1], [0, 0, 1, 1], [], []>} : vector<256x32xbf16>, vector<32x32xbf16>, vector<256x32xf32> -> vector<256x32xf32>
    %138 = arith.addf %132, %137 : vector<256x32xf32>
    %139 = vector.extract_strided_slice %101 {offsets = [2, 0, 0], sizes = [16, 16, 32], strides = [1, 1, 1]} : vector<18x18x32xbf16> to vector<16x16x32xbf16>
    %140 = vector.shape_cast %139 : vector<16x16x32xbf16> to vector<256x32xbf16>
    %c15 = arith.constant 15 : index
    %c0_79 = arith.constant 0 : index
    %c0_80 = arith.constant 0 : index
    %141 = vector.load %arg2[%c15, %c0_79, %c0_80] : memref<18x32x32xbf16, #tpu.memory_space<vmem>>, vector<1x32x32xbf16>
    %142 = vector.shape_cast %141 : vector<1x32x32xbf16> to vector<32x32xbf16>
    %cst_81 = arith.constant dense<0.000000e+00> : vector<256x32xf32>
    %143 = tpu.matmul %140, %142, %cst_81 {dimension_numbers = #tpu.dot_dimension_numbers<[1], [0], [0], [1], [0, 0, 1, 1], [], []>} : vector<256x32xbf16>, vector<32x32xbf16>, vector<256x32xf32> -> vector<256x32xf32>
    %144 = arith.addf %138, %143 : vector<256x32xf32>
    %145 = vector.extract_strided_slice %101 {offsets = [2, 1, 0], sizes = [16, 16, 32], strides = [1, 1, 1]} : vector<18x18x32xbf16> to vector<16x16x32xbf16>
    %146 = vector.shape_cast %145 : vector<16x16x32xbf16> to vector<256x32xbf16>
    %c16 = arith.constant 16 : index
    %c0_82 = arith.constant 0 : index
    %c0_83 = arith.constant 0 : index
    %147 = vector.load %arg2[%c16, %c0_82, %c0_83] : memref<18x32x32xbf16, #tpu.memory_space<vmem>>, vector<1x32x32xbf16>
    %148 = vector.shape_cast %147 : vector<1x32x32xbf16> to vector<32x32xbf16>
    %cst_84 = arith.constant dense<0.000000e+00> : vector<256x32xf32>
    %149 = tpu.matmul %146, %148, %cst_84 {dimension_numbers = #tpu.dot_dimension_numbers<[1], [0], [0], [1], [0, 0, 1, 1], [], []>} : vector<256x32xbf16>, vector<32x32xbf16>, vector<256x32xf32> -> vector<256x32xf32>
    %150 = arith.addf %144, %149 : vector<256x32xf32>
    %151 = vector.extract_strided_slice %101 {offsets = [2, 2, 0], sizes = [16, 16, 32], strides = [1, 1, 1]} : vector<18x18x32xbf16> to vector<16x16x32xbf16>
    %152 = vector.shape_cast %151 : vector<16x16x32xbf16> to vector<256x32xbf16>
    %c17 = arith.constant 17 : index
    %c0_85 = arith.constant 0 : index
    %c0_86 = arith.constant 0 : index
    %153 = vector.load %arg2[%c17, %c0_85, %c0_86] : memref<18x32x32xbf16, #tpu.memory_space<vmem>>, vector<1x32x32xbf16>
    %154 = vector.shape_cast %153 : vector<1x32x32xbf16> to vector<32x32xbf16>
    %cst_87 = arith.constant dense<0.000000e+00> : vector<256x32xf32>
    %155 = tpu.matmul %152, %154, %cst_87 {dimension_numbers = #tpu.dot_dimension_numbers<[1], [0], [0], [1], [0, 0, 1, 1], [], []>} : vector<256x32xbf16>, vector<32x32xbf16>, vector<256x32xf32> -> vector<256x32xf32>
    %156 = arith.addf %150, %155 : vector<256x32xf32>
    %c1_88 = arith.constant 1 : index
    %c0_89 = arith.constant 0 : index
    %157 = vector.load %arg3[%c1_88, %c0_89] : memref<2x32xf32, #tpu.memory_space<vmem>>, vector<1x32xf32>
    %158 = vector.broadcast %157 : vector<1x32xf32> to vector<256x32xf32>
    %159 = arith.addf %156, %158 : vector<256x32xf32>
    %cst_90 = arith.constant dense<0.000000e+00> : vector<32xf32>
    %160 = vector.multi_reduction <add>, %159, %cst_90 [0] : vector<256x32xf32> to vector<32xf32>
    %161 = vector.shape_cast %160 : vector<32xf32> to vector<1x32xf32>
    %162 = arith.mulf %159, %159 : vector<256x32xf32>
    %cst_91 = arith.constant dense<0.000000e+00> : vector<32xf32>
    %163 = vector.multi_reduction <add>, %162, %cst_91 [0] : vector<256x32xf32> to vector<32xf32>
    %164 = vector.shape_cast %163 : vector<32xf32> to vector<1x32xf32>
    %165 = tpu.concatenate %161, %164 in 0 : vector<1x32xf32>, vector<1x32xf32> -> vector<2x32xf32>
    %cst_92 = arith.constant dense<0.000000e+00> : vector<2x32xf32>
    %166 = tpu.matmul %165, %6, %cst_92 {dimension_numbers = #tpu.dot_dimension_numbers<[1], [0], [0], [1], [0, 0, 1, 1], [], []>} : vector<2x32xf32>, vector<32x32xf32>, vector<2x32xf32> -> vector<2x32xf32>
    %167 = vector.extract_strided_slice %166 {offsets = [0, 0], sizes = [1, 32], strides = [1, 1]} : vector<2x32xf32> to vector<1x32xf32>
    %cst_93 = arith.constant 9.765625E-4 : f32
    %168 = vector.broadcast %cst_93 : f32 to vector<1x32xf32>
    %169 = arith.mulf %167, %168 : vector<1x32xf32>
    %170 = vector.extract_strided_slice %166 {offsets = [1, 0], sizes = [1, 32], strides = [1, 1]} : vector<2x32xf32> to vector<1x32xf32>
    %cst_94 = arith.constant 9.765625E-4 : f32
    %171 = vector.broadcast %cst_94 : f32 to vector<1x32xf32>
    %172 = arith.mulf %170, %171 : vector<1x32xf32>
    %173 = arith.mulf %169, %169 : vector<1x32xf32>
    %174 = arith.subf %172, %173 : vector<1x32xf32>
    %cst_95 = arith.constant 0.000000e+00 : f32
    %175 = vector.broadcast %cst_95 : f32 to vector<1x32xf32>
    %176 = arith.maximumf %174, %175 : vector<1x32xf32>
    %177 = vector.broadcast %169 : vector<1x32xf32> to vector<256x32xf32>
    %178 = arith.subf %159, %177 : vector<256x32xf32>
    %cst_96 = arith.constant 9.99999974E-6 : f32
    %179 = vector.broadcast %cst_96 : f32 to vector<1x32xf32>
    %180 = arith.addf %176, %179 : vector<1x32xf32>
    %181 = math.rsqrt %180 : vector<1x32xf32>
    %182 = vector.broadcast %181 : vector<1x32xf32> to vector<256x32xf32>
    %183 = arith.mulf %178, %182 : vector<256x32xf32>
    %c1_97 = arith.constant 1 : index
    %c0_98 = arith.constant 0 : index
    %184 = vector.load %arg4[%c1_97, %c0_98] : memref<2x32xf32, #tpu.memory_space<vmem>>, vector<1x32xf32>
    %185 = vector.broadcast %184 : vector<1x32xf32> to vector<256x32xf32>
    %186 = arith.mulf %183, %185 : vector<256x32xf32>
    %c1_99 = arith.constant 1 : index
    %c0_100 = arith.constant 0 : index
    %187 = vector.load %arg5[%c1_99, %c0_100] : memref<2x32xf32, #tpu.memory_space<vmem>>, vector<1x32xf32>
    %188 = vector.broadcast %187 : vector<1x32xf32> to vector<256x32xf32>
    %189 = arith.addf %186, %188 : vector<256x32xf32>
    %cst_101 = arith.constant 0.000000e+00 : f32
    %190 = vector.broadcast %cst_101 : f32 to vector<256x32xf32>
    %191 = arith.maximumf %189, %190 : vector<256x32xf32>
    %192 = vector.shape_cast %191 : vector<256x32xf32> to vector<16x16x32xf32>
    %193 = arith.truncf %192 : vector<16x16x32xf32> to vector<16x16x32xbf16>
    %c1_102 = arith.constant 1 : index
    %c1_103 = arith.constant 1 : index
    %c0_104 = arith.constant 0 : index
    %194 = vector.load %arg10[%c1_102, %c1_103, %c0_104] : memref<18x18x32xbf16, #tpu.memory_space<vmem>>, vector<16x16x32xbf16>
    tpu.vector_store %arg10[%c1_102, %c1_103, %c0_104], %193 {strides = array<i32>} : memref<18x18x32xbf16, #tpu.memory_space<vmem>>, vector<16x16x32xbf16>,
    %c0_105 = arith.constant 0 : index
    %c0_106 = arith.constant 0 : index
    %c0_107 = arith.constant 0 : index
    %195 = vector.load %arg10[%c0_105, %c0_106, %c0_107] : memref<18x18x32xbf16, #tpu.memory_space<vmem>>, vector<18x18x32xbf16>
    %cst_108 = arith.constant 0.000000e+00 : f32
    %196 = vector.broadcast %cst_108 : f32 to vector<256x16xf32>
    %197 = vector.extract_strided_slice %195 {offsets = [0, 0, 0], sizes = [16, 16, 32], strides = [1, 1, 1]} : vector<18x18x32xbf16> to vector<16x16x32xbf16>
    %198 = vector.shape_cast %197 : vector<16x16x32xbf16> to vector<256x32xbf16>
    %c0_109 = arith.constant 0 : index
    %c0_110 = arith.constant 0 : index
    %c0_111 = arith.constant 0 : index
    %199 = vector.load %arg7[%c0_109, %c0_110, %c0_111] : memref<9x32x16xbf16, #tpu.memory_space<vmem>>, vector<1x32x16xbf16>
    %200 = vector.shape_cast %199 : vector<1x32x16xbf16> to vector<32x16xbf16>
    %cst_112 = arith.constant dense<0.000000e+00> : vector<256x16xf32>
    %201 = tpu.matmul %198, %200, %cst_112 {dimension_numbers = #tpu.dot_dimension_numbers<[1], [0], [0], [1], [0, 0, 1, 1], [], []>} : vector<256x32xbf16>, vector<32x16xbf16>, vector<256x16xf32> -> vector<256x16xf32>
    %202 = arith.addf %196, %201 : vector<256x16xf32>
    %203 = vector.extract_strided_slice %195 {offsets = [0, 1, 0], sizes = [16, 16, 32], strides = [1, 1, 1]} : vector<18x18x32xbf16> to vector<16x16x32xbf16>
    %204 = vector.shape_cast %203 : vector<16x16x32xbf16> to vector<256x32xbf16>
    %c1_113 = arith.constant 1 : index
    %c0_114 = arith.constant 0 : index
    %c0_115 = arith.constant 0 : index
    %205 = vector.load %arg7[%c1_113, %c0_114, %c0_115] : memref<9x32x16xbf16, #tpu.memory_space<vmem>>, vector<1x32x16xbf16>
    %206 = vector.shape_cast %205 : vector<1x32x16xbf16> to vector<32x16xbf16>
    %cst_116 = arith.constant dense<0.000000e+00> : vector<256x16xf32>
    %207 = tpu.matmul %204, %206, %cst_116 {dimension_numbers = #tpu.dot_dimension_numbers<[1], [0], [0], [1], [0, 0, 1, 1], [], []>} : vector<256x32xbf16>, vector<32x16xbf16>, vector<256x16xf32> -> vector<256x16xf32>
    %208 = arith.addf %202, %207 : vector<256x16xf32>
    %209 = vector.extract_strided_slice %195 {offsets = [0, 2, 0], sizes = [16, 16, 32], strides = [1, 1, 1]} : vector<18x18x32xbf16> to vector<16x16x32xbf16>
    %210 = vector.shape_cast %209 : vector<16x16x32xbf16> to vector<256x32xbf16>
    %c2_117 = arith.constant 2 : index
    %c0_118 = arith.constant 0 : index
    %c0_119 = arith.constant 0 : index
    %211 = vector.load %arg7[%c2_117, %c0_118, %c0_119] : memref<9x32x16xbf16, #tpu.memory_space<vmem>>, vector<1x32x16xbf16>
    %212 = vector.shape_cast %211 : vector<1x32x16xbf16> to vector<32x16xbf16>
    %cst_120 = arith.constant dense<0.000000e+00> : vector<256x16xf32>
    %213 = tpu.matmul %210, %212, %cst_120 {dimension_numbers = #tpu.dot_dimension_numbers<[1], [0], [0], [1], [0, 0, 1, 1], [], []>} : vector<256x32xbf16>, vector<32x16xbf16>, vector<256x16xf32> -> vector<256x16xf32>
    %214 = arith.addf %208, %213 : vector<256x16xf32>
    %215 = vector.extract_strided_slice %195 {offsets = [1, 0, 0], sizes = [16, 16, 32], strides = [1, 1, 1]} : vector<18x18x32xbf16> to vector<16x16x32xbf16>
    %216 = vector.shape_cast %215 : vector<16x16x32xbf16> to vector<256x32xbf16>
    %c3_121 = arith.constant 3 : index
    %c0_122 = arith.constant 0 : index
    %c0_123 = arith.constant 0 : index
    %217 = vector.load %arg7[%c3_121, %c0_122, %c0_123] : memref<9x32x16xbf16, #tpu.memory_space<vmem>>, vector<1x32x16xbf16>
    %218 = vector.shape_cast %217 : vector<1x32x16xbf16> to vector<32x16xbf16>
    %cst_124 = arith.constant dense<0.000000e+00> : vector<256x16xf32>
    %219 = tpu.matmul %216, %218, %cst_124 {dimension_numbers = #tpu.dot_dimension_numbers<[1], [0], [0], [1], [0, 0, 1, 1], [], []>} : vector<256x32xbf16>, vector<32x16xbf16>, vector<256x16xf32> -> vector<256x16xf32>
    %220 = arith.addf %214, %219 : vector<256x16xf32>
    %221 = vector.extract_strided_slice %195 {offsets = [1, 1, 0], sizes = [16, 16, 32], strides = [1, 1, 1]} : vector<18x18x32xbf16> to vector<16x16x32xbf16>
    %222 = vector.shape_cast %221 : vector<16x16x32xbf16> to vector<256x32xbf16>
    %c4_125 = arith.constant 4 : index
    %c0_126 = arith.constant 0 : index
    %c0_127 = arith.constant 0 : index
    %223 = vector.load %arg7[%c4_125, %c0_126, %c0_127] : memref<9x32x16xbf16, #tpu.memory_space<vmem>>, vector<1x32x16xbf16>
    %224 = vector.shape_cast %223 : vector<1x32x16xbf16> to vector<32x16xbf16>
    %cst_128 = arith.constant dense<0.000000e+00> : vector<256x16xf32>
    %225 = tpu.matmul %222, %224, %cst_128 {dimension_numbers = #tpu.dot_dimension_numbers<[1], [0], [0], [1], [0, 0, 1, 1], [], []>} : vector<256x32xbf16>, vector<32x16xbf16>, vector<256x16xf32> -> vector<256x16xf32>
    %226 = arith.addf %220, %225 : vector<256x16xf32>
    %227 = vector.extract_strided_slice %195 {offsets = [1, 2, 0], sizes = [16, 16, 32], strides = [1, 1, 1]} : vector<18x18x32xbf16> to vector<16x16x32xbf16>
    %228 = vector.shape_cast %227 : vector<16x16x32xbf16> to vector<256x32xbf16>
    %c5_129 = arith.constant 5 : index
    %c0_130 = arith.constant 0 : index
    %c0_131 = arith.constant 0 : index
    %229 = vector.load %arg7[%c5_129, %c0_130, %c0_131] : memref<9x32x16xbf16, #tpu.memory_space<vmem>>, vector<1x32x16xbf16>
    %230 = vector.shape_cast %229 : vector<1x32x16xbf16> to vector<32x16xbf16>
    %cst_132 = arith.constant dense<0.000000e+00> : vector<256x16xf32>
    %231 = tpu.matmul %228, %230, %cst_132 {dimension_numbers = #tpu.dot_dimension_numbers<[1], [0], [0], [1], [0, 0, 1, 1], [], []>} : vector<256x32xbf16>, vector<32x16xbf16>, vector<256x16xf32> -> vector<256x16xf32>
    %232 = arith.addf %226, %231 : vector<256x16xf32>
    %233 = vector.extract_strided_slice %195 {offsets = [2, 0, 0], sizes = [16, 16, 32], strides = [1, 1, 1]} : vector<18x18x32xbf16> to vector<16x16x32xbf16>
    %234 = vector.shape_cast %233 : vector<16x16x32xbf16> to vector<256x32xbf16>
    %c6_133 = arith.constant 6 : index
    %c0_134 = arith.constant 0 : index
    %c0_135 = arith.constant 0 : index
    %235 = vector.load %arg7[%c6_133, %c0_134, %c0_135] : memref<9x32x16xbf16, #tpu.memory_space<vmem>>, vector<1x32x16xbf16>
    %236 = vector.shape_cast %235 : vector<1x32x16xbf16> to vector<32x16xbf16>
    %cst_136 = arith.constant dense<0.000000e+00> : vector<256x16xf32>
    %237 = tpu.matmul %234, %236, %cst_136 {dimension_numbers = #tpu.dot_dimension_numbers<[1], [0], [0], [1], [0, 0, 1, 1], [], []>} : vector<256x32xbf16>, vector<32x16xbf16>, vector<256x16xf32> -> vector<256x16xf32>
    %238 = arith.addf %232, %237 : vector<256x16xf32>
    %239 = vector.extract_strided_slice %195 {offsets = [2, 1, 0], sizes = [16, 16, 32], strides = [1, 1, 1]} : vector<18x18x32xbf16> to vector<16x16x32xbf16>
    %240 = vector.shape_cast %239 : vector<16x16x32xbf16> to vector<256x32xbf16>
    %c7_137 = arith.constant 7 : index
    %c0_138 = arith.constant 0 : index
    %c0_139 = arith.constant 0 : index
    %241 = vector.load %arg7[%c7_137, %c0_138, %c0_139] : memref<9x32x16xbf16, #tpu.memory_space<vmem>>, vector<1x32x16xbf16>
    %242 = vector.shape_cast %241 : vector<1x32x16xbf16> to vector<32x16xbf16>
    %cst_140 = arith.constant dense<0.000000e+00> : vector<256x16xf32>
    %243 = tpu.matmul %240, %242, %cst_140 {dimension_numbers = #tpu.dot_dimension_numbers<[1], [0], [0], [1], [0, 0, 1, 1], [], []>} : vector<256x32xbf16>, vector<32x16xbf16>, vector<256x16xf32> -> vector<256x16xf32>
    %244 = arith.addf %238, %243 : vector<256x16xf32>
    %245 = vector.extract_strided_slice %195 {offsets = [2, 2, 0], sizes = [16, 16, 32], strides = [1, 1, 1]} : vector<18x18x32xbf16> to vector<16x16x32xbf16>
    %246 = vector.shape_cast %245 : vector<16x16x32xbf16> to vector<256x32xbf16>
    %c8_141 = arith.constant 8 : index
    %c0_142 = arith.constant 0 : index
    %c0_143 = arith.constant 0 : index
    %247 = vector.load %arg7[%c8_141, %c0_142, %c0_143] : memref<9x32x16xbf16, #tpu.memory_space<vmem>>, vector<1x32x16xbf16>
    %248 = vector.shape_cast %247 : vector<1x32x16xbf16> to vector<32x16xbf16>
    %cst_144 = arith.constant dense<0.000000e+00> : vector<256x16xf32>
    %249 = tpu.matmul %246, %248, %cst_144 {dimension_numbers = #tpu.dot_dimension_numbers<[1], [0], [0], [1], [0, 0, 1, 1], [], []>} : vector<256x32xbf16>, vector<32x16xbf16>, vector<256x16xf32> -> vector<256x16xf32>
    %250 = arith.addf %244, %249 : vector<256x16xf32>
    %c0_145 = arith.constant 0 : index
    %c0_146 = arith.constant 0 : index
    %251 = vector.load %arg8[%c0_145, %c0_146] : memref<1x16xf32, #tpu.memory_space<vmem>>, vector<1x16xf32>
    %252 = vector.broadcast %251 : vector<1x16xf32> to vector<256x16xf32>
    %253 = arith.addf %250, %252 : vector<256x16xf32>
    %254 = vector.shape_cast %253 : vector<256x16xf32> to vector<1x16x16x16xf32>
    %c0_147 = arith.constant 0 : index
    %c0_148 = arith.constant 0 : index
    %c0_149 = arith.constant 0 : index
    %c0_150 = arith.constant 0 : index
    %255 = vector.load %arg9[%c0_147, %c0_148, %c0_149, %c0_150] : memref<1x16x16x16xf32, #tpu.memory_space<vmem>>, vector<1x16x16x16xf32>
    tpu.vector_store %arg9[%c0_147, %c0_148, %c0_149, %c0_150], %254 {strides = array<i32>} : memref<1x16x16x16xf32, #tpu.memory_space<vmem>>, vector<1x16x16x16xf32>,
    return
  }
  func.func @transform_0(%arg0: i32) -> (i32, i32, i32, i32) {
    %c0_i32 = arith.constant 0 : i32
    %c0_i32_0 = arith.constant 0 : i32
    %c0_i32_1 = arith.constant 0 : i32
    %c0_i32_2 = arith.constant 0 : i32
    return %arg0, %c0_i32, %c0_i32_0, %c0_i32_1 : i32, i32, i32, i32
  }
  func.func @transform_1(%arg0: i32) -> (i32, i32, i32) {
    %c0_i32 = arith.constant 0 : i32
    %c0_i32_0 = arith.constant 0 : i32
    %c0_i32_1 = arith.constant 0 : i32
    %c0_i32_2 = arith.constant 0 : i32
    return %c0_i32, %c0_i32_0, %c0_i32_1 : i32, i32, i32
  }
  func.func @transform_2(%arg0: i32) -> (i32, i32) {
    %c0_i32 = arith.constant 0 : i32
    %c0_i32_0 = arith.constant 0 : i32
    %c0_i32_1 = arith.constant 0 : i32
    return %c0_i32, %c0_i32_0 : i32, i32
  }
  func.func @transform_3(%arg0: i32) -> (i32, i32) {
    %c0_i32 = arith.constant 0 : i32
    %c0_i32_0 = arith.constant 0 : i32
    %c0_i32_1 = arith.constant 0 : i32
    return %c0_i32, %c0_i32_0 : i32, i32
  }
  func.func @transform_4(%arg0: i32) -> (i32, i32) {
    %c0_i32 = arith.constant 0 : i32
    %c0_i32_0 = arith.constant 0 : i32
    %c0_i32_1 = arith.constant 0 : i32
    return %c0_i32, %c0_i32_0 : i32, i32
  }
  func.func @transform_5(%arg0: i32) -> (i32, i32) {
    %c0_i32 = arith.constant 0 : i32
    %c0_i32_0 = arith.constant 0 : i32
    %c0_i32_1 = arith.constant 0 : i32
    return %c0_i32, %c0_i32_0 : i32, i32
  }
  func.func @transform_6(%arg0: i32) -> (i32, i32, i32) {
    %c0_i32 = arith.constant 0 : i32
    %c0_i32_0 = arith.constant 0 : i32
    %c0_i32_1 = arith.constant 0 : i32
    %c0_i32_2 = arith.constant 0 : i32
    return %c0_i32, %c0_i32_0, %c0_i32_1 : i32, i32, i32
  }
  func.func @transform_7(%arg0: i32) -> (i32, i32) {
    %c0_i32 = arith.constant 0 : i32
    %c0_i32_0 = arith.constant 0 : i32
    %c0_i32_1 = arith.constant 0 : i32
    return %c0_i32, %c0_i32_0 : i32, i32
  }
  func.func @transform_8(%arg0: i32) -> (i32, i32, i32, i32) {
    %c0_i32 = arith.constant 0 : i32
    %c0_i32_0 = arith.constant 0 : i32
    %c0_i32_1 = arith.constant 0 : i32
    %c0_i32_2 = arith.constant 0 : i32
    return %arg0, %c0_i32, %c0_i32_0, %c0_i32_1 : i32, i32, i32, i32
  }
}

</mosaic_0001>

<bundles_post_ra>
// kernel: tpu_custom_call.1
= control target key start
LH: loop header
LB: loop body
LE: loop exit
PB: predicated region body
PF: predicated region fallthrough
CT: control target
= control target key end

     0   :  { %s20879_s0 = inlined_call_operand.hbm [shape: bf16[2,16,16,32], index: 0, kind: input, shape index: {}]   ;;  %s20880_s1 = inlined_call_operand.hbm [shape: bf16[18,32,32], index: 1, kind: input, shape index: {}]   ;;  %s20881_s2 = inlined_call_operand.vmem [shape: f32[2,32], index: 2, kind: input, shape index: {}]   ;;  %s20882_s3 = inlined_call_operand.vmem [shape: f32[2,32], index: 3, kind: input, shape index: {}]   ;;  %s20883_s4 = inlined_call_operand.vmem [shape: f32[2,32], index: 4, kind: input, shape index: {}]   ;;  %s20884_s5 = inlined_call_operand.vmem [shape: f32[32,32], index: 5, kind: input, shape index: {}]   ;;  %s20885_s6 = inlined_call_operand.vmem [shape: bf16[9,32,16], index: 6, kind: input, shape index: {}]   ;;  %s20886_s7 = inlined_call_operand.vmem [shape: f32[1,16], index: 7, kind: input, shape index: {}]   ;;  %s20887_s8 = inlined_call_operand.hbm [shape: f32[2,16,16,16], index: 8, kind: output, shape index: {}]  }
   0x1   :  { %21071 = sst [smem:[#allocation68_spill]] %s20880_s1 }
   0x2   :  { %13 = vsyncpa [#allocation4], 0 }
   0x3   :  { %15 = vsyncpa [#allocation4 + $0x1], 0 }
   0x4   :  { %16 = vsyncpa [#allocation7], 0 }
   0x5   :  { %17 = vsyncpa [#allocation5], 0 }
   0x6   :  { %19 = vsyncpa [#allocation5 + $0x1], 0  ;;  %s14251_s27 = smov 0   ;;  %s14253_s28 = smov 0  }
   0x7   :  { %s14255_s29 = smov 0   ;;  %s14257_s30 = smov 0  }
   0x8 LB: > { %s14272_s9 = sadd.s32 4294967295, %s14194_s30   ;;  %s11493_s10 = sadd.s32 4294967294, %s14194_s30   ;;  %s14194_s30 = sphi %s14257_s30, %s21692_s30   ;;  %s14190_s29 = sphi %s14255_s29, %s21695_s29   ;;  %s14186_s28 = sphi %s14253_s28, %s21694_s28   ;;  %s14182_s27 = sphi %s14251_s27, %s21693_s27  }
   0x9   : > { %p45_p0 = scmp.ne.s32.totalorder %s14186_s28, %s14182_s27  ;;  %p20891_p1 = scmp.eq.s32.totalorder %s14272_s9, 0 }
   0xa   : > { %p222_p3 = scmp.eq.s32.totalorder %s11493_s10, 1  ;;  %p11494_p5 = scmp.ge.s32.totalorder %s14194_s30, 1 }
   0xb   : > { %p14281_p4 = por %p20891_p1, %p45_p0  ;;  %p229_p7 = scmp.lt.s32.totalorder %s14194_s30, 3 }
   0xc   : > { %p14286_p6 = por %p222_p3, %p45_p0  ;;  %s14196_s14 = smov [#allocation6]  }
   0xd   : > { %s21072_s11 = scalar_select %p14281_p4, 1, 0 }
   0xe   : > { %s21073_s12 = scalar_select %p14286_p6, 1, 0 }
   0xf   : > { %p14292_p9 = pnand %p11494_p5, %p229_p7  ;;  %s241_s15 = sshll.u32 %s14196_s14, 4  ;;  %s242_s15 = int_to_ptr.vmem [resolvable:$true] %s241_s15 }
  0x10   : > { %s14306_s17 = sadd.s32 1, %s14194_s30   ;;  %s32_s18 = sadd.s32 1, %s14190_s29 }
  0x11   : > { %s21074_s13 = scalar_select %p14292_p9, 1, 0 }
  0x12   : > { %p13885_p10 = pneg %p14292_p9  ;;  %21076 = sst [smem:[#allocation12_spill]] %s14306_s17 }
  0x13   : > { %s29_s19 = ssub.s32 %s14194_s30, %s14306_s17  ;;  %s14083_s20 = scalar_lea.vmem %s242_s15, 4608 }
  0x14   : > { %p14301_p12 = pnand %p13885_p10, %p20891_p1  ;;  %p14084_p0 = scmp.ne.s32.totalorder %s242_s15, %s14083_s20 }
  0x15   : > { %p14091_p7 = scmp.lt.s32.totalorder %s242_s15, %s242_s15  ;;  %p14092_p8 = scmp.lt.s32.totalorder %s14083_s20, %s14083_s20 }
  0x16   : > { %p14074_p13 = pneg %p14301_p12 }
  0x17   : > { %p14093_p11 = por %p14092_p8, %p14091_p7 }
  0x18   : > { %p14086_p3 = pnand %p14084_p0, %p14074_p13 }
  0x1a   : > { %p14087_p5 = pneg %p14086_p3 }
  0x1c   : > { %p14094_p2 = pnand %p14093_p11, %p14087_p5 }
  0x1e   : > { %14097 = shalt.err (!%p14094_p2)
}
  0x1f   : > { %s20890_s21 = smov 64   ;;  %s20892_s22 = smov 4  }
  0x20   : > { %s21077_s1 = sld [smem:[#allocation68_spill]]  ;;  %p30_p2 = scmp.eq.s32.totalorder %s29_s19, 0 }
  0x21   : > { %p39_p8 = scmp.ne.s32.totalorder %s14190_s29, %s14186_s28  ;;  %p40_p10 = scmp.eq.s32.totalorder %s14194_s30, 0 }
  0x22   : > { %p13898_p11 = scmp.lt.s32.totalorder %s14194_s30, 2  ;;  %p21078_p0 = scmp.eq.s32.totalorder %s14272_s9, 1 }
  0x23   : > { %s14326_s25 = scalar_select %p30_p2, %s14190_s29, %s32_s18  }
  0x24   : > { %p41_p13 = por %p40_p10, %p39_p8  ;;  %p14330_p3 = por %p21078_p0, %p39_p8 }
  0x25   : > { %s273_s10 = sand.u32 1, %s14190_s29   ;;  %s12317_s14 = sshll.u32 %s14194_s30, 11 }
  0x26   : > { %13888 = dma.hbm_to_vmem [thread:$0]  (!%p14301_p12), %s21077_s1, 4608, %s242_s15, [#allocation7], %s20890_s21, %s20890_s21, %s20892_s22  }
  0x27   : > { %s21079_s26 = scalar_select %p14330_p3, 1, 0 }
  0x28   : > { %s11497_s16 = sshll.u32 %s273_s10, 7  ;;  %s14339_s23 = scalar_lea.hbm %s20879_s0, %s12317_s14 }
  0x29   : > { %s277_s15 = scalar_lea.vmem [#allocation3], %s11497_s16  ;;  %p14341_p12 = pnand %p13898_p11, %p41_p13 }
  0x2a   : > { %s284_s18 = sshll.u32 %s277_s15, 4  ;;  %s14347_s24 = scalar_lea.sflag [#allocation4], %s273_s10  ;;  %s14345_s18 = int_to_ptr.vmem [resolvable:$true] %s284_s18 }
  0x2b   : > { %s14098_s21 = scalar_lea.hbm %s14339_s23, 2048  ;;  %p14100_p7 = pneg %p14341_p12 }
  0x2c   : > { %p14099_p5 = scmp.ne.s32.totalorder %s14339_s23, %s14098_s21  ;;  %s14103_s16 = scalar_lea.hbm %s20879_s0, 4096 }
  0x2d   : > { %p14104_p10 = scmp.lt.s32.totalorder %s14339_s23, %s20879_s0  ;;  %p14105_p11 = scmp.lt.s32.totalorder %s14103_s16, %s14098_s21 }
  0x2e   : > { %p14101_p2 = pnand %p14100_p7, %p14099_p5 }
  0x2f   : > { %p14106_p13 = por %p14105_p11, %p14104_p10 }
  0x30   : > { %p14102_p8 = pneg %p14101_p2 }
  0x32   : > { %p14107_p0 = pnand %p14106_p13, %p14102_p8 }
  0x34   : > { %14110 = shalt.err (!%p14107_p0)
}
  0x35   : > { %s14111_s10 = scalar_lea.vmem %s14345_s18, 2048  ;;  %s14199_s22 = smov [#allocation3]  }
  0x36   : > { %p14112_p1 = scmp.ne.s32.totalorder %s14345_s18, %s14111_s10  ;;  %s14116_s1 = sshll.u32 %s14199_s22, 4  ;;  %s14117_s1 = int_to_ptr.vmem [resolvable:$false] %s14116_s1 }
  0x37   : > { %s14118_s17 = scalar_lea.vmem %s14117_s1, 4096  ;;  %p14119_p2 = scmp.lt.s32.totalorder %s14345_s18, %s14117_s1 }
  0x38   : > { %p14114_p6 = pnand %p14112_p1, %p14100_p7  ;;  %p14120_p3 = scmp.lt.s32.totalorder %s14118_s17, %s14111_s10 }
  0x3a   : > { %p14115_p5 = pneg %p14114_p6  ;;  %p14121_p4 = por %p14120_p3, %p14119_p2 }
  0x3c   : > { %p14122_p9 = pnand %p14121_p4, %p14115_p5 }
  0x3e   : > { %14125 = shalt.err (!%p14122_p9)
}
  0x3f   : > { %s21081_s21 = smov 4   ;;  %s21082_s14 = smov 64  }
  0x40   : > { %13892 = dma.hbm_to_vmem [thread:$0]  (!%p14341_p12), %s14339_s23, 2048, %s14345_s18, %s14347_s24, %s21082_s14, %s21082_s14, %s21081_s21  }
  0x41   : > { %p21083_p1 = scmp.ne.s32.totalorder %s21074_s13, 0 }
  0x43   : > { %296 = sbr.rel (%p21083_p1) target bundleno = 2483 (0x9b3), region = 52 }
  0x48   : > { %s14374_s22 = sand.u32 1, %s14186_s28   ;;  %p21084_p4 = scmp.ne.s32.totalorder %s21072_s11, 0 }
  0x49   : > { %s11501_s1 = sshll.u32 %s14374_s22, 7  ;;  %s299_s16 = scalar_lea.sflag [#allocation4], %s14374_s22 }
  0x4a   : > { %s14378_s20 = scalar_lea.vmem [#allocation3], %s11501_s1 }
  0x4b   : > { %14169 = dma.done.wait (%p21084_p4), %s299_s16, 2048  }
  0x4c   : > { %14171 = vsyncadd (%p21084_p4), %s299_s16, 4294965248  ;;  %p21085_p6 = scmp.eq.s32.totalorder %s14272_s9, 0 }
  0x4e   : > { %14173 = dma.done.wait (%p21085_p6), [#allocation7], 4608   ;;  %p21086_p9 = pmov %p21085_p6 }
  0x4f   : > { %s11503_s13 = sshll.u32 %s14374_s22, 8  ;;  %p21087_p3 = scmp.ne.s32.totalorder %s14272_s9, 0 }
  0x50   : > { %14175 = vsyncadd (%p21086_p9), [#allocation7], 4294962688  ;;  %s14389_s23 = scalar_lea.vmem [#allocation8], %s11503_s13 }
  0x51   : > { %343 = sbr.rel (%p21087_p3) target bundleno = 114 (0x72), region = 64 }
  0x56   : > { %vm344_vm0 = vcmask 257024   ;;  %vm347_vm1 = vcmask 253952   ;;  %v14200_v0 = vmov 0  }
  0x57   : > { %345 = vst.msk [vmem:[#allocation2] sm:$0xf] %vm344_vm0, %v14200_v0  ;;  %346 = vst.msk [vmem:[#allocation2 + $0x4] sm:$0xf] %vm344_vm0, %v14200_v0 }
  0x58   : > { %349 = vst.msk [vmem:[#allocation2 + $0xc] sm:$0xf] %vm344_vm0, %v14200_v0  ;;  %350 = vst.msk [vmem:[#allocation2 + $0x10] sm:$0xf] %vm344_vm0, %v14200_v0 }
  0x59   : > { %352 = vst.msk [vmem:[#allocation2 + $0x18] sm:$0xf] %vm344_vm0, %v14200_v0  ;;  %353 = vst.msk [vmem:[#allocation2 + $0x1c] sm:$0xf] %vm344_vm0, %v14200_v0 }
  0x5a   : > { %355 = vst.msk [vmem:[#allocation2 + $0x24] sm:$0xf] %vm344_vm0, %v14200_v0  ;;  %356 = vst.msk [vmem:[#allocation2 + $0x28] sm:$0xf] %vm344_vm0, %v14200_v0 }
  0x5b   : > { %358 = vst.msk [vmem:[#allocation2 + $0x30] sm:$0xf] %vm344_vm0, %v14200_v0  ;;  %359 = vst.msk [vmem:[#allocation2 + $0x34] sm:$0xf] %vm344_vm0, %v14200_v0 }
  0x5c   : > { %361 = vst.msk [vmem:[#allocation2 + $0x3c] sm:$0xf] %vm344_vm0, %v14200_v0  ;;  %362 = vst.msk [vmem:[#allocation2 + $0x40] sm:$0xf] %vm344_vm0, %v14200_v0 }
  0x5d   : > { %364 = vst.msk [vmem:[#allocation2 + $0x48] sm:$0xf] %vm344_vm0, %v14200_v0  ;;  %365 = vst.msk [vmem:[#allocation2 + $0x4c] sm:$0xf] %vm344_vm0, %v14200_v0 }
  0x5e   : > { %367 = vst.msk [vmem:[#allocation2 + $0x54] sm:$0xf] %vm344_vm0, %v14200_v0  ;;  %368 = vst.msk [vmem:[#allocation2 + $0x58] sm:$0xf] %vm344_vm0, %v14200_v0 }
  0x5f   : > { %370 = vst.msk [vmem:[#allocation2 + $0x60] sm:$0xf] %vm344_vm0, %v14200_v0  ;;  %371 = vst.msk [vmem:[#allocation2 + $0x64] sm:$0xf] %vm344_vm0, %v14200_v0 }
  0x60   : > { %373 = vst.msk [vmem:[#allocation2 + $0x6c] sm:$0xf] %vm344_vm0, %v14200_v0  ;;  %374 = vst.msk [vmem:[#allocation2 + $0x70] sm:$0xf] %vm344_vm0, %v14200_v0 }
  0x61   : > { %376 = vst.msk [vmem:[#allocation2 + $0x78] sm:$0xf] %vm344_vm0, %v14200_v0  ;;  %377 = vst.msk [vmem:[#allocation2 + $0x7c] sm:$0xf] %vm344_vm0, %v14200_v0 }
  0x62   : > { %379 = vst.msk [vmem:[#allocation2 + $0x84] sm:$0xf] %vm344_vm0, %v14200_v0  ;;  %380 = vst.msk [vmem:[#allocation2 + $0x88] sm:$0xf] %vm344_vm0, %v14200_v0 }
  0x63   : > { %382 = vst.msk [vmem:[#allocation2 + $0x90] sm:$0xf] %vm344_vm0, %v14200_v0  ;;  %383 = vst.msk [vmem:[#allocation2 + $0x94] sm:$0xf] %vm344_vm0, %v14200_v0 }
  0x64   : > { %385 = vst.msk [vmem:[#allocation2 + $0x9c] sm:$0xf] %vm344_vm0, %v14200_v0  ;;  %386 = vst.msk [vmem:[#allocation2 + $0xa0] sm:$0xf] %vm344_vm0, %v14200_v0 }
  0x65   : > { %388 = vst.msk [vmem:[#allocation2 + $0xa8] sm:$0xf] %vm344_vm0, %v14200_v0  ;;  %389 = vst.msk [vmem:[#allocation2 + $0xac] sm:$0xf] %vm344_vm0, %v14200_v0 }
  0x66   : > { %391 = vst.msk [vmem:[#allocation2 + $0xb4] sm:$0xf] %vm344_vm0, %v14200_v0  ;;  %392 = vst.msk [vmem:[#allocation2 + $0xb8] sm:$0xf] %vm344_vm0, %v14200_v0 }
  0x67   : > { %394 = vst.msk [vmem:[#allocation2 + $0xc0] sm:$0xf] %vm344_vm0, %v14200_v0  ;;  %395 = vst.msk [vmem:[#allocation2 + $0xc4] sm:$0xf] %vm344_vm0, %v14200_v0 }
  0x68   : > { %397 = vst.msk [vmem:[#allocation2 + $0xcc] sm:$0xf] %vm344_vm0, %v14200_v0  ;;  %398 = vst.msk [vmem:[#allocation2 + $0xd0] sm:$0xf] %vm344_vm0, %v14200_v0 }
  0x69   : > { %348 = vst.msk [vmem:[#allocation2 + $0x8] sm:$0x1] %vm347_vm1, %v14200_v0  ;;  %351 = vst.msk [vmem:[#allocation2 + $0x14] sm:$0x1] %vm347_vm1, %v14200_v0 }
  0x6a   : > { %354 = vst.msk [vmem:[#allocation2 + $0x20] sm:$0x1] %vm347_vm1, %v14200_v0  ;;  %357 = vst.msk [vmem:[#allocation2 + $0x2c] sm:$0x1] %vm347_vm1, %v14200_v0 }
  0x6b   : > { %360 = vst.msk [vmem:[#allocation2 + $0x38] sm:$0x1] %vm347_vm1, %v14200_v0  ;;  %363 = vst.msk [vmem:[#allocation2 + $0x44] sm:$0x1] %vm347_vm1, %v14200_v0 }
  0x6c   : > { %366 = vst.msk [vmem:[#allocation2 + $0x50] sm:$0x1] %vm347_vm1, %v14200_v0  ;;  %369 = vst.msk [vmem:[#allocation2 + $0x5c] sm:$0x1] %vm347_vm1, %v14200_v0 }
  0x6d   : > { %372 = vst.msk [vmem:[#allocation2 + $0x68] sm:$0x1] %vm347_vm1, %v14200_v0  ;;  %375 = vst.msk [vmem:[#allocation2 + $0x74] sm:$0x1] %vm347_vm1, %v14200_v0 }
  0x6e   : > { %378 = vst.msk [vmem:[#allocation2 + $0x80] sm:$0x1] %vm347_vm1, %v14200_v0  ;;  %381 = vst.msk [vmem:[#allocation2 + $0x8c] sm:$0x1] %vm347_vm1, %v14200_v0 }
  0x6f   : > { %384 = vst.msk [vmem:[#allocation2 + $0x98] sm:$0x1] %vm347_vm1, %v14200_v0  ;;  %387 = vst.msk [vmem:[#allocation2 + $0xa4] sm:$0x1] %vm347_vm1, %v14200_v0 }
  0x70   : > { %390 = vst.msk [vmem:[#allocation2 + $0xb0] sm:$0x1] %vm347_vm1, %v14200_v0  ;;  %393 = vst.msk [vmem:[#allocation2 + $0xbc] sm:$0x1] %vm347_vm1, %v14200_v0 }
  0x71   : > { %396 = vst.msk [vmem:[#allocation2 + $0xc8] sm:$0x1] %vm347_vm1, %v14200_v0  ;;  %399 = vst.msk [vmem:[#allocation2 + $0xd4] sm:$0x1] %vm347_vm1, %v14200_v0 }
  0x72 PF: > { %v13941_v1 = vld [vmem:[#allocation6 + $0x18] sm:$0xff]   ;;  %v13942_v2 = vld [vmem:[#allocation6 + $0x10] sm:$0xff]   ;;  %v878_v3 = vld [vmem:[#allocation2] sm:$0xf]  ;;  %vm936_vm2 = vsmask.f32 3328 }
  0x73   : > { %12879 = vmatprep.subr.bf16.mxu0 %v13941_v1  ;;  %13873 = vmatprep.subr.bf16.mxu1 %v13941_v1  ;;  %v879_v4 = vld [vmem:[#allocation2 + $0x4] sm:$0xf]  ;;  %v14447_v5 = vld [vmem:[#allocation2 + $0x8] sm:$0x1]  ;;  %vm937_vm3 = vsmask.f32 7440 }
  0x74   : > { %12880 = vmatpush3.bf16.msra.mxu0 %v13941_v1  ;;  %13875 = vmatpush3.bf16.msra.mxu1 %v13941_v1  ;;  %v940_v6 = vshrl.u32 %v878_v3, 16  ;;  %v943_v7 = vshll.u32 %v878_v3, 16  ;;  %v949_v8 = vshll.u32 %v879_v4, 16  ;;  %v953_v9 = vshrl.u32 %v879_v4, 16  ;;  %v400_v11 = vld [vmem:[%s14378_s20] sm:$0xf]  ;;  %vm14458_vm7 = vmor %vm936_vm2, %vm937_vm3 }
  0x75   : > { %12881 = vmatprep.subr.bf16.mxu0 %v13942_v2  ;;  %13874 = vmatprep.subr.bf16.mxu1 %v13942_v2  ;;  %v959_v10 = vshll.u32 %v14447_v5, 16  ;;  %vm756_vm4 = vcmask 257024   ;;  %v401_v14 = vld [vmem:[%s14378_s20 + $0x4] sm:$0xf]  ;;  %vm432_vm5 = vsmask.f32 256 }
  0x76   : > { %v942_v12 = vrot.slane %v940_v6, 4  ;;  %v945_v13 = vrot.slane %v943_v7, 5  ;;  %v951_v15 = vrot.slane %v949_v8, 5  ;;  %v955_v16 = vrot.slane %v953_v9, 4  ;;  %v14452_v18 = vld [vmem:[#allocation6 + $0x8] sm:$0xff]   ;;  %s12382_s24 = sshll.u32 %s14272_s9, 12 }
  0x77   : > { %v961_v17 = vrot.slane %v959_v10, 5  ;;  %vm433_vm6 = vsmask.f32 4368  ;;  %v436_v20 = vshrl.u32 %v400_v11, 16  ;;  %v439_v21 = vshll.u32 %v400_v11, 16  ;;  %v14454_v23 = vld [vmem:[#allocation6 + $0x28] sm:$0xff]   ;;  %s20829_s21 = scalar_lea.hbm %s20887_s8, %s12382_s24 }
  0x78   : > { %12882 = vmatpush3.bf16.msra.mxu0 %v13942_v2  ;;  %13876 = vmatpush3.bf16.msra.mxu1 %v13942_v2  ;;  %v946_v19 = vor.u32 %v945_v13, %v942_v12  ;;  %v444_v22 = vshrl.u32 %v401_v14, 16  ;;  %v21088_v24 = vmov 0  ;;  %v956_v25 = vor.u32 %v955_v16, %v951_v15  ;;  %v759_v27 = vld [vmem:[#allocation2 + $0xc] sm:$0xf]  ;;  %vm14465_vm10 = vmor %vm432_vm5, %vm433_vm6  ;;  %v414_v32 = vld [vmem:[%s14378_s20 + $0x38] sm:$0xf] }
  0x79   : > { %v21089_v24 = vsel %vm14458_vm7, 4294967295, %v21088_v24  ;;  %v447_v26 = vshll.u32 %v401_v14, 16  ;;  %vm757_vm8 = vsmask.f32 7938  ;;  %vm764_vm9 = vcmask 253952   ;;  %12915 = vmatprep.subr.bf16.mxu1 %v14452_v18  ;;  %12951 = vmatprep.subr.bf16.mxu0 %v14454_v23  ;;  %s11410_s15 = sshll.u32 %s14389_s23, 4  ;;  %s20831_s15 = int_to_ptr.vmem [resolvable:$true] %s11410_s15 }
  0x7a   : > { %21090 = vst [vmem:[#allocation13_spill] sm:$0xff] %v21089_v24  ;;  %v947_v28 = vrot.slane %v946_v19, 4  ;;  %v21091_v29 = vmov 0  ;;  %v438_v30 = vrot.slane %v436_v20, 7  ;;  %v446_v31 = vrot.slane %v444_v22, 7  ;;  %vm14472_vm12 = vmand %vm756_vm4, %vm757_vm8  ;;  %s11397_s9 = scalar_lea.sflag [#allocation5], %s14374_s22 }
  0x7b   : > { %v21092_v29 = vsel %vm14465_vm10, 4294967295, %v21091_v29  ;;  %v957_v33 = vrot.slane %v956_v25, 4  ;;  %vm1388_vm11 = vcmask 261120   ;;  %v21094_v34 = vmov 0  ;;  %v415_v35 = vld [vmem:[%s14378_s20 + $0x3c] sm:$0xf]  ;;  %vm14481_vm13 = vmand %vm764_vm9, %vm432_vm5 }
  0x7c   : > { %21093 = vst [vmem:[#allocation14_spill] sm:$0xff] %v21092_v29  ;;  %v21095_v34 = vsel %vm14472_vm12, 4294967295, %v21094_v34  ;;  %v555_v36 = vshrl.u32 %v414_v32, 16  ;;  %v558_v37 = vshll.u32 %v414_v32, 16  ;;  %v952_v38 = vsel %vm14458_vm7, %v947_v28, %v951_v15  ;;  %v766_v43 = vld [vmem:[#allocation2 + $0x14] sm:$0x1] }
  0x7d   : > { %21096 = vst [vmem:[#allocation15_spill] sm:$0xff] %v21095_v34  ;;  %v441_v39 = vor.u32 %v439_v21, %v438_v30  ;;  %v442_v40 = vrot.slane %v438_v30, 4  ;;  %v449_v41 = vor.u32 %v447_v26, %v446_v31  ;;  %v21097_v42 = vmov 0  ;;  %v811_v44 = vld [vmem:[#allocation2 + $0x60] sm:$0xf]  ;;  %s14126_s14 = scalar_lea.vmem %s20831_s15, 4096 }
  0x7e   : > { %v21098_v42 = vsel %vm14481_vm13, 4294967295, %v21097_v42  ;;  %v962_v45 = vsel %vm14458_vm7, %v957_v33, %v961_v17  ;;  %v451_v46 = vrot.slane %v446_v31, 4  ;;  %v557_v47 = vrot.slane %v555_v36, 7  ;;  %v416_v53 = vld [vmem:[%s14378_s20 + $0x40] sm:$0xf]  ;;  %p14127_p12 = scmp.ne.s32.totalorder %s20831_s15, %s14126_s14  ;;  %p21689_p7 = scmp.ne.s32.totalorder %s21079_s26, 0 }
  0x7f   : > { %21099 = vst [vmem:[#allocation16_spill] sm:$0xff] %v21098_v42  ;;  %v563_v48 = vshrl.u32 %v415_v35, 16  ;;  %v11505_v49 = vcombine.low %v952_v38, %v962_v45  ;;  %v450_v50 = vsel %vm14465_vm10, %v442_v40, %v449_v41  ;;  %v760_v51 = vsel %vm14472_vm12, %v441_v39, %v759_v27  ;;  %v417_v58 = vld [vmem:[%s14378_s20 + $0x44] sm:$0xf]  ;;  %v815_v59 = vld [vmem:[#allocation2 + $0x68] sm:$0x1] }
  0x80   : > { %v566_v52 = vshll.u32 %v415_v35, 16  ;;  %761 = vst [vmem:[#allocation2 + $0xc] sm:$0xf] %v760_v51  ;;  %763 = vst.msk [vmem:[#allocation2 + $0x10] sm:$0xf] %vm756_vm4, %v450_v50  ;;  %v767_v54 = vsel %vm14481_vm13, %v451_v46, %v766_v43  ;;  %v560_v55 = vor.u32 %v558_v37, %v557_v47  ;;  %v561_v56 = vrot.slane %v557_v47, 4  ;;  %p14128_p8 = pnand %p14127_p12, %p21689_p7 }
  0x81   : > { %v565_v57 = vrot.slane %v563_v48, 7  ;;  %12883 = vmatprep.mubr.msk.bf16.mxu0 %vm1388_vm11, %v11505_v49  ;;  %768 = vst [vmem:[#allocation2 + $0x14] sm:$0x1] %v767_v54  ;;  %v572_v60 = vshrl.u32 %v416_v53, 16  ;;  %v575_v61 = vshll.u32 %v416_v53, 16  ;;  %v580_v62 = vshrl.u32 %v417_v58, 16 }
  0x82   : > { %v583_v63 = vshll.u32 %v417_v58, 16  ;;  %v812_v2 = vsel %vm14472_vm12, %v560_v55, %v811_v44  ;;  %v402_v6 = vld [vmem:[%s14378_s20 + $0x8] sm:$0xf]  ;;  %v403_v7 = vld [vmem:[%s14378_s20 + $0xc] sm:$0xf]  ;;  %vm1915_vm14 = vcmask 1042432   ;;  %p14129_p10 = pneg %p14128_p8 }
  0x83   : > { %v568_v0 = vor.u32 %v566_v52, %v565_v57  ;;  %v570_v1 = vrot.slane %v565_v57, 4  ;;  %813 = vst [vmem:[#allocation2 + $0x60] sm:$0xf] %v812_v2  ;;  %v574_v3 = vrot.slane %v572_v60, 7  ;;  %v582_v4 = vrot.slane %v580_v62, 7  ;;  %s14203_s1 = smov [#allocation8]  }
  0x84   : > { %v818_v10 = vld [vmem:[#allocation2 + $0x6c] sm:$0xf]  ;;  %v822_v11 = vld [vmem:[#allocation2 + $0x74] sm:$0x1]  ;;  %v453_v12 = vshrl.u32 %v402_v6, 16  ;;  %v456_v13 = vshll.u32 %v402_v6, 16 }
  0x85   : > { %v569_v8 = vsel %vm14465_vm10, %v561_v56, %v568_v0  ;;  %v816_v9 = vsel %vm14481_vm13, %v570_v1, %v815_v59  ;;  %v577_v14 = vor.u32 %v575_v61, %v574_v3  ;;  %v578_v15 = vrot.slane %v574_v3, 4  ;;  %v404_v19 = vld [vmem:[%s14378_s20 + $0x10] sm:$0xf]  ;;  %v769_v43 = vld [vmem:[#allocation2 + $0x18] sm:$0xf]  ;;  %s14130_s16 = sshll.u32 %s14203_s1, 4  ;;  %s14131_s16 = int_to_ptr.vmem [resolvable:$false] %s14130_s16 }
  0x86   : > { %814 = vst.msk [vmem:[#allocation2 + $0x64] sm:$0xf] %vm756_vm4, %v569_v8  ;;  %817 = vst [vmem:[#allocation2 + $0x68] sm:$0x1] %v816_v9  ;;  %v585_v16 = vor.u32 %v583_v63, %v582_v4  ;;  %v587_v17 = vrot.slane %v582_v4, 4  ;;  %v14508_v21 = vrot.slane %v453_v12, 7  ;;  %p14133_p11 = scmp.lt.s32.totalorder %s20831_s15, %s14131_s16 }
  0x87   : > { %v461_v22 = vshrl.u32 %v403_v7, 16  ;;  %v464_v25 = vshll.u32 %v403_v7, 16  ;;  %v881_v26 = vld [vmem:[#allocation2 + $0xc] sm:$0xf]  ;;  %v882_v27 = vld [vmem:[#allocation2 + $0x10] sm:$0xf]  ;;  %v819_v30 = vsel %vm14472_vm12, %v577_v14, %v818_v10 }
  0x88   : > { %v586_v28 = vsel %vm14465_vm10, %v578_v15, %v585_v16  ;;  %v823_v31 = vsel %vm14481_vm13, %v587_v17, %v822_v11  ;;  %v470_v32 = vshrl.u32 %v404_v19, 16  ;;  %v14516_v33 = vld [vmem:[#allocation2 + $0x14] sm:$0x1]  ;;  %v964_v35 = vshrl.u32 %v881_v26, 16  ;;  %820 = vst [vmem:[#allocation2 + $0x6c] sm:$0xf] %v819_v30 }
  0x89   : > { %v967_v36 = vshll.u32 %v881_v26, 16  ;;  %v973_v37 = vshll.u32 %v882_v27, 16  ;;  %v977_v38 = vshrl.u32 %v882_v27, 16  ;;  %821 = vst.msk [vmem:[#allocation2 + $0x70] sm:$0xf] %vm756_vm4, %v586_v28  ;;  %v983_v39 = vshll.u32 %v14516_v33, 16 }
  0x8a   : > { %824 = vst [vmem:[#allocation2 + $0x74] sm:$0x1] %v823_v31  ;;  %v458_v40 = vor.u32 %v456_v13, %v14508_v21  ;;  %v459_v41 = vrot.slane %v14508_v21, 4  ;;  %v473_v44 = vshll.u32 %v404_v19, 16  ;;  %v966_v45 = vrot.slane %v964_v35, 4 }
  0x8b   : > { %v969_v46 = vrot.slane %v967_v36, 5  ;;  %v975_v47 = vrot.slane %v973_v37, 5  ;;  %v979_v48 = vrot.slane %v977_v38, 4  ;;  %v902_v49 = vld [vmem:[#allocation2 + $0x60] sm:$0xf]  ;;  %v985_v50 = vrot.slane %v983_v39, 5 }
  0x8c   : > { %v1132_v51 = vshrl.u32 %v902_v49, 16  ;;  %v1135_v52 = vshll.u32 %v902_v49, 16  ;;  %v463_v53 = vrot.slane %v461_v22, 7  ;;  %v770_v58 = vsel %vm14472_vm12, %v458_v40, %v769_v43  ;;  %v13946_v22 = vld [vmem:[#allocation6 + $0x20] sm:$0xff]   ;;  %v773_v30 = vld [vmem:[#allocation2 + $0x20] sm:$0x1] }
  0x8d   : > { %v970_v54 = vor.u32 %v969_v46, %v966_v45  ;;  %v980_v55 = vor.u32 %v979_v48, %v975_v47  ;;  %v903_v56 = vld [vmem:[#allocation2 + $0x64] sm:$0xf]  ;;  %v904_v57 = vld [vmem:[#allocation2 + $0x68] sm:$0x1]  ;;  %v14524_v59 = vrot.slane %v470_v32, 7  ;;  %vm1916_vm15 = vcmask 1046532  }
  0x8e   : > { %v1134_v60 = vrot.slane %v1132_v51, 4  ;;  %v1137_v61 = vrot.slane %v1135_v52, 5  ;;  %v1141_v62 = vshll.u32 %v903_v56, 16  ;;  %v1145_v63 = vshrl.u32 %v903_v56, 16  ;;  %771 = vst [vmem:[#allocation2 + $0x18] sm:$0xf] %v770_v58  ;;  %vm14833_vm0 = vmor %vm1915_vm14, %vm1916_vm15 }
  0x8f   : > { %v971_v0 = vrot.slane %v970_v54, 4  ;;  %v981_v1 = vrot.slane %v980_v55, 4  ;;  %v1151_v2 = vshll.u32 %v904_v57, 16  ;;  %v466_v3 = vor.u32 %v464_v25, %v463_v53  ;;  %v905_v8 = vld [vmem:[#allocation2 + $0x6c] sm:$0xf] }
  0x90   : > { %v1138_v4 = vor.u32 %v1137_v61, %v1134_v60  ;;  %v1143_v6 = vrot.slane %v1141_v62, 5  ;;  %v1147_v7 = vrot.slane %v1145_v63, 4  ;;  %v906_v9 = vld [vmem:[#allocation2 + $0x70] sm:$0xf]  ;;  %v475_v10 = vor.u32 %v473_v44, %v14524_v59  ;;  %v405_v37 = vld [vmem:[%s14378_s20 + $0x14] sm:$0xf] }
  0x91   : > { %v976_v11 = vsel %vm14458_vm7, %v971_v0, %v975_v47  ;;  %v986_v12 = vsel %vm14458_vm7, %v981_v1, %v985_v50  ;;  %v1153_v13 = vrot.slane %v1151_v2, 5  ;;  %v907_v14 = vld [vmem:[#allocation2 + $0x74] sm:$0x1]  ;;  %v1156_v15 = vshrl.u32 %v905_v8, 16  ;;  %v776_v38 = vld [vmem:[#allocation2 + $0x24] sm:$0xf] }
  0x92   : > { %v14531_v16 = vcombine.low %v976_v11, %v986_v12  ;;  %v1139_v17 = vrot.slane %v1138_v4, 4  ;;  %v1148_v19 = vor.u32 %v1147_v7, %v1143_v6  ;;  %v1159_v21 = vshll.u32 %v905_v8, 16  ;;  %v418_v50 = vld [vmem:[%s14378_s20 + $0x48] sm:$0xf]  ;;  %v419_v58 = vld [vmem:[%s14378_s20 + $0x4c] sm:$0xf] }
  0x93   : > { %v1158_v25 = vrot.slane %v1156_v15, 4  ;;  %v1165_v26 = vshll.u32 %v906_v9, 16  ;;  %v1169_v27 = vshrl.u32 %v906_v9, 16  ;;  %v1175_v28 = vshll.u32 %v907_v14, 16  ;;  %v780_v2 = vld [vmem:[#allocation2 + $0x2c] sm:$0x1] }
  0x94   : > { %12884 = vmatmul.mubr.msk.bf16.vlgmr.msra.gmra.mxu0 %vm1388_vm11, %v14531_v16  ;;  %v1144_v31 = vsel %vm14458_vm7, %v1139_v17, %v1143_v6  ;;  %v1149_v32 = vrot.slane %v1148_v19, 4  ;;  %v1161_v35 = vrot.slane %v1159_v21, 5  ;;  %v467_v36 = vsel %vm14465_vm10, %v459_v41, %v466_v3  ;;  %v13948_v41 = vld [vmem:[#allocation6 + $0x48] sm:$0xff]   ;;  %v420_v9 = vld [vmem:[%s14378_s20 + $0x50] sm:$0xf] }
  0x95   : > { %v1167_v39 = vrot.slane %v1165_v26, 5  ;;  %v1171_v40 = vrot.slane %v1169_v27, 4  ;;  %v1177_v43 = vrot.slane %v1175_v28, 5  ;;  %12952 = vmatpush3.bf16.msra.mxu0 %v14454_v23  ;;  %v468_v44 = vrot.slane %v463_v53, 4  ;;  %772 = vst.msk [vmem:[#allocation2 + $0x1c] sm:$0xf] %vm756_vm4, %v467_v36 }
  0x96   : > { %v884_v45 = vld [vmem:[#allocation2 + $0x18] sm:$0xf]  ;;  %v1154_v46 = vsel %vm14458_vm7, %v1149_v32, %v1153_v13  ;;  %v1162_v47 = vor.u32 %v1161_v35, %v1158_v25  ;;  %12953 = vmatprep.subr.bf16.mxu0 %v13946_v22  ;;  %v476_v53 = vrot.slane %v14524_v59, 4  ;;  %v478_v57 = vshrl.u32 %v405_v37, 16  ;;  %v421_v26 = vld [vmem:[%s14378_s20 + $0x54] sm:$0xf] }
  0x97   : > { %v988_v48 = vshrl.u32 %v884_v45, 16  ;;  %v991_v49 = vshll.u32 %v884_v45, 16  ;;  %v14545_v51 = vcombine.low %v1144_v31, %v1154_v46  ;;  %v1172_v52 = vor.u32 %v1171_v40, %v1167_v39  ;;  %v825_v17 = vld [vmem:[#allocation2 + $0x78] sm:$0xf]  ;;  %v829_v31 = vld [vmem:[#allocation2 + $0x80] sm:$0x1] }
  0x98   : > { %v774_v23 = vsel %vm14481_vm13, %v468_v44, %v773_v30  ;;  %v1163_v54 = vrot.slane %v1162_v47, 4  ;;  %v481_v61 = vshll.u32 %v405_v37, 16  ;;  %v777_v62 = vsel %vm14472_vm12, %v475_v10, %v776_v38  ;;  %v13945_v10 = vld [vmem:[#allocation6] sm:$0xff]   ;;  %v13947_v46 = vld [vmem:[#allocation6 + $0x38] sm:$0xff]  }
  0x99   : > { %21100 = vst [vmem:[#allocation17_spill] sm:$0xff] %v14545_v51  ;;  %775 = vst [vmem:[#allocation2 + $0x20] sm:$0x1] %v774_v23  ;;  %v990_v55 = vrot.slane %v988_v48, 4  ;;  %v993_v56 = vrot.slane %v991_v49, 5  ;;  %12899 = vmatprep.mubr.msk.bf16.mxu1 %vm1388_vm11, %v14545_v51  ;;  %v1173_v60 = vrot.slane %v1172_v52, 4  ;;  %12954 = vmatpush3.bf16.msra.mxu0 %v13946_v22 }
  0x9a   : > { %v589_v63 = vshrl.u32 %v418_v50, 16  ;;  %v1168_v59 = vsel %vm14458_vm7, %v1163_v54, %v1167_v39  ;;  %v480_v1 = vrot.slane %v478_v57, 7  ;;  %778 = vst [vmem:[#allocation2 + $0x24] sm:$0xf] %v777_v62  ;;  %v592_v3 = vshll.u32 %v418_v50, 16  ;;  %13023 = vmatprep.subr.bf16.mxu0 %v13948_v41 }
  0x9b   : > { %v994_v0 = vor.u32 %v993_v56, %v990_v55  ;;  %v1178_v4 = vsel %vm14458_vm7, %v1173_v60, %v1177_v43  ;;  %v597_v7 = vshrl.u32 %v419_v58, 16  ;;  %v600_v8 = vshll.u32 %v419_v58, 16  ;;  %v406_v52 = vld [vmem:[%s14378_s20 + $0x18] sm:$0xf]  ;;  %v14590_v56 = vld [vmem:[%s14378_s20 + $0x1c] sm:$0xf] }
  0x9c   : > { %v591_v6 = vrot.slane %v589_v63, 7  ;;  %v14560_v11 = vcombine.low %v1168_v59, %v1178_v4  ;;  %v14562_v12 = vld [vmem:[#allocation2 + $0x1c] sm:$0xf]  ;;  %v483_v14 = vor.u32 %v481_v61, %v480_v1  ;;  %v485_v15 = vrot.slane %v480_v1, 4 }
  0x9d   : > { %v995_v13 = vrot.slane %v994_v0, 4  ;;  %v997_v19 = vshll.u32 %v14562_v12, 16  ;;  %v1001_v21 = vshrl.u32 %v14562_v12, 16  ;;  %v599_v30 = vrot.slane %v597_v7, 7  ;;  %v864_v20 = vld [vmem:[#allocation2 + $0xbc] sm:$0x1] }
  0x9e   : > { %21101 = vst [vmem:[#allocation18_spill] sm:$0xff] %v14560_v11  ;;  %v594_v22 = vor.u32 %v592_v3, %v591_v6  ;;  %v595_v25 = vrot.slane %v591_v6, 4  ;;  %12900 = vmatmul.mubr.msk.bf16.vlgmr.msra.gmra.mxu1 %vm1388_vm11, %v14560_v11  ;;  %v484_v27 = vsel %vm14465_vm10, %v476_v53, %v483_v14  ;;  %v781_v28 = vsel %vm14481_vm13, %v485_v15, %v780_v2  ;;  %v836_v3 = vld [vmem:[#allocation2 + $0x8c] sm:$0x1] }
  0x9f   : > { %v606_v32 = vshrl.u32 %v420_v9, 16  ;;  %12916 = vmatpush3.bf16.msra.mxu1 %v14452_v18  ;;  %v999_v36 = vrot.slane %v997_v19, 5  ;;  %v1003_v37 = vrot.slane %v1001_v21, 4  ;;  %779 = vst.msk [vmem:[#allocation2 + $0x28] sm:$0xf] %vm756_vm4, %v484_v27  ;;  %v609_v39 = vshll.u32 %v420_v9, 16 }
  0xa0   : > { %v14574_v35 = vld [vmem:[#allocation2 + $0x20] sm:$0x1]  ;;  %782 = vst [vmem:[#allocation2 + $0x2c] sm:$0x1] %v781_v28  ;;  %v826_v38 = vsel %vm14472_vm12, %v594_v22, %v825_v17  ;;  %v602_v43 = vor.u32 %v600_v8, %v599_v30  ;;  %v604_v44 = vrot.slane %v599_v30, 4  ;;  %12917 = vmatprep.subr.bf16.mxu1 %v13945_v10  ;;  %v614_v50 = vshrl.u32 %v421_v26, 16 }
  0xa1   : > { %v1007_v40 = vshll.u32 %v14574_v35, 16  ;;  %827 = vst [vmem:[#allocation2 + $0x78] sm:$0xf] %v826_v38  ;;  %v608_v45 = vrot.slane %v606_v32, 7  ;;  %v832_v18 = vld [vmem:[#allocation2 + $0x84] sm:$0xf]  ;;  %v1000_v47 = vsel %vm14458_vm7, %v995_v13, %v999_v36  ;;  %v1004_v48 = vor.u32 %v1003_v37, %v999_v36 }
  0xa2   : > { %v14582_v49 = vld [vmem:[#allocation2 + $0x24] sm:$0xf]  ;;  %v617_v41 = vshll.u32 %v421_v26, 16  ;;  %v603_v55 = vsel %vm14465_vm10, %v595_v25, %v602_v43  ;;  %v830_v58 = vsel %vm14481_vm13, %v604_v44, %v829_v31  ;;  %v616_v59 = vrot.slane %v614_v50, 7  ;;  %v783_v37 = vld [vmem:[#allocation2 + $0x30] sm:$0xf] }
  0xa3   : > { %v1009_v23 = vrot.slane %v1007_v40, 5  ;;  %v1012_v53 = vshrl.u32 %v14582_v49, 16  ;;  %v1015_v54 = vshll.u32 %v14582_v49, 16  ;;  %v1005_v57 = vrot.slane %v1004_v48, 4  ;;  %828 = vst.msk [vmem:[#allocation2 + $0x7c] sm:$0xf] %vm756_vm4, %v603_v55  ;;  %12918 = vmatpush3.bf16.msra.mxu1 %v13945_v10 }
  0xa4   : > { %v611_v60 = vor.u32 %v609_v39, %v608_v45  ;;  %v612_v61 = vrot.slane %v608_v45, 4  ;;  %831 = vst [vmem:[#allocation2 + $0x80] sm:$0x1] %v830_v58  ;;  %v487_v0 = vshrl.u32 %v406_v52, 16  ;;  %12987 = vmatprep.subr.bf16.mxu1 %v13947_v46  ;;  %v490_v4 = vshll.u32 %v406_v52, 16 }
  0xa5   : > { %v1014_v62 = vrot.slane %v1012_v53, 4  ;;  %v1017_v63 = vrot.slane %v1015_v54, 5  ;;  %v1010_v1 = vsel %vm14458_vm7, %v1005_v57, %v1009_v23  ;;  %v495_v6 = vshrl.u32 %v14590_v56, 16 }
  0xa6   : > { %v833_v2 = vsel %vm14472_vm12, %v611_v60, %v832_v18  ;;  %v14600_v7 = vcombine.low %v1000_v47, %v1010_v1  ;;  %v14602_v8 = vld [vmem:[#allocation2 + $0x28] sm:$0xf]  ;;  %v619_v13 = vor.u32 %v617_v41, %v616_v59  ;;  %v621_v14 = vrot.slane %v616_v59, 4 }
  0xa7   : > { %v14604_v9 = vld [vmem:[#allocation2 + $0x2c] sm:$0x1]  ;;  %v1018_v10 = vor.u32 %v1017_v63, %v1014_v62  ;;  %834 = vst [vmem:[#allocation2 + $0x84] sm:$0xf] %v833_v2  ;;  %v1021_v15 = vshll.u32 %v14602_v8, 16  ;;  %v1025_v17 = vshrl.u32 %v14602_v8, 16 }
  0xa8   : > { %21102 = vst [vmem:[#allocation19_spill] sm:$0xff] %v14600_v7  ;;  %v1031_v19 = vshll.u32 %v14604_v9, 16  ;;  %v908_v21 = vld [vmem:[#allocation2 + $0x78] sm:$0xf]  ;;  %v489_v22 = vrot.slane %v487_v0, 7  ;;  %12887 = vmatprep.mubr.msk.bf16.mxu0 %vm1388_vm11, %v14600_v7  ;;  %v620_v28 = vsel %vm14465_vm10, %v612_v61, %v619_v13  ;;  %v837_v36 = vsel %vm14481_vm13, %v621_v14, %v836_v3 }
  0xa9   : > { %v1019_v25 = vrot.slane %v1018_v10, 4  ;;  %v1180_v26 = vshrl.u32 %v908_v21, 16  ;;  %v1183_v27 = vshll.u32 %v908_v21, 16  ;;  %v1023_v30 = vrot.slane %v1021_v15, 5  ;;  %835 = vst.msk [vmem:[#allocation2 + $0x88] sm:$0xf] %vm756_vm4, %v620_v28 }
  0xaa   : > { %v1027_v31 = vrot.slane %v1025_v17, 4  ;;  %v1033_v32 = vrot.slane %v1031_v19, 5  ;;  %v909_v38 = vld [vmem:[#allocation2 + $0x7c] sm:$0xf]  ;;  %838 = vst [vmem:[#allocation2 + $0x8c] sm:$0x1] %v837_v36  ;;  %v492_v43 = vor.u32 %v490_v4, %v489_v22 }
  0xab   : > { %v1182_v39 = vrot.slane %v1180_v26, 4  ;;  %v1185_v40 = vrot.slane %v1183_v27, 5  ;;  %v493_v44 = vrot.slane %v489_v22, 4  ;;  %v1024_v45 = vsel %vm14458_vm7, %v1019_v25, %v1023_v30  ;;  %v910_v46 = vld [vmem:[#allocation2 + $0x80] sm:$0x1] }
  0xac   : > { %v1028_v18 = vor.u32 %v1027_v31, %v1023_v30  ;;  %v1189_v47 = vshll.u32 %v909_v38, 16  ;;  %v1193_v48 = vshrl.u32 %v909_v38, 16  ;;  %v1199_v41 = vshll.u32 %v910_v46, 16  ;;  %v408_v3 = vld [vmem:[%s14378_s20 + $0x20] sm:$0xf] }
  0xad   : > { %v1186_v50 = vor.u32 %v1185_v40, %v1182_v39  ;;  %v497_v52 = vrot.slane %v495_v6, 7  ;;  %v498_v23 = vshll.u32 %v14590_v56, 16  ;;  %v784_v58 = vsel %vm14472_vm12, %v492_v43, %v783_v37  ;;  %v787_v56 = vld [vmem:[#allocation2 + $0x38] sm:$0x1]  ;;  %v409_v28 = vld [vmem:[%s14378_s20 + $0x24] sm:$0xf] }
  0xae   : > { %v1029_v53 = vrot.slane %v1028_v18, 4  ;;  %v1191_v54 = vrot.slane %v1189_v47, 5  ;;  %v1195_v55 = vrot.slane %v1193_v48, 4  ;;  %v911_v57 = vld [vmem:[#allocation2 + $0x84] sm:$0xf]  ;;  %v1201_v61 = vrot.slane %v1199_v41, 5 }
  0xaf   : > { %v1187_v60 = vrot.slane %v1186_v50, 4  ;;  %v1204_v62 = vshrl.u32 %v911_v57, 16  ;;  %v1207_v63 = vshll.u32 %v911_v57, 16  ;;  %785 = vst [vmem:[#allocation2 + $0x30] sm:$0xf] %v784_v58  ;;  %v500_v1 = vor.u32 %v498_v23, %v497_v52 }
  0xb0   : > { %v1034_v59 = vsel %vm14458_vm7, %v1029_v53, %v1033_v32  ;;  %v1196_v0 = vor.u32 %v1195_v55, %v1191_v54  ;;  %v502_v2 = vrot.slane %v497_v52, 4  ;;  %v912_v10 = vld [vmem:[#allocation2 + $0x88] sm:$0xf]  ;;  %v504_v30 = vshrl.u32 %v408_v3, 16  ;;  %v422_v31 = vld [vmem:[%s14378_s20 + $0x58] sm:$0xf] }
  0xb1   : > { %v14624_v4 = vcombine.low %v1024_v45, %v1034_v59  ;;  %v1192_v6 = vsel %vm14458_vm7, %v1187_v60, %v1191_v54  ;;  %v1206_v13 = vrot.slane %v1204_v62, 4  ;;  %v1209_v14 = vrot.slane %v1207_v63, 5  ;;  %v913_v17 = vld [vmem:[#allocation2 + $0x8c] sm:$0x1]  ;;  %v790_v45 = vld [vmem:[#allocation2 + $0x3c] sm:$0xf] }
  0xb2   : > { %v1197_v15 = vrot.slane %v1196_v0, 4  ;;  %v1213_v19 = vshll.u32 %v912_v10, 16  ;;  %v1217_v21 = vshrl.u32 %v912_v10, 16  ;;  %v501_v22 = vsel %vm14465_vm10, %v493_v44, %v500_v1  ;;  %v794_v54 = vld [vmem:[#allocation2 + $0x44] sm:$0x1] }
  0xb3   : > { %21103 = vst [vmem:[#allocation20_spill] sm:$0xff] %v14624_v4  ;;  %12888 = vmatmul.mubr.msk.bf16.gmra.mxu0 %vm1388_vm11, %v14624_v4  ;;  %v1210_v25 = vor.u32 %v1209_v14, %v1206_v13  ;;  %v1223_v26 = vshll.u32 %v913_v17, 16  ;;  %786 = vst.msk [vmem:[#allocation2 + $0x34] sm:$0xf] %vm756_vm4, %v501_v22  ;;  %v788_v27 = vsel %vm14481_vm13, %v502_v2, %v787_v56  ;;  %v507_v38 = vshll.u32 %v408_v3, 16 }
  0xb4   : > { %v1202_v32 = vsel %vm14458_vm7, %v1197_v15, %v1201_v61  ;;  %v1215_v36 = vrot.slane %v1213_v19, 5  ;;  %v1219_v37 = vrot.slane %v1217_v21, 4  ;;  %789 = vst [vmem:[#allocation2 + $0x38] sm:$0x1] %v788_v27  ;;  %v506_v44 = vrot.slane %v504_v30, 7 }
  0xb5   : > { %v14639_v39 = vcombine.low %v1192_v6, %v1202_v32  ;;  %v1211_v40 = vrot.slane %v1210_v25, 4  ;;  %v1225_v43 = vrot.slane %v1223_v26, 5  ;;  %v512_v47 = vshrl.u32 %v409_v28, 16  ;;  %v423_v60 = vld [vmem:[%s14378_s20 + $0x5c] sm:$0xf] }
  0xb6   : > { %v1220_v18 = vor.u32 %v1219_v37, %v1215_v36  ;;  %v14641_v46 = vld [vmem:[#allocation2 + $0x30] sm:$0xf]  ;;  %v515_v48 = vshll.u32 %v409_v28, 16  ;;  %v623_v50 = vshrl.u32 %v422_v31, 16  ;;  %v509_v53 = vor.u32 %v507_v38, %v506_v44  ;;  %v424_v2 = vld [vmem:[%s14378_s20 + $0x60] sm:$0xf] }
  0xb7   : > { %21104 = vst [vmem:[#allocation21_spill] sm:$0xff] %v14639_v39  ;;  %12903 = vmatprep.mubr.msk.bf16.mxu1 %vm1388_vm11, %v14639_v39  ;;  %v1216_v41 = vsel %vm14458_vm7, %v1211_v40, %v1215_v36  ;;  %v1036_v52 = vshrl.u32 %v14641_v46, 16  ;;  %v1039_v23 = vshll.u32 %v14641_v46, 16  ;;  %v510_v57 = vrot.slane %v506_v44, 4  ;;  %v839_v1 = vld [vmem:[#allocation2 + $0x90] sm:$0xf] }
  0xb8   : > { %v1221_v55 = vrot.slane %v1220_v18, 4  ;;  %v514_v58 = vrot.slane %v512_v47, 7  ;;  %v625_v61 = vrot.slane %v623_v50, 7  ;;  %v791_v59 = vsel %vm14472_vm12, %v509_v53, %v790_v45  ;;  %v425_v22 = vld [vmem:[%s14378_s20 + $0x64] sm:$0xf] }
  0xb9   : > { %v1038_v62 = vrot.slane %v1036_v52, 4  ;;  %v1041_v63 = vrot.slane %v1039_v23, 5  ;;  %v626_v0 = vshll.u32 %v422_v31, 16  ;;  %792 = vst [vmem:[#allocation2 + $0x3c] sm:$0xf] %v791_v59  ;;  %v631_v37 = vshrl.u32 %v423_v60, 16 }
  0xba   : > { %v1226_v56 = vsel %vm14458_vm7, %v1221_v55, %v1225_v43  ;;  %v14655_v3 = vld [vmem:[#allocation2 + $0x34] sm:$0xf]  ;;  %v517_v6 = vor.u32 %v515_v48, %v514_v58  ;;  %v519_v10 = vrot.slane %v514_v58, 4  ;;  %v629_v13 = vrot.slane %v625_v61, 4  ;;  %v14665_v25 = vld [vmem:[%s14378_s20 + $0x28] sm:$0xf] }
  0xbb   : > { %v14657_v14 = vcombine.low %v1216_v41, %v1226_v56  ;;  %v14659_v15 = vld [vmem:[#allocation2 + $0x38] sm:$0x1]  ;;  %v1042_v17 = vor.u32 %v1041_v63, %v1038_v62  ;;  %v1045_v19 = vshll.u32 %v14655_v3, 16  ;;  %v1049_v21 = vshrl.u32 %v14655_v3, 16  ;;  %v846_v41 = vld [vmem:[#allocation2 + $0x9c] sm:$0xf] }
  0xbc   : > { %v1055_v26 = vshll.u32 %v14659_v15, 16  ;;  %v518_v27 = vsel %vm14465_vm10, %v510_v57, %v517_v6  ;;  %v795_v28 = vsel %vm14481_vm13, %v519_v10, %v794_v54  ;;  %v628_v30 = vor.u32 %v626_v0, %v625_v61  ;;  %v843_v44 = vld [vmem:[#allocation2 + $0x98] sm:$0x1]  ;;  %v14683_v61 = vld [vmem:[%s14378_s20 + $0x2c] sm:$0xf] }
  0xbd   : > { %21105 = vst [vmem:[#allocation22_spill] sm:$0xff] %v14657_v14  ;;  %12904 = vmatmul.mubr.msk.bf16.gmra.mxu1 %vm1388_vm11, %v14657_v14  ;;  %v1043_v31 = vrot.slane %v1042_v17, 4  ;;  %v1047_v32 = vrot.slane %v1045_v19, 5  ;;  %v1051_v36 = vrot.slane %v1049_v21, 4  ;;  %793 = vst.msk [vmem:[#allocation2 + $0x40] sm:$0xf] %vm756_vm4, %v518_v27 }
  0xbe   : > { %796 = vst [vmem:[#allocation2 + $0x44] sm:$0x1] %v795_v28  ;;  %v1057_v38 = vrot.slane %v1055_v26, 5  ;;  %v634_v40 = vshll.u32 %v423_v60, 16  ;;  %v840_v43 = vsel %vm14472_vm12, %v628_v30, %v839_v1  ;;  %v640_v45 = vshrl.u32 %v424_v2, 16 }
  0xbf   : > { %v1048_v18 = vsel %vm14458_vm7, %v1043_v31, %v1047_v32  ;;  %v1052_v47 = vor.u32 %v1051_v36, %v1047_v32  ;;  %v633_v48 = vrot.slane %v631_v37, 7  ;;  %841 = vst [vmem:[#allocation2 + $0x90] sm:$0xf] %v840_v43  ;;  %v643_v50 = vshll.u32 %v424_v2, 16  ;;  %v850_v17 = vld [vmem:[#allocation2 + $0xa4] sm:$0x1] }
  0xc0   : > { %v642_v52 = vrot.slane %v640_v45, 7  ;;  %v648_v23 = vshrl.u32 %v425_v22, 16  ;;  %v651_v53 = vshll.u32 %v425_v22, 16  ;;  %v521_v54 = vshrl.u32 %v14665_v25, 16  ;;  %v14680_v57 = vld [vmem:[#allocation2 + $0x3c] sm:$0xf] }
  0xc1   : > { %v1053_v55 = vrot.slane %v1052_v47, 4  ;;  %v636_v58 = vor.u32 %v634_v40, %v633_v48  ;;  %v638_v60 = vrot.slane %v633_v48, 4  ;;  %v524_v62 = vshll.u32 %v14665_v25, 16  ;;  %v797_v43 = vld [vmem:[#allocation2 + $0x48] sm:$0xf] }
  0xc2   : > { %v1060_v63 = vshrl.u32 %v14680_v57, 16  ;;  %v1063_v59 = vshll.u32 %v14680_v57, 16  ;;  %v645_v0 = vor.u32 %v643_v50, %v642_v52  ;;  %v646_v1 = vrot.slane %v642_v52, 4  ;;  %v14868_v14 = vld [vmem:[#allocation2 + $0x18] sm:$0xf] }
  0xc3   : > { %v1058_v2 = vsel %vm14458_vm7, %v1053_v55, %v1057_v38  ;;  %v637_v56 = vsel %vm14465_vm10, %v629_v13, %v636_v58  ;;  %v844_v6 = vsel %vm14481_vm13, %v638_v60, %v843_v44  ;;  %v650_v10 = vrot.slane %v648_v23, 7  ;;  %v14712_v44 = vld [vmem:[%s14378_s20 + $0x30] sm:$0xf] }
  0xc4   : > { %v14694_v19 = vcombine.low %v1048_v18, %v1058_v2  ;;  %v14696_v21 = vld [vmem:[#allocation2 + $0x40] sm:$0xf]  ;;  %v1062_v25 = vrot.slane %v1060_v63, 4  ;;  %v1065_v26 = vrot.slane %v1063_v59, 5  ;;  %842 = vst.msk [vmem:[#allocation2 + $0x94] sm:$0xf] %vm756_vm4, %v637_v56  ;;  %v847_v13 = vsel %vm14472_vm12, %v645_v0, %v846_v41 }
  0xc5   : > { %v14698_v22 = vld [vmem:[#allocation2 + $0x44] sm:$0x1]  ;;  %845 = vst [vmem:[#allocation2 + $0x98] sm:$0x1] %v844_v6  ;;  %v1069_v27 = vshll.u32 %v14696_v21, 16  ;;  %v1073_v28 = vshrl.u32 %v14696_v21, 16  ;;  %v653_v31 = vor.u32 %v651_v53, %v650_v10 }
  0xc6   : > { %21106 = vst [vmem:[#allocation23_spill] sm:$0xff] %v14694_v19  ;;  %v1079_v30 = vshll.u32 %v14698_v22, 16  ;;  %848 = vst [vmem:[#allocation2 + $0x9c] sm:$0xf] %v847_v13  ;;  %12891 = vmatprep.mubr.msk.bf16.mxu0 %vm1388_vm11, %v14694_v19  ;;  %v1066_v32 = vor.u32 %v1065_v26, %v1062_v25  ;;  %v14708_v36 = vld [vmem:[#allocation2 + $0x90] sm:$0xf] }
  0xc7   : > { %v655_v37 = vrot.slane %v650_v10, 4  ;;  %v523_v38 = vrot.slane %v521_v54, 7  ;;  %v529_v40 = vshrl.u32 %v14683_v61, 16  ;;  %v1071_v18 = vrot.slane %v1069_v27, 5 }
  0xc8   : > { %v1075_v47 = vrot.slane %v1073_v28, 4  ;;  %v1228_v48 = vshrl.u32 %v14708_v36, 16  ;;  %v1067_v50 = vrot.slane %v1066_v32, 4  ;;  %v1231_v41 = vshll.u32 %v14708_v36, 16  ;;  %v801_v32 = vld [vmem:[#allocation2 + $0x50] sm:$0x1] }
  0xc9   : > { %v654_v52 = vsel %vm14465_vm10, %v646_v1, %v653_v31  ;;  %v851_v23 = vsel %vm14481_vm13, %v655_v37, %v850_v17  ;;  %v1081_v54 = vrot.slane %v1079_v30, 5  ;;  %v526_v58 = vor.u32 %v524_v62, %v523_v38 }
  0xca   : > { %v1076_v53 = vor.u32 %v1075_v47, %v1071_v18  ;;  %v1230_v55 = vrot.slane %v1228_v48, 4  ;;  %849 = vst.msk [vmem:[#allocation2 + $0xa0] sm:$0xf] %vm756_vm4, %v654_v52  ;;  %852 = vst [vmem:[#allocation2 + $0xa4] sm:$0x1] %v851_v23  ;;  %v1233_v60 = vrot.slane %v1231_v41, 5  ;;  %v1072_v2 = vsel %vm14458_vm7, %v1067_v50, %v1071_v18 }
  0xcb   : > { %v527_v63 = vrot.slane %v523_v38, 4  ;;  %v531_v59 = vrot.slane %v529_v40, 7  ;;  %v532_v0 = vshll.u32 %v14683_v61, 16  ;;  %v14725_v1 = vld [vmem:[#allocation2 + $0x94] sm:$0xf]  ;;  %v798_v10 = vsel %vm14472_vm12, %v526_v58, %v797_v43 }
  0xcc   : > { %v1077_v56 = vrot.slane %v1076_v53, 4  ;;  %v14727_v6 = vld [vmem:[#allocation2 + $0x98] sm:$0x1]  ;;  %v538_v17 = vshrl.u32 %v14712_v44, 16  ;;  %v1234_v25 = vor.u32 %v1233_v60, %v1230_v55  ;;  %v1237_v62 = vshll.u32 %v14725_v1, 16 }
  0xcd   : > { %v1241_v26 = vshrl.u32 %v14725_v1, 16  ;;  %v1247_v61 = vshll.u32 %v14727_v6, 16  ;;  %v14735_v13 = vld [vmem:[#allocation2 + $0x9c] sm:$0xf]  ;;  %799 = vst [vmem:[#allocation2 + $0x48] sm:$0xf] %v798_v10  ;;  %v534_v31 = vor.u32 %v532_v0, %v531_v59 }
  0xce   : > { %v1082_v27 = vsel %vm14458_vm7, %v1077_v56, %v1081_v54  ;;  %v1252_v28 = vshrl.u32 %v14735_v13, 16  ;;  %v1255_v30 = vshll.u32 %v14735_v13, 16  ;;  %v1235_v38 = vrot.slane %v1234_v25, 4  ;;  %v413_v55 = vld [vmem:[%s14378_s20 + $0x34] sm:$0xf] }
  0xcf   : > { %v14741_v37 = vcombine.low %v1072_v2, %v1082_v27  ;;  %v1239_v40 = vrot.slane %v1237_v62, 5  ;;  %v1243_v43 = vrot.slane %v1241_v26, 4  ;;  %v1249_v18 = vrot.slane %v1247_v61, 5  ;;  %v804_v56 = vld [vmem:[#allocation2 + $0x54] sm:$0xf] }
  0xd0   : > { %v1254_v47 = vrot.slane %v1252_v28, 4  ;;  %v1257_v48 = vrot.slane %v1255_v30, 5  ;;  %v535_v50 = vsel %vm14465_vm10, %v527_v63, %v534_v31  ;;  %v536_v54 = vrot.slane %v531_v59, 4  ;;  %v426_v26 = vld [vmem:[%s14378_s20 + $0x68] sm:$0xf] }
  0xd1   : > { %21107 = vst [vmem:[#allocation24_spill] sm:$0xff] %v14741_v37  ;;  %12892 = vmatmul.mubr.msk.bf16.gmra.mxu0 %vm1388_vm11, %v14741_v37  ;;  %v1240_v41 = vsel %vm14458_vm7, %v1235_v38, %v1239_v40  ;;  %v1244_v52 = vor.u32 %v1243_v43, %v1239_v40  ;;  %v14749_v23 = vld [vmem:[#allocation2 + $0xa0] sm:$0xf]  ;;  %v14751_v53 = vld [vmem:[#allocation2 + $0xa4] sm:$0x1]  ;;  %v540_v58 = vrot.slane %v538_v17, 7 }
  0xd2   : > { %800 = vst.msk [vmem:[#allocation2 + $0x4c] sm:$0xf] %vm756_vm4, %v535_v50  ;;  %v1258_v60 = vor.u32 %v1257_v48, %v1254_v47  ;;  %v1261_v63 = vshll.u32 %v14749_v23, 16  ;;  %v1265_v0 = vshrl.u32 %v14749_v23, 16  ;;  %v1271_v2 = vshll.u32 %v14751_v53, 16 }
  0xd3   : > { %v1245_v10 = vrot.slane %v1244_v52, 4  ;;  %v802_v25 = vsel %vm14481_vm13, %v536_v54, %v801_v32  ;;  %v541_v62 = vshll.u32 %v14712_v44, 16  ;;  %v544_v59 = vrot.slane %v540_v58, 4  ;;  %v14765_v31 = vld [vmem:[%s14378_s20 + $0x6c] sm:$0xf] }
  0xd4   : > { %v1259_v61 = vrot.slane %v1258_v60, 4  ;;  %v1263_v27 = vrot.slane %v1261_v63, 5  ;;  %v1267_v17 = vrot.slane %v1265_v0, 4  ;;  %v1273_v28 = vrot.slane %v1271_v2, 5  ;;  %803 = vst [vmem:[#allocation2 + $0x50] sm:$0x1] %v802_v25 }
  0xd5   : > { %v14762_v30 = vld [vmem:[#allocation2 + $0x48] sm:$0xf]  ;;  %v1250_v38 = vsel %vm14458_vm7, %v1245_v10, %v1249_v18  ;;  %v543_v43 = vor.u32 %v541_v62, %v540_v58  ;;  %v546_v50 = vshrl.u32 %v413_v55, 16  ;;  %v549_v60 = vshll.u32 %v413_v55, 16  ;;  %v808_v18 = vld [vmem:[#allocation2 + $0x5c] sm:$0x1] }
  0xd6   : > { %v1084_v40 = vshrl.u32 %v14762_v30, 16  ;;  %v1087_v32 = vshll.u32 %v14762_v30, 16  ;;  %v14771_v44 = vcombine.low %v1240_v41, %v1250_v38  ;;  %v1264_v47 = vsel %vm14458_vm7, %v1259_v61, %v1263_v27 }
  0xd7   : > { %v1268_v48 = vor.u32 %v1267_v17, %v1263_v27  ;;  %v805_v63 = vsel %vm14472_vm12, %v543_v43, %v804_v56  ;;  %v548_v58 = vrot.slane %v546_v50, 7  ;;  %v657_v2 = vshrl.u32 %v426_v26, 16  ;;  %v853_v56 = vld [vmem:[#allocation2 + $0xa8] sm:$0xf]  ;;  %v429_v43 = vld [vmem:[%s14378_s20 + $0x74] sm:$0xf] }
  0xd8   : > { %21108 = vst [vmem:[#allocation25_spill] sm:$0xff] %v14771_v44  ;;  %v1086_v52 = vrot.slane %v1084_v40, 4  ;;  %v1089_v54 = vrot.slane %v1087_v32, 5  ;;  %12907 = vmatprep.mubr.msk.bf16.mxu1 %vm1388_vm11, %v14771_v44  ;;  %806 = vst [vmem:[#allocation2 + $0x54] sm:$0xf] %v805_v63  ;;  %v660_v10 = vshll.u32 %v426_v26, 16 }
  0xd9   : > { %v1269_v0 = vrot.slane %v1268_v48, 4  ;;  %v14779_v41 = vld [vmem:[#allocation2 + $0x4c] sm:$0xf]  ;;  %v665_v61 = vshrl.u32 %v14765_v31, 16  ;;  %v428_v27 = vld [vmem:[%s14378_s20 + $0x70] sm:$0xf]  ;;  %v551_v38 = vor.u32 %v549_v60, %v548_v58 }
  0xda   : > { %v1090_v25 = vor.u32 %v1089_v54, %v1086_v52  ;;  %v1093_v62 = vshll.u32 %v14779_v41, 16  ;;  %v1097_v55 = vshrl.u32 %v14779_v41, 16  ;;  %v553_v40 = vrot.slane %v548_v58, 4 }
  0xdb   : > { %v1274_v17 = vsel %vm14458_vm7, %v1269_v0, %v1273_v28  ;;  %v659_v32 = vrot.slane %v657_v2, 7  ;;  %v14790_v26 = vld [vmem:[#allocation2 + $0x50] sm:$0x1]  ;;  %v552_v45 = vsel %vm14465_vm10, %v544_v59, %v551_v38  ;;  %v667_v2 = vrot.slane %v665_v61, 7 }
  0xdc   : > { %v14788_v48 = vcombine.low %v1264_v47, %v1274_v17  ;;  %v1091_v50 = vrot.slane %v1090_v25, 4  ;;  %v1095_v52 = vrot.slane %v1093_v62, 5  ;;  %v1099_v54 = vrot.slane %v1097_v55, 4  ;;  %807 = vst.msk [vmem:[#allocation2 + $0x58] sm:$0xf] %vm756_vm4, %v552_v45 }
  0xdd   : > { %v1103_v63 = vshll.u32 %v14790_v26, 16  ;;  %v809_v28 = vsel %vm14481_vm13, %v553_v40, %v808_v18  ;;  %v662_v60 = vor.u32 %v660_v10, %v659_v32  ;;  %v663_v58 = vrot.slane %v659_v32, 4  ;;  %v857_v18 = vld [vmem:[#allocation2 + $0xb0] sm:$0x1] }
  0xde   : > { %21109 = vst [vmem:[#allocation26_spill] sm:$0xff] %v14788_v48  ;;  %12908 = vmatmul.mubr.msk.bf16.gmra.mxu1 %vm1388_vm11, %v14788_v48  ;;  %v1096_v47 = vsel %vm14458_vm7, %v1091_v50, %v1095_v52  ;;  %v1100_v0 = vor.u32 %v1099_v54, %v1095_v52  ;;  %810 = vst [vmem:[#allocation2 + $0x5c] sm:$0x1] %v809_v28  ;;  %v668_v62 = vshll.u32 %v14765_v31, 16  ;;  %v674_v10 = vshrl.u32 %v428_v27, 16 }
  0xdf   : > { %v1105_v25 = vrot.slane %v1103_v63, 5  ;;  %v854_v59 = vsel %vm14472_vm12, %v662_v60, %v853_v56  ;;  %v14805_v17 = vld [vmem:[#allocation2 + $0x54] sm:$0xf]  ;;  %v672_v38 = vrot.slane %v667_v2, 4  ;;  %v677_v40 = vshll.u32 %v428_v27, 16 }
  0xe0   : > { %v1101_v55 = vrot.slane %v1100_v0, 4  ;;  %855 = vst [vmem:[#allocation2 + $0xa8] sm:$0xf] %v854_v59  ;;  %v682_v50 = vshrl.u32 %v429_v43, 16  ;;  %v1108_v45 = vshrl.u32 %v14805_v17, 16  ;;  %v1111_v32 = vshll.u32 %v14805_v17, 16 }
  0xe1   : > { %v670_v61 = vor.u32 %v668_v62, %v667_v2  ;;  %v676_v52 = vrot.slane %v674_v10, 7  ;;  %v858_v56 = vsel %vm14481_vm13, %v672_v38, %v857_v18  ;;  %v685_v63 = vshll.u32 %v429_v43, 16  ;;  %v860_v28 = vld [vmem:[#allocation2 + $0xb4] sm:$0xf] }
  0xe2   : > { %v1106_v31 = vsel %vm14458_vm7, %v1101_v55, %v1105_v25  ;;  %v684_v54 = vrot.slane %v682_v50, 7  ;;  %v1110_v0 = vrot.slane %v1108_v45, 4  ;;  %v1113_v27 = vrot.slane %v1111_v32, 5  ;;  %859 = vst [vmem:[#allocation2 + $0xb0] sm:$0x1] %v858_v56 }
  0xe3   : > { %v14813_v60 = vcombine.low %v1096_v47, %v1106_v31  ;;  %v671_v59 = vsel %vm14465_vm10, %v663_v58, %v670_v61  ;;  %v679_v2 = vor.u32 %v677_v40, %v676_v52  ;;  %v680_v62 = vrot.slane %v676_v52, 4  ;;  %v14820_v43 = vld [vmem:[#allocation2 + $0x58] sm:$0xf]  ;;  %v14824_v55 = vld [vmem:[#allocation2] sm:$0xf] }
  0xe4   : > { %856 = vst.msk [vmem:[#allocation2 + $0xac] sm:$0xf] %vm756_vm4, %v671_v59  ;;  %v687_v25 = vor.u32 %v685_v63, %v684_v54  ;;  %v689_v10 = vrot.slane %v684_v54, 4  ;;  %v1114_v18 = vor.u32 %v1113_v27, %v1110_v0  ;;  %v11573_v58 = vrot.slane %v14824_v55, 9  ;;  %v14844_v54 = vld [vmem:[#allocation2 + $0x4] sm:$0xf] }
  0xe5   : > { %21110 = vst [vmem:[#allocation27_spill] sm:$0xff] %v14813_v60  ;;  %12895 = vmatprep.mubr.msk.bf16.mxu0 %vm1388_vm11, %v14813_v60  ;;  %v14822_v47 = vld [vmem:[#allocation2 + $0x5c] sm:$0x1]  ;;  %v1117_v38 = vshll.u32 %v14820_v43, 16  ;;  %v1121_v40 = vshrl.u32 %v14820_v43, 16  ;;  %v21111_v32 = vmov 0  ;;  %v861_v31 = vsel %vm14472_vm12, %v679_v2, %v860_v28 }
  0xe6   : > { %v1127_v50 = vshll.u32 %v14822_v47, 16  ;;  %v688_v45 = vsel %vm14465_vm10, %v680_v62, %v687_v25  ;;  %v21112_v32 = vsel %vm14833_vm0, 4294967295, %v21111_v32  ;;  %v1115_v61 = vrot.slane %v1114_v18, 4  ;;  %862 = vst [vmem:[#allocation2 + $0xb4] sm:$0xf] %v861_v31 }
  0xe7   : > { %21113 = vst [vmem:[#allocation28_spill] sm:$0xff] %v21112_v32  ;;  %v14837_v52 = vld [vmem:[#allocation2 + $0xa8] sm:$0xf]  ;;  %863 = vst.msk [vmem:[#allocation2 + $0xb8] sm:$0xf] %vm756_vm4, %v688_v45  ;;  %v865_v56 = vsel %vm14481_vm13, %v689_v10, %v864_v20  ;;  %v1920_v63 = vrot.slane %v14844_v54, 5 }
  0xe8   : > { %v1119_v0 = vrot.slane %v1117_v38, 5  ;;  %v1123_v27 = vrot.slane %v1121_v40, 4  ;;  %v1129_v59 = vrot.slane %v1127_v50, 5  ;;  %v1276_v62 = vshrl.u32 %v14837_v52, 16  ;;  %866 = vst [vmem:[#allocation2 + $0xbc] sm:$0x1] %v865_v56 }
  0xe9   : > { %v1279_v25 = vshll.u32 %v14837_v52, 16  ;;  %v1921_v28 = vsel %vm14833_vm0, %v11573_v58, %v1920_v63  ;;  %v1922_v2 = vrot.slane %v1920_v63, 4  ;;  %v14851_v18 = vld [vmem:[#allocation2 + $0xc] sm:$0xf]  ;;  %v14856_v40 = vld [vmem:[#allocation2 + $0xb0] sm:$0x1] }
  0xea   : > { %v11574_v20 = vrot.slane %v14851_v18, 9  ;;  %v1120_v10 = vsel %vm14458_vm7, %v1115_v61, %v1119_v0  ;;  %v1124_v38 = vor.u32 %v1123_v27, %v1119_v0  ;;  %v1278_v50 = vrot.slane %v1276_v62, 4  ;;  %v14858_v45 = vld [vmem:[#allocation2 + $0x10] sm:$0xf] }
  0xeb   : > { %v1927_v31 = vrot.slane %v14858_v45, 5  ;;  %v14861_v56 = vld [vmem:[#allocation2 + $0xac] sm:$0xf]  ;;  %v1281_v48 = vrot.slane %v1279_v25, 5  ;;  %v1295_v58 = vshll.u32 %v14856_v40, 16  ;;  %v21114_v63 = vrot.slane %v14447_v5, 5 }
  0xec   : > { %v11575_v61 = vrot.slane %v14868_v14, 9  ;;  %v1125_v0 = vrot.slane %v1124_v38, 4  ;;  %v1285_v27 = vshll.u32 %v14861_v56, 16  ;;  %v1289_v62 = vshrl.u32 %v14861_v56, 16 }
  0xed   : > { %v1924_v44 = vsel %vm14833_vm0, %v1922_v2, %v21114_v63  ;;  %v1282_v11 = vor.u32 %v1281_v48, %v1278_v50  ;;  %v1297_v51 = vrot.slane %v1295_v58, 5  ;;  %v1928_v25 = vsel %vm14833_vm0, %v11574_v20, %v1927_v31  ;;  %v14882_v7 = vld [vmem:[#allocation2 + $0xb4] sm:$0xf] }
  0xee   : > { %v11589_v39 = vcombine.low %v1921_v28, %v1924_v44  ;;  %v1929_v60 = vrot.slane %v1927_v31, 4  ;;  %v1130_v5 = vsel %vm14458_vm7, %v1125_v0, %v1129_v59  ;;  %v1287_v2 = vrot.slane %v1285_v27, 5  ;;  %v14877_v37 = vld [vmem:[#allocation2 + $0xb8] sm:$0xf] }
  0xef   : > { %v1291_v63 = vrot.slane %v1289_v62, 4  ;;  %v1934_v38 = vrot.slane %v14562_v12, 5  ;;  %v14880_v19 = vcombine.low %v1120_v10, %v1130_v5  ;;  %v1283_v4 = vrot.slane %v1282_v11, 4  ;;  %v14884_v44 = vld [vmem:[#allocation2 + $0xbc] sm:$0x1] }
  0xf0   : > { %v1309_v48 = vshll.u32 %v14877_v37, 16  ;;  %v21116_v28 = vrot.slane %v14516_v33, 5  ;;  %v1300_v50 = vshrl.u32 %v14882_v7, 16  ;;  %v1303_v31 = vshll.u32 %v14882_v7, 16 }
  0xf1   : > { %21115 = vst [vmem:[#allocation29_spill] sm:$0xff] %v14880_v19  ;;  %v1292_v20 = vor.u32 %v1291_v63, %v1287_v2  ;;  %v1313_v12 = vshrl.u32 %v14877_v37, 16  ;;  %12896 = vmatmul.mubr.msk.bf16.gmra.mxu0 %vm1388_vm11, %v14880_v19  ;;  %v1288_v11 = vsel %vm14458_vm7, %v1283_v4, %v1287_v2  ;;  %v1319_v58 = vshll.u32 %v14884_v44, 16 }
  0xf2   : > { %v1931_v59 = vsel %vm14833_vm0, %v1929_v60, %v21116_v28  ;;  %v1311_v10 = vrot.slane %v1309_v48, 5  ;;  %v1302_v60 = vrot.slane %v1300_v50, 4  ;;  %v1305_v27 = vrot.slane %v1303_v31, 5  ;;  %12955 = vmatprep.mubr.msk.bf16.mxu0 %vm1388_vm11, %v11589_v39 }
  0xf3   : > { %v14899_v33 = vcombine.low %v1928_v25, %v1931_v59  ;;  %v1293_v0 = vrot.slane %v1292_v20, 4  ;;  %v1315_v62 = vrot.slane %v1313_v12, 4  ;;  %v1321_v5 = vrot.slane %v1319_v58, 5  ;;  %v13950_v12 = vld [vmem:[#allocation6 + $0x40] sm:$0xff]  }
  0xf4   : > { %v1935_v63 = vsel %vm14833_vm0, %v11575_v61, %v1934_v38  ;;  %v1936_v28 = vrot.slane %v1934_v38, 4  ;;  %v1937_v19 = vrot.slane %v14574_v35, 5  ;;  %v1306_v2 = vor.u32 %v1305_v27, %v1302_v60  ;;  %v14043_v60 = vld [vmem:[#allocation6 + $0x48] sm:$0xff]  }
  0xf5   : > { %v1298_v4 = vsel %vm14458_vm7, %v1293_v0, %v1297_v51  ;;  %v1316_v48 = vor.u32 %v1315_v62, %v1311_v10  ;;  %v11576_v25 = vrot.slane %v14582_v49, 9  ;;  %v1941_v39 = vrot.slane %v14602_v8, 5 }
  0xf6   : > { %v14908_v59 = vcombine.low %v1288_v11, %v1298_v4  ;;  %v1938_v20 = vsel %vm14833_vm0, %v1936_v28, %v1937_v19  ;;  %v1944_v50 = vrot.slane %v14604_v9, 5  ;;  %v1307_v61 = vrot.slane %v1306_v2, 4 }
  0xf7   : > { %v1317_v38 = vrot.slane %v1316_v48, 4  ;;  %v14914_v31 = vcombine.low %v1935_v63, %v1938_v20  ;;  %v1943_v51 = vrot.slane %v1941_v39, 4  ;;  %v11577_v35 = vrot.slane %v14641_v46, 9 }
  0xf8   : > { %12911 = vmatprep.mubr.msk.bf16.mxu1 %vm1388_vm11, %v14908_v59  ;;  %v1948_v49 = vrot.slane %v14655_v3, 5  ;;  %v1312_v19 = vsel %vm14458_vm7, %v1307_v61, %v1311_v10  ;;  %v11539_v9 = vcombine.low %v14824_v55, %v14844_v54  ;;  %v1951_v11 = vrot.slane %v14659_v15, 5  ;;  %v14044_v61 = vld [vmem:[#allocation2 + $0x1c] sm:$0xf] }
  0xf9   : > { %v1322_v8 = vsel %vm14458_vm7, %v1317_v38, %v1321_v5  ;;  %12956 = vmatmul.mubr.msk.bf16.vlgmr.msra.gmra.mxu0 %vm1388_vm11, %v14899_v33  ;;  %v1942_v10 = vsel %vm14833_vm0, %v11576_v25, %v1941_v39  ;;  %v1945_v27 = vsel %vm14833_vm0, %v1943_v51, %v1944_v50  ;;  %v1955_v55 = vrot.slane %v14696_v21, 5  ;;  %v14945_v5 = vld [vmem:[#allocation6 + $0x68] sm:$0xff]  }
  0xfa   : > { %v14927_v58 = vcombine.low %v1312_v19, %v1322_v8  ;;  %v1950_v0 = vrot.slane %v1948_v49, 4  ;;  %13024 = vmatpush3.bf16.msra.mxu0 %v14043_v60  ;;  %12959 = vmatprep.mubr.msk.bf16.mxu0 %vm1388_vm11, %v14914_v31  ;;  %v1949_v15 = vsel %vm14833_vm0, %v11577_v35, %v1948_v49  ;;  %v1962_v62 = vrot.slane %v14779_v41, 5  ;;  %v14979_v35 = vld [vmem:[#allocation2 + $0x64] sm:$0xf]  ;;  %v14984_v19 = vld [vmem:[#allocation6 + $0x58] sm:$0xff]  }
  0xfb   : > { %13025 = vmatprep.subr.bf16.mxu0 %v13950_v12  ;;  %v14948_v63 = vcombine.low %v1942_v10, %v1945_v27  ;;  %v11578_v28 = vrot.slane %v14680_v57, 9  ;;  %v1958_v4 = vrot.slane %v14698_v22, 5  ;;  %v1957_v48 = vrot.slane %v1955_v55, 4  ;;  %v13949_v22 = vld [vmem:[#allocation6 + $0x30] sm:$0xff]   ;;  %v14992_v10 = vld [vmem:[#allocation2 + $0x60] sm:$0xf] }
  0xfc   : > { %12912 = vmatmul.mubr.msk.bf16.gmra.mxu1 %vm1388_vm11, %v14927_v58  ;;  %v1952_v54 = vsel %vm14833_vm0, %v1950_v0, %v1951_v11  ;;  %v11579_v25 = vrot.slane %v14762_v30, 9  ;;  %v14957_v20 = vcombine.low %v14851_v18, %v14858_v45  ;;  %v1964_v39 = vrot.slane %v1962_v62, 4 }
  0xfd   : > { %12919 = vmatprep.mubr.msk.bf16.mxu1 %vm1388_vm11, %v11539_v9  ;;  %v14952_v2 = vcombine.low %v1949_v15, %v1952_v54  ;;  %v1965_v50 = vrot.slane %v14790_v26, 5  ;;  %v14962_v38 = vcombine.low %v14868_v14, %v14044_v61  ;;  %v1956_v18 = vsel %vm14833_vm0, %v11578_v28, %v1955_v55  ;;  %v14048_v55 = vld [vmem:[#allocation2 + $0x24] sm:$0xf]  ;;  %v14049_v15 = vld [vmem:[#allocation2 + $0x28] sm:$0xf] }
  0xfe   : > { %13026 = vmatpush3.bf16.msra.mxu0 %v13950_v12  ;;  %v1959_v45 = vsel %vm14833_vm0, %v1957_v48, %v1958_v4  ;;  %v1969_v26 = vrot.slane %v14820_v43, 5  ;;  %v1963_v14 = vsel %vm14833_vm0, %v11579_v25, %v1962_v62  ;;  %v1976_v49 = vrot.slane %v14979_v35, 5  ;;  %v14046_v12 = vld [vmem:[#allocation6 + $0x38] sm:$0xff]   ;;  %v14050_v28 = vld [vmem:[#allocation2 + $0x68] sm:$0x1] }
  0xff   : > { %21117 = vst [vmem:[#allocation30_spill] sm:$0xff] %v14952_v2  ;;  %13095 = vmatprep.subr.bf16.mxu0 %v14945_v5  ;;  %v1966_v51 = vsel %vm14833_vm0, %v1964_v39, %v1965_v50  ;;  %v14986_v8 = vcombine.low %v1956_v18, %v1959_v45  ;;  %v11580_v9 = vrot.slane %v14805_v17, 9  ;;  %v1972_v11 = vrot.slane %v14822_v47, 5  ;;  %v15010_v39 = vld [vmem:[#allocation2 + $0x70] sm:$0xf] }
 0x100   : > { %v14990_v0 = vcombine.low %v1963_v14, %v1966_v51  ;;  %v1971_v60 = vrot.slane %v1969_v26, 4  ;;  %v11581_v27 = vrot.slane %v14992_v10, 9  ;;  %v14995_v54 = vcombine.low %v14048_v55, %v14049_v15  ;;  %v15019_v61 = vld [vmem:[#allocation2 + $0x7c] sm:$0xf]  ;;  %v430_v18 = vld [vmem:[%s14378_s20 + $0x78] sm:$0xf] }
 0x101   : > { %12960 = vmatmul.mubr.msk.bf16.gmra.mxu0 %vm1388_vm11, %v14948_v63  ;;  %21118 = vst [vmem:[#allocation31_spill] sm:$0xff] %v14986_v8  ;;  %v1978_v62 = vrot.slane %v1976_v49, 4  ;;  %v1979_v4 = vrot.slane %v14050_v28, 5  ;;  %v14999_v48 = vcombine.low %v14641_v46, %v14655_v3  ;;  %v1970_v47 = vsel %vm14833_vm0, %v11580_v9, %v1969_v26  ;;  %v15031_v14 = vld [vmem:[#allocation2 + $0x6c] sm:$0xf] }
 0x102   : > { %12963 = vmatprep.mubr.msk.bf16.mxu0 %vm1388_vm11, %v14952_v2  ;;  %21119 = vst [vmem:[#allocation32_spill] sm:$0xff] %v14990_v0  ;;  %v1973_v25 = vsel %vm14833_vm0, %v1971_v60, %v1972_v11  ;;  %v1983_v46 = vrot.slane %v15010_v39, 5  ;;  %v1977_v3 = vsel %vm14833_vm0, %v11581_v27, %v1976_v49  ;;  %v15027_v45 = vcombine.low %v14680_v57, %v14696_v21  ;;  %v431_v49 = vld [vmem:[%s14378_s20 + $0x7c] sm:$0xf]  ;;  %v15037_v27 = vld [vmem:[#allocation2 + $0x78] sm:$0xf] }
 0x103   : > { %v1980_v50 = vsel %vm14833_vm0, %v1978_v62, %v1979_v4  ;;  %v15029_v26 = vcombine.low %v1970_v47, %v1973_v25  ;;  %v11582_v51 = vrot.slane %v15031_v14, 9  ;;  %v14054_v11 = vld [vmem:[#allocation2 + $0x74] sm:$0x1]  ;;  %v11583_v55 = vrot.slane %v15037_v27, 9  ;;  %v14056_v62 = vld [vmem:[#allocation2 + $0x80] sm:$0x1] }
 0x104   : > { %12920 = vmatmul.mubr.msk.bf16.vlgmr.msra.gmra.mxu1 %vm1388_vm11, %v14957_v20  ;;  %v1985_v9 = vrot.slane %v1983_v46, 4  ;;  %v1986_v60 = vrot.slane %v14054_v11, 5  ;;  %v1993_v57 = vrot.slane %v14056_v62, 5  ;;  %v691_v21 = vshrl.u32 %v430_v18, 16  ;;  %s14132_s20 = scalar_lea.vmem %s14131_s16, 8192 }
 0x105   : > { %12988 = vmatpush3.bf16.msra.mxu1 %v14046_v12  ;;  %12923 = vmatprep.mubr.msk.bf16.mxu1 %vm1388_vm11, %v14962_v38  ;;  %21120 = vst [vmem:[#allocation33_spill] sm:$0xff] %v15029_v26  ;;  %v15035_v12 = vcombine.low %v1977_v3, %v1980_v50  ;;  %v694_v28 = vshll.u32 %v430_v18, 16  ;;  %v15042_v4 = vcombine.low %v14762_v30, %v14779_v41  ;;  %v699_v47 = vshrl.u32 %v431_v49, 16  ;;  %v15054_v30 = vld [vmem:[#allocation2 + $0x88] sm:$0xf]  ;;  %p14134_p13 = scmp.lt.s32.totalorder %s14132_s20, %s14126_s14 }
 0x106   : > { %12989 = vmatprep.subr.bf16.mxu1 %v13949_v22  ;;  %v1984_v25 = vsel %vm14833_vm0, %v11582_v51, %v1983_v46  ;;  %v693_v3 = vrot.slane %v691_v21, 7  ;;  %v702_v50 = vshll.u32 %v431_v49, 16  ;;  %v1987_v11 = vsel %vm14833_vm0, %v1985_v9, %v1986_v60  ;;  %v871_v9 = vld [vmem:[#allocation2 + $0xc8] sm:$0x1] }
 0x107   : > { %21121 = vst [vmem:[#allocation34_spill] sm:$0xff] %v15035_v12  ;;  %v1997_v41 = vrot.slane %v15054_v30, 5  ;;  %v701_v62 = vrot.slane %v699_v47, 7  ;;  %v2004_v51 = vrot.slane %v14725_v1, 5  ;;  %v14058_v47 = vld [vmem:[#allocation2 + $0x84] sm:$0xf]  ;;  %p14135_p0 = por %p14134_p13, %p14133_p11 }
 0x108   : > { %v696_v49 = vor.u32 %v694_v28, %v693_v3  ;;  %v697_v21 = vrot.slane %v693_v3, 4  ;;  %vm14202_vm1 = vmmov 0   ;;  %vm3907_vm2 = vcmask 1040384  }
 0x109   : > { %12990 = vmatpush3.bf16.msra.mxu1 %v13949_v22  ;;  %12964 = vmatmul.mubr.msk.bf16.gmra.mxu0 %vm1388_vm11, %v14986_v8  ;;  %v1990_v22 = vrot.slane %v15019_v61, 5  ;;  %v706_v60 = vrot.slane %v701_v62, 4  ;;  %vm11363_vm3 = vcmask 130048   ;;  %p14136_p5 = pnand %p14135_p0, %p14129_p10 }
 0x10a   : > { %13059 = vmatprep.subr.bf16.mxu1 %v14984_v19  ;;  %12967 = vmatprep.mubr.msk.bf16.mxu0 %vm1388_vm11, %v14990_v0  ;;  %v14059_v0 = vld [vmem:[#allocation2 + $0x8c] sm:$0x1] }
 0x10b   : > { %v1992_v15 = vrot.slane %v1990_v22, 4  ;;  %v1991_v18 = vsel %vm14833_vm0, %v11583_v55, %v1990_v22  ;;  %v704_v22 = vor.u32 %v702_v50, %v701_v62  ;;  %v15064_v55 = vcombine.low %v1984_v25, %v1987_v11 }
 0x10c   : > { %12924 = vmatmul.mubr.msk.bf16.gmra.mxu1 %vm1388_vm11, %v14995_v54  ;;  %v2000_v8 = vrot.slane %v14059_v0, 5  ;;  %v872_v3 = vsel %vm14481_vm13, %v706_v60, %v871_v9  ;;  %v15076_v25 = vcombine.low %v14805_v17, %v14820_v43  ;;  %v11585_v50 = vrot.slane %v14708_v36, 9 }
 0x10d   : > { %12927 = vmatprep.mubr.msk.bf16.mxu1 %vm1388_vm11, %v14999_v48  ;;  %v1994_v46 = vsel %vm14833_vm0, %v1992_v15, %v1993_v57  ;;  %v1999_v57 = vrot.slane %v1997_v41, 4  ;;  %v705_v28 = vsel %vm14465_vm10, %v697_v21, %v704_v22  ;;  %v2006_v0 = vrot.slane %v2004_v51, 4  ;;  %873 = vst [vmem:[#allocation2 + $0xc8] sm:$0x1] %v872_v3 }
 0x10e   : > { %v15068_v15 = vcombine.low %v1991_v18, %v1994_v46  ;;  %v2007_v11 = vrot.slane %v14727_v6, 5  ;;  %870 = vst.msk [vmem:[#allocation2 + $0xc4] sm:$0xf] %vm756_vm4, %v705_v28  ;;  %v2011_v6 = vrot.slane %v14749_v23, 5  ;;  %v2014_v62 = vrot.slane %v14751_v53, 5 }
 0x10f   : > { %v2001_v43 = vsel %vm14833_vm0, %v1999_v57, %v2000_v8  ;;  %v11586_v8 = vrot.slane %v14735_v13, 9  ;;  %v15111_v46 = vcombine.low %v15031_v14, %v15010_v39  ;;  %v2021_v21 = vrot.slane %v14856_v40, 5 }
 0x110   : > { %v15117_v9 = vcombine.low %v15037_v27, %v15019_v61  ;;  %v2025_v14 = vrot.slane %v14877_v37, 5  ;;  %v11588_v60 = vrot.slane %v14882_v7, 9  ;;  %v2028_v28 = vrot.slane %v14884_v44, 5 }
 0x111   : > { %12968 = vmatmul.mubr.msk.bf16.gmra.mxu0 %vm1388_vm11, %v15029_v26  ;;  %v867_v26 = vld [vmem:[#allocation2 + $0xc0] sm:$0xf]  ;;  %v2012_v53 = vsel %vm14833_vm0, %v11586_v8, %v2011_v6  ;;  %v15143_v3 = vcombine.low %v14058_v47, %v15054_v30  ;;  %v15169_v44 = vcombine.low %v14837_v52, %v14861_v56  ;;  %v21122_v30 = vld [vmem:[#allocation19_spill] sm:$0xff] }
 0x112   : > { %12971 = vmatprep.mubr.msk.bf16.mxu0 %vm1388_vm11, %v15035_v12  ;;  %v11584_v12 = vrot.slane %v14058_v47, 9  ;;  %v868_v2 = vsel %vm14472_vm12, %v696_v49, %v867_v26  ;;  %v15083_v26 = vcombine.low %v14992_v10, %v14979_v35  ;;  %v2008_v35 = vsel %vm14833_vm0, %v2006_v0, %v2007_v11  ;;  %v21127_v47 = vld [vmem:[#allocation29_spill] sm:$0xff] }
 0x113   : > { %869 = vst [vmem:[#allocation2 + $0xc0] sm:$0xf] %v868_v2  ;;  %v2005_v2 = vsel %vm14833_vm0, %v11585_v50, %v2004_v51  ;;  %v2018_v10 = vrot.slane %v14861_v56, 5  ;;  %v11587_v51 = vrot.slane %v14837_v52, 9  ;;  %v2027_v57 = vrot.slane %v2025_v14, 4  ;;  %v21123_v52 = vld [vmem:[#allocation20_spill] sm:$0xff] }
 0x114   : > { %12928 = vmatmul.mubr.msk.bf16.gmra.mxu1 %vm1388_vm11, %v15027_v45  ;;  %v1998_v17 = vsel %vm14833_vm0, %v11584_v12, %v1997_v41  ;;  %v15105_v18 = vcombine.low %v2005_v2, %v2008_v35  ;;  %v2013_v41 = vrot.slane %v2011_v6, 4  ;;  %v15147_v50 = vcombine.low %v14708_v36, %v14725_v1  ;;  %v21125_v56 = vld [vmem:[#allocation24_spill] sm:$0xff]  ;;  %v21130_v2 = vld [vmem:[#allocation21_spill] sm:$0xff]  ;;  %v21131_v35 = vld [vmem:[#allocation22_spill] sm:$0xff] }
 0x115   : > { %12931 = vmatprep.mubr.msk.bf16.mxu1 %vm1388_vm11, %v15042_v4  ;;  %v15103_v12 = vcombine.low %v1998_v17, %v2001_v43  ;;  %v2020_v49 = vrot.slane %v2018_v10, 4  ;;  %v2019_v40 = vsel %vm14833_vm0, %v11587_v51, %v2018_v10  ;;  %v2026_v0 = vsel %vm14833_vm0, %v11588_v60, %v2025_v14  ;;  %v21129_v17 = vld [vmem:[#allocation18_spill] sm:$0xff]  ;;  %v21132_v14 = vld [vmem:[#allocation25_spill] sm:$0xff] }
 0x116   : > { %v2015_v39 = vsel %vm14833_vm0, %v2013_v41, %v2014_v62  ;;  %v2029_v11 = vsel %vm14833_vm0, %v2027_v57, %v2028_v28  ;;  %v15165_v1 = vcombine.low %v14735_v13, %v14749_v23  ;;  %v15181_v13 = vcombine.low %v14882_v7, %v14877_v37  ;;  %v13955_v23 = vld [vmem:[#allocation6 + $0x60] sm:$0xff]   ;;  %v21124_v7 = vld [vmem:[#allocation23_spill] sm:$0xff]  ;;  %v15225_v6 = vld [vmem:[#allocation2 + $0xc4] sm:$0xf] }
 0x117   : > { %v2022_v61 = vsel %vm14833_vm0, %v2020_v49, %v2021_v21  ;;  %v15136_v27 = vcombine.low %v2012_v53, %v2015_v39  ;;  %v15161_v36 = vcombine.low %v2026_v0, %v2029_v11  ;;  %v13954_v37 = vld [vmem:[#allocation6 + $0x50] sm:$0xff]   ;;  %v2564_v41 = vshll.u32 %v15225_v6, 16 }
 0x118   : > { %v15138_v22 = vcombine.low %v2019_v40, %v2022_v61  ;;  %v2568_v62 = vshrl.u32 %v15225_v6, 16  ;;  %v15239_v39 = vld [vmem:[#allocation2 + $0xc8] sm:$0x1]  ;;  %v21133_v40 = vld [vmem:[#allocation26_spill] sm:$0xff] }
 0x119   : > { %12972 = vmatmul.mubr.msk.bf16.gmra.mxu0 %vm1388_vm11, %v15064_v55  ;;  %v2566_v21 = vrot.slane %v2564_v41, 5  ;;  %v2574_v57 = vshll.u32 %v15239_v39, 16  ;;  %v2800_v24 = vrot.slane %v15239_v39, 5 }
 0x11a   : > { %12975 = vmatprep.mubr.msk.bf16.mxu0 %vm1388_vm11, %v15068_v15  ;;  %v15223_v43 = vld [vmem:[#allocation2 + $0xc0] sm:$0xf]  ;;  %v2570_v53 = vrot.slane %v2568_v62, 4 }
 0x11b   : > { %v2555_v10 = vshrl.u32 %v15223_v43, 16  ;;  %v2558_v8 = vshll.u32 %v15223_v43, 16  ;;  %v2576_v11 = vrot.slane %v2574_v57, 5  ;;  %v11661_v29 = vrot.slane %v15223_v43, 9 }
 0x11c   : > { %12932 = vmatmul.mubr.msk.bf16.gmra.mxu1 %vm1388_vm11, %v15076_v25  ;;  %v2571_v60 = vor.u32 %v2570_v53, %v2566_v21 }
 0x11d   : > { %12935 = vmatprep.mubr.msk.bf16.mxu1 %vm1388_vm11, %v15083_v26  ;;  %v2557_v51 = vrot.slane %v2555_v10, 4  ;;  %v2560_v49 = vrot.slane %v2558_v8, 5  ;;  %v15260_v10 = vld [vmem:[#allocation2 + $0xcc] sm:$0xf]  ;;  %v15262_v8 = vld [vmem:[#allocation2 + $0xd0] sm:$0xf] }
 0x11e   : > { %v2572_v0 = vrot.slane %v2571_v60, 4  ;;  %v3237_v41 = vshrl.u32 %v15260_v10, 16  ;;  %v3240_v62 = vshll.u32 %v15260_v10, 16  ;;  %v11681_v34 = vcombine.low %v15260_v10, %v15262_v8 }
 0x11f   : > { %v2561_v61 = vor.u32 %v2560_v49, %v2557_v51  ;;  %v3246_v51 = vshll.u32 %v15262_v8, 16  ;;  %v3250_v49 = vshrl.u32 %v15262_v8, 16 }
 0x120   : > { %v3239_v53 = vrot.slane %v3237_v41, 4 }
 0x121   : > { %12976 = vmatmul.mubr.msk.bf16.gmra.mxu0 %vm1388_vm11, %v15103_v12  ;;  %v2562_v28 = vrot.slane %v2561_v61, 4  ;;  %v3242_v61 = vrot.slane %v3240_v62, 5  ;;  %v3248_v60 = vrot.slane %v3246_v51, 5  ;;  %v3252_v57 = vrot.slane %v3250_v49, 4  ;;  %v13960_v49 = vld [vmem:[#allocation6 + $0x80] sm:$0xff]  }
 0x122   : > { %12979 = vmatprep.mubr.msk.bf16.mxu0 %vm1388_vm11, %v15105_v18  ;;  %v11623_v51 = vcombine.low %v15223_v43, %v15225_v6 }
 0x124   : > { %12936 = vmatmul.mubr.msk.bf16.gmra.mxu1 %vm1388_vm11, %v15111_v46 }
 0x125   : > { %12939 = vmatprep.mubr.msk.bf16.mxu1 %vm1388_vm11, %v15117_v9 }
 0x129   : > { %12980 = vmatmul.mubr.msk.bf16.gmra.mxu0 %vm1388_vm11, %v15136_v27 }
 0x12a   : > { %12983 = vmatprep.mubr.msk.bf16.mxu0 %vm1388_vm11, %v15138_v22 }
 0x12c   : > { %12940 = vmatmul.mubr.msk.bf16.gmra.mxu1 %vm1388_vm11, %v15143_v3 }
 0x12d   : > { %12943 = vmatprep.mubr.msk.bf16.mxu1 %vm1388_vm11, %v15147_v50 }
 0x131   : > { %12984 = vmatmul.mubr.msk.bf16.gmra.mxu0 %vm1388_vm11, %v15161_v36 }
 0x132   : > { %13027 = vmatprep.mubr.msk.bf16.mxu0 %vm1388_vm11, %v14531_v16  ;;  %v15190_v16 = vld [vmem:[#allocation6 + $0x88] sm:$0xff]  }
 0x134   : > { %12944 = vmatmul.mubr.msk.bf16.gmra.mxu1 %vm1388_vm11, %v15165_v1 }
 0x135   : > { %12947 = vmatprep.mubr.msk.bf16.mxu1 %vm1388_vm11, %v15169_v44 }
 0x139   : > { %13028 = vmatmul.mubr.msk.bf16.vlgmr.msra.gmra.mxu0 %vm1388_vm11, %v21122_v30 }
 0x13a   : > { %13096 = vmatpush3.bf16.msra.mxu0 %v14945_v5  ;;  %13031 = vmatprep.mubr.msk.bf16.mxu0 %vm1388_vm11, %v21123_v52  ;;  %v15204_v5 = vld [vmem:[#allocation6 + $0x78] sm:$0xff]  }
 0x13b   : > { %13097 = vmatprep.subr.bf16.mxu0 %v13955_v23 }
 0x13c   : > { %12948 = vmatmul.mubr.msk.bf16.gmra.mxu1 %vm1388_vm11, %v15181_v13 }
 0x13d   : > { %12991 = vmatprep.mubr.msk.bf16.mxu1 %vm1388_vm11, %v14957_v20  ;;  %v21126_v20 = vld [vmem:[#allocation27_spill] sm:$0xff] }
 0x13e   : > { %13098 = vmatpush3.bf16.msra.mxu0 %v13955_v23  ;;  %v2567_v23 = vsel %vm14458_vm7, %v2562_v28, %v2566_v21  ;;  %v15278_v28 = vld [vmem:[#allocation2 + $0xd4] sm:$0x1] }
 0x13f   : > { %13167 = vmatprep.subr.bf16.mxu0 %v15190_v16 }
 0x141   : > { %13032 = vmatmul.mubr.msk.bf16.gmra.mxu0 %vm1388_vm11, %v21124_v7 }
 0x142   : > { %13035 = vmatprep.mubr.msk.bf16.mxu0 %vm1388_vm11, %v21125_v56 }
 0x144   : > { %12992 = vmatmul.mubr.msk.bf16.vlgmr.msra.gmra.mxu1 %vm1388_vm11, %v14962_v38 }
 0x145   : > { %13060 = vmatpush3.bf16.msra.mxu1 %v14984_v19  ;;  %12995 = vmatprep.mubr.msk.bf16.mxu1 %vm1388_vm11, %v14995_v54  ;;  %v21128_v19 = vld [vmem:[#allocation17_spill] sm:$0xff] }
 0x146   : > { %13061 = vmatprep.subr.bf16.mxu1 %v13954_v37 }
 0x149   : > { %13062 = vmatpush3.bf16.msra.mxu1 %v13954_v37  ;;  %13036 = vmatmul.mubr.msk.bf16.gmra.mxu0 %vm1388_vm11, %v21126_v20  ;;  %v2577_v37 = vsel %vm14458_vm7, %v2572_v0, %v2576_v11  ;;  %v3243_v0 = vor.u32 %v3242_v61, %v3239_v53  ;;  %v3253_v11 = vor.u32 %v3252_v57, %v3248_v60  ;;  %v21140_v57 = vld [vmem:[#allocation33_spill] sm:$0xff] }
 0x14a   : > { %13131 = vmatprep.subr.bf16.mxu1 %v15204_v5  ;;  %13039 = vmatprep.mubr.msk.bf16.mxu0 %vm1388_vm11, %v21127_v47  ;;  %v15270_v21 = vcombine.low %v2567_v23, %v2577_v37  ;;  %v3256_v23 = vshll.u32 %v15278_v28, 16 }
 0x14b   : > { %v3244_v37 = vrot.slane %v3243_v0, 4  ;;  %v3254_v41 = vrot.slane %v3253_v11, 4 }
 0x14c   : > { %12996 = vmatmul.mubr.msk.bf16.gmra.mxu1 %vm1388_vm11, %v14999_v48  ;;  %21134 = vst [vmem:[#allocation19_spill] sm:$0xff] %v15270_v21  ;;  %v3258_v62 = vrot.slane %v3256_v23, 5 }
 0x14d   : > { %12999 = vmatprep.mubr.msk.bf16.mxu1 %vm1388_vm11, %v15027_v45 }
 0x14e   : > { %v3259_v42 = vsel %vm14458_vm7, %v3254_v41, %v3258_v62 }
 0x151   : > { %13040 = vmatmul.mubr.msk.bf16.gmra.mxu0 %vm1388_vm11, %v21128_v19 }
 0x152   : > { %13043 = vmatprep.mubr.msk.bf16.mxu0 %vm1388_vm11, %v21129_v17 }
 0x154   : > { %13000 = vmatmul.mubr.msk.bf16.gmra.mxu1 %vm1388_vm11, %v15042_v4  ;;  %v15301_v61 = vpop.f32.mrf.mxu0 }
 0x155   : > { %13003 = vmatprep.mubr.msk.bf16.mxu1 %vm1388_vm11, %v15076_v25 }
 0x159   : > { %13044 = vmatmul.mubr.msk.bf16.gmra.mxu0 %vm1388_vm11, %v21130_v2 }
 0x15a   : > { %13047 = vmatprep.mubr.msk.bf16.mxu0 %vm1388_vm11, %v21131_v35 }
 0x15c   : > { %13004 = vmatmul.mubr.msk.bf16.gmra.mxu1 %vm1388_vm11, %v15083_v26 }
 0x15d   : > { %13007 = vmatprep.mubr.msk.bf16.mxu1 %vm1388_vm11, %v15111_v46 }
 0x161   : > { %13048 = vmatmul.mubr.msk.bf16.gmra.mxu0 %vm1388_vm11, %v21132_v14 }
 0x162   : > { %13051 = vmatprep.mubr.msk.bf16.mxu0 %vm1388_vm11, %v21133_v40 }
 0x164   : > { %13008 = vmatmul.mubr.msk.bf16.gmra.mxu1 %vm1388_vm11, %v15117_v9 }
 0x165   : > { %13011 = vmatprep.mubr.msk.bf16.mxu1 %vm1388_vm11, %v15143_v3 }
 0x169   : > { %13052 = vmatmul.mubr.msk.bf16.gmra.mxu0 %vm1388_vm11, %v14908_v59 }
 0x16a   : > { %13055 = vmatprep.mubr.msk.bf16.mxu0 %vm1388_vm11, %v14927_v58 }
 0x16c   : > { %13012 = vmatmul.mubr.msk.bf16.gmra.mxu1 %vm1388_vm11, %v15147_v50 }
 0x16d   : > { %13015 = vmatprep.mubr.msk.bf16.mxu1 %vm1388_vm11, %v15165_v1 }
 0x171   : > { %13056 = vmatmul.mubr.msk.bf16.gmra.mxu0 %vm1388_vm11, %v15270_v21 }
 0x172   : > { %13099 = vmatprep.mubr.msk.bf16.mxu0 %vm1388_vm11, %v14962_v38  ;;  %v3249_v38 = vsel %vm14458_vm7, %v3244_v37, %v3248_v60 }
 0x173   : > { %v15291_v53 = vcombine.low %v3249_v38, %v3259_v42  ;;  %v15310_v42 = vpop.f32.mrf.mxu0  ;;  %v2797_v38 = vrot.slane %v15225_v6, 5 }
 0x174   : > { %13016 = vmatmul.mubr.msk.bf16.gmra.mxu1 %vm1388_vm11, %v15169_v44 }
 0x175   : > { %13019 = vmatprep.mubr.msk.bf16.mxu1 %vm1388_vm11, %v15181_v13  ;;  %21135 = vst [vmem:[#allocation20_spill] sm:$0xff] %v15291_v53  ;;  %v2798_v43 = vsel %vm14833_vm0, %v11661_v29, %v2797_v38 }
 0x179   : > { %13100 = vmatmul.mubr.msk.bf16.vlgmr.msra.gmra.mxu0 %vm1388_vm11, %v14995_v54  ;;  %v13959_v54 = vld [vmem:[#allocation6 + $0x70] sm:$0xff]  }
 0x17a   : > { %13168 = vmatpush3.bf16.msra.mxu0 %v15190_v16  ;;  %13103 = vmatprep.mubr.msk.bf16.mxu0 %vm1388_vm11, %v14999_v48  ;;  %v21136_v48 = vld [vmem:[#allocation30_spill] sm:$0xff] }
 0x17b   : > { %13169 = vmatprep.subr.bf16.mxu0 %v13960_v49 }
 0x17c   : > { %13020 = vmatmul.mubr.msk.bf16.gmra.mxu1 %vm1388_vm11, %v11623_v51 }
 0x17d   : > { %13063 = vmatprep.mubr.msk.bf16.mxu1 %vm1388_vm11, %v14899_v33  ;;  %v15314_v33 = vpop.f32.mrf.mxu0 }
 0x17e   : > { %13170 = vmatpush3.bf16.msra.mxu0 %v13960_v49 }
 0x17f   : > { %v15324_v16 = vpop.f32.mrf.mxu0 }
 0x181   : > { %13104 = vmatmul.mubr.msk.bf16.gmra.mxu0 %vm1388_vm11, %v15027_v45  ;;  %v15320_v45 = vpop.f32.mrf.mxu1 }
 0x182   : > { %13107 = vmatprep.mubr.msk.bf16.mxu0 %vm1388_vm11, %v15042_v4  ;;  %v21137_v4 = vld [vmem:[#allocation31_spill] sm:$0xff] }
 0x184   : > { %13064 = vmatmul.mubr.msk.bf16.vlgmr.msra.gmra.mxu1 %vm1388_vm11, %v14914_v31 }
 0x185   : > { %13132 = vmatpush3.bf16.msra.mxu1 %v15204_v5  ;;  %13067 = vmatprep.mubr.msk.bf16.mxu1 %vm1388_vm11, %v14948_v63  ;;  %v15326_v5 = vpop.f32.mrf.mxu1 }
 0x186   : > { %13133 = vmatprep.subr.bf16.mxu1 %v13959_v54  ;;  %21138 = vst [vmem:[#allocation23_spill] sm:$0xff] %v15326_v5 }
 0x187   : > { %v15336_v60 = vpop.f32.mrf.mxu1 }
 0x189   : > { %13134 = vmatpush3.bf16.msra.mxu1 %v13959_v54  ;;  %13108 = vmatmul.mubr.msk.bf16.gmra.mxu0 %vm1388_vm11, %v15076_v25  ;;  %v15330_v25 = vpop.f32.mrf.mxu0  ;;  %v15342_v11 = vpop.f32.mrf.mxu1 }
 0x18a   : > { %13111 = vmatprep.mubr.msk.bf16.mxu0 %vm1388_vm11, %v15083_v26  ;;  %v21139_v26 = vld [vmem:[#allocation32_spill] sm:$0xff]  ;;  %21141 = vst [vmem:[#allocation24_spill] sm:$0xff] %v15342_v11 }
 0x18b   : > { %v15340_v0 = vpop.f32.mrf.mxu0  ;;  %v15352_v23 = vpop.f32.mrf.mxu1 }
 0x18c   : > { %13068 = vmatmul.mubr.msk.bf16.gmra.mxu1 %vm1388_vm11, %v21136_v48 }
 0x18d   : > { %13071 = vmatprep.mubr.msk.bf16.mxu1 %vm1388_vm11, %v21137_v4  ;;  %v15358_v41 = vpop.f32.mrf.mxu1 }
 0x18e   : > { %21143 = vst [vmem:[#allocation27_spill] sm:$0xff] %v15358_v41 }
 0x191   : > { %13112 = vmatmul.mubr.msk.bf16.gmra.mxu0 %vm1388_vm11, %v15111_v46  ;;  %v15346_v46 = vpop.f32.mrf.mxu0 }
 0x192   : > { %13115 = vmatprep.mubr.msk.bf16.mxu0 %vm1388_vm11, %v15117_v9  ;;  %v21142_v9 = vld [vmem:[#allocation34_spill] sm:$0xff] }
 0x193   : > { %v15356_v37 = vpop.f32.mrf.mxu0 }
 0x194   : > { %13072 = vmatmul.mubr.msk.bf16.gmra.mxu1 %vm1388_vm11, %v21139_v26 }
 0x195   : > { %13075 = vmatprep.mubr.msk.bf16.mxu1 %vm1388_vm11, %v21140_v57 }
 0x199   : > { %13116 = vmatmul.mubr.msk.bf16.gmra.mxu0 %vm1388_vm11, %v15143_v3  ;;  %v15362_v3 = vpop.f32.mrf.mxu0 }
 0x19a   : > { %13119 = vmatprep.mubr.msk.bf16.mxu0 %vm1388_vm11, %v15147_v50  ;;  %v15368_v50 = vpop.f32.mrf.mxu1 }
 0x19b   : > { %v15372_v62 = vpop.f32.mrf.mxu0 }
 0x19c   : > { %13076 = vmatmul.mubr.msk.bf16.gmra.mxu1 %vm1388_vm11, %v21142_v9  ;;  %v15374_v49 = vpop.f32.mrf.mxu1 }
 0x19d   : > { %13079 = vmatprep.mubr.msk.bf16.mxu1 %vm1388_vm11, %v15064_v55  ;;  %21144 = vst [vmem:[#allocation29_spill] sm:$0xff] %v15374_v49 }
 0x1a1   : > { %13120 = vmatmul.mubr.msk.bf16.gmra.mxu0 %vm1388_vm11, %v15165_v1  ;;  %v15378_v1 = vpop.f32.mrf.mxu0 }
 0x1a2   : > { %13123 = vmatprep.mubr.msk.bf16.mxu0 %vm1388_vm11, %v15169_v44  ;;  %v15383_v44 = vpop.f32.mrf.mxu1 }
 0x1a3   : > { %21145 = vst [vmem:[#allocation17_spill] sm:$0xff] %v15383_v44  ;;  %v15388_v54 = vpop.f32.mrf.mxu0 }
 0x1a4   : > { %13080 = vmatmul.mubr.msk.bf16.gmra.mxu1 %vm1388_vm11, %v15068_v15 }
 0x1a5   : > { %13083 = vmatprep.mubr.msk.bf16.mxu1 %vm1388_vm11, %v15103_v12 }
 0x1a9   : > { %13124 = vmatmul.mubr.msk.bf16.gmra.mxu0 %vm1388_vm11, %v15181_v13  ;;  %v15392_v13 = vpop.f32.mrf.mxu1 }
 0x1aa   : > { %13127 = vmatprep.mubr.msk.bf16.mxu0 %vm1388_vm11, %v11623_v51  ;;  %21146 = vst [vmem:[#allocation18_spill] sm:$0xff] %v15392_v13  ;;  %v2799_v51 = vrot.slane %v2797_v38, 4 }
 0x1ab   : > { %v15403_v6 = vpop.f32.mrf.mxu1 }
 0x1ac   : > { %13084 = vmatmul.mubr.msk.bf16.gmra.mxu1 %vm1388_vm11, %v15105_v18  ;;  %21147 = vst [vmem:[#allocation21_spill] sm:$0xff] %v15403_v6  ;;  %v2801_v39 = vsel %vm14833_vm0, %v2799_v51, %v2800_v24 }
 0x1ad   : > { %13087 = vmatprep.mubr.msk.bf16.mxu1 %vm1388_vm11, %v15136_v27  ;;  %v15415_v13 = vpop.f32.mrf.mxu1 }
 0x1ae   : > { %21148 = vst [vmem:[#allocation22_spill] sm:$0xff] %v15415_v13 }
 0x1b1   : > { %v15396_v49 = vpop.f32.mrf.mxu0  ;;  %13128 = vmatmul.mubr.msk.bf16.gmra.mxu0 %vm1388_vm11, %v11681_v34 }
 0x1b2   : > { %13171 = vmatprep.mubr.msk.bf16.mxu0 %vm1388_vm11, %v14914_v31  ;;  %v15417_v31 = vcombine.low %v2798_v43, %v2801_v39 }
 0x1b3   : > { %v15405_v41 = vpop.f32.mrf.mxu0 }
 0x1b4   : > { %13088 = vmatmul.mubr.msk.bf16.gmra.mxu1 %vm1388_vm11, %v15138_v22 }
 0x1b5   : > { %13091 = vmatprep.mubr.msk.bf16.mxu1 %vm1388_vm11, %v15161_v36  ;;  %v15413_v34 = vpop.f32.mrf.mxu0 }
 0x1b7   : > { %v15419_v11 = vpop.f32.mrf.mxu0 }
 0x1b9   : > { %v12957_v5 = vpop.f32.mrf.mxu0  ;;  %13172 = vmatmul.mubr.msk.bf16.vlgmr.msra.gmra.mxu0 %vm1388_vm11, %v14948_v63 }
 0x1ba   : > { %13175 = vmatprep.mubr.msk.bf16.mxu0 %vm1388_vm11, %v21136_v48 }
 0x1bb   : > { %v2177_v24 = vpop.f32.mrf.mxu0 }
 0x1bc   : > { %v15425_v53 = vpop.f32.mrf.mxu1  ;;  %13092 = vmatmul.mubr.msk.bf16.gmra.mxu1 %vm1388_vm11, %v15417_v31 }
 0x1bd   : > { %21149 = vst [vmem:[#allocation25_spill] sm:$0xff] %v15425_v53  ;;  %13135 = vmatprep.mubr.msk.bf16.mxu1 %vm1388_vm11, %v21122_v30  ;;  %v12958_v38 = vpop.f32.mrf.mxu0 }
 0x1be   : > { %v15431_v29 = vpop.f32.mrf.mxu1 }
 0x1bf   : > { %21150 = vst [vmem:[#allocation26_spill] sm:$0xff] %v15431_v29  ;;  %v2180_v43 = vpop.f32.mrf.mxu0 }
 0x1c0   : > { %v15433_v51 = vpop.f32.mrf.mxu1 }
 0x1c1   : > { %21151 = vst [vmem:[#allocation30_spill] sm:$0xff] %v15433_v51  ;;  %v12961_v63 = vpop.f32.mrf.mxu0  ;;  %13176 = vmatmul.mubr.msk.bf16.gmra.mxu0 %vm1388_vm11, %v21137_v4 }
 0x1c2   : > { %v15435_v39 = vpop.f32.mrf.mxu1  ;;  %13179 = vmatprep.mubr.msk.bf16.mxu0 %vm1388_vm11, %v21139_v26 }
 0x1c3   : > { %21152 = vst [vmem:[#allocation31_spill] sm:$0xff] %v15435_v39  ;;  %v2193_v30 = vpop.f32.mrf.mxu0 }
 0x1c4   : > { %v12921_v48 = vpop.f32.mrf.mxu1  ;;  %13136 = vmatmul.mubr.msk.bf16.vlgmr.msra.gmra.mxu1 %vm1388_vm11, %v21123_v52 }
 0x1c5   : > { %v1781_v29 = vadd.f32 %v12921_v48, %v15301_v61  ;;  %13139 = vmatprep.mubr.msk.bf16.mxu1 %vm1388_vm11, %v21124_v7  ;;  %v12962_v53 = vpop.f32.mrf.mxu0 }
 0x1c6   : > { %v1772_v51 = vpop.f32.mrf.mxu1 }
 0x1c7   : > { %v1773_v39 = vadd.f32 %v1772_v51, %v15310_v42  ;;  %v15447_v13 = vadd.f32 %v12957_v5, %v1781_v29  ;;  %v2196_v6 = vpop.f32.mrf.mxu0 }
 0x1c8   : > { %v12922_v4 = vpop.f32.mrf.mxu1 }
 0x1c9   : > { %v15449_v21 = vadd.f32 %v2177_v24, %v1773_v39  ;;  %v1784_v26 = vadd.f32 %v12922_v4, %v15314_v33  ;;  %v12965_v52 = vpop.f32.mrf.mxu0  ;;  %13180 = vmatmul.mubr.msk.bf16.gmra.mxu0 %vm1388_vm11, %v21140_v57 }
 0x1ca   : > { %v1775_v44 = vpop.f32.mrf.mxu1  ;;  %13183 = vmatprep.mubr.msk.bf16.mxu0 %vm1388_vm11, %v21142_v9 }
 0x1cb   : > { %v1776_v61 = vadd.f32 %v1775_v44, %v15324_v16  ;;  %v15457_v7 = vadd.f32 %v12958_v38, %v1784_v26  ;;  %v2209_v5 = vpop.f32.mrf.mxu0 }
 0x1cc   : > { %v12925_v42 = vpop.f32.mrf.mxu1  ;;  %13140 = vmatmul.mubr.msk.bf16.gmra.mxu1 %vm1388_vm11, %v21125_v56 }
 0x1cd   : > { %v1797_v24 = vadd.f32 %v12925_v42, %v15330_v25  ;;  %13143 = vmatprep.mubr.msk.bf16.mxu1 %vm1388_vm11, %v21126_v20  ;;  %v15464_v33 = vadd.f32 %v2180_v43, %v1776_v61  ;;  %v12966_v29 = vpop.f32.mrf.mxu0 }
 0x1ce   : > { %v1788_v57 = vpop.f32.mrf.mxu1 }
 0x1cf   : > { %v1789_v16 = vadd.f32 %v1788_v57, %v15340_v0  ;;  %v15467_v44 = vadd.f32 %v12961_v63, %v1797_v24  ;;  %v2212_v38 = vpop.f32.mrf.mxu0 }
 0x1d0   : > { %v12926_v9 = vpop.f32.mrf.mxu1 }
 0x1d1   : > { %v15469_v51 = vadd.f32 %v2193_v30, %v1789_v16  ;;  %v1800_v56 = vadd.f32 %v12926_v9, %v15346_v46  ;;  %v12969_v48 = vpop.f32.mrf.mxu0  ;;  %13184 = vmatmul.mubr.msk.bf16.gmra.mxu0 %vm1388_vm11, %v15064_v55 }
 0x1d2   : > { %v1791_v39 = vpop.f32.mrf.mxu1  ;;  %13187 = vmatprep.mubr.msk.bf16.mxu0 %vm1388_vm11, %v15068_v15 }
 0x1d3   : > { %v1792_v20 = vadd.f32 %v1791_v39, %v15356_v37  ;;  %v15477_v25 = vadd.f32 %v12962_v53, %v1800_v56  ;;  %v2225_v43 = vpop.f32.mrf.mxu0 }
 0x1d4   : > { %v12929_v0 = vpop.f32.mrf.mxu1  ;;  %13144 = vmatmul.mubr.msk.bf16.gmra.mxu1 %vm1388_vm11, %v21127_v47 }
 0x1d5   : > { %v1813_v63 = vadd.f32 %v12929_v0, %v15362_v3  ;;  %13147 = vmatprep.mubr.msk.bf16.mxu1 %vm1388_vm11, %v21128_v19  ;;  %v15484_v46 = vadd.f32 %v2196_v6, %v1792_v20  ;;  %v12970_v30 = vpop.f32.mrf.mxu0 }
 0x1d6   : > { %v1804_v55 = vpop.f32.mrf.mxu1 }
 0x1d7   : > { %v1805_v37 = vadd.f32 %v1804_v55, %v15372_v62  ;;  %v15487_v4 = vadd.f32 %v12965_v52, %v1813_v63  ;;  %v2228_v53 = vpop.f32.mrf.mxu0 }
 0x1d8   : > { %v12930_v15 = vpop.f32.mrf.mxu1 }
 0x1d9   : > { %v15489_v26 = vadd.f32 %v2209_v5, %v1805_v37  ;;  %v1816_v47 = vadd.f32 %v12930_v15, %v15378_v1  ;;  %v12973_v42 = vpop.f32.mrf.mxu0  ;;  %13188 = vmatmul.mubr.msk.bf16.gmra.mxu0 %vm1388_vm11, %v15103_v12 }
 0x1da   : > { %v1807_v61 = vpop.f32.mrf.mxu1  ;;  %13191 = vmatprep.mubr.msk.bf16.mxu0 %vm1388_vm11, %v15105_v18 }
 0x1db   : > { %v1808_v19 = vadd.f32 %v1807_v61, %v15388_v54  ;;  %v15497_v3 = vadd.f32 %v12966_v29, %v1816_v47  ;;  %v15501_v6 = vpop.f32.mrf.mxu0 }
 0x1dc   : > { %v12933_v62 = vpop.f32.mrf.mxu1  ;;  %13148 = vmatmul.mubr.msk.bf16.gmra.mxu1 %vm1388_vm11, %v21129_v17 }
 0x1dd   : > { %v1829_v1 = vadd.f32 %v12933_v62, %v15396_v49  ;;  %13151 = vmatprep.mubr.msk.bf16.mxu1 %vm1388_vm11, %v21130_v2  ;;  %v15506_v52 = vadd.f32 %v2212_v38, %v1808_v19  ;;  %v12974_v54 = vpop.f32.mrf.mxu0  ;;  %v3479_v2 = vrot.slane %v15262_v8, 5  ;;  %v21153_v62 = vld [vmem:[#allocation17_spill] sm:$0xff] }
 0x1de   : > { %v1820_v12 = vpop.f32.mrf.mxu1 }
 0x1df   : > { %v1821_v5 = vadd.f32 %v1820_v12, %v15405_v41  ;;  %v15509_v18 = vadd.f32 %v12969_v48, %v1829_v1  ;;  %v15511_v57 = vpop.f32.mrf.mxu0  ;;  %v3481_v39 = vrot.slane %v3479_v2, 4  ;;  %v3482_v48 = vrot.slane %v15278_v28, 5  ;;  %v21154_v12 = vld [vmem:[#allocation19_spill] sm:$0xff] }
 0x1e0   : > { %v12934_v24 = vpop.f32.mrf.mxu1 }
 0x1e1   : > { %v15513_v29 = vadd.f32 %v2225_v43, %v1821_v5  ;;  %v1832_v17 = vadd.f32 %v12934_v24, %v15413_v34  ;;  %v12977_v49 = vpop.f32.mrf.mxu0  ;;  %13192 = vmatmul.mubr.msk.bf16.gmra.mxu0 %vm1388_vm11, %v15136_v27  ;;  %v3483_v28 = vsel %vm14833_vm0, %v3481_v39, %v3482_v48  ;;  %v21158_v48 = vld [vmem:[#allocation25_spill] sm:$0xff] }
 0x1e2   : > { %v1823_v16 = vpop.f32.mrf.mxu1  ;;  %13195 = vmatprep.mubr.msk.bf16.mxu0 %vm1388_vm11, %v15138_v22  ;;  %v11719_v22 = vrot.slane %v15260_v10, 9 }
 0x1e3   : > { %v1824_v9 = vadd.f32 %v1823_v16, %v15419_v11  ;;  %v15522_v41 = vadd.f32 %v12970_v30, %v1832_v17  ;;  %v15526_v56 = vpop.f32.mrf.mxu0  ;;  %v21155_v16 = vld [vmem:[#allocation21_spill] sm:$0xff] }
 0x1e4   : > { %v12937_v38 = vpop.f32.mrf.mxu1  ;;  %13152 = vmatmul.mubr.msk.bf16.gmra.mxu1 %vm1388_vm11, %v21131_v35  ;;  %v3480_v10 = vsel %vm14833_vm0, %v11719_v22, %v3479_v2  ;;  %v21157_v22 = vld [vmem:[#allocation20_spill] sm:$0xff] }
 0x1e5   : > { %v1845_v34 = vadd.f32 %v12937_v38, %v15320_v45  ;;  %13155 = vmatprep.mubr.msk.bf16.mxu1 %vm1388_vm11, %v21132_v14  ;;  %v15531_v27 = vadd.f32 %v2228_v53, %v1824_v9  ;;  %v12978_v11 = vpop.f32.mrf.mxu0  ;;  %v11720_v37 = vcombine.low %v3480_v10, %v3483_v28  ;;  %v21156_v38 = vld [vmem:[#allocation22_spill] sm:$0xff] }
 0x1e6   : > { %v15533_v8 = vpop.f32.mrf.mxu1  ;;  %v21159_v10 = vld [vmem:[#allocation26_spill] sm:$0xff] }
 0x1e7   : > { %v15537_v20 = vadd.f32 %v12973_v42, %v1845_v34  ;;  %v15539_v0 = vpop.f32.mrf.mxu0 }
 0x1e8   : > { %v12938_v35 = vpop.f32.mrf.mxu1 }
 0x1e9   : > { %v1848_v45 = vadd.f32 %v12938_v35, %v15336_v60  ;;  %v12981_v14 = vpop.f32.mrf.mxu0  ;;  %13196 = vmatmul.mubr.msk.bf16.gmra.mxu0 %vm1388_vm11, %v15161_v36 }
 0x1ea   : > { %v15542_v43 = vpop.f32.mrf.mxu1  ;;  %13199 = vmatprep.mubr.msk.bf16.mxu0 %vm1388_vm11, %v15417_v31 }
 0x1eb   : > { %v15552_v63 = vadd.f32 %v12974_v54, %v1848_v45  ;;  %v15556_v60 = vpop.f32.mrf.mxu0 }
 0x1ec   : > { %v12941_v55 = vpop.f32.mrf.mxu1  ;;  %13156 = vmatmul.mubr.msk.bf16.gmra.mxu1 %vm1388_vm11, %v21133_v40 }
 0x1ed   : > { %v1861_v30 = vadd.f32 %v12941_v55, %v15352_v23  ;;  %13159 = vmatprep.mubr.msk.bf16.mxu1 %vm1388_vm11, %v14908_v59  ;;  %v12982_v31 = vpop.f32.mrf.mxu0 }
 0x1ee   : > { %v15561_v36 = vpop.f32.mrf.mxu1 }
 0x1ef   : > { %v15563_v15 = vadd.f32 %v12977_v49, %v1861_v30  ;;  %v15565_v47 = vpop.f32.mrf.mxu0 }
 0x1f0   : > { %v12942_v53 = vpop.f32.mrf.mxu1 }
 0x1f1   : > { %v1864_v61 = vadd.f32 %v12942_v53, %v15368_v50  ;;  %v12985_v40 = vpop.f32.mrf.mxu0  ;;  %13200 = vmatmul.mubr.msk.bf16.gmra.mxu0 %vm1388_vm11, %v11720_v37  ;;  %v21160_v53 = vld [vmem:[#allocation30_spill] sm:$0xff] }
 0x1f2   : > { %v15568_v42 = vpop.f32.mrf.mxu1 }
 0x1f3   : > { %v15571_v23 = vadd.f32 %v12978_v11, %v1864_v61  ;;  %v2289_v59 = vpop.f32.mrf.mxu0 }
 0x1f4   : > { %v12945_v19 = vpop.f32.mrf.mxu1  ;;  %13160 = vmatmul.mubr.msk.bf16.gmra.mxu1 %vm1388_vm11, %v14927_v58 }
 0x1f5   : > { %v1877_v1 = vadd.f32 %v12945_v19, %v21153_v62  ;;  %13163 = vmatprep.mubr.msk.bf16.mxu1 %vm1388_vm11, %v21154_v12  ;;  %v12986_v50 = vpop.f32.mrf.mxu0 }
 0x1f6   : > { %v15578_v54 = vpop.f32.mrf.mxu1 }
 0x1f7   : > { %v15580_v5 = vadd.f32 %v12981_v14, %v1877_v1  ;;  %v15582_v17 = vpop.f32.mrf.mxu0  ;;  %v21161_v1 = vld [vmem:[#allocation31_spill] sm:$0xff] }
 0x1f8   : > { %v12946_v24 = vpop.f32.mrf.mxu1 }
 0x1f9   : > { %v1880_v49 = vadd.f32 %v12946_v24, %v21155_v16  ;;  %v13029_v9 = vpop.f32.mrf.mxu0 }
 0x1fa   : > { %v1871_v2 = vpop.f32.mrf.mxu1 }
 0x1fb   : > { %v15586_v58 = vadd.f32 %v1871_v2, %v21156_v38  ;;  %v15588_v34 = vadd.f32 %v12982_v31, %v1880_v49  ;;  %v2635_v39 = vpop.f32.mrf.mxu0 }
 0x1fc   : > { %v12949_v11 = vpop.f32.mrf.mxu1  ;;  %13164 = vmatmul.mubr.msk.bf16.gmra.mxu1 %vm1388_vm11, %v21157_v22 }
 0x1fd   : > { %v1893_v35 = vadd.f32 %v12949_v11, %v21158_v48  ;;  %v13030_v14 = vpop.f32.mrf.mxu0 }
 0x1fe   : > { %v1884_v45 = vpop.f32.mrf.mxu1 }
 0x1ff   : > { %v1885_v28 = vadd.f32 %v1884_v45, %v21159_v10  ;;  %v15594_v55 = vadd.f32 %v12985_v40, %v1893_v35  ;;  %v15596_v37 = vpop.f32.mrf.mxu0 }
 0x200   : > { %v12950_v30 = vpop.f32.mrf.mxu1 }
 0x201   : > { %v1896_v61 = vadd.f32 %v12950_v30, %v21160_v53  ;;  %v15599_v31 = vadd.f32 %v2289_v59, %v1885_v28  ;;  %v13033_v62 = vpop.f32.mrf.mxu0 }
 0x202   : > { %v1887_v19 = vpop.f32.mrf.mxu1 }
 0x203   : > { %v15602_v12 = vadd.f32 %v1887_v19, %v21161_v1  ;;  %v15604_v24 = vadd.f32 %v12986_v50, %v1896_v61  ;;  %v2651_v49 = vpop.f32.mrf.mxu0 }
 0x204   : > { %v12993_v16 = vpop.f32.mrf.mxu1 }
 0x205   : > { %v2524_v2 = vadd.f32 %v12993_v16, %v15447_v13  ;;  %v13034_v38 = vpop.f32.mrf.mxu0 }
 0x206   : > { %v2395_v40 = vpop.f32.mrf.mxu1 }
 0x207   : > { %v2522_v11 = vadd.f32 %v2395_v40, %v15449_v21  ;;  %v15608_v22 = vadd.f32 %v13029_v9, %v2524_v2  ;;  %v15610_v59 = vpop.f32.mrf.mxu0 }
 0x208   : > { %v12994_v48 = vpop.f32.mrf.mxu1 }
 0x209   : > { %v2525_v35 = vadd.f32 %v12994_v48, %v15457_v7  ;;  %v15613_v45 = vadd.f32 %v2635_v39, %v2522_v11  ;;  %v13037_v50 = vpop.f32.mrf.mxu0 }
 0x20a   : > { %v2398_v10 = vpop.f32.mrf.mxu1 }
 0x20b   : > { %v15616_v28 = vadd.f32 %v2398_v10, %v15464_v33  ;;  %v15618_v30 = vadd.f32 %v13030_v14, %v2525_v35  ;;  %v2667_v53 = vpop.f32.mrf.mxu0 }
 0x20c   : > { %v12997_v13 = vpop.f32.mrf.mxu1 }
 0x20d   : > { %v2528_v21 = vadd.f32 %v12997_v13, %v15467_v44  ;;  %v13038_v61 = vpop.f32.mrf.mxu0 }
 0x20e   : > { %v2411_v9 = vpop.f32.mrf.mxu1 }
 0x20f   : > { %v2526_v19 = vadd.f32 %v2411_v9, %v15469_v51  ;;  %v15622_v1 = vadd.f32 %v13033_v62, %v2528_v21  ;;  %v15624_v39 = vpop.f32.mrf.mxu0 }
 0x210   : > { %v12998_v7 = vpop.f32.mrf.mxu1 }
 0x211   : > { %v2529_v16 = vadd.f32 %v12998_v7, %v15477_v25  ;;  %v15627_v2 = vadd.f32 %v2651_v49, %v2526_v19  ;;  %v13041_v14 = vpop.f32.mrf.mxu0 }
 0x212   : > { %v2414_v33 = vpop.f32.mrf.mxu1 }
 0x213   : > { %v15630_v40 = vadd.f32 %v2414_v33, %v15484_v46  ;;  %v15632_v11 = vadd.f32 %v13034_v38, %v2529_v16  ;;  %v2683_v48 = vpop.f32.mrf.mxu0 }
 0x214   : > { %v13001_v44 = vpop.f32.mrf.mxu1 }
 0x215   : > { %v2532_v51 = vadd.f32 %v13001_v44, %v15487_v4  ;;  %v13042_v35 = vpop.f32.mrf.mxu0 }
 0x216   : > { %v2427_v62 = vpop.f32.mrf.mxu1 }
 0x217   : > { %v2530_v10 = vadd.f32 %v2427_v62, %v15489_v26  ;;  %v15636_v13 = vadd.f32 %v13037_v50, %v2532_v51  ;;  %v15638_v49 = vpop.f32.mrf.mxu0  ;;  %v21162_v62 = vld [vmem:[#allocation23_spill] sm:$0xff] }
 0x218   : > { %v13002_v25 = vpop.f32.mrf.mxu1 }
 0x219   : > { %v2533_v21 = vadd.f32 %v13002_v25, %v15497_v3  ;;  %v15641_v9 = vadd.f32 %v2667_v53, %v2530_v10  ;;  %v13045_v38 = vpop.f32.mrf.mxu0  ;;  %v1837_v10 = vadd.f32 %v15533_v8, %v21162_v62 }
 0x21a   : > { %v2430_v46 = vpop.f32.mrf.mxu1 }
 0x21b   : > { %v15644_v19 = vadd.f32 %v2430_v46, %v15506_v52  ;;  %v15646_v7 = vadd.f32 %v13038_v61, %v2533_v21  ;;  %v2699_v16 = vpop.f32.mrf.mxu0  ;;  %v2320_v8 = vadd.f32 %v15501_v6, %v1837_v10 }
 0x21c   : > { %v13005_v4 = vpop.f32.mrf.mxu1 }
 0x21d   : > { %v2536_v26 = vadd.f32 %v13005_v4, %v15509_v18  ;;  %v13046_v33 = vpop.f32.mrf.mxu0  ;;  %v21163_v4 = vld [vmem:[#allocation24_spill] sm:$0xff] }
 0x21e   : > { %v2443_v50 = vpop.f32.mrf.mxu1 }
 0x21f   : > { %v2534_v44 = vadd.f32 %v2443_v50, %v15513_v29  ;;  %v15650_v51 = vadd.f32 %v13041_v14, %v2536_v26  ;;  %v15652_v53 = vpop.f32.mrf.mxu0  ;;  %v1840_v26 = vadd.f32 %v15542_v43, %v21163_v4 }
 0x220   : > { %v13006_v3 = vpop.f32.mrf.mxu1 }
 0x221   : > { %v2537_v52 = vadd.f32 %v13006_v3, %v15522_v41  ;;  %v15657_v61 = vadd.f32 %v2683_v48, %v2534_v44  ;;  %v13049_v21 = vpop.f32.mrf.mxu0 }
 0x222   : > { %v2446_v25 = vpop.f32.mrf.mxu1 }
 0x223   : > { %v15660_v18 = vadd.f32 %v2446_v25, %v15531_v27  ;;  %v15662_v46 = vadd.f32 %v13042_v35, %v2537_v52  ;;  %v2715_v14 = vpop.f32.mrf.mxu0  ;;  %v21164_v27 = vld [vmem:[#allocation27_spill] sm:$0xff]  ;;  %v2321_v25 = vadd.f32 %v15511_v57, %v1840_v26 }
 0x224   : > { %v13009_v29 = vpop.f32.mrf.mxu1  ;;  %v1853_v35 = vadd.f32 %v15561_v36, %v21164_v27 }
 0x225   : > { %v2540_v50 = vadd.f32 %v13009_v29, %v15537_v20  ;;  %v13050_v41 = vpop.f32.mrf.mxu0 }
 0x226   : > { %v2459_v62 = vpop.f32.mrf.mxu1 }
 0x227   : > { %v2538_v48 = vadd.f32 %v2459_v62, %v2320_v8  ;;  %v15668_v44 = vadd.f32 %v13045_v38, %v2540_v50  ;;  %v15670_v32 = vpop.f32.mrf.mxu0  ;;  %v877_v38 = vld [vmem:[%s20884_s5 + $0x18] sm:$0xff]  ;;  %v20941_v8 = vmov 0.0  }
 0x228   : > { %v13010_v3 = vpop.f32.mrf.mxu1  ;;  %13203 = vmatprep.subr.mxu1 %v20941_v8  ;;  %13211 = vmatprep.mubr.msk.f32.mxu1 %vm14202_vm1, %v20941_v8 }
 0x229   : > { %v2541_v52 = vadd.f32 %v13010_v3, %v15552_v63  ;;  %v15676_v43 = vadd.f32 %v2699_v16, %v2538_v48  ;;  %v13053_v29 = vpop.f32.mrf.mxu0  ;;  %v21165_v63 = vld [vmem:[#allocation29_spill] sm:$0xff]  ;;  %v2324_v16 = vadd.f32 %v15526_v56, %v1853_v35  ;;  %13204 = vmatpush3.msra.mxu1 %v877_v38 }
 0x22a   : > { %v2462_v20 = vpop.f32.mrf.mxu1  ;;  %v1856_v57 = vadd.f32 %v15568_v42, %v21165_v63  ;;  %13205 = vmatprep.subr.mxu1 %v20941_v8 }
 0x22b   : > { %v15678_v6 = vadd.f32 %v2462_v20, %v2321_v25  ;;  %v15680_v10 = vadd.f32 %v13046_v33, %v2541_v52  ;;  %v2731_v50 = vpop.f32.mrf.mxu0  ;;  %v21166_v52 = vld [vmem:[#allocation18_spill] sm:$0xff] }
 0x22c   : > { %v13013_v4 = vpop.f32.mrf.mxu1  ;;  %v1869_v25 = vadd.f32 %v15578_v54, %v21166_v52 }
 0x22d   : > { %v2544_v36 = vadd.f32 %v13013_v4, %v15563_v15  ;;  %v13054_v33 = vpop.f32.mrf.mxu0  ;;  %v2325_v15 = vadd.f32 %v15539_v0, %v1856_v57 }
 0x22e   : > { %v2475_v26 = vpop.f32.mrf.mxu1 }
 0x22f   : > { %v2542_v62 = vadd.f32 %v2475_v26, %v2324_v16  ;;  %v15691_v48 = vadd.f32 %v13049_v21, %v2544_v36  ;;  %v15693_v27 = vpop.f32.mrf.mxu0  ;;  %v2328_v16 = vadd.f32 %v15556_v60, %v1869_v25 }
 0x230   : > { %v13014_v3 = vpop.f32.mrf.mxu1 }
 0x231   : > { %v2545_v42 = vadd.f32 %v13014_v3, %v15571_v23  ;;  %v15699_v20 = vadd.f32 %v2715_v14, %v2542_v62  ;;  %v13057_v35 = vpop.f32.mrf.mxu0 }
 0x232   : > { %v2478_v56 = vpop.f32.mrf.mxu1 }
 0x233   : > { %v15701_v38 = vadd.f32 %v2478_v56, %v2325_v15  ;;  %v15703_v4 = vadd.f32 %v13050_v41, %v2545_v42  ;;  %v2747_v63 = vpop.f32.mrf.mxu0  ;;  %v2329_v41 = vadd.f32 %v15565_v47, %v15586_v58 }
 0x234   : > { %v13017_v21 = vpop.f32.mrf.mxu1 }
 0x235   : > { %v2548_v36 = vadd.f32 %v13017_v21, %v15580_v5  ;;  %v13058_v54 = vpop.f32.mrf.mxu0 }
 0x236   : > { %v2491_v26 = vpop.f32.mrf.mxu1 }
 0x237   : > { %v2546_v52 = vadd.f32 %v2491_v26, %v2328_v16  ;;  %v15707_v23 = vadd.f32 %v13053_v29, %v2548_v36  ;;  %v15709_v14 = vpop.f32.mrf.mxu0  ;;  %v876_v29 = vld [vmem:[%s20884_s5 + $0x10] sm:$0xff]  ;;  %v2333_v16 = vadd.f32 %v15582_v17, %v15602_v12 }
 0x238   : > { %v13018_v0 = vpop.f32.mrf.mxu1  ;;  %13206 = vmatpush3.msra.mxu1 %v876_v29 }
 0x239   : > { %v2549_v57 = vadd.f32 %v13018_v0, %v15588_v34  ;;  %v15714_v62 = vadd.f32 %v2731_v50, %v2546_v52  ;;  %v13101_v42 = vpop.f32.mrf.mxu0  ;;  %13207 = vmatprep.subr.mxu1 %v20941_v8 }
 0x23a   : > { %v2494_v3 = vpop.f32.mrf.mxu1 }
 0x23b   : > { %v15716_v5 = vadd.f32 %v2494_v3, %v2329_v41  ;;  %v15718_v60 = vadd.f32 %v13054_v33, %v2549_v57  ;;  %v3077_v15 = vpop.f32.mrf.mxu0 }
 0x23c   : > { %v13021_v25 = vpop.f32.mrf.mxu1 }
 0x23d   : > { %v2552_v34 = vadd.f32 %v13021_v25, %v15594_v55  ;;  %v13102_v58 = vpop.f32.mrf.mxu0 }
 0x23e   : > { %v2507_v47 = vpop.f32.mrf.mxu1 }
 0x23f   : > { %v2550_v50 = vadd.f32 %v2507_v47, %v15599_v31  ;;  %v15726_v56 = vadd.f32 %v13057_v35, %v2552_v34  ;;  %v15728_v33 = vpop.f32.mrf.mxu0 }
 0x240   : > { %v13022_v21 = vpop.f32.mrf.mxu1 }
 0x241   : > { %v2553_v36 = vadd.f32 %v13022_v21, %v15604_v24  ;;  %v15733_v26 = vadd.f32 %v2747_v63, %v2550_v50  ;;  %v13105_v55 = vpop.f32.mrf.mxu0 }
 0x242   : > { %v2510_v52 = vpop.f32.mrf.mxu1 }
 0x243   : > { %21167 = vst [vmem:[#allocation32_spill] sm:$0xff] %v15733_v26  ;;  %v15735_v0 = vadd.f32 %v2510_v52, %v2333_v16  ;;  %v15737_v57 = vadd.f32 %v13058_v54, %v2553_v36  ;;  %v15739_v31 = vpop.f32.mrf.mxu0 }
 0x244   : > { %v13065_v41 = vpop.f32.mrf.mxu1 }
 0x245   : > { %v2988_v35 = vadd.f32 %v13065_v41, %v15608_v22  ;;  %v13106_v29 = vpop.f32.mrf.mxu0  ;;  %v875_v22 = vld [vmem:[%s20884_s5 + $0x8] sm:$0xff] }
 0x246   : > { %v2859_v3 = vpop.f32.mrf.mxu1  ;;  %13208 = vmatpush3.msra.mxu1 %v875_v22 }
 0x247   : > { %v2986_v24 = vadd.f32 %v2859_v3, %v15613_v45  ;;  %v15743_v25 = vadd.f32 %v13101_v42, %v2988_v35  ;;  %v15745_v12 = vpop.f32.mrf.mxu0  ;;  %13209 = vmatprep.subr.mxu1 %v20941_v8 }
 0x248   : > { %v13066_v17 = vpop.f32.mrf.mxu1 }
 0x249   : > { %v2989_v63 = vadd.f32 %v13066_v17, %v15618_v30  ;;  %v15748_v34 = vadd.f32 %v3077_v15, %v2986_v24  ;;  %v13109_v47 = vpop.f32.mrf.mxu0 }
 0x24a   : > { %v15750_v54 = vpop.f32.mrf.mxu1 }
 0x24b   : > { %v15752_v50 = vadd.f32 %v13102_v58, %v2989_v63  ;;  %v15757_v45 = vpop.f32.mrf.mxu0 }
 0x24c   : > { %v13069_v21 = vpop.f32.mrf.mxu1 }
 0x24d   : > { %v2992_v42 = vadd.f32 %v13069_v21, %v15622_v1  ;;  %v13110_v15 = vpop.f32.mrf.mxu0  ;;  %v874_v21 = vld [vmem:[%s20884_s5] sm:$0xff] }
 0x24e   : > { %v15761_v30 = vpop.f32.mrf.mxu1  ;;  %13210 = vmatpush3.msra.mxu1 %v874_v21 }
 0x24f   : > { %v15763_v36 = vadd.f32 %v13105_v55, %v2992_v42  ;;  %v15765_v58 = vpop.f32.mrf.mxu0 }
 0x250   : > { %v13070_v16 = vpop.f32.mrf.mxu1 }
 0x251   : > { %21168 = vst [vmem:[#allocation33_spill] sm:$0xff] %v15763_v36  ;;  %v2993_v52 = vadd.f32 %v13070_v16, %v15632_v11  ;;  %v13113_v35 = vpop.f32.mrf.mxu0 }
 0x252   : > { %v15768_v41 = vpop.f32.mrf.mxu1 }
 0x253   : > { %v15770_v3 = vadd.f32 %v13106_v29, %v2993_v52  ;;  %v15772_v17 = vpop.f32.mrf.mxu0 }
 0x254   : > { %v13073_v24 = vpop.f32.mrf.mxu1  ;;  %21170 = vst [vmem:[#allocation17_spill] sm:$0xff] %v15772_v17 }
 0x255   : > { %21169 = vst [vmem:[#allocation34_spill] sm:$0xff] %v15770_v3  ;;  %v2996_v1 = vadd.f32 %v13073_v24, %v15636_v13  ;;  %v13114_v22 = vpop.f32.mrf.mxu0 }
 0x256   : > { %v15775_v63 = vpop.f32.mrf.mxu1 }
 0x257   : > { %v15777_v55 = vadd.f32 %v13109_v47, %v2996_v1  ;;  %v15782_v42 = vpop.f32.mrf.mxu0 }
 0x258   : > { %v13074_v11 = vpop.f32.mrf.mxu1  ;;  %21172 = vst [vmem:[#allocation21_spill] sm:$0xff] %v15782_v42 }
 0x259   : > { %21171 = vst [vmem:[#allocation19_spill] sm:$0xff] %v15777_v55  ;;  %v2997_v29 = vadd.f32 %v13074_v11, %v15646_v7  ;;  %v13117_v16 = vpop.f32.mrf.mxu0 }
 0x25a   : > { %v15787_v13 = vpop.f32.mrf.mxu1 }
 0x25b   : > { %v15789_v52 = vadd.f32 %v13110_v15, %v2997_v29  ;;  %v15791_v24 = vpop.f32.mrf.mxu0 }
 0x25c   : > { %v13077_v47 = vpop.f32.mrf.mxu1  ;;  %21174 = vst [vmem:[#allocation20_spill] sm:$0xff] %v15791_v24 }
 0x25d   : > { %21173 = vst [vmem:[#allocation22_spill] sm:$0xff] %v15789_v52  ;;  %v3000_v1 = vadd.f32 %v13077_v47, %v15650_v51  ;;  %v13118_v3 = vpop.f32.mrf.mxu0 }
 0x25e   : > { %v15794_v55 = vpop.f32.mrf.mxu1 }
 0x25f   : > { %v15796_v21 = vadd.f32 %v13113_v35, %v3000_v1  ;;  %v15798_v42 = vpop.f32.mrf.mxu0 }
 0x260   : > { %v13078_v36 = vpop.f32.mrf.mxu1  ;;  %21176 = vst [vmem:[#allocation26_spill] sm:$0xff] %v15798_v42 }
 0x261   : > { %21175 = vst [vmem:[#allocation25_spill] sm:$0xff] %v15796_v21  ;;  %v3001_v7 = vadd.f32 %v13078_v36, %v15662_v46  ;;  %v13121_v8 = vpop.f32.mrf.mxu0 }
 0x262   : > { %v15801_v11 = vpop.f32.mrf.mxu1 }
 0x263   : > { %v15803_v15 = vadd.f32 %v13114_v22, %v3001_v7  ;;  %v15805_v52 = vpop.f32.mrf.mxu0 }
 0x264   : > { %v13081_v29 = vpop.f32.mrf.mxu1  ;;  %21178 = vst [vmem:[#allocation31_spill] sm:$0xff] %v15805_v52 }
 0x265   : > { %21177 = vst [vmem:[#allocation30_spill] sm:$0xff] %v15803_v15  ;;  %v3004_v51 = vadd.f32 %v13081_v29, %v15668_v44  ;;  %v13122_v24 = vpop.f32.mrf.mxu0 }
 0x266   : > { %v15808_v47 = vpop.f32.mrf.mxu1 }
 0x267   : > { %v15810_v35 = vadd.f32 %v13117_v16, %v3004_v51  ;;  %v15812_v21 = vpop.f32.mrf.mxu0 }
 0x268   : > { %v13082_v1 = vpop.f32.mrf.mxu1  ;;  %21180 = vst [vmem:[#allocation24_spill] sm:$0xff] %v15812_v21 }
 0x269   : > { %21179 = vst [vmem:[#allocation23_spill] sm:$0xff] %v15810_v35  ;;  %v3005_v46 = vadd.f32 %v13082_v1, %v15680_v10  ;;  %v13125_v42 = vpop.f32.mrf.mxu0 }
 0x26a   : > { %v15815_v36 = vpop.f32.mrf.mxu1 }
 0x26b   : > { %v15817_v22 = vadd.f32 %v13118_v3, %v3005_v46  ;;  %v15819_v15 = vpop.f32.mrf.mxu0 }
 0x26c   : > { %v13085_v7 = vpop.f32.mrf.mxu1  ;;  %21182 = vst [vmem:[#allocation29_spill] sm:$0xff] %v15819_v15 }
 0x26d   : > { %21181 = vst [vmem:[#allocation27_spill] sm:$0xff] %v15817_v22  ;;  %v3008_v44 = vadd.f32 %v13085_v7, %v15691_v48  ;;  %v13126_v52 = vpop.f32.mrf.mxu0 }
 0x26e   : > { %v15822_v29 = vpop.f32.mrf.mxu1 }
 0x26f   : > { %v15824_v16 = vadd.f32 %v13121_v8, %v3008_v44  ;;  %v15826_v35 = vpop.f32.mrf.mxu0 }
 0x270   : > { %v13086_v51 = vpop.f32.mrf.mxu1  ;;  %21184 = vst [vmem:[#allocation35_spill] sm:$0xff] %v15826_v35 }
 0x271   : > { %21183 = vst [vmem:[#allocation18_spill] sm:$0xff] %v15824_v16  ;;  %v3009_v10 = vadd.f32 %v13086_v51, %v15703_v4  ;;  %v13129_v21 = vpop.f32.mrf.mxu0 }
 0x272   : > { %v15829_v1 = vpop.f32.mrf.mxu1 }
 0x273   : > { %v15831_v3 = vadd.f32 %v13122_v24, %v3009_v10  ;;  %v15833_v22 = vpop.f32.mrf.mxu0 }
 0x274   : > { %v13089_v46 = vpop.f32.mrf.mxu1  ;;  %21186 = vst [vmem:[#allocation37_spill] sm:$0xff] %v15833_v22 }
 0x275   : > { %21185 = vst [vmem:[#allocation36_spill] sm:$0xff] %v15831_v3  ;;  %v3012_v48 = vadd.f32 %v13089_v46, %v15707_v23  ;;  %v13130_v15 = vpop.f32.mrf.mxu0 }
 0x276   : > { %v2955_v7 = vpop.f32.mrf.mxu1 }
 0x277   : > { %v15836_v17 = vadd.f32 %v13125_v42, %v3012_v48  ;;  %v15838_v44 = vpop.f32.mrf.mxu0  ;;  %v2763_v48 = vadd.f32 %v15596_v37, %v15616_v28 }
 0x278   : > { %v13090_v8 = vpop.f32.mrf.mxu1  ;;  %21187 = vst [vmem:[#allocation38_spill] sm:$0xff] %v15838_v44 }
 0x279   : > { %v3013_v16 = vadd.f32 %v13090_v8, %v15718_v60  ;;  %v13173_v51 = vpop.f32.mrf.mxu0 }
 0x27a   : > { %v2958_v4 = vpop.f32.mrf.mxu1 }
 0x27b   : > { %v15841_v35 = vadd.f32 %v13126_v52, %v3013_v16  ;;  %v3541_v10 = vpop.f32.mrf.mxu0  ;;  %v2987_v52 = vadd.f32 %v15750_v54, %v2763_v48  ;;  %v2779_v54 = vadd.f32 %v15652_v53, %v15678_v6  ;;  %v2791_v53 = vadd.f32 %v15709_v14, %v15735_v0 }
 0x27c   : > { %v13093_v24 = vpop.f32.mrf.mxu1 }
 0x27d   : > { %v3016_v3 = vadd.f32 %v13093_v24, %v15726_v56  ;;  %v13174_v26 = vpop.f32.mrf.mxu0  ;;  %v2990_v56 = vadd.f32 %v15761_v30, %v15627_v2  ;;  %v2994_v2 = vadd.f32 %v15775_v63, %v15641_v9  ;;  %v3205_v6 = vadd.f32 %v15728_v33, %v2987_v52  ;;  %v21193_v52 = vld [vmem:[#allocation33_spill] sm:$0xff] }
 0x27e   : > { %v2971_v22 = vpop.f32.mrf.mxu1  ;;  %v2998_v9 = vadd.f32 %v15794_v55, %v15657_v61  ;;  %v3006_v33 = vadd.f32 %v15822_v29, %v15699_v20  ;;  %v15898_v61 = vld [vmem:[%s20881_s2] ss:$0 sm:$0xff]  ;;  %v3010_v20 = vadd.f32 %v2955_v7, %v15714_v62  ;;  %v21191_v62 = vld [vmem:[#allocation20_spill] sm:$0xff] }
 0x27f   : > { %v15844_v23 = vadd.f32 %v13129_v21, %v3016_v3  ;;  %v3544_v42 = vpop.f32.mrf.mxu0  ;;  %v2767_v21 = vadd.f32 %v15610_v59, %v15630_v40  ;;  %v2771_v3 = vadd.f32 %v15624_v39, %v15644_v19  ;;  %v2783_v39 = vadd.f32 %v15670_v32, %v15701_v38 }
 0x280   : > { %v13094_v46 = vpop.f32.mrf.mxu1  ;;  %v3002_v32 = vadd.f32 %v15808_v47, %v15676_v43  ;;  %v3208_v30 = vadd.f32 %v15739_v31, %v2990_v56  ;;  %v15904_v63 = vadd.f32 %v15757_v45, %v2994_v2  ;;  %v21188_v47 = vld [vmem:[#allocation32_spill] sm:$0xff]  ;;  %v21189_v45 = vld [vmem:[#allocation17_spill] sm:$0xff] }
 0x281   : > { %v3017_v44 = vadd.f32 %v13094_v46, %v15737_v57  ;;  %v15851_v8 = vpop.f32.mrf.mxu0  ;;  %v2775_v57 = vadd.f32 %v15638_v49, %v15660_v18  ;;  %v2995_v59 = vadd.f32 %v15787_v13, %v2771_v3  ;;  %v2787_v49 = vadd.f32 %v15693_v27, %v15716_v5  ;;  %v21196_v2 = vld [vmem:[#allocation29_spill] sm:$0xff] }
 0x282   : > { %v15849_v60 = vpop.f32.mrf.mxu1  ;;  %v3003_v27 = vadd.f32 %v15815_v36, %v2779_v54  ;;  %v3014_v36 = vadd.f32 %v2971_v22, %v21188_v47  ;;  %v21192_v22 = vld [vmem:[#allocation26_spill] sm:$0xff] }
 0x283   : > { %v15854_v16 = vadd.f32 %v13130_v15, %v3017_v44  ;;  %v15862_v28 = vpop.f32.mrf.mxu0  ;;  %v2991_v44 = vadd.f32 %v15768_v41, %v2767_v21  ;;  %v15907_v55 = vadd.f32 %v15765_v58, %v2995_v59  ;;  %v3011_v13 = vadd.f32 %v2958_v4, %v2787_v49 }
 0x284   : > { %v13137_v37 = vpop.f32.mrf.mxu1  ;;  %v15930_v7 = vadd.f32 %v21192_v22, %v3003_v27  ;;  %v15945_v59 = vadd.f32 %v21196_v2, %v3010_v20 }
 0x285   : > { %v3446_v15 = vadd.f32 %v13137_v37, %v15743_v25  ;;  %v15875_v19 = vpop.f32.mrf.mxu0  ;;  %v2999_v25 = vadd.f32 %v15801_v11, %v2775_v57  ;;  %v21194_v37 = vld [vmem:[#allocation31_spill] sm:$0xff] }
 0x286   : > { %v3317_v40 = vpop.f32.mrf.mxu1  ;;  %v15939_v57 = vadd.f32 %v21194_v37, %v3006_v33 }
 0x287   : > { %v3444_v18 = vadd.f32 %v3317_v40, %v15748_v34  ;;  %v15889_v41 = vpop.f32.mrf.mxu0  ;;  %v3670_v14 = vadd.f32 %v13173_v51, %v3446_v15  ;;  %v3209_v34 = vadd.f32 %v15745_v12, %v2991_v44  ;;  %v21195_v15 = vld [vmem:[#allocation24_spill] sm:$0xff] }
 0x288   : > { %v13138_v38 = vpop.f32.mrf.mxu1 }
 0x289   : > { %v3668_v5 = vadd.f32 %v3541_v10, %v3444_v18  ;;  %v3447_v0 = vadd.f32 %v13138_v38, %v15752_v50  ;;  %v15901_v31 = vpop.f32.mrf.mxu0  ;;  %v3007_v50 = vadd.f32 %v15829_v1, %v2783_v39  ;;  %v15918_v10 = vadd.f32 %v21189_v45, %v2998_v9  ;;  %v21190_v1 = vld [vmem:[#allocation21_spill] sm:$0xff]  ;;  %v21197_v39 = vld [vmem:[#allocation35_spill] sm:$0xff] }
 0x28a   : > { %v3320_v43 = vpop.f32.mrf.mxu1  ;;  %v15921_v58 = vadd.f32 %v15898_v61, %v3670_v14  ;;  %v15924_v46 = vadd.f32 %v21190_v1, %v2999_v25  ;;  %v15948_v40 = vadd.f32 %v21197_v39, %v3011_v13  ;;  %v21198_v25 = vld [vmem:[#allocation37_spill] sm:$0xff]  ;;  %v15962_v38 = vadd.f32 %v15849_v60, %v2791_v53  ;;  %v21199_v14 = vld [vmem:[#allocation34_spill] sm:$0xff] }
 0x28b   : > { %v3671_v11 = vadd.f32 %v13174_v26, %v3447_v0  ;;  %v15913_v29 = vadd.f32 %v15898_v61, %v3668_v5  ;;  %v3445_v12 = vadd.f32 %v3320_v43, %v3205_v6  ;;  %v15915_v24 = vpop.f32.mrf.mxu0  ;;  %v15927_v26 = vadd.f32 %v21191_v62, %v3002_v32 }
 0x28c   : > { %v13141_v51 = vpop.f32.mrf.mxu1  ;;  %v15942_v44 = vadd.f32 %v21195_v15, %v3007_v50  ;;  %v15959_v32 = vadd.f32 %v21198_v25, %v3014_v36 }
 0x28d   : > { %v15933_v4 = vadd.f32 %v15898_v61, %v3671_v11  ;;  %v3669_v48 = vadd.f32 %v3544_v42, %v3445_v12  ;;  %v3450_v56 = vadd.f32 %v13141_v51, %v21193_v52  ;;  %v15936_v3 = vpop.f32.mrf.mxu0  ;;  %v3806_v42 = vmul.f32 %v15913_v29, %v15913_v29 }
 0x28e   : > { %v3333_v21 = vpop.f32.mrf.mxu1  ;;  %v3737_v0 = vsel %vm1388_vm11, %v15913_v29, 0.0  ;;  %v3740_v11 = vsel %vm1388_vm11, %v15921_v58, 0.0 }
 0x28f   : > { %v3448_v54 = vadd.f32 %v3333_v21, %v3208_v30  ;;  %v15953_v49 = vadd.f32 %v15898_v61, %v3669_v48  ;;  %v3674_v18 = vadd.f32 %v15851_v8, %v3450_v56  ;;  %v15956_v9 = vpop.f32.mrf.mxu0  ;;  %v3808_v30 = vmul.f32 %v15921_v58, %v15921_v58  ;;  %v21200_v56 = vld [vmem:[#allocation19_spill] sm:$0xff] }
 0x290   : > { %v13142_v6 = vpop.f32.mrf.mxu1  ;;  %v3809_v8 = vmul.f32 %v15933_v4, %v15933_v4  ;;  %v3838_v47 = vsel %vm1388_vm11, %v3806_v42, 0.0  ;;  %v3742_v62 = vsel %vm1388_vm11, %v15933_v4, 0.0 }
 0x291   : > { %v3672_v27 = vadd.f32 %v15862_v28, %v3448_v54  ;;  %v3451_v5 = vadd.f32 %v13142_v6, %v21199_v14  ;;  %v3738_v33 = vsel %vm1388_vm11, %v15953_v49, 0.0  ;;  %v3807_v60 = vmul.f32 %v15953_v49, %v15953_v49  ;;  %v15976_v43 = vpop.f32.mrf.mxu0 }
 0x292   : > { %v3336_v53 = vpop.f32.mrf.mxu1  ;;  %v3739_v50 = vadd.f32 %v3738_v33, %v3737_v0  ;;  %v15987_v12 = vadd.f32 %v15898_v61, %v3674_v18  ;;  %v3841_v1 = vsel %vm1388_vm11, %v3808_v30, 0.0  ;;  %v3843_v15 = vsel %vm1388_vm11, %v3809_v8, 0.0  ;;  %v21201_v8 = vld [vmem:[#allocation22_spill] sm:$0xff] }
 0x293   : > { %v15979_v28 = vadd.f32 %v15898_v61, %v3672_v27  ;;  %v3675_v20 = vadd.f32 %v15875_v19, %v3451_v5  ;;  %v3449_v13 = vadd.f32 %v3336_v53, %v3209_v34  ;;  %v3839_v36 = vsel %vm1388_vm11, %v3807_v60, 0.0  ;;  %v15989_v45 = vpop.f32.mrf.mxu0 }
 0x294   : > { %v13145_v51 = vpop.f32.mrf.mxu1  ;;  %v3741_v19 = vadd.f32 %v3740_v11, %v3739_v50  ;;  %v3840_v34 = vadd.f32 %v3839_v36, %v3838_v47  ;;  %v3812_v18 = vmul.f32 %v15987_v12, %v15987_v12  ;;  %v3748_v36 = vsel %vm1388_vm11, %v15987_v12, 0.0 }
 0x295   : > { %v3810_v22 = vmul.f32 %v15979_v28, %v15979_v28  ;;  %v15997_v48 = vadd.f32 %v15898_v61, %v3675_v20  ;;  %v3673_v52 = vadd.f32 %v15889_v41, %v3449_v13  ;;  %v3454_v21 = vadd.f32 %v13145_v51, %v21200_v56  ;;  %v16001_v54 = vpop.f32.mrf.mxu0 }
 0x296   : > { %v3349_v37 = vpop.f32.mrf.mxu1  ;;  %v3842_v2 = vadd.f32 %v3841_v1, %v3840_v34  ;;  %v3743_v39 = vadd.f32 %v3742_v62, %v3741_v19  ;;  %v3744_v6 = vsel %vm1388_vm11, %v15979_v28, 0.0 }
 0x297   : > { %v3452_v42 = vadd.f32 %v3349_v37, %v15904_v63  ;;  %v16010_v25 = vadd.f32 %v15898_v61, %v3673_v52  ;;  %v3678_v41 = vadd.f32 %v15901_v31, %v3454_v21  ;;  %v16013_v27 = vpop.f32.mrf.mxu0  ;;  %v3845_v33 = vsel %vm1388_vm11, %v3810_v22, 0.0 }
 0x298   : > { %v13146_v30 = vpop.f32.mrf.mxu1  ;;  %v3745_v14 = vadd.f32 %v3744_v6, %v3743_v39  ;;  %v3844_v5 = vadd.f32 %v3843_v15, %v3842_v2  ;;  %v3813_v60 = vmul.f32 %v15997_v48, %v15997_v48  ;;  %v3849_v22 = vsel %vm1388_vm11, %v3812_v18, 0.0  ;;  %v21202_v2 = vld [vmem:[#allocation25_spill] sm:$0xff] }
 0x299   : > { %v3676_v0 = vadd.f32 %v15915_v24, %v3452_v42  ;;  %v3455_v63 = vadd.f32 %v13146_v30, %v21201_v8  ;;  %v3746_v53 = vsel %vm1388_vm11, %v16010_v25, 0.0  ;;  %v3811_v31 = vmul.f32 %v16010_v25, %v16010_v25  ;;  %v16024_v20 = vpop.f32.mrf.mxu0 }
 0x29a   : > { %v3352_v50 = vpop.f32.mrf.mxu1  ;;  %v3846_v13 = vadd.f32 %v3845_v33, %v3844_v5  ;;  %v3747_v11 = vadd.f32 %v3746_v53, %v3745_v14  ;;  %v16034_v1 = vadd.f32 %v15898_v61, %v3678_v41  ;;  %v3750_v52 = vsel %vm1388_vm11, %v15997_v48, 0.0 }
 0x29b   : > { %v16027_v24 = vadd.f32 %v15898_v61, %v3676_v0  ;;  %v3679_v47 = vadd.f32 %v15936_v3, %v3455_v63  ;;  %v3847_v51 = vsel %vm1388_vm11, %v3811_v31, 0.0  ;;  %v3453_v62 = vadd.f32 %v3352_v50, %v15907_v55  ;;  %v16037_v34 = vpop.f32.mrf.mxu0  ;;  %v21203_v31 = vld [vmem:[#allocation30_spill] sm:$0xff] }
 0x29c   : > { %v13149_v19 = vpop.f32.mrf.mxu1  ;;  %v3749_v56 = vadd.f32 %v3748_v36, %v3747_v11  ;;  %v3848_v3 = vadd.f32 %v3847_v51, %v3846_v13  ;;  %v3851_v18 = vsel %vm1388_vm11, %v3813_v60, 0.0  ;;  %v3816_v14 = vmul.f32 %v16034_v1, %v16034_v1 }
 0x29d   : > { %v3814_v21 = vmul.f32 %v16027_v24, %v16027_v24  ;;  %v16045_v37 = vadd.f32 %v15898_v61, %v3679_v47  ;;  %v3677_v15 = vadd.f32 %v15956_v9, %v3453_v62  ;;  %v3458_v55 = vadd.f32 %v13149_v19, %v21202_v2  ;;  %v16049_v42 = vpop.f32.mrf.mxu0 }
 0x29e   : > { %v3365_v39 = vpop.f32.mrf.mxu1  ;;  %v3850_v6 = vadd.f32 %v3849_v22, %v3848_v3  ;;  %v3751_v41 = vadd.f32 %v3750_v52, %v3749_v56  ;;  %v3752_v5 = vsel %vm1388_vm11, %v16027_v24, 0.0  ;;  %v3756_v22 = vsel %vm1388_vm11, %v16034_v1, 0.0 }
 0x29f   : > { %v3456_v30 = vadd.f32 %v3365_v39, %v15918_v10  ;;  %v16058_v0 = vadd.f32 %v15898_v61, %v3677_v15  ;;  %v3682_v9 = vadd.f32 %v15976_v43, %v3458_v55  ;;  %v16061_v63 = vpop.f32.mrf.mxu0  ;;  %v3853_v50 = vsel %vm1388_vm11, %v3814_v21, 0.0 }
 0x2a0   : > { %v13150_v8 = vpop.f32.mrf.mxu1  ;;  %v3753_v33 = vadd.f32 %v3752_v5, %v3751_v41  ;;  %v3852_v60 = vadd.f32 %v3851_v18, %v3850_v6  ;;  %v3817_v13 = vmul.f32 %v16045_v37, %v16045_v37  ;;  %v3857_v2 = vsel %vm1388_vm11, %v3816_v14, 0.0 }
 0x2a1   : > { %v3680_v53 = vadd.f32 %v15989_v45, %v3456_v30  ;;  %v3459_v10 = vadd.f32 %v13150_v8, %v21203_v31  ;;  %v3754_v11 = vsel %vm1388_vm11, %v16058_v0, 0.0  ;;  %v3815_v43 = vmul.f32 %v16058_v0, %v16058_v0  ;;  %v16072_v36 = vpop.f32.mrf.mxu0  ;;  %v21204_v30 = vld [vmem:[#allocation23_spill] sm:$0xff] }
 0x2a2   : > { %v3368_v47 = vpop.f32.mrf.mxu1  ;;  %v3854_v51 = vadd.f32 %v3853_v50, %v3852_v60  ;;  %v3755_v62 = vadd.f32 %v3754_v11, %v3753_v33  ;;  %v16082_v56 = vadd.f32 %v15898_v61, %v3682_v9  ;;  %v3758_v55 = vsel %vm1388_vm11, %v16045_v37, 0.0 }
 0x2a3   : > { %v16075_v45 = vadd.f32 %v15898_v61, %v3680_v53  ;;  %v3683_v19 = vadd.f32 %v16001_v54, %v3459_v10  ;;  %v3855_v52 = vsel %vm1388_vm11, %v3815_v43, 0.0  ;;  %v3457_v3 = vadd.f32 %v3368_v47, %v15924_v46  ;;  %v3621_v15 = vpop.f32.mrf.mxu0 }
 0x2a4   : > { %v13153_v21 = vpop.f32.mrf.mxu1  ;;  %v3757_v39 = vadd.f32 %v3756_v22, %v3755_v62  ;;  %v3856_v18 = vadd.f32 %v3855_v52, %v3854_v51  ;;  %v3859_v8 = vsel %vm1388_vm11, %v3817_v13, 0.0  ;;  %v3820_v53 = vmul.f32 %v16082_v56, %v16082_v56  ;;  %v21205_v51 = vld [vmem:[#allocation27_spill] sm:$0xff] }
 0x2a5   : > { %v3818_v54 = vmul.f32 %v16075_v45, %v16075_v45  ;;  %v16091_v6 = vadd.f32 %v15898_v61, %v3683_v19  ;;  %v3681_v41 = vadd.f32 %v16013_v27, %v3457_v3  ;;  %v3462_v5 = vadd.f32 %v13153_v21, %v21204_v30  ;;  %v13194_v9 = vpop.f32.mrf.mxu0 }
 0x2a6   : > { %v3381_v46 = vpop.f32.mrf.mxu1  ;;  %v3858_v14 = vadd.f32 %v3857_v2, %v3856_v18  ;;  %v3759_v33 = vadd.f32 %v3758_v55, %v3757_v39  ;;  %v3760_v31 = vsel %vm1388_vm11, %v16075_v45, 0.0  ;;  %v3764_v39 = vsel %vm1388_vm11, %v16082_v56, 0.0 }
 0x2a7   : > { %v3460_v60 = vadd.f32 %v3381_v46, %v15927_v26  ;;  %v16102_v10 = vadd.f32 %v15898_v61, %v3681_v41  ;;  %v3686_v27 = vadd.f32 %v16024_v20, %v3462_v5  ;;  %v16105_v11 = vpop.f32.mrf.mxu0  ;;  %v3861_v62 = vsel %vm1388_vm11, %v3818_v54, 0.0 }
 0x2a8   : > { %v13154_v50 = vpop.f32.mrf.mxu1  ;;  %v3761_v43 = vadd.f32 %v3760_v31, %v3759_v33  ;;  %v3860_v13 = vadd.f32 %v3859_v8, %v3858_v14  ;;  %v3821_v19 = vmul.f32 %v16091_v6, %v16091_v6  ;;  %v3865_v5 = vsel %vm1388_vm11, %v3820_v53, 0.0 }
 0x2a9   : > { %v3684_v47 = vadd.f32 %v16037_v34, %v3460_v60  ;;  %v3463_v26 = vadd.f32 %v13154_v50, %v21205_v51  ;;  %v3762_v22 = vsel %vm1388_vm11, %v16102_v10, 0.0  ;;  %v3819_v20 = vmul.f32 %v16102_v10, %v16102_v10  ;;  %v16116_v3 = vpop.f32.mrf.mxu0 }
 0x2aa   : > { %v3384_v52 = vpop.f32.mrf.mxu1  ;;  %v3862_v21 = vadd.f32 %v3861_v62, %v3860_v13  ;;  %v3763_v2 = vadd.f32 %v3762_v22, %v3761_v43  ;;  %v16126_v54 = vadd.f32 %v15898_v61, %v3686_v27  ;;  %v3766_v46 = vsel %vm1388_vm11, %v16091_v6, 0.0  ;;  %v21206_v27 = vld [vmem:[#allocation18_spill] sm:$0xff] }
 0x2ab   : > { %v16119_v34 = vadd.f32 %v15898_v61, %v3684_v47  ;;  %v3687_v55 = vadd.f32 %v16049_v42, %v3463_v26  ;;  %v3863_v18 = vsel %vm1388_vm11, %v3819_v20, 0.0  ;;  %v3461_v41 = vadd.f32 %v3384_v52, %v15930_v7  ;;  %v3637_v33 = vpop.f32.mrf.mxu0 }
 0x2ac   : > { %v13157_v30 = vpop.f32.mrf.mxu1  ;;  %v3765_v8 = vadd.f32 %v3764_v39, %v3763_v2  ;;  %v3864_v14 = vadd.f32 %v3863_v18, %v3862_v21  ;;  %v3867_v43 = vsel %vm1388_vm11, %v3821_v19, 0.0  ;;  %v3824_v51 = vmul.f32 %v16126_v54, %v16126_v54  ;;  %v21207_v19 = vld [vmem:[#allocation36_spill] sm:$0xff] }
 0x2ad   : > { %v3822_v42 = vmul.f32 %v16119_v34, %v16119_v34  ;;  %v16135_v60 = vadd.f32 %v15898_v61, %v3687_v55  ;;  %v3685_v31 = vadd.f32 %v16061_v63, %v3461_v41  ;;  %v3466_v50 = vadd.f32 %v13157_v30, %v21206_v27  ;;  %v13198_v55 = vpop.f32.mrf.mxu0 }
 0x2ae   : > { %v3397_v7 = vpop.f32.mrf.mxu1  ;;  %v3866_v53 = vadd.f32 %v3865_v5, %v3864_v14  ;;  %v3767_v13 = vadd.f32 %v3766_v46, %v3765_v8  ;;  %v3768_v26 = vsel %vm1388_vm11, %v16119_v34, 0.0  ;;  %v3772_v8 = vsel %vm1388_vm11, %v16126_v54, 0.0 }
 0x2af   : > { %v3464_v47 = vadd.f32 %v3397_v7, %v15939_v57  ;;  %v16146_v62 = vadd.f32 %v15898_v61, %v3685_v31  ;;  %v3690_v63 = vadd.f32 %v16072_v36, %v3466_v50  ;;  %v3869_v57 = vsel %vm1388_vm11, %v3822_v42, 0.0 }
 0x2b0   : > { %v13158_v22 = vpop.f32.mrf.mxu1  ;;  %v3769_v20 = vadd.f32 %v3768_v26, %v3767_v13  ;;  %v3868_v52 = vadd.f32 %v3867_v43, %v3866_v53  ;;  %v3825_v39 = vmul.f32 %v16135_v60, %v16135_v60  ;;  %v3873_v50 = vsel %vm1388_vm11, %v3824_v51, 0.0  ;;  %v3640_v13 = vpop.f32.mrf.mxu0 }
 0x2b1   : > { %v3688_v21 = vadd.f32 %v3621_v15, %v3464_v47  ;;  %v3467_v2 = vadd.f32 %v13158_v22, %v21207_v19  ;;  %v3770_v18 = vsel %vm1388_vm11, %v16146_v62, 0.0  ;;  %v3823_v41 = vmul.f32 %v16146_v62, %v16146_v62 }
 0x2b2   : > { %v3400_v30 = vpop.f32.mrf.mxu1  ;;  %v3870_v36 = vadd.f32 %v3869_v57, %v3868_v52  ;;  %v3771_v5 = vadd.f32 %v3770_v18, %v3769_v20  ;;  %v16164_v42 = vadd.f32 %v15898_v61, %v3690_v63  ;;  %v3774_v7 = vsel %vm1388_vm11, %v16135_v60, 0.0 }
 0x2b3   : > { %v16158_v46 = vadd.f32 %v15898_v61, %v3688_v21  ;;  %v3691_v15 = vadd.f32 %v13194_v9, %v3467_v2  ;;  %v3871_v14 = vsel %vm1388_vm11, %v3823_v41, 0.0  ;;  %v3465_v31 = vadd.f32 %v3400_v30, %v15942_v44  ;;  %v13201_v30 = vpop.f32.mrf.mxu0 }
 0x2b4   : > { %v13161_v27 = vpop.f32.mrf.mxu1  ;;  %v3773_v43 = vadd.f32 %v3772_v8, %v3771_v5  ;;  %v3872_v53 = vadd.f32 %v3871_v14, %v3870_v36  ;;  %v3875_v9 = vsel %vm1388_vm11, %v3825_v39, 0.0  ;;  %v3828_v21 = vmul.f32 %v16164_v42, %v16164_v42 }
 0x2b5   : > { %v3826_v47 = vmul.f32 %v16158_v46, %v16158_v46  ;;  %v3689_v26 = vadd.f32 %v16105_v11, %v3465_v31  ;;  %v3470_v63 = vadd.f32 %v13161_v27, %v15836_v17  ;;  %v16176_v51 = vadd.f32 %v15898_v61, %v3691_v15 }
 0x2b6   : > { %v3413_v22 = vpop.f32.mrf.mxu1  ;;  %v3874_v44 = vadd.f32 %v3873_v50, %v3872_v53  ;;  %v3775_v20 = vadd.f32 %v3774_v7, %v3773_v43  ;;  %v3776_v19 = vsel %vm1388_vm11, %v16158_v46, 0.0  ;;  %v3881_v53 = vsel %vm1388_vm11, %v3828_v21, 0.0 }
 0x2b7   : > { %v3468_v52 = vadd.f32 %v3413_v22, %v15945_v59  ;;  %v16184_v2 = vadd.f32 %v15898_v61, %v3689_v26  ;;  %v3694_v11 = vadd.f32 %v16116_v3, %v3470_v63  ;;  %v3780_v59 = vsel %vm1388_vm11, %v16164_v42, 0.0  ;;  %v3653_v26 = vpop.f32.mrf.mxu0  ;;  %v21208_v63 = vld [vmem:[#allocation38_spill] sm:$0xff] }
 0x2b8   : > { %v13162_v17 = vpop.f32.mrf.mxu1  ;;  %v3777_v57 = vadd.f32 %v3776_v19, %v3775_v20  ;;  %v3876_v39 = vadd.f32 %v3875_v9, %v3874_v44  ;;  %v3877_v36 = vsel %vm1388_vm11, %v3826_v47, 0.0  ;;  %v3829_v14 = vmul.f32 %v16176_v51, %v16176_v51 }
 0x2b9   : > { %v3692_v18 = vadd.f32 %v3637_v33, %v3468_v52  ;;  %v3471_v41 = vadd.f32 %v13162_v17, %v15841_v35  ;;  %v3778_v5 = vsel %vm1388_vm11, %v16184_v2, 0.0  ;;  %v3827_v15 = vmul.f32 %v16184_v2, %v16184_v2 }
 0x2ba   : > { %v3416_v8 = vpop.f32.mrf.mxu1  ;;  %v3878_v3 = vadd.f32 %v3877_v36, %v3876_v39  ;;  %v3779_v33 = vadd.f32 %v3778_v5, %v3777_v57  ;;  %v16202_v27 = vadd.f32 %v15898_v61, %v3694_v11  ;;  %v3233_v22 = vadd.f32 %v21208_v63, %v15962_v38  ;;  %v13202_v36 = vpop.f32.mrf.mxu0 }
 0x2bb   : > { %v16198_v35 = vadd.f32 %v15898_v61, %v3692_v18  ;;  %v3879_v31 = vsel %vm1388_vm11, %v3827_v15, 0.0  ;;  %v3695_v50 = vadd.f32 %v13198_v55, %v3471_v41  ;;  %v3469_v7 = vadd.f32 %v3416_v8, %v15948_v40 }
 0x2bc   : > { %v13165_v43 = vpop.f32.mrf.mxu1  ;;  %v3781_v9 = vadd.f32 %v3780_v59, %v3779_v33  ;;  %v3880_v47 = vadd.f32 %v3879_v31, %v3878_v3  ;;  %v3782_v44 = vsel %vm1388_vm11, %v16176_v51, 0.0  ;;  %v3883_v40 = vsel %vm1388_vm11, %v3829_v14, 0.0  ;;  %v3656_v63 = vpop.f32.mrf.mxu0 }
 0x2bd   : > { %v3830_v20 = vmul.f32 %v16198_v35, %v16198_v35  ;;  %v3693_v52 = vadd.f32 %v3640_v13, %v3469_v7  ;;  %v3474_v55 = vadd.f32 %v13165_v43, %v15844_v23  ;;  %v3832_v57 = vmul.f32 %v16202_v27, %v16202_v27 }
 0x2be   : > { %v3429_v19 = vpop.f32.mrf.mxu1  ;;  %v3882_v11 = vadd.f32 %v3881_v53, %v3880_v47  ;;  %v3783_v21 = vadd.f32 %v3782_v44, %v3781_v9  ;;  %v3784_v38 = vsel %vm1388_vm11, %v16198_v35, 0.0  ;;  %v16220_v39 = vadd.f32 %v15898_v61, %v3695_v50 }
 0x2bf   : > { %v3472_v17 = vadd.f32 %v3429_v19, %v15959_v32  ;;  %v16223_v13 = vadd.f32 %v15898_v61, %v3693_v52  ;;  %v3885_v32 = vsel %vm1388_vm11, %v3830_v20, 0.0  ;;  %v3698_v3 = vadd.f32 %v13201_v30, %v3474_v55 }
 0x2c0   : > { %v13166_v23 = vpop.f32.mrf.mxu1  ;;  %v3785_v18 = vadd.f32 %v3784_v38, %v3783_v21  ;;  %v3884_v41 = vadd.f32 %v3883_v40, %v3882_v11  ;;  %v3788_v33 = vsel %vm1388_vm11, %v16202_v27, 0.0  ;;  %v3889_v47 = vsel %vm1388_vm11, %v3832_v57, 0.0 }
 0x2c1   : > { %v3696_v59 = vadd.f32 %v3653_v26, %v3472_v17  ;;  %v3475_v5 = vadd.f32 %v13166_v23, %v15854_v16  ;;  %v3786_v15 = vsel %vm1388_vm11, %v16223_v13, 0.0  ;;  %v3831_v8 = vmul.f32 %v16223_v13, %v16223_v13 }
 0x2c2   : > { %v3432_v14 = vpop.f32.mrf.mxu1  ;;  %v3886_v31 = vadd.f32 %v3885_v32, %v3884_v41  ;;  %v3787_v50 = vadd.f32 %v3786_v15, %v3785_v18  ;;  %v3833_v16 = vmul.f32 %v16220_v39, %v16220_v39  ;;  %v3790_v44 = vsel %vm1388_vm11, %v16220_v39, 0.0 }
 0x2c3   : > { %v16234_v7 = vadd.f32 %v15898_v61, %v3696_v59  ;;  %v3887_v43 = vsel %vm1388_vm11, %v3831_v8, 0.0  ;;  %v3699_v53 = vadd.f32 %v13202_v36, %v3475_v5  ;;  %v3473_v9 = vadd.f32 %v3432_v14, %v3233_v22 }
 0x2c4   : > { %v3789_v26 = vadd.f32 %v3788_v33, %v3787_v50  ;;  %v3888_v30 = vadd.f32 %v3887_v43, %v3886_v31  ;;  %v16243_v20 = vadd.f32 %v15898_v61, %v3698_v3  ;;  %v3891_v11 = vsel %vm1388_vm11, %v3833_v16, 0.0 }
 0x2c5   : > { %v3834_v52 = vmul.f32 %v16234_v7, %v16234_v7  ;;  %v3697_v55 = vadd.f32 %v3656_v63, %v3473_v9  ;;  %v3792_v22 = vsel %vm1388_vm11, %v16234_v7, 0.0  ;;  %v16251_v21 = vadd.f32 %v15898_v61, %v3699_v53 }
 0x2c6   : > { %v3890_v19 = vadd.f32 %v3889_v47, %v3888_v30  ;;  %v3791_v40 = vadd.f32 %v3790_v44, %v3789_v26  ;;  %v3836_v23 = vmul.f32 %v16243_v20, %v16243_v20  ;;  %v3796_v32 = vsel %vm1388_vm11, %v16243_v20, 0.0 }
 0x2c7   : > { %v16254_v17 = vadd.f32 %v15898_v61, %v3697_v55  ;;  %v3893_v18 = vsel %vm1388_vm11, %v3834_v52, 0.0  ;;  %v3837_v61 = vmul.f32 %v16251_v21, %v16251_v21  ;;  %v3798_v33 = vsel %vm1388_vm11, %v16251_v21, 0.0 }
 0x2c8   : > { %v3793_v57 = vadd.f32 %v3792_v22, %v3791_v40  ;;  %v3892_v38 = vadd.f32 %v3891_v11, %v3890_v19  ;;  %v3897_v14 = vsel %vm1388_vm11, %v3836_v23, 0.0  ;;  %v4697_v23 = vld [vmem:[#allocation2] sm:$0xf] }
 0x2c9   : > { %v3794_v41 = vsel %vm1388_vm11, %v16254_v17, 0.0  ;;  %v3835_v59 = vmul.f32 %v16254_v17, %v16254_v17  ;;  %v3899_v16 = vsel %vm1388_vm11, %v3837_v61, 0.0  ;;  %v13968_v61 = vld [vmem:[#allocation6 + $0xa0] sm:$0xff]  }
 0x2ca   : > { %v3894_v36 = vadd.f32 %v3893_v18, %v3892_v38  ;;  %v3795_v5 = vadd.f32 %v3794_v41, %v3793_v57  ;;  %v13962_v57 = vld [vmem:[#allocation6 + $0x98] sm:$0xff]   ;;  %v13963_v38 = vld [vmem:[#allocation6 + $0x90] sm:$0xff]   ;;  %v4698_v18 = vld [vmem:[#allocation2 + $0x4] sm:$0xf] }
 0x2cb   : > { %v3895_v15 = vsel %vm1388_vm11, %v3835_v59, 0.0  ;;  %13250 = vmatprep.subr.bf16.mxu0 %v13962_v57  ;;  %v11809_v41 = vcombine.low %v4697_v23, %v4698_v18  ;;  %v13965_v59 = vld [vmem:[#allocation6 + $0xa8] sm:$0xff]  }
 0x2cc   : > { %v3797_v8 = vadd.f32 %v3796_v32, %v3795_v5  ;;  %v3896_v3 = vadd.f32 %v3895_v15, %v3894_v36  ;;  %13251 = vmatpush3.bf16.msra.mxu0 %v13962_v57  ;;  %v4757_v36 = vshrl.u32 %v4697_v23, 16  ;;  %v4760_v5 = vshll.u32 %v4697_v23, 16  ;;  %13214 = vmatprep.subr.bf16.mxu1 %v13965_v59 }
 0x2cd   : > { %13252 = vmatprep.subr.bf16.mxu0 %v13963_v38  ;;  %13254 = vmatprep.mubr.msk.bf16.mxu0 %vm1388_vm11, %v11809_v41  ;;  %v4770_v32 = vshrl.u32 %v4698_v18, 16  ;;  %v4766_v15 = vshll.u32 %v4698_v18, 16 }
 0x2ce   : > { %v3799_v31 = vadd.f32 %v3798_v33, %v3797_v8  ;;  %v3898_v50 = vadd.f32 %v3897_v14, %v3896_v3  ;;  %v4759_v8 = vrot.slane %v4757_v36, 4  ;;  %v4762_v3 = vrot.slane %v4760_v5, 5 }
 0x2cf   : > { %v4768_v14 = vrot.slane %v4766_v15, 5  ;;  %v4772_v33 = vrot.slane %v4770_v32, 4 }
 0x2d0   : > { %v3800_v43 = vrot.slane %v3799_v31, 4  ;;  %v3900_v53 = vadd.f32 %v3899_v16, %v3898_v50  ;;  %13253 = vmatpush3.bf16.msra.mxu0 %v13963_v38  ;;  %v4699_v50 = vld [vmem:[#allocation2 + $0x8] sm:$0x1] }
 0x2d2   : > { %v3801_v9 = vadd.f32 %v3800_v43, %v3799_v31  ;;  %v3901_v47 = vrot.slane %v3900_v53, 4 }
 0x2d4   : > { %v3802_v26 = vrot.slane %v3801_v9, 2  ;;  %v3902_v30 = vadd.f32 %v3901_v47, %v3900_v53  ;;  %v4773_v47 = vor.u32 %v4772_v33, %v4768_v14 }
 0x2d6   : > { %v3803_v63 = vadd.f32 %v3802_v26, %v3801_v9  ;;  %v3903_v44 = vrot.slane %v3902_v30, 2  ;;  %v4763_v9 = vor.u32 %v4762_v3, %v4759_v8  ;;  %v4776_v26 = vshll.u32 %v4699_v50, 16 }
 0x2d8   : > { %v3804_v52 = vrot.slane %v3803_v63, 1  ;;  %v3904_v55 = vadd.f32 %v3903_v44, %v3902_v30  ;;  %v13970_v30 = vld [vmem:[#allocation6 + $0xb8] sm:$0xff]  }
 0x2da   : > { %v3905_v19 = vrot.slane %v3904_v55, 1  ;;  %v3805_v40 = vadd.f32 %v3804_v52, %v3803_v63  ;;  %v3989_v63 = vlaneseq }
 0x2dc   : > { %v3906_v11 = vadd.f32 %v3905_v19, %v3904_v55  ;;  %v4764_v55 = vrot.slane %v4763_v9, 4  ;;  %v4774_v19 = vrot.slane %v4773_v47, 4 }
 0x2de   : > { %v3908_v22 = vsel %vm3907_vm2, %v3805_v40, %v3906_v11  ;;  %v4778_v40 = vrot.slane %v4776_v26, 5  ;;  %v16275_v11 = vshrl.u32 %v3989_v63, 7  ;;  %v4769_v23 = vsel %vm14458_vm7, %v4764_v55, %v4768_v14 }
 0x2df   : > { %13212 = vmatmul.mubr.msk.f32.vlgmr.msra.gmra.mxu1 %vm1388_vm11, %v3908_v22 }
 0x2e0   : > { %13215 = vmatpush3.bf16.msra.mxu1 %v13965_v59  ;;  %21209 = vst [vmem:[#allocation32_spill] sm:$0xff] %v16275_v11  ;;  %v4779_v18 = vsel %vm14458_vm7, %v4774_v19, %v4778_v40  ;;  %v20944_v41 = vsub.s32 0, %v16275_v11  ;;  %v20943_v5 = vsub.s32 1, %v16275_v11  ;;  %v4631_v11 = vld [vmem:[#allocation2 + $0x5c] sm:$0x1] }
 0x2e1   : > { %13216 = vmatprep.subr.bf16.mxu1 %v13968_v61  ;;  %v11775_v59 = vcombine.low %v4769_v23, %v4779_v18 }
 0x2e3   : > { %13218 = vmatprep.mubr.msk.bf16.mxu1 %vm1388_vm11, %v11775_v59 }
 0x2e4   : > { %13217 = vmatpush3.bf16.msra.mxu1 %v13968_v61 }
 0x2e5   : > { %13286 = vmatprep.subr.bf16.mxu1 %v13970_v30 }
 0x39f   : > { %v3978_v31 = vpop.f32.mrf.mxu1 }
 0x3a0   : > { %v3982_v16 = vmul.f32 0.0009765625, %v3978_v31 }
 0x3a1   : > { %v13213_v43 = vpop.f32.mrf.mxu1 }
 0x3a2   : > { %v3983_v53 = vmul.f32 %v3982_v16, %v3982_v16  ;;  %v16284_v36 = vrot.slane %v3982_v16, %v20944_v41 }
 0x3a4   : > { %v3985_v44 = vrot.slane %v3983_v53, 7  ;;  %v3993_v32 = vsub.f32 %v15913_v29, %v16284_v36  ;;  %v3994_v61 = vsub.f32 %v15953_v49, %v16284_v36  ;;  %v3995_v15 = vsub.f32 %v15921_v58, %v16284_v36 }
 0x3a5   : > { %v3996_v8 = vsub.f32 %v15933_v4, %v16284_v36  ;;  %v3997_v3 = vsub.f32 %v15979_v28, %v16284_v36  ;;  %v3998_v14 = vsub.f32 %v16010_v25, %v16284_v36  ;;  %v3999_v33 = vsub.f32 %v15987_v12, %v16284_v36 }
 0x3a6   : > { %v3987_v52 = vsub.f32 %v3982_v16, %v3985_v44  ;;  %v4000_v29 = vsub.f32 %v15997_v48, %v16284_v36  ;;  %v4001_v49 = vsub.f32 %v16027_v24, %v16284_v36  ;;  %v4002_v58 = vsub.f32 %v16058_v0, %v16284_v36 }
 0x3a7   : > { %v4003_v4 = vsub.f32 %v16034_v1, %v16284_v36  ;;  %v4004_v28 = vsub.f32 %v16045_v37, %v16284_v36  ;;  %v4005_v25 = vsub.f32 %v16075_v45, %v16284_v36  ;;  %v4006_v12 = vsub.f32 %v16102_v10, %v16284_v36 }
 0x3a8   : > { %v3988_v22 = vmax.f32 %v3987_v52, 0.0  ;;  %v4007_v48 = vsub.f32 %v16082_v56, %v16284_v36  ;;  %v4008_v24 = vsub.f32 %v16091_v6, %v16284_v36  ;;  %v4009_v0 = vsub.f32 %v16119_v34, %v16284_v36 }
 0x3a9   : > { %v4010_v1 = vsub.f32 %v16146_v62, %v16284_v36  ;;  %v4011_v37 = vsub.f32 %v16126_v54, %v16284_v36  ;;  %v4012_v45 = vsub.f32 %v16135_v60, %v16284_v36  ;;  %v4013_v10 = vsub.f32 %v16158_v46, %v16284_v36 }
 0x3aa   : > { %v4025_v57 = vadd.f32 1e-05, %v3988_v22  ;;  %v4014_v56 = vsub.f32 %v16184_v2, %v16284_v36  ;;  %v4015_v6 = vsub.f32 %v16164_v42, %v16284_v36  ;;  %v4016_v34 = vsub.f32 %v16176_v51, %v16284_v36  ;;  %v11741_v22 = vld [vmem:[%s20882_s3] ss:$0 sm:$0xff] }
 0x3ab   : > { %v4017_v62 = vsub.f32 %v16198_v35, %v16284_v36  ;;  %v4018_v60 = vsub.f32 %v16223_v13, %v16284_v36  ;;  %v4019_v46 = vsub.f32 %v16202_v27, %v16284_v36  ;;  %v4020_v2 = vsub.f32 %v16220_v39, %v16284_v36 }
 0x3ac   : > { %14034 = vrsqrt.f32 %v4025_v57  ;;  %v4021_v42 = vsub.f32 %v16234_v7, %v16284_v36  ;;  %v4022_v51 = vsub.f32 %v16254_v17, %v16284_v36  ;;  %v4023_v35 = vsub.f32 %v16243_v20, %v16284_v36 }
 0x3ad   : > { %v4024_v50 = vsub.f32 %v16251_v21, %v16284_v36 }
 0x3b9   : > { %v14035_v31 = vpop.eup %14034 }
 0x3ba   : > { %v4030_v54 = vrot.slane %v14035_v31, %v20943_v5 }
 0x3bc   : > { %v4031_v16 = vmul.f32 %v4030_v54, %v3993_v32  ;;  %v4032_v13 = vmul.f32 %v4030_v54, %v3994_v61  ;;  %v4033_v43 = vmul.f32 %v4030_v54, %v3995_v15  ;;  %v4034_v53 = vmul.f32 %v4030_v54, %v3996_v8 }
 0x3bd   : > { %v4035_v27 = vmul.f32 %v4030_v54, %v3997_v3  ;;  %v4036_v9 = vmul.f32 %v4030_v54, %v3998_v14  ;;  %v4037_v47 = vmul.f32 %v4030_v54, %v3999_v33  ;;  %v4038_v39 = vmul.f32 %v4030_v54, %v4000_v29 }
 0x3be   : > { %v4039_v26 = vmul.f32 %v4030_v54, %v4001_v49  ;;  %v4040_v30 = vmul.f32 %v4030_v54, %v4002_v58  ;;  %v4041_v7 = vmul.f32 %v4030_v54, %v4003_v4  ;;  %v4042_v63 = vmul.f32 %v4030_v54, %v4004_v28 }
 0x3bf   : > { %v4043_v44 = vmul.f32 %v4030_v54, %v4005_v25  ;;  %v4044_v17 = vmul.f32 %v4030_v54, %v4006_v12  ;;  %v4045_v52 = vmul.f32 %v4030_v54, %v4007_v48  ;;  %v4046_v55 = vmul.f32 %v4030_v54, %v4008_v24 }
 0x3c0   : > { %v4047_v20 = vmul.f32 %v4030_v54, %v4009_v0  ;;  %v4048_v19 = vmul.f32 %v4030_v54, %v4010_v1  ;;  %v4049_v40 = vmul.f32 %v4030_v54, %v4011_v37  ;;  %v4050_v21 = vmul.f32 %v4030_v54, %v4012_v45 }
 0x3c1   : > { %v4051_v57 = vmul.f32 %v4030_v54, %v4013_v10  ;;  %v4052_v23 = vmul.f32 %v4030_v54, %v4014_v56  ;;  %v4053_v18 = vmul.f32 %v4030_v54, %v4015_v6  ;;  %v4054_v59 = vmul.f32 %v4030_v54, %v4016_v34 }
 0x3c2   : > { %v4055_v36 = vmul.f32 %v4030_v54, %v4017_v62  ;;  %v4056_v32 = vmul.f32 %v4030_v54, %v4018_v60  ;;  %v4057_v61 = vmul.f32 %v4030_v54, %v4019_v46  ;;  %v4058_v15 = vmul.f32 %v4030_v54, %v4020_v2  ;;  %v11742_v60 = vld [vmem:[%s20883_s4] ss:$0 sm:$0xff] }
 0x3c3   : > { %v4059_v8 = vmul.f32 %v4030_v54, %v4021_v42  ;;  %v4060_v3 = vmul.f32 %v4030_v54, %v4022_v51  ;;  %v4061_v14 = vmul.f32 %v4030_v54, %v4023_v35  ;;  %v4062_v33 = vmul.f32 %v4030_v54, %v4024_v50 }
 0x3c4   : > { %v4068_v29 = vmul.f32 %v11741_v22, %v4031_v16  ;;  %v4069_v49 = vmul.f32 %v11741_v22, %v4032_v13  ;;  %v4070_v58 = vmul.f32 %v11741_v22, %v4033_v43  ;;  %v4071_v4 = vmul.f32 %v11741_v22, %v4034_v53 }
 0x3c5   : > { %v4072_v28 = vmul.f32 %v11741_v22, %v4035_v27  ;;  %v4073_v25 = vmul.f32 %v11741_v22, %v4036_v9  ;;  %v4074_v12 = vmul.f32 %v11741_v22, %v4037_v47  ;;  %v4075_v48 = vmul.f32 %v11741_v22, %v4038_v39 }
 0x3c6   : > { %v4076_v24 = vmul.f32 %v11741_v22, %v4039_v26  ;;  %v4077_v0 = vmul.f32 %v11741_v22, %v4040_v30  ;;  %v4078_v1 = vmul.f32 %v11741_v22, %v4041_v7  ;;  %v4079_v37 = vmul.f32 %v11741_v22, %v4042_v63 }
 0x3c7   : > { %v4080_v45 = vmul.f32 %v11741_v22, %v4043_v44  ;;  %v4081_v10 = vmul.f32 %v11741_v22, %v4044_v17  ;;  %v4082_v31 = vmul.f32 %v11741_v22, %v4045_v52  ;;  %v4083_v56 = vmul.f32 %v11741_v22, %v4046_v55 }
 0x3c8   : > { %v4084_v6 = vmul.f32 %v11741_v22, %v4047_v20  ;;  %v4085_v34 = vmul.f32 %v11741_v22, %v4048_v19  ;;  %v4086_v62 = vmul.f32 %v11741_v22, %v4049_v40  ;;  %v4087_v54 = vmul.f32 %v11741_v22, %v4050_v21 }
 0x3c9   : > { %v4088_v46 = vmul.f32 %v11741_v22, %v4051_v57  ;;  %v4089_v2 = vmul.f32 %v11741_v22, %v4052_v23  ;;  %v4090_v42 = vmul.f32 %v11741_v22, %v4053_v18  ;;  %v4091_v51 = vmul.f32 %v11741_v22, %v4054_v59 }
 0x3ca   : > { %v4092_v35 = vmul.f32 %v11741_v22, %v4055_v36  ;;  %v4093_v50 = vmul.f32 %v11741_v22, %v4056_v32  ;;  %v4094_v16 = vmul.f32 %v11741_v22, %v4057_v61  ;;  %v4095_v13 = vmul.f32 %v11741_v22, %v4058_v15 }
 0x3cb   : > { %v4096_v43 = vmul.f32 %v11741_v22, %v4059_v8  ;;  %v4097_v53 = vmul.f32 %v11741_v22, %v4060_v3  ;;  %v4098_v27 = vmul.f32 %v11741_v22, %v4061_v14  ;;  %v4099_v9 = vmul.f32 %v11741_v22, %v4062_v33 }
 0x3cc   : > { %v16360_v47 = vadd.f32 %v11742_v60, %v4068_v29  ;;  %v16362_v39 = vadd.f32 %v11742_v60, %v4069_v49  ;;  %v16364_v26 = vadd.f32 %v11742_v60, %v4070_v58  ;;  %v16366_v30 = vadd.f32 %v11742_v60, %v4071_v4 }
 0x3cd   : > { %v16368_v7 = vadd.f32 %v11742_v60, %v4072_v28  ;;  %v16370_v63 = vadd.f32 %v11742_v60, %v4073_v25  ;;  %v16372_v44 = vadd.f32 %v11742_v60, %v4074_v12  ;;  %v16374_v17 = vadd.f32 %v11742_v60, %v4075_v48 }
 0x3ce   : > { %v16376_v52 = vadd.f32 %v11742_v60, %v4076_v24  ;;  %v16378_v55 = vadd.f32 %v11742_v60, %v4077_v0  ;;  %v16380_v20 = vadd.f32 %v11742_v60, %v4078_v1  ;;  %v16382_v19 = vadd.f32 %v11742_v60, %v4079_v37 }
 0x3cf   : > { %v16384_v40 = vadd.f32 %v11742_v60, %v4080_v45  ;;  %v16386_v21 = vadd.f32 %v11742_v60, %v4081_v10  ;;  %v16388_v22 = vadd.f32 %v11742_v60, %v4082_v31  ;;  %v16390_v57 = vadd.f32 %v11742_v60, %v4083_v56  ;;  %v16432_v10 = vld [vmem:[#allocation6 + $0xc8] sm:$0xff]  }
 0x3d0   : > { %v16392_v23 = vadd.f32 %v11742_v60, %v4084_v6  ;;  %v16394_v18 = vadd.f32 %v11742_v60, %v4085_v34  ;;  %v16396_v59 = vadd.f32 %v11742_v60, %v4086_v62  ;;  %v16398_v36 = vadd.f32 %v11742_v60, %v4087_v54  ;;  %21211 = vst [vmem:[#allocation17_spill] sm:$0xff] %v16432_v10 }
 0x3d1   : > { %v16400_v32 = vadd.f32 %v11742_v60, %v4088_v46  ;;  %v16402_v61 = vadd.f32 %v11742_v60, %v4089_v2  ;;  %v16404_v15 = vadd.f32 %v11742_v60, %v4090_v42  ;;  %v16406_v8 = vadd.f32 %v11742_v60, %v4091_v51  ;;  %13322 = vmatprep.subr.bf16.mxu0 %v16432_v10 }
 0x3d2   : > { %v16408_v3 = vadd.f32 %v11742_v60, %v4092_v35  ;;  %v16410_v14 = vadd.f32 %v11742_v60, %v4093_v50  ;;  %v16412_v33 = vadd.f32 %v11742_v60, %v4094_v16  ;;  %v16414_v29 = vadd.f32 %v11742_v60, %v4095_v13 }
 0x3d3   : > { %v16416_v49 = vadd.f32 %v11742_v60, %v4096_v43  ;;  %v16418_v58 = vadd.f32 %v11742_v60, %v4097_v53  ;;  %v16420_v4 = vadd.f32 %v11742_v60, %v4098_v27  ;;  %v16422_v28 = vadd.f32 %v11742_v60, %v4099_v9 }
 0x3d4   : > { %v4137_v25 = vmax.f32 %v16360_v47, 0.0  ;;  %v4138_v12 = vmax.f32 %v16362_v39, 0.0  ;;  %v4139_v48 = vmax.f32 %v16364_v26, 0.0  ;;  %v4140_v24 = vmax.f32 %v16366_v30, 0.0 }
 0x3d5   : > { %v4141_v0 = vmax.f32 %v16368_v7, 0.0  ;;  %v4142_v1 = vmax.f32 %v16370_v63, 0.0  ;;  %v4143_v37 = vmax.f32 %v16372_v44, 0.0  ;;  %v4144_v45 = vmax.f32 %v16374_v17, 0.0 }
 0x3d6   : > { %v4145_v31 = vmax.f32 %v16376_v52, 0.0  ;;  %v4146_v56 = vmax.f32 %v16378_v55, 0.0  ;;  %v4147_v6 = vmax.f32 %v16380_v20, 0.0  ;;  %v4148_v34 = vmax.f32 %v16382_v19, 0.0 }
 0x3d7   : > { %v4149_v62 = vmax.f32 %v16384_v40, 0.0  ;;  %v4150_v54 = vmax.f32 %v16386_v21, 0.0  ;;  %v4151_v60 = vmax.f32 %v16388_v22, 0.0  ;;  %v4152_v46 = vmax.f32 %v16390_v57, 0.0 }
 0x3d8   : > { %v4153_v2 = vmax.f32 %v16392_v23, 0.0  ;;  %v4154_v42 = vmax.f32 %v16394_v18, 0.0  ;;  %v4155_v51 = vmax.f32 %v16396_v59, 0.0  ;;  %v4156_v35 = vmax.f32 %v16398_v36, 0.0 }
 0x3d9   : > { %v4157_v50 = vmax.f32 %v16400_v32, 0.0  ;;  %v4158_v16 = vmax.f32 %v16402_v61, 0.0  ;;  %v4159_v13 = vmax.f32 %v16404_v15, 0.0  ;;  %v4160_v43 = vmax.f32 %v16406_v8, 0.0 }
 0x3da   : > { %v4161_v53 = vmax.f32 %v16408_v3, 0.0  ;;  %v4162_v27 = vmax.f32 %v16410_v14, 0.0  ;;  %v4163_v9 = vmax.f32 %v16412_v33, 0.0  ;;  %v4164_v47 = vmax.f32 %v16414_v29, 0.0 }
 0x3db   : > { %v4165_v39 = vmax.f32 %v16416_v49, 0.0  ;;  %v4166_v26 = vmax.f32 %v16418_v58, 0.0  ;;  %v4167_v30 = vmax.f32 %v16420_v4, 0.0  ;;  %v4168_v7 = vmax.f32 %v16422_v28, 0.0 }
 0x3dc   : > { %v16459_v63 = vpack.c.bf16 %v4137_v25, %v4137_v25  ;;  %v16461_v44 = vpack.c.bf16 %v4138_v12, %v4138_v12  ;;  %v16463_v17 = vpack.c.bf16 %v4139_v48, %v4139_v48  ;;  %v16465_v52 = vpack.c.bf16 %v4140_v24, %v4140_v24 }
 0x3dd   : > { %v16467_v55 = vpack.c.bf16 %v4141_v0, %v4141_v0  ;;  %v16469_v20 = vpack.c.bf16 %v4142_v1, %v4142_v1  ;;  %v16471_v19 = vpack.c.bf16 %v4143_v37, %v4143_v37  ;;  %v16473_v40 = vpack.c.bf16 %v4144_v45, %v4144_v45 }
 0x3de   : > { %v16475_v21 = vpack.c.bf16 %v4145_v31, %v4145_v31  ;;  %v16477_v22 = vpack.c.bf16 %v4146_v56, %v4146_v56  ;;  %v16479_v57 = vpack.c.bf16 %v4147_v6, %v4147_v6  ;;  %v16481_v23 = vpack.c.bf16 %v4148_v34, %v4148_v34 }
 0x3df   : > { %v16483_v18 = vpack.c.bf16 %v4149_v62, %v4149_v62  ;;  %v16485_v59 = vpack.c.bf16 %v4150_v54, %v4150_v54  ;;  %v16487_v36 = vpack.c.bf16 %v4151_v60, %v4151_v60  ;;  %v16489_v32 = vpack.c.bf16 %v4152_v46, %v4152_v46 }
 0x3e0   : > { %v16491_v61 = vpack.c.bf16 %v4153_v2, %v4153_v2  ;;  %v16493_v15 = vpack.c.bf16 %v4154_v42, %v4154_v42  ;;  %v16495_v8 = vpack.c.bf16 %v4155_v51, %v4155_v51  ;;  %v16497_v3 = vpack.c.bf16 %v4156_v35, %v4156_v35 }
 0x3e1   : > { %v16499_v14 = vpack.c.bf16 %v4157_v50, %v4157_v50  ;;  %v16501_v33 = vpack.c.bf16 %v4158_v16, %v4158_v16  ;;  %v16503_v29 = vpack.c.bf16 %v4159_v13, %v4159_v13  ;;  %v16505_v49 = vpack.c.bf16 %v4160_v43, %v4160_v43 }
 0x3e2   : > { %v16507_v58 = vpack.c.bf16 %v4161_v53, %v4161_v53  ;;  %v16509_v4 = vpack.c.bf16 %v4162_v27, %v4162_v27  ;;  %v16511_v28 = vpack.c.bf16 %v4163_v9, %v4163_v9  ;;  %v16513_v25 = vpack.c.bf16 %v4164_v47, %v4164_v47 }
 0x3e3   : > { %v16515_v12 = vpack.c.bf16 %v4165_v39, %v4165_v39  ;;  %v16517_v48 = vpack.c.bf16 %v4166_v26, %v4166_v26  ;;  %v16519_v24 = vpack.c.bf16 %v4167_v30, %v4167_v30  ;;  %v16521_v0 = vpack.c.bf16 %v4168_v7, %v4168_v7 }
 0x3e4   : > { %v4266_v1 = vshrl.u32 %v16459_v63, 16  ;;  %v4269_v37 = vshll.u32 %v16459_v63, 16  ;;  %v4274_v45 = vshrl.u32 %v16461_v44, 16  ;;  %v4277_v31 = vshll.u32 %v16461_v44, 16  ;;  %v4624_v63 = vld [vmem:[#allocation2 + $0x50] sm:$0x1] }
 0x3e5   : > { %v4283_v56 = vshrl.u32 %v16463_v17, 16  ;;  %v4286_v6 = vshll.u32 %v16463_v17, 16  ;;  %v4291_v34 = vshrl.u32 %v16465_v52, 16  ;;  %v4294_v62 = vshll.u32 %v16465_v52, 16 }
 0x3e6   : > { %v4300_v54 = vshrl.u32 %v16467_v55, 16  ;;  %v4303_v60 = vshll.u32 %v16467_v55, 16  ;;  %v4308_v46 = vshrl.u32 %v16469_v20, 16  ;;  %v4311_v2 = vshll.u32 %v16469_v20, 16 }
 0x3e7   : > { %v4317_v42 = vshrl.u32 %v16471_v19, 16  ;;  %v4320_v51 = vshll.u32 %v16471_v19, 16  ;;  %v4325_v35 = vshrl.u32 %v16473_v40, 16  ;;  %v4328_v50 = vshll.u32 %v16473_v40, 16 }
 0x3e8   : > { %v4334_v16 = vshrl.u32 %v16475_v21, 16  ;;  %v4521_v13 = vshrl.u32 %v16519_v24, 16  ;;  %v4268_v26 = vrot.slane %v4266_v1, 7  ;;  %v16589_v30 = vrot.slane %v4274_v45, 7 }
 0x3e9   : > { %v4285_v7 = vrot.slane %v4283_v56, 7  ;;  %v16591_v27 = vrot.slane %v4291_v34, 7  ;;  %v4302_v5 = vrot.slane %v4300_v54, 7  ;;  %v16593_v41 = vrot.slane %v4308_v46, 7 }
 0x3ea   : > { %v4319_v53 = vrot.slane %v4317_v42, 7  ;;  %v16595_v43 = vrot.slane %v4325_v35, 7  ;;  %v16599_v9 = vor.u32 %v4269_v37, %v4268_v26  ;;  %v4272_v47 = vrot.slane %v4268_v26, 4 }
 0x3eb   : > { %v4279_v1 = vor.u32 %v4277_v31, %v16589_v30  ;;  %v16607_v56 = vor.u32 %v4286_v6, %v4285_v7  ;;  %v4289_v34 = vrot.slane %v4285_v7, 4  ;;  %v4296_v54 = vor.u32 %v4294_v62, %v16591_v27 }
 0x3ec   : > { %v16617_v44 = vor.u32 %v4303_v60, %v4302_v5  ;;  %v4306_v31 = vrot.slane %v4302_v5, 4  ;;  %v4313_v17 = vor.u32 %v4311_v2, %v16593_v41  ;;  %v16627_v62 = vor.u32 %v4320_v51, %v4319_v53 }
 0x3ed   : > { %v4280_v46 = vsel %vm14465_vm10, %v4272_v47, %v4279_v1  ;;  %v4297_v6 = vsel %vm14465_vm10, %v4289_v34, %v4296_v54  ;;  %v4323_v42 = vrot.slane %v4319_v53, 4  ;;  %v4330_v5 = vor.u32 %v4328_v50, %v16595_v43 }
 0x3ee   : > { %4588 = vst.msk [vmem:[#allocation2 + $0x10] sm:$0xf] %vm756_vm4, %v4280_v46  ;;  %v4314_v55 = vsel %vm14465_vm10, %v4306_v31, %v4313_v17  ;;  %v4336_v60 = vrot.slane %v4334_v16, 7  ;;  %4595 = vst.msk [vmem:[#allocation2 + $0x1c] sm:$0xf] %vm756_vm4, %v4297_v6  ;;  %v21213_v19 = vshrl.u32 %v16477_v22, 16 }
 0x3ef   : > { %v21214_v51 = vshrl.u32 %v16479_v57, 16  ;;  %v21215_v53 = vshrl.u32 %v16481_v23, 16  ;;  %v21216_v40 = vshrl.u32 %v16483_v18, 16  ;;  %4602 = vst.msk [vmem:[#allocation2 + $0x28] sm:$0xf] %vm756_vm4, %v4314_v55  ;;  %v4331_v16 = vsel %vm14465_vm10, %v4323_v42, %v4330_v5 }
 0x3f0   : > { %v16641_v2 = vrot.slane %v21213_v19, 7  ;;  %v21217_v26 = vshll.u32 %v16475_v21, 16  ;;  %v4340_v1 = vrot.slane %v4336_v60, 4  ;;  %v21218_v34 = vshrl.u32 %v16485_v59, 16  ;;  %4609 = vst.msk [vmem:[#allocation2 + $0x34] sm:$0xf] %vm756_vm4, %v4331_v16 }
 0x3f1   : > { %v4353_v35 = vrot.slane %v21214_v51, 7  ;;  %v16647_v47 = vrot.slane %v21215_v53, 7  ;;  %v4370_v50 = vrot.slane %v21216_v40, 7  ;;  %v21219_v46 = vshll.u32 %v16477_v22, 16  ;;  %v4603_v17 = vld [vmem:[#allocation2 + $0x2c] sm:$0x1] }
 0x3f2   : > { %v16656_v7 = vor.u32 %v21217_v26, %v4336_v60  ;;  %v16660_v54 = vrot.slane %v21218_v34, 7  ;;  %v21220_v6 = vshll.u32 %v16479_v57, 16  ;;  %v21221_v21 = vshll.u32 %v16481_v23, 16  ;;  %v4610_v60 = vld [vmem:[#allocation2 + $0x38] sm:$0x1] }
 0x3f3   : > { %v4347_v31 = vor.u32 %v21219_v46, %v16641_v2  ;;  %v4357_v42 = vrot.slane %v4353_v35, 4  ;;  %v21222_v19 = vshll.u32 %v16483_v18, 16  ;;  %v4374_v22 = vrot.slane %v4370_v50, 4 }
 0x3f4   : > { %v16668_v55 = vor.u32 %v21220_v6, %v4353_v35  ;;  %v4364_v5 = vor.u32 %v21221_v21, %v16647_v47  ;;  %v21223_v57 = vshll.u32 %v16485_v59, 16  ;;  %v21224_v16 = vshrl.u32 %v16487_v36, 16 }
 0x3f5   : > { %v16677_v51 = vor.u32 %v21222_v19, %v4370_v50  ;;  %v4348_v53 = vsel %vm14465_vm10, %v4340_v1, %v4347_v31  ;;  %v21225_v18 = vshrl.u32 %v16489_v32, 16  ;;  %v21226_v50 = vshrl.u32 %v16491_v61, 16 }
 0x3f6   : > { %v4381_v35 = vor.u32 %v21223_v57, %v16660_v54  ;;  %v4387_v23 = vrot.slane %v21224_v16, 7  ;;  %v4365_v26 = vsel %vm14465_vm10, %v4357_v42, %v4364_v5  ;;  %v21227_v1 = vshrl.u32 %v16493_v15, 16  ;;  %4616 = vst.msk [vmem:[#allocation2 + $0x40] sm:$0xf] %vm756_vm4, %v4348_v53 }
 0x3f7   : > { %v16691_v34 = vrot.slane %v21225_v18, 7  ;;  %v4404_v46 = vrot.slane %v21226_v50, 7  ;;  %v21228_v6 = vshll.u32 %v16487_v36, 16  ;;  %v21229_v5 = vshrl.u32 %v16495_v8, 16  ;;  %4623 = vst.msk [vmem:[#allocation2 + $0x4c] sm:$0xf] %vm756_vm4, %v4365_v26 }
 0x3f8   : > { %v16697_v31 = vrot.slane %v21227_v1, 7  ;;  %v4382_v59 = vsel %vm14465_vm10, %v4374_v22, %v4381_v35  ;;  %v4391_v42 = vrot.slane %v4387_v23, 4  ;;  %v21230_v57 = vshll.u32 %v16489_v32, 16 }
 0x3f9   : > { %v16704_v21 = vor.u32 %v21228_v6, %v4387_v23  ;;  %v4421_v19 = vrot.slane %v21229_v5, 7  ;;  %v21231_v53 = vshll.u32 %v16491_v61, 16  ;;  %v4408_v22 = vrot.slane %v4404_v46, 4  ;;  %4630 = vst.msk [vmem:[#allocation2 + $0x58] sm:$0xf] %vm756_vm4, %v4382_v59 }
 0x3fa   : > { %v4398_v16 = vor.u32 %v21230_v57, %v16691_v34  ;;  %v21232_v36 = vshll.u32 %v16493_v15, 16  ;;  %v21233_v26 = vshll.u32 %v16495_v8, 16  ;;  %v21234_v61 = vshrl.u32 %v16497_v3, 16 }
 0x3fb   : > { %v16715_v50 = vor.u32 %v21231_v53, %v4404_v46  ;;  %v4425_v32 = vrot.slane %v4421_v19, 4  ;;  %v21235_v46 = vshrl.u32 %v16499_v14, 16  ;;  %v21236_v15 = vshrl.u32 %v16501_v33, 16 }
 0x3fc   : > { %v4415_v35 = vor.u32 %v21232_v36, %v16697_v31  ;;  %v16724_v1 = vor.u32 %v21233_v26, %v4421_v19  ;;  %v4399_v6 = vsel %vm14465_vm10, %v4391_v42, %v4398_v16  ;;  %v16730_v5 = vrot.slane %v21234_v61, 7 }
 0x3fd   : > { %v4438_v59 = vrot.slane %v21235_v46, 7  ;;  %v16736_v57 = vrot.slane %v21236_v15, 7  ;;  %v21237_v53 = vshrl.u32 %v16503_v29, 16  ;;  %v21238_v36 = vshrl.u32 %v16505_v49, 16  ;;  %4637 = vst.msk [vmem:[#allocation2 + $0x64] sm:$0xf] %vm756_vm4, %v4399_v6 }
 0x3fe   : > { %v4416_v8 = vsel %vm14465_vm10, %v4408_v22, %v4415_v35  ;;  %v21239_v16 = vshrl.u32 %v16507_v58, 16  ;;  %v21240_v61 = vshll.u32 %v16497_v3, 16  ;;  %v21241_v22 = vshll.u32 %v16499_v14, 16 }
 0x3ff   : > { %v4455_v19 = vrot.slane %v21237_v53, 7  ;;  %v16744_v42 = vrot.slane %v21238_v36, 7  ;;  %v4442_v53 = vrot.slane %v4438_v59, 4  ;;  %4644 = vst.msk [vmem:[#allocation2 + $0x70] sm:$0xf] %vm756_vm4, %v4416_v8  ;;  %v21242_v36 = vshll.u32 %v16501_v33, 16 }
 0x400   : > { %v4472_v26 = vrot.slane %v21239_v16, 7  ;;  %v4432_v46 = vor.u32 %v21240_v61, %v16730_v5  ;;  %v16755_v35 = vor.u32 %v21241_v22, %v4438_v59  ;;  %v21243_v6 = vshll.u32 %v16503_v29, 16  ;;  %v4599_v16 = vld [vmem:[#allocation2 + $0x24] sm:$0xf] }
 0x401   : > { %v4449_v23 = vor.u32 %v21242_v36, %v16736_v57  ;;  %v4459_v3 = vrot.slane %v4455_v19, 4  ;;  %v21244_v14 = vshll.u32 %v16505_v49, 16  ;;  %v21245_v22 = vshll.u32 %v16507_v58, 16  ;;  %v4592_v49 = vld [vmem:[#allocation2 + $0x18] sm:$0xf] }
 0x402   : > { %v16764_v18 = vor.u32 %v21243_v6, %v4455_v19  ;;  %v4433_v61 = vsel %vm14465_vm10, %v4425_v32, %v4432_v46  ;;  %v4476_v29 = vrot.slane %v4472_v26, 4  ;;  %v21246_v6 = vshrl.u32 %v16509_v4, 16 }
 0x403   : > { %v4466_v59 = vor.u32 %v21244_v14, %v16744_v42  ;;  %v16774_v33 = vor.u32 %v21245_v22, %v4472_v26  ;;  %v4450_v36 = vsel %vm14465_vm10, %v4442_v53, %v4449_v23  ;;  %v21247_v32 = vshrl.u32 %v16511_v28, 16  ;;  %4651 = vst.msk [vmem:[#allocation2 + $0x7c] sm:$0xf] %vm756_vm4, %v4433_v61  ;;  %v4585_v14 = vld [vmem:[#allocation2 + $0xc] sm:$0xf] }
 0x404   : > { %v16780_v19 = vrot.slane %v21246_v6, 7  ;;  %v21248_v22 = vshrl.u32 %v16513_v25, 16  ;;  %v21249_v23 = vshrl.u32 %v16515_v12, 16  ;;  %v21250_v53 = vshrl.u32 %v16517_v48, 16  ;;  %4658 = vst.msk [vmem:[#allocation2 + $0x88] sm:$0xf] %vm756_vm4, %v4450_v36 }
 0x405   : > { %v4489_v46 = vrot.slane %v21247_v32, 7  ;;  %v4467_v58 = vsel %vm14465_vm10, %v4459_v3, %v4466_v59  ;;  %v4596_v32 = vld [vmem:[#allocation2 + $0x20] sm:$0x1]  ;;  %v4589_v61 = vld [vmem:[#allocation2 + $0x14] sm:$0x1]  ;;  %v21252_v15 = vshll.u32 %v16509_v4, 16 }
 0x406   : > { %v16789_v8 = vrot.slane %v21248_v22, 7  ;;  %v4506_v26 = vrot.slane %v21249_v23, 7  ;;  %v16795_v6 = vrot.slane %v21250_v53, 7  ;;  %v21253_v22 = vshll.u32 %v16511_v28, 16  ;;  %4665 = vst.msk [vmem:[#allocation2 + $0x94] sm:$0xf] %vm756_vm4, %v4467_v58 }
 0x407   : > { %v4483_v3 = vor.u32 %v21252_v15, %v16780_v19  ;;  %v4493_v23 = vrot.slane %v4489_v46, 4  ;;  %v4606_v53 = vld [vmem:[#allocation2 + $0x30] sm:$0xf]  ;;  %v4613_v36 = vld [vmem:[#allocation2 + $0x3c] sm:$0xf]  ;;  %v21254_v20 = vshll.u32 %v16513_v25, 16 }
 0x408   : > { %21251 = vst [vmem:[#allocation21_spill] sm:$0xff] %v16795_v6  ;;  %v16804_v40 = vor.u32 %v21253_v22, %v4489_v46  ;;  %v21255_v15 = vshll.u32 %v16515_v12, 16  ;;  %v4510_v28 = vrot.slane %v4506_v26, 4  ;;  %v4620_v22 = vld [vmem:[#allocation2 + $0x48] sm:$0xf]  ;;  %v21257_v39 = vshll.u32 %v16517_v48, 16 }
 0x409   : > { %v4500_v52 = vor.u32 %v21254_v20, %v16789_v8  ;;  %v4617_v46 = vld [vmem:[#allocation2 + $0x44] sm:$0x1]  ;;  %v4484_v58 = vsel %vm14465_vm10, %v4476_v29, %v4483_v3  ;;  %v4523_v20 = vrot.slane %v4521_v13, 7  ;;  %v4634_v4 = vld [vmem:[#allocation2 + $0x60] sm:$0xf]  ;;  %v21258_v38 = vshrl.u32 %v16521_v0, 16 }
 0x40a   : > { %v16813_v59 = vor.u32 %v21255_v15, %v4506_v26  ;;  %v4517_v45 = vor.u32 %v21257_v39, %v16795_v6  ;;  %v4627_v12 = vld [vmem:[#allocation2 + $0x54] sm:$0xf]  ;;  %v4638_v15 = vld [vmem:[#allocation2 + $0x68] sm:$0x1]  ;;  %v4586_v48 = vsel %vm14472_vm12, %v16599_v9, %v4585_v14  ;;  %v21260_v39 = vrot.slane %v16589_v30, 4 }
 0x40b   : > { %v4501_v26 = vsel %vm14465_vm10, %v4493_v23, %v4500_v52  ;;  %v16827_v10 = vrot.slane %v21258_v38, 7  ;;  %4672 = vst.msk [vmem:[#allocation2 + $0xa0] sm:$0xf] %vm756_vm4, %v4484_v58  ;;  %v4648_v25 = vld [vmem:[#allocation2 + $0x78] sm:$0xf]  ;;  %v21262_v23 = vshll.u32 %v16519_v24, 16  ;;  %v4593_v9 = vsel %vm14472_vm12, %v16607_v56, %v4592_v49 }
 0x40c   : > { %21256 = vst [vmem:[#allocation20_spill] sm:$0xff] %v16813_v59  ;;  %v4590_v13 = vsel %vm14481_vm13, %v21260_v39, %v4589_v61  ;;  %v4641_v6 = vld [vmem:[#allocation2 + $0x6c] sm:$0xf]  ;;  %v4518_v52 = vsel %vm14465_vm10, %v4510_v28, %v4517_v45  ;;  %v4527_v59 = vrot.slane %v4523_v20, 4  ;;  %4587 = vst [vmem:[#allocation2 + $0xc] sm:$0xf] %v4586_v48  ;;  %v4600_v56 = vsel %vm14472_vm12, %v16617_v44, %v4599_v16 }
 0x40d   : > { %v16841_v38 = vor.u32 %v21262_v23, %v4523_v20  ;;  %4591 = vst [vmem:[#allocation2 + $0x14] sm:$0x1] %v4590_v13  ;;  %4679 = vst.msk [vmem:[#allocation2 + $0xac] sm:$0xf] %vm756_vm4, %v4501_v26  ;;  %v4652_v30 = vld [vmem:[#allocation2 + $0x80] sm:$0x1]  ;;  %v4614_v16 = vsel %vm14472_vm12, %v16656_v7, %v4613_v36 }
 0x40e   : > { %v4645_v14 = vld [vmem:[#allocation2 + $0x74] sm:$0x1]  ;;  %v21263_v61 = vshll.u32 %v16521_v0, 16  ;;  %v4536_v45 = vrot.slane %v16827_v10, 4  ;;  %4594 = vst [vmem:[#allocation2 + $0x18] sm:$0xf] %v4593_v9 }
 0x40f   : > { %v21264_v24 = vrot.slane %v16591_v27, 4  ;;  %4686 = vst.msk [vmem:[#allocation2 + $0xb8] sm:$0xf] %vm756_vm4, %v4518_v52  ;;  %v4662_v49 = vld [vmem:[#allocation2 + $0x90] sm:$0xf]  ;;  %v21265_v0 = vrot.slane %v16593_v41, 4  ;;  %v4607_v27 = vsel %vm14472_vm12, %v16627_v62, %v4606_v53 }
 0x410   : > { %v4534_v58 = vor.u32 %v21263_v61, %v16827_v10  ;;  %v4655_v20 = vld [vmem:[#allocation2 + $0x84] sm:$0xf]  ;;  %v4666_v26 = vld [vmem:[#allocation2 + $0x98] sm:$0x1]  ;;  %4601 = vst [vmem:[#allocation2 + $0x24] sm:$0xf] %v4600_v56 }
 0x411   : > { %v4597_v28 = vsel %vm14481_vm13, %v21264_v24, %v4596_v32  ;;  %v4604_v48 = vsel %vm14481_vm13, %v21265_v0, %v4603_v17  ;;  %v21266_v32 = vrot.slane %v16595_v43, 4  ;;  %v4659_v39 = vld [vmem:[#allocation2 + $0x8c] sm:$0x1]  ;;  %v4676_v13 = vld [vmem:[#allocation2 + $0xa8] sm:$0xf]  ;;  %v21267_v62 = vrot.slane %v16641_v2, 4 }
 0x412   : > { %4598 = vst [vmem:[#allocation2 + $0x20] sm:$0x1] %v4597_v28  ;;  %v4669_v52 = vld [vmem:[#allocation2 + $0x9c] sm:$0xf]  ;;  %v4535_v41 = vsel %vm14465_vm10, %v4527_v59, %v4534_v58  ;;  %4605 = vst [vmem:[#allocation2 + $0x2c] sm:$0x1] %v4604_v48  ;;  %v4621_v17 = vsel %vm14472_vm12, %v16668_v55, %v4620_v22  ;;  %v4628_v2 = vsel %vm14472_vm12, %v16677_v51, %v4627_v12 }
 0x413   : > { %v4611_v44 = vsel %vm14481_vm13, %v21266_v32, %v4610_v60  ;;  %4608 = vst [vmem:[#allocation2 + $0x30] sm:$0xf] %v4607_v27  ;;  %4615 = vst [vmem:[#allocation2 + $0x3c] sm:$0xf] %v4614_v16  ;;  %v4618_v43 = vsel %vm14481_vm13, %v21267_v62, %v4617_v46  ;;  %v21268_v7 = vrot.slane %v16647_v47, 4  ;;  %v21269_v46 = vrot.slane %v16660_v54, 4 }
 0x414   : > { %4612 = vst [vmem:[#allocation2 + $0x38] sm:$0x1] %v4611_v44  ;;  %v4680_v53 = vld [vmem:[#allocation2 + $0xb0] sm:$0x1]  ;;  %v4673_v59 = vld [vmem:[#allocation2 + $0xa4] sm:$0x1]  ;;  %v4635_v47 = vsel %vm14472_vm12, %v16704_v21, %v4634_v4 }
 0x415   : > { %v4625_v60 = vsel %vm14481_vm13, %v21268_v7, %v4624_v63  ;;  %v4690_v36 = vld [vmem:[#allocation2 + $0xc0] sm:$0xf]  ;;  %4619 = vst [vmem:[#allocation2 + $0x44] sm:$0x1] %v4618_v43  ;;  %4622 = vst [vmem:[#allocation2 + $0x48] sm:$0xf] %v4621_v17  ;;  %v4632_v55 = vsel %vm14481_vm13, %v21269_v46, %v4631_v11  ;;  %v4642_v11 = vsel %vm14472_vm12, %v16715_v50, %v4641_v6 }
 0x416   : > { %4626 = vst [vmem:[#allocation2 + $0x50] sm:$0x1] %v4625_v60  ;;  %v21270_v63 = vrot.slane %v16691_v34, 4  ;;  %4693 = vst.msk [vmem:[#allocation2 + $0xc4] sm:$0xf] %vm756_vm4, %v4535_v41  ;;  %v21271_v54 = vrot.slane %v16697_v31, 4  ;;  %v4649_v34 = vsel %vm14472_vm12, %v16724_v1, %v4648_v25  ;;  %v4656_v31 = vsel %vm14472_vm12, %v16755_v35, %v4655_v20 }
 0x417   : > { %v4683_v23 = vld [vmem:[#allocation2 + $0xb4] sm:$0xf]  ;;  %v4694_v9 = vld [vmem:[#allocation2 + $0xc8] sm:$0x1]  ;;  %v4687_v61 = vld [vmem:[#allocation2 + $0xbc] sm:$0x1]  ;;  %v4663_v1 = vsel %vm14472_vm12, %v16764_v18, %v4662_v49  ;;  %v4691_v49 = vsel %vm14472_vm12, %v16841_v38, %v4690_v36 }
 0x418   : > { %v4639_v22 = vsel %vm14481_vm13, %v21270_v63, %v4638_v15  ;;  %4629 = vst [vmem:[#allocation2 + $0x54] sm:$0xf] %v4628_v2  ;;  %4633 = vst [vmem:[#allocation2 + $0x5c] sm:$0x1] %v4632_v55  ;;  %v4646_v51 = vsel %vm14481_vm13, %v21271_v54, %v4645_v14  ;;  %v21272_v21 = vrot.slane %v16730_v5, 4  ;;  %v21273_v50 = vrot.slane %v16736_v57, 4 }
 0x419   : > { %4636 = vst [vmem:[#allocation2 + $0x60] sm:$0xf] %v4635_v47  ;;  %4640 = vst [vmem:[#allocation2 + $0x68] sm:$0x1] %v4639_v22  ;;  %v21274_v5 = vrot.slane %v16744_v42, 4  ;;  %v4670_v57 = vsel %vm14472_vm12, %v16774_v33, %v4669_v52  ;;  %v21275_v35 = vrot.slane %v16780_v19, 4  ;;  %v4677_v42 = vsel %vm14472_vm12, %v16804_v40, %v4676_v13 }
 0x41a   : > { %v4653_v4 = vsel %vm14481_vm13, %v21272_v21, %v4652_v30  ;;  %4643 = vst [vmem:[#allocation2 + $0x6c] sm:$0xf] %v4642_v11  ;;  %4647 = vst [vmem:[#allocation2 + $0x74] sm:$0x1] %v4646_v51  ;;  %v4660_v6 = vsel %vm14481_vm13, %v21273_v50, %v4659_v39  ;;  %v16929_v12 = vld [vmem:[#allocation2 + $0x10] sm:$0xf]  ;;  %v4695_v20 = vsel %vm14481_vm13, %v4536_v45, %v4694_v9 }
 0x41b   : > { %4650 = vst [vmem:[#allocation2 + $0x78] sm:$0xf] %v4649_v34  ;;  %4654 = vst [vmem:[#allocation2 + $0x80] sm:$0x1] %v4653_v4  ;;  %v4667_v25 = vsel %vm14481_vm13, %v21274_v5, %v4666_v26  ;;  %v16931_v15 = vld [vmem:[#allocation2 + $0x1c] sm:$0xf]  ;;  %v4674_v18 = vsel %vm14481_vm13, %v21275_v35, %v4673_v59 }
 0x41c   : > { %4657 = vst [vmem:[#allocation2 + $0x84] sm:$0xf] %v4656_v31  ;;  %4661 = vst [vmem:[#allocation2 + $0x8c] sm:$0x1] %v4660_v6  ;;  %v21276_v30 = vrot.slane %v16789_v8, 4  ;;  %v13985_v28 = vld [vmem:[#allocation6 + $0xc0] sm:$0xff]  }
 0x41d   : > { %4664 = vst [vmem:[#allocation2 + $0x90] sm:$0xf] %v4663_v1  ;;  %4668 = vst [vmem:[#allocation2 + $0x98] sm:$0x1] %v4667_v25  ;;  %v16947_v58 = vld [vmem:[#allocation2 + $0xc] sm:$0xf] }
 0x41e   : > { %v4681_v14 = vsel %vm14481_vm13, %v21276_v30, %v4680_v53  ;;  %v16949_v24 = vld [vmem:[#allocation2 + $0x14] sm:$0x1]  ;;  %4671 = vst [vmem:[#allocation2 + $0x9c] sm:$0xf] %v4670_v57  ;;  %4675 = vst [vmem:[#allocation2 + $0xa4] sm:$0x1] %v4674_v18  ;;  %v16973_v27 = vcombine.low %v16947_v58, %v16929_v12 }
 0x41f   : > { %4678 = vst [vmem:[#allocation2 + $0xa8] sm:$0xf] %v4677_v42  ;;  %4682 = vst [vmem:[#allocation2 + $0xb0] sm:$0x1] %v4681_v14  ;;  %v21277_v33 = vld [vmem:[#allocation20_spill] sm:$0xff]  ;;  %v21278_v56 = vld [vmem:[#allocation21_spill] sm:$0xff] }
 0x420   : > { %v4684_v19 = vsel %vm14472_vm12, %v21277_v33, %v4683_v23  ;;  %v21279_v40 = vrot.slane %v21278_v56, 4  ;;  %v16965_v26 = vld [vmem:[#allocation2 + $0x18] sm:$0xf]  ;;  %v16967_v0 = vld [vmem:[#allocation2 + $0x28] sm:$0xf]  ;;  %v4781_v45 = vshrl.u32 %v16947_v58, 16  ;;  %13255 = vmatmul.mubr.msk.bf16.vlgmr.msra.gmra.mxu0 %vm1388_vm11, %v16973_v27 }
 0x421   : > { %v16969_v48 = vld [vmem:[#allocation2 + $0x34] sm:$0xf]  ;;  %4685 = vst [vmem:[#allocation2 + $0xb4] sm:$0xf] %v4684_v19  ;;  %4692 = vst [vmem:[#allocation2 + $0xc0] sm:$0xf] %v4691_v49  ;;  %v16977_v10 = vcombine.low %v16965_v26, %v16931_v15 }
 0x422   : > { %v4688_v8 = vsel %vm14481_vm13, %v21279_v40, %v4687_v61  ;;  %4696 = vst [vmem:[#allocation2 + $0xc8] sm:$0x1] %v4695_v20  ;;  %v16979_v38 = vld [vmem:[#allocation2 + $0x24] sm:$0xf]  ;;  %v4784_v32 = vshll.u32 %v16947_v58, 16  ;;  %v4790_v16 = vshll.u32 %v16929_v12, 16 }
 0x423   : > { %4689 = vst [vmem:[#allocation2 + $0xbc] sm:$0x1] %v4688_v8  ;;  %v16983_v44 = vld [vmem:[#allocation2 + $0x40] sm:$0xf]  ;;  %v4794_v39 = vshrl.u32 %v16929_v12, 16  ;;  %v4800_v13 = vshll.u32 %v16949_v24, 16  ;;  %v16994_v41 = vcombine.low %v16979_v38, %v16967_v0  ;;  %13258 = vmatprep.mubr.msk.bf16.mxu0 %vm1388_vm11, %v16977_v10 }
 0x424   : > { %v16988_v52 = vld [vmem:[#allocation2 + $0x30] sm:$0xf]  ;;  %v4783_v62 = vrot.slane %v4781_v45, 4  ;;  %v4786_v43 = vrot.slane %v4784_v32, 5  ;;  %v17000_v7 = vld [vmem:[#allocation2 + $0x20] sm:$0x1] }
 0x425   : > { %v16998_v17 = vcombine.low %v16988_v52, %v16969_v48  ;;  %v17002_v60 = vld [vmem:[#allocation2 + $0x3c] sm:$0xf]  ;;  %v4792_v53 = vrot.slane %v4790_v16, 5  ;;  %v4796_v59 = vrot.slane %v4794_v39, 4  ;;  %v4802_v36 = vrot.slane %v4800_v13, 5  ;;  %v17011_v23 = vld [vmem:[#allocation6 + $0xe8] sm:$0xff]  }
 0x426   : > { %v4805_v2 = vshrl.u32 %v16965_v26, 16  ;;  %v21280_v46 = vld [vmem:[#allocation17_spill] sm:$0xff]  ;;  %v4787_v55 = vor.u32 %v4786_v43, %v4783_v62  ;;  %v4808_v47 = vshll.u32 %v16965_v26, 16  ;;  %v4814_v63 = vshll.u32 %v16931_v15, 16  ;;  %v17020_v5 = vld [vmem:[#allocation2 + $0x4c] sm:$0xf] }
 0x427   : > { %13323 = vmatpush3.bf16.msra.mxu0 %v21280_v46  ;;  %v4818_v22 = vshrl.u32 %v16931_v15, 16  ;;  %v4797_v9 = vor.u32 %v4796_v59, %v4792_v53  ;;  %v4824_v11 = vshll.u32 %v17000_v7, 16  ;;  %v17016_v54 = vcombine.low %v17002_v60, %v16983_v44  ;;  %v17024_v42 = vld [vmem:[#allocation2 + $0x2c] sm:$0x1]  ;;  %v17027_v14 = vld [vmem:[#allocation2 + $0x48] sm:$0xf] }
 0x428   : > { %13324 = vmatprep.subr.bf16.mxu0 %v13985_v28  ;;  %v4807_v61 = vrot.slane %v4805_v2, 4  ;;  %v4788_v51 = vrot.slane %v4787_v55, 4  ;;  %v4810_v34 = vrot.slane %v4808_v47, 5  ;;  %v4816_v21 = vrot.slane %v4814_v63, 5  ;;  %13259 = vmatmul.mubr.msk.bf16.gmra.mxu0 %vm1388_vm11, %v16994_v41  ;;  %v13979_v45 = vld [vmem:[#allocation6 + $0xb0] sm:$0xff]   ;;  %v14060_v55 = vld [vmem:[#allocation6 + $0xb8] sm:$0xff]  }
 0x429   : > { %v4820_v4 = vrot.slane %v4818_v22, 4  ;;  %v4798_v31 = vrot.slane %v4797_v9, 4  ;;  %v4826_v50 = vrot.slane %v4824_v11, 5  ;;  %v4829_v6 = vshrl.u32 %v16979_v38, 16  ;;  %13262 = vmatprep.mubr.msk.bf16.mxu0 %vm1388_vm11, %v16998_v17  ;;  %v17044_v62 = vld [vmem:[#allocation2 + $0x58] sm:$0xf] }
 0x42a   : > { %v4832_v1 = vshll.u32 %v16979_v38, 16  ;;  %v4793_v57 = vsel %vm14458_vm7, %v4788_v51, %v4792_v53  ;;  %v4811_v35 = vor.u32 %v4810_v34, %v4807_v61  ;;  %v4838_v30 = vshll.u32 %v16967_v0, 16  ;;  %v17052_v59 = vld [vmem:[#allocation2 + $0x38] sm:$0x1]  ;;  %v17056_v46 = vld [vmem:[#allocation2 + $0x54] sm:$0xf] }
 0x42b   : > { %13325 = vmatpush3.bf16.msra.mxu0 %v13985_v28  ;;  %v4821_v18 = vor.u32 %v4820_v4, %v4816_v21  ;;  %v4803_v33 = vsel %vm14458_vm7, %v4798_v31, %v4802_v36  ;;  %v4831_v19 = vrot.slane %v4829_v6, 4  ;;  %v4842_v28 = vshrl.u32 %v16967_v0, 16  ;;  %21283 = vst [vmem:[#allocation33_spill] sm:$0xff] %v17056_v46 }
 0x42c   : > { %13394 = vmatprep.subr.bf16.mxu0 %v17011_v23  ;;  %v4834_v56 = vrot.slane %v4832_v1, 5  ;;  %v17035_v40 = vcombine.low %v4793_v57, %v4803_v33  ;;  %v4812_v8 = vrot.slane %v4811_v35, 4  ;;  %v4840_v20 = vrot.slane %v4838_v30, 5  ;;  %v17073_v1 = vld [vmem:[#allocation2 + $0x64] sm:$0xf] }
 0x42d   : > { %v4822_v49 = vrot.slane %v4821_v18, 4  ;;  %v4844_v16 = vrot.slane %v4842_v28, 4  ;;  %v4848_v39 = vshll.u32 %v17024_v42, 16  ;;  %v17042_v13 = vcombine.low %v17027_v14, %v17020_v5  ;;  %v17075_v30 = vld [vmem:[#allocation2 + $0x44] sm:$0x1] }
 0x42e   : > { %21282 = vst [vmem:[#allocation26_spill] sm:$0xff] %v17035_v40  ;;  %v4835_v32 = vor.u32 %v4834_v56, %v4831_v19  ;;  %13219 = vmatmul.mubr.msk.bf16.vlgmr.msra.gmra.mxu1 %vm1388_vm11, %v17035_v40  ;;  %v4817_v43 = vsel %vm14458_vm7, %v4812_v8, %v4816_v21  ;;  %v4853_v36 = vshrl.u32 %v16988_v52, 16  ;;  %v4856_v2 = vshll.u32 %v16988_v52, 16  ;;  %v17062_v21 = vld [vmem:[#allocation6 + $0xd8] sm:$0xff]  }
 0x42f   : > { %v4827_v53 = vsel %vm14458_vm7, %v4822_v49, %v4826_v50  ;;  %13287 = vmatpush3.bf16.msra.mxu1 %v14060_v55  ;;  %v4845_v22 = vor.u32 %v4844_v16, %v4840_v20  ;;  %v4850_v9 = vrot.slane %v4848_v39, 5  ;;  %v4862_v51 = vshll.u32 %v16969_v48, 16  ;;  %v17082_v49 = vld [vmem:[#allocation2 + $0x60] sm:$0xf] }
 0x430   : > { %v17058_v47 = vcombine.low %v4817_v43, %v4827_v53  ;;  %v4836_v63 = vrot.slane %v4835_v32, 4  ;;  %v4855_v61 = vrot.slane %v4853_v36, 4  ;;  %v4858_v11 = vrot.slane %v4856_v2, 5  ;;  %13288 = vmatprep.subr.bf16.mxu1 %v13979_v45  ;;  %21285 = vst [vmem:[#allocation24_spill] sm:$0xff] %v17082_v49  ;;  %13263 = vmatmul.mubr.msk.bf16.gmra.mxu0 %vm1388_vm11, %v17016_v54 }
 0x431   : > { %v4866_v34 = vshrl.u32 %v16969_v48, 16  ;;  %v4846_v31 = vrot.slane %v4845_v22, 4  ;;  %v4872_v50 = vshll.u32 %v17052_v59, 16  ;;  %v17071_v6 = vcombine.low %v17056_v46, %v17044_v62  ;;  %13266 = vmatprep.mubr.msk.bf16.mxu0 %vm1388_vm11, %v17042_v13  ;;  %v17101_v22 = vld [vmem:[#allocation2 + $0x50] sm:$0x1] }
 0x432   : > { %21284 = vst [vmem:[#allocation31_spill] sm:$0xff] %v17058_v47  ;;  %13222 = vmatprep.mubr.msk.bf16.mxu1 %vm1388_vm11, %v17058_v47  ;;  %v4841_v4 = vsel %vm14458_vm7, %v4836_v63, %v4840_v20  ;;  %v4859_v57 = vor.u32 %v4858_v11, %v4855_v61  ;;  %v4864_v35 = vrot.slane %v4862_v51, 5  ;;  %v4877_v33 = vshrl.u32 %v17002_v60, 16  ;;  %v17104_v61 = vld [vmem:[#allocation2 + $0x70] sm:$0xf] }
 0x433   : > { %v4868_v18 = vrot.slane %v4866_v34, 4  ;;  %v4851_v19 = vsel %vm14458_vm7, %v4846_v31, %v4850_v9  ;;  %v4874_v56 = vrot.slane %v4872_v50, 5  ;;  %v4880_v28 = vshll.u32 %v17002_v60, 16  ;;  %13289 = vmatpush3.bf16.msra.mxu1 %v13979_v45  ;;  %21287 = vst [vmem:[#allocation35_spill] sm:$0xff] %v17104_v61  ;;  %v17107_v31 = vld [vmem:[#allocation2 + $0x6c] sm:$0xf] }
 0x434   : > { %v4886_v8 = vshll.u32 %v16983_v44, 16  ;;  %v17086_v20 = vcombine.low %v4841_v4, %v4851_v19  ;;  %v4860_v32 = vrot.slane %v4859_v57, 4  ;;  %v4879_v39 = vrot.slane %v4877_v33, 4  ;;  %13358 = vmatprep.subr.bf16.mxu1 %v17062_v21  ;;  %21288 = vst [vmem:[#allocation37_spill] sm:$0xff] %v17107_v31 }
 0x435   : > { %v4869_v16 = vor.u32 %v4868_v18, %v4864_v35  ;;  %v4882_v43 = vrot.slane %v4880_v28, 5  ;;  %v4890_v36 = vshrl.u32 %v16983_v44, 16  ;;  %v4896_v2 = vshll.u32 %v17075_v30, 16 }
 0x436   : > { %21286 = vst [vmem:[#allocation29_spill] sm:$0xff] %v17086_v20  ;;  %v4888_v53 = vrot.slane %v4886_v8, 5  ;;  %13223 = vmatmul.mubr.msk.bf16.gmra.mxu1 %vm1388_vm11, %v17086_v20  ;;  %v4865_v45 = vsel %vm14458_vm7, %v4860_v32, %v4864_v35  ;;  %v17099_v63 = vcombine.low %v17082_v49, %v17073_v1  ;;  %v4901_v9 = vshrl.u32 %v17027_v14, 16 }
 0x437   : > { %v4870_v55 = vrot.slane %v4869_v16, 4  ;;  %v4883_v11 = vor.u32 %v4882_v43, %v4879_v39  ;;  %v4892_v51 = vrot.slane %v4890_v36, 4  ;;  %v4898_v34 = vrot.slane %v4896_v2, 5 }
 0x438   : > { %v4904_v4 = vshll.u32 %v17027_v14, 16  ;;  %v4903_v57 = vrot.slane %v4901_v9, 4  ;;  %v4910_v35 = vshll.u32 %v17020_v5, 16  ;;  %v4914_v18 = vshrl.u32 %v17020_v5, 16  ;;  %v17127_v9 = vld [vmem:[#allocation2 + $0x7c] sm:$0xf]  ;;  %13267 = vmatmul.mubr.msk.bf16.gmra.mxu0 %vm1388_vm11, %v17071_v6 }
 0x439   : > { %v4875_v50 = vsel %vm14458_vm7, %v4870_v55, %v4874_v56  ;;  %v4884_v19 = vrot.slane %v4883_v11, 4  ;;  %v4893_v28 = vor.u32 %v4892_v51, %v4888_v53  ;;  %v4920_v39 = vshll.u32 %v17101_v22, 16  ;;  %21291 = vst [vmem:[#allocation22_spill] sm:$0xff] %v17127_v9  ;;  %13270 = vmatprep.mubr.msk.bf16.mxu0 %vm1388_vm11, %v17099_v63 }
 0x43a   : > { %v17113_v33 = vcombine.low %v4865_v45, %v4875_v50  ;;  %v4906_v8 = vrot.slane %v4904_v4, 5  ;;  %v4912_v32 = vrot.slane %v4910_v35, 5  ;;  %v4916_v16 = vrot.slane %v4914_v18, 4  ;;  %v17124_v45 = vld [vmem:[#allocation2 + $0x5c] sm:$0x1] }
 0x43b   : > { %v17118_v43 = vcombine.low %v17107_v31, %v17104_v61  ;;  %v4889_v56 = vsel %vm14458_vm7, %v4884_v19, %v4888_v53  ;;  %v4894_v36 = vrot.slane %v4893_v28, 4  ;;  %21290 = vst [vmem:[#allocation19_spill] sm:$0xff] %v17124_v45  ;;  %v4925_v55 = vshrl.u32 %v17056_v46, 16  ;;  %v17133_v35 = vld [vmem:[#allocation2 + $0x78] sm:$0xf] }
 0x43c   : > { %21289 = vst [vmem:[#allocation34_spill] sm:$0xff] %v17113_v33  ;;  %13226 = vmatprep.mubr.msk.bf16.mxu1 %vm1388_vm11, %v17113_v33  ;;  %v4907_v2 = vor.u32 %v4906_v8, %v4903_v57  ;;  %v4917_v11 = vor.u32 %v4916_v16, %v4912_v32  ;;  %v4922_v51 = vrot.slane %v4920_v39, 5  ;;  %v4928_v4 = vshll.u32 %v17056_v46, 16  ;;  %21292 = vst [vmem:[#allocation25_spill] sm:$0xff] %v17133_v35 }
 0x43d   : > { %v4934_v50 = vshll.u32 %v17044_v62, 16  ;;  %v4899_v53 = vsel %vm14458_vm7, %v4894_v36, %v4898_v34  ;;  %v4927_v18 = vrot.slane %v4925_v55, 4  ;;  %v4938_v19 = vshrl.u32 %v17044_v62, 16  ;;  %v17149_v36 = vld [vmem:[#allocation2 + $0x88] sm:$0xf] }
 0x43e   : > { %v4908_v57 = vrot.slane %v4907_v2, 4  ;;  %v17140_v28 = vcombine.low %v4889_v56, %v4899_v53  ;;  %v4918_v8 = vrot.slane %v4917_v11, 4  ;;  %v4930_v16 = vrot.slane %v4928_v4, 5  ;;  %v17155_v55 = vld [vmem:[#allocation2 + $0x68] sm:$0x1] }
 0x43f   : > { %v4936_v39 = vrot.slane %v4934_v50, 5  ;;  %v4940_v29 = vrot.slane %v4938_v19, 4  ;;  %v4944_v37 = vshll.u32 %v17124_v45, 16  ;;  %v17147_v34 = vcombine.low %v17133_v35, %v17127_v9  ;;  %21295 = vst [vmem:[#allocation27_spill] sm:$0xff] %v17155_v55  ;;  %v17159_v4 = vld [vmem:[#allocation2 + $0x84] sm:$0xf] }
 0x440   : > { %21293 = vst [vmem:[#allocation30_spill] sm:$0xff] %v17140_v28  ;;  %v4913_v3 = vsel %vm14458_vm7, %v4908_v57, %v4912_v32  ;;  %13227 = vmatmul.mubr.msk.bf16.gmra.mxu1 %vm1388_vm11, %v17140_v28  ;;  %v4923_v56 = vsel %vm14458_vm7, %v4918_v8, %v4922_v51  ;;  %v4931_v2 = vor.u32 %v4930_v16, %v4927_v18  ;;  %v4949_v32 = vshrl.u32 %v17082_v49, 16 }
 0x441   : > { %21294 = vst [vmem:[#allocation23_spill] sm:$0xff] %v17147_v34  ;;  %v4952_v11 = vshll.u32 %v17082_v49, 16  ;;  %21296 = vst [vmem:[#allocation18_spill] sm:$0xff] %v17159_v4  ;;  %v17161_v50 = vcombine.low %v4913_v3, %v4923_v56  ;;  %v4941_v53 = vor.u32 %v4940_v29, %v4936_v39  ;;  %v4946_v57 = vrot.slane %v4944_v37, 5  ;;  %13271 = vmatmul.mubr.msk.bf16.gmra.mxu0 %vm1388_vm11, %v17118_v43 }
 0x442   : > { %v4958_v19 = vshll.u32 %v17073_v1, 16  ;;  %v4932_v33 = vrot.slane %v4931_v2, 4  ;;  %v4951_v28 = vrot.slane %v4949_v32, 4  ;;  %v4962_v51 = vshrl.u32 %v17073_v1, 16  ;;  %v17176_v2 = vld [vmem:[#allocation2 + $0x74] sm:$0x1]  ;;  %13274 = vmatprep.mubr.msk.bf16.mxu0 %vm1388_vm11, %v17147_v34 }
 0x443   : > { %21297 = vst [vmem:[#allocation36_spill] sm:$0xff] %v17161_v50  ;;  %v4954_v20 = vrot.slane %v4952_v11, 5  ;;  %13230 = vmatprep.mubr.msk.bf16.mxu1 %vm1388_vm11, %v17161_v50  ;;  %v4942_v18 = vrot.slane %v4941_v53, 4  ;;  %v4968_v16 = vshll.u32 %v17155_v55, 16  ;;  %v17170_v3 = vcombine.low %v17159_v4, %v17149_v36  ;;  %21298 = vst [vmem:[#allocation38_spill] sm:$0xff] %v17176_v2 }
 0x444   : > { %v4960_v8 = vrot.slane %v4958_v19, 5  ;;  %v4937_v37 = vsel %vm14458_vm7, %v4932_v33, %v4936_v39  ;;  %v4964_v56 = vrot.slane %v4962_v51, 4  ;;  %v4973_v32 = vshrl.u32 %v17107_v31, 16  ;;  %v17179_v11 = vld [vmem:[#allocation2 + $0x94] sm:$0xf] }
 0x445   : > { %v4955_v29 = vor.u32 %v4954_v20, %v4951_v28  ;;  %21299 = vst [vmem:[#allocation20_spill] sm:$0xff] %v17179_v11  ;;  %v4947_v53 = vsel %vm14458_vm7, %v4942_v18, %v4946_v57  ;;  %v4970_v19 = vrot.slane %v4968_v16, 5  ;;  %v4976_v50 = vshll.u32 %v17107_v31, 16  ;;  %v17187_v33 = vld [vmem:[#allocation2 + $0x90] sm:$0xf] }
 0x446   : > { %v4982_v47 = vshll.u32 %v17104_v61, 16  ;;  %21300 = vst [vmem:[#allocation21_spill] sm:$0xff] %v17187_v33  ;;  %v17189_v20 = vcombine.low %v4937_v37, %v4947_v53  ;;  %v4965_v39 = vor.u32 %v4964_v56, %v4960_v8  ;;  %v4975_v51 = vrot.slane %v4973_v32, 4 }
 0x447   : > { %v4956_v28 = vrot.slane %v4955_v29, 4  ;;  %v4978_v40 = vrot.slane %v4976_v50, 5  ;;  %v4986_v49 = vshrl.u32 %v17104_v61, 16  ;;  %v4992_v57 = vshll.u32 %v17176_v2, 16  ;;  %v17201_v29 = vld [vmem:[#allocation2 + $0x80] sm:$0x1] }
 0x448   : > { %21301 = vst [vmem:[#allocation17_spill] sm:$0xff] %v17189_v20  ;;  %v4984_v55 = vrot.slane %v4982_v47, 5  ;;  %13231 = vmatmul.mubr.msk.bf16.gmra.mxu1 %vm1388_vm11, %v17189_v20  ;;  %v4966_v16 = vrot.slane %v4965_v39, 4  ;;  %v17199_v37 = vcombine.low %v17187_v33, %v17179_v11  ;;  %21303 = vst [vmem:[#allocation40_spill] sm:$0xff] %v17201_v29  ;;  %v4997_v50 = vshrl.u32 %v17133_v35, 16 }
 0x449   : > { %v4961_v18 = vsel %vm14458_vm7, %v4956_v28, %v4960_v8  ;;  %v17204_v47 = vld [vmem:[#allocation2 + $0xa0] sm:$0xf]  ;;  %v4979_v56 = vor.u32 %v4978_v40, %v4975_v51  ;;  %v4988_v32 = vrot.slane %v4986_v49, 4  ;;  %v4994_v53 = vrot.slane %v4992_v57, 5  ;;  %v17207_v20 = vld [vmem:[#allocation2 + $0x9c] sm:$0xf]  ;;  %13275 = vmatmul.mubr.msk.bf16.gmra.mxu0 %vm1388_vm11, %v17170_v3 }
 0x44a   : > { %21302 = vst [vmem:[#allocation39_spill] sm:$0xff] %v17199_v37  ;;  %v5000_v2 = vshll.u32 %v17133_v35, 16  ;;  %21304 = vst [vmem:[#allocation41_spill] sm:$0xff] %v17207_v20  ;;  %v4971_v8 = vsel %vm14458_vm7, %v4966_v16, %v4970_v19  ;;  %v4999_v28 = vrot.slane %v4997_v50, 4  ;;  %v5006_v39 = vshll.u32 %v17127_v9, 16  ;;  %13278 = vmatprep.mubr.msk.bf16.mxu0 %vm1388_vm11, %v17199_v37 }
 0x44b   : > { %v5010_v31 = vshrl.u32 %v17127_v9, 16  ;;  %v17213_v61 = vcombine.low %v4961_v18, %v4971_v8  ;;  %v4980_v45 = vrot.slane %v4979_v56, 4  ;;  %v4989_v46 = vor.u32 %v4988_v32, %v4984_v55  ;;  %v17228_v16 = vld [vmem:[#allocation2 + $0x8c] sm:$0x1] }
 0x44c   : > { %v5002_v34 = vrot.slane %v5000_v2, 5  ;;  %v5008_v40 = vrot.slane %v5006_v39, 5  ;;  %v5016_v51 = vshll.u32 %v17201_v29, 16  ;;  %v17220_v19 = vcombine.low %v17207_v20, %v17204_v47  ;;  %21306 = vst [vmem:[#allocation43_spill] sm:$0xff] %v17228_v16  ;;  %v17231_v50 = vld [vmem:[#allocation2 + $0xac] sm:$0xf] }
 0x44d   : > { %21305 = vst [vmem:[#allocation42_spill] sm:$0xff] %v17213_v61  ;;  %v5012_v49 = vrot.slane %v5010_v31, 4  ;;  %13234 = vmatprep.mubr.msk.bf16.mxu1 %vm1388_vm11, %v17213_v61  ;;  %v4985_v57 = vsel %vm14458_vm7, %v4980_v45, %v4984_v55  ;;  %v4990_v18 = vrot.slane %v4989_v46, 4  ;;  %v5021_v31 = vshrl.u32 %v17159_v4, 16  ;;  %v17235_v61 = vld [vmem:[#allocation2 + $0xa8] sm:$0xf] }
 0x44e   : > { %v5003_v2 = vor.u32 %v5002_v34, %v4999_v28  ;;  %v5018_v32 = vrot.slane %v5016_v51, 5  ;;  %v5024_v8 = vshll.u32 %v17159_v4, 16  ;;  %v5030_v39 = vshll.u32 %v17149_v36, 16  ;;  %21307 = vst [vmem:[#allocation44_spill] sm:$0xff] %v17235_v61 }
 0x44f   : > { %v5013_v56 = vor.u32 %v5012_v49, %v5008_v40  ;;  %v4995_v46 = vsel %vm14458_vm7, %v4990_v18, %v4994_v53  ;;  %v5023_v55 = vrot.slane %v5021_v31, 4  ;;  %v5034_v34 = vshrl.u32 %v17149_v36, 16  ;;  %v17249_v53 = vld [vmem:[#allocation2 + $0xb8] sm:$0xf] }
 0x450   : > { %v5004_v45 = vrot.slane %v5003_v2, 4  ;;  %v17240_v28 = vcombine.low %v4985_v57, %v4995_v46  ;;  %v5026_v35 = vrot.slane %v5024_v8, 5  ;;  %v5032_v37 = vrot.slane %v5030_v39, 5  ;;  %v17255_v2 = vld [vmem:[#allocation2 + $0x98] sm:$0x1] }
 0x451   : > { %v5014_v29 = vrot.slane %v5013_v56, 4  ;;  %v5036_v51 = vrot.slane %v5034_v34, 4  ;;  %v5040_v4 = vshll.u32 %v17228_v16, 16  ;;  %v17247_v9 = vcombine.low %v17235_v61, %v17231_v50  ;;  %21310 = vst [vmem:[#allocation47_spill] sm:$0xff] %v17255_v2  ;;  %v17259_v56 = vld [vmem:[#allocation2 + $0xb4] sm:$0xf]  ;;  %13279 = vmatmul.mubr.msk.bf16.gmra.mxu0 %vm1388_vm11, %v17220_v19 }
 0x452   : > { %21308 = vst [vmem:[#allocation45_spill] sm:$0xff] %v17240_v28  ;;  %v5009_v49 = vsel %vm14458_vm7, %v5004_v45, %v5008_v40  ;;  %13235 = vmatmul.mubr.msk.bf16.gmra.mxu1 %vm1388_vm11, %v17240_v28  ;;  %v5027_v18 = vor.u32 %v5026_v35, %v5023_v55  ;;  %v5045_v40 = vshrl.u32 %v17187_v33, 16  ;;  %v5048_v31 = vshll.u32 %v17187_v33, 16  ;;  %21311 = vst [vmem:[#allocation48_spill] sm:$0xff] %v17259_v56 }
 0x453   : > { %21309 = vst [vmem:[#allocation46_spill] sm:$0xff] %v17247_v9  ;;  %v5019_v57 = vsel %vm14458_vm7, %v5014_v29, %v5018_v32  ;;  %v5037_v39 = vor.u32 %v5036_v51, %v5032_v37  ;;  %v5042_v46 = vrot.slane %v5040_v4, 5  ;;  %v5054_v45 = vshll.u32 %v17179_v11, 16  ;;  %13282 = vmatprep.mubr.msk.bf16.mxu0 %vm1388_vm11, %v17247_v9 }
 0x454   : > { %v17261_v8 = vcombine.low %v5009_v49, %v5019_v57  ;;  %v5028_v34 = vrot.slane %v5027_v18, 4  ;;  %v5047_v29 = vrot.slane %v5045_v40, 4  ;;  %v5050_v35 = vrot.slane %v5048_v31, 5  ;;  %v17278_v31 = vld [vmem:[#allocation2 + $0xa4] sm:$0x1] }
 0x455   : > { %v5058_v32 = vshrl.u32 %v17179_v11, 16  ;;  %v5038_v55 = vrot.slane %v5037_v39, 4  ;;  %v5056_v49 = vrot.slane %v5054_v45, 5  ;;  %v5064_v4 = vshll.u32 %v17255_v2, 16  ;;  %21313 = vst [vmem:[#allocation50_spill] sm:$0xff] %v17278_v31 }
 0x456   : > { %21312 = vst [vmem:[#allocation49_spill] sm:$0xff] %v17261_v8  ;;  %13238 = vmatprep.mubr.msk.bf16.mxu1 %vm1388_vm11, %v17261_v8  ;;  %v17274_v51 = vcombine.low %v17259_v56, %v17249_v53  ;;  %v5033_v57 = vsel %vm14458_vm7, %v5028_v34, %v5032_v37  ;;  %v5051_v18 = vor.u32 %v5050_v35, %v5047_v29  ;;  %v5069_v8 = vshrl.u32 %v17207_v20, 16 }
 0x457   : > { %v5060_v40 = vrot.slane %v5058_v32, 4  ;;  %v5043_v39 = vsel %vm14458_vm7, %v5038_v55, %v5042_v46  ;;  %v5066_v28 = vrot.slane %v5064_v4, 5  ;;  %v5072_v45 = vshll.u32 %v17207_v20, 16 }
 0x458   : > { %v5078_v2 = vshll.u32 %v17204_v47, 16  ;;  %v17285_v33 = vcombine.low %v5033_v57, %v5043_v39  ;;  %v5052_v16 = vrot.slane %v5051_v18, 4  ;;  %v5071_v11 = vrot.slane %v5069_v8, 4 }
 0x459   : > { %v5061_v9 = vor.u32 %v5060_v40, %v5056_v49  ;;  %v5074_v37 = vrot.slane %v5072_v45, 5  ;;  %v5082_v29 = vshrl.u32 %v17204_v47, 16  ;;  %v5088_v35 = vshll.u32 %v17278_v31, 16  ;;  %v17295_v40 = vld [vmem:[#allocation2 + $0xb0] sm:$0x1]  ;;  %13283 = vmatmul.mubr.msk.bf16.gmra.mxu0 %vm1388_vm11, %v17274_v51 }
 0x45a   : > { %21314 = vst [vmem:[#allocation51_spill] sm:$0xff] %v17285_v33  ;;  %v5080_v34 = vrot.slane %v5078_v2, 5  ;;  %13239 = vmatmul.mubr.msk.bf16.gmra.mxu1 %vm1388_vm11, %v17285_v33  ;;  %v5057_v46 = vsel %vm14458_vm7, %v5052_v16, %v5056_v49  ;;  %v5093_v55 = vshrl.u32 %v17235_v61, 16  ;;  %v5096_v4 = vshll.u32 %v17235_v61, 16  ;;  %21315 = vst [vmem:[#allocation52_spill] sm:$0xff] %v17295_v40  ;;  %13326 = vmatprep.mubr.msk.bf16.mxu0 %vm1388_vm11, %v16973_v27 }
 0x45b   : > { %v5062_v32 = vrot.slane %v5061_v9, 4  ;;  %v5075_v57 = vor.u32 %v5074_v37, %v5071_v11  ;;  %v5084_v18 = vrot.slane %v5082_v29, 4  ;;  %v5090_v8 = vrot.slane %v5088_v35, 5  ;;  %v14062_v31 = vld [vmem:[#allocation2 + $0x4] sm:$0xf] }
 0x45c   : > { %v5102_v2 = vshll.u32 %v17231_v50, 16  ;;  %v5095_v45 = vrot.slane %v5093_v55, 4  ;;  %v5098_v16 = vrot.slane %v5096_v4, 5  ;;  %v5106_v9 = vshrl.u32 %v17231_v50, 16  ;;  %v17313_v55 = vld [vmem:[#allocation2 + $0xbc] sm:$0x1] }
 0x45d   : > { %v5067_v39 = vsel %vm14458_vm7, %v5062_v32, %v5066_v28  ;;  %v5076_v33 = vrot.slane %v5075_v57, 4  ;;  %v5085_v11 = vor.u32 %v5084_v18, %v5080_v34  ;;  %v5112_v61 = vshll.u32 %v17295_v40, 16 }
 0x45e   : > { %v17303_v49 = vcombine.low %v5057_v46, %v5067_v39  ;;  %v5104_v37 = vrot.slane %v5102_v2, 5  ;;  %v5099_v29 = vor.u32 %v5098_v16, %v5095_v45  ;;  %v5108_v35 = vrot.slane %v5106_v9, 4 }
 0x45f   : > { %v5117_v28 = vshrl.u32 %v17259_v56, 16  ;;  %v5081_v32 = vsel %vm14458_vm7, %v5076_v33, %v5080_v34  ;;  %v5086_v46 = vrot.slane %v5085_v11, 4  ;;  %v5120_v4 = vshll.u32 %v17259_v56, 16  ;;  %v13990_v56 = vld [vmem:[#allocation6 + $0xe0] sm:$0xff]  }
 0x460   : > { %21316 = vst [vmem:[#allocation53_spill] sm:$0xff] %v17303_v49  ;;  %13242 = vmatprep.mubr.msk.bf16.mxu1 %vm1388_vm11, %v17303_v49  ;;  %v5126_v27 = vshll.u32 %v17249_v53, 16  ;;  %v5100_v57 = vrot.slane %v5099_v29, 4  ;;  %v5109_v18 = vor.u32 %v5108_v35, %v5104_v37  ;;  %v5114_v2 = vrot.slane %v5112_v61, 5  ;;  %v14061_v61 = vld [vmem:[#allocation2] sm:$0xf] }
 0x461   : > { %v5119_v39 = vrot.slane %v5117_v28, 4  ;;  %v5091_v45 = vsel %vm14458_vm7, %v5086_v46, %v5090_v8  ;;  %v5122_v16 = vrot.slane %v5120_v4, 5  ;;  %v5130_v49 = vshrl.u32 %v17249_v53, 16  ;;  %13327 = vmatmul.mubr.msk.bf16.vlgmr.msra.gmra.mxu0 %vm1388_vm11, %v16977_v10 }
 0x462   : > { %v5128_v9 = vrot.slane %v5126_v27, 5  ;;  %v17320_v40 = vcombine.low %v5081_v32, %v5091_v45  ;;  %v5105_v33 = vsel %vm14458_vm7, %v5100_v57, %v5104_v37  ;;  %v5110_v34 = vrot.slane %v5109_v18, 4  ;;  %v14063_v37 = vld [vmem:[#allocation2 + $0x8] sm:$0x1]  ;;  %13330 = vmatprep.mubr.msk.bf16.mxu0 %vm1388_vm11, %v16994_v41  ;;  %13395 = vmatpush3.bf16.msra.mxu0 %v17011_v23  ;;  %v17338_v18 = vld [vmem:[#allocation6 + $0x108] sm:$0xff]  }
 0x463   : > { %v5136_v11 = vshll.u32 %v17313_v55, 16  ;;  %v5123_v29 = vor.u32 %v5122_v16, %v5119_v39  ;;  %v5132_v35 = vrot.slane %v5130_v49, 4  ;;  %v11843_v28 = vrot.slane %v14061_v61, 9  ;;  %13396 = vmatprep.subr.bf16.mxu0 %v13990_v56 }
 0x464   : > { %v5733_v20 = vrot.slane %v14062_v31, 5  ;;  %13243 = vmatmul.mubr.msk.bf16.gmra.mxu1 %vm1388_vm11, %v17320_v40  ;;  %v5115_v8 = vsel %vm14458_vm7, %v5110_v34, %v5114_v2  ;;  %v5736_v32 = vrot.slane %v14063_v37, 5  ;;  %v5740_v16 = vrot.slane %v16929_v12, 5 }
 0x465   : > { %v17331_v46 = vcombine.low %v5105_v33, %v5115_v8  ;;  %v5124_v4 = vrot.slane %v5123_v29, 4  ;;  %v5133_v27 = vor.u32 %v5132_v35, %v5128_v9  ;;  %v5138_v45 = vrot.slane %v5136_v11, 5 }
 0x466   : > { %v5734_v49 = vsel %vm14833_vm0, %v11843_v28, %v5733_v20  ;;  %v5735_v57 = vrot.slane %v5733_v20, 4  ;;  %v5747_v33 = vrot.slane %v16931_v15, 5  ;;  %13397 = vmatpush3.bf16.msra.mxu0 %v13990_v56  ;;  %v5742_v35 = vrot.slane %v5740_v16, 4 }
 0x467   : > { %13246 = vmatprep.mubr.msk.bf16.mxu1 %vm1388_vm11, %v17331_v46  ;;  %v5129_v2 = vsel %vm14458_vm7, %v5124_v4, %v5128_v9  ;;  %v5134_v39 = vrot.slane %v5133_v27, 4  ;;  %13466 = vmatprep.subr.bf16.mxu0 %v17338_v18  ;;  %v5743_v9 = vrot.slane %v16949_v24, 5  ;;  %v11844_v15 = vrot.slane %v16947_v58, 9 }
 0x468   : > { %v5737_v23 = vsel %vm14833_vm0, %v5735_v57, %v5736_v32  ;;  %v5749_v12 = vrot.slane %v5747_v33, 4  ;;  %v11845_v56 = vrot.slane %v16965_v26, 9  ;;  %v5750_v11 = vrot.slane %v17000_v7, 5  ;;  %v13987_v32 = vld [vmem:[#allocation6 + $0xd0] sm:$0xff]  }
 0x469   : > { %v5139_v20 = vsel %vm14458_vm7, %v5134_v39, %v5138_v45  ;;  %v11859_v34 = vcombine.low %v5734_v49, %v5737_v23  ;;  %13331 = vmatmul.mubr.msk.bf16.gmra.mxu0 %vm1388_vm11, %v16998_v17  ;;  %v5744_v61 = vsel %vm14833_vm0, %v5742_v35, %v5743_v9  ;;  %v5754_v28 = vrot.slane %v16967_v0, 5 }
 0x46a   : > { %v17350_v29 = vcombine.low %v5129_v2, %v5139_v20  ;;  %13334 = vmatprep.mubr.msk.bf16.mxu0 %vm1388_vm11, %v17016_v54  ;;  %v5751_v8 = vsel %vm14833_vm0, %v5749_v12, %v5750_v11  ;;  %v5761_v24 = vrot.slane %v16969_v48, 5  ;;  %v5741_v58 = vsel %vm14833_vm0, %v11844_v15, %v5740_v16  ;;  %v17391_v2 = vld [vmem:[#allocation6 + $0xf8] sm:$0xff]  }
 0x46b   : > { %v17372_v37 = vcombine.low %v5741_v58, %v5744_v61  ;;  %v5748_v26 = vsel %vm14833_vm0, %v11845_v56, %v5747_v33  ;;  %v5756_v4 = vrot.slane %v5754_v28, 4  ;;  %v11846_v48 = vrot.slane %v16979_v38, 9 }
 0x46c   : > { %13247 = vmatmul.mubr.msk.bf16.gmra.mxu1 %vm1388_vm11, %v17350_v29  ;;  %v17376_v7 = vcombine.low %v5748_v26, %v5751_v8  ;;  %v5763_v0 = vrot.slane %v5761_v24, 4  ;;  %v5757_v27 = vrot.slane %v17024_v42, 5  ;;  %v11847_v49 = vrot.slane %v16988_v52, 9  ;;  %v21322_v26 = vld [vmem:[#allocation27_spill] sm:$0xff] }
 0x46d   : > { %13290 = vmatprep.mubr.msk.bf16.mxu1 %vm1388_vm11, %v11859_v34  ;;  %v5764_v57 = vrot.slane %v17052_v59, 5  ;;  %v5768_v39 = vrot.slane %v16983_v44, 5  ;;  %v5775_v42 = vrot.slane %v17020_v5, 5  ;;  %v5755_v45 = vsel %vm14833_vm0, %v11846_v48, %v5754_v28  ;;  %v21320_v28 = vld [vmem:[#allocation19_spill] sm:$0xff] }
 0x46e   : > { %v5762_v59 = vsel %vm14833_vm0, %v11847_v49, %v5761_v24  ;;  %v11848_v5 = vrot.slane %v17002_v60, 9  ;;  %v5771_v33 = vrot.slane %v17075_v30, 5  ;;  %v11849_v20 = vrot.slane %v17027_v14, 9  ;;  %v21321_v24 = vld [vmem:[#allocation24_spill] sm:$0xff]  ;;  %v21324_v49 = vld [vmem:[#allocation22_spill] sm:$0xff] }
 0x46f   : > { %v5765_v38 = vsel %vm14833_vm0, %v5763_v0, %v5764_v57  ;;  %v5770_v23 = vrot.slane %v5768_v39, 4  ;;  %v5777_v44 = vrot.slane %v5775_v42, 4  ;;  %v5778_v34 = vrot.slane %v17101_v22, 5  ;;  %v21323_v0 = vld [vmem:[#allocation35_spill] sm:$0xff] }
 0x470   : > { %v17406_v16 = vcombine.low %v5762_v59, %v5765_v38  ;;  %v5782_v12 = vrot.slane %v17044_v62, 5  ;;  %v5789_v15 = vrot.slane %v17073_v1, 5  ;;  %v5769_v60 = vsel %vm14833_vm0, %v11848_v5, %v5768_v39  ;;  %v21318_v62 = vld [vmem:[#allocation23_spill] sm:$0xff]  ;;  %v21319_v1 = vld [vmem:[#allocation33_spill] sm:$0xff] }
 0x471   : > { %13335 = vmatmul.mubr.msk.bf16.gmra.mxu0 %vm1388_vm11, %v17042_v13  ;;  %v5772_v35 = vsel %vm14833_vm0, %v5770_v23, %v5771_v33  ;;  %v5779_v9 = vsel %vm14833_vm0, %v5777_v44, %v5778_v34  ;;  %v5776_v14 = vsel %vm14833_vm0, %v11849_v20, %v5775_v42  ;;  %v11850_v61 = vrot.slane %v21319_v1, 9  ;;  %v21325_v59 = vld [vmem:[#allocation39_spill] sm:$0xff]  ;;  %v21326_v44 = vld [vmem:[#allocation37_spill] sm:$0xff]  ;;  %v21327_v33 = vld [vmem:[#allocation38_spill] sm:$0xff] }
 0x472   : > { %13338 = vmatprep.mubr.msk.bf16.mxu0 %vm1388_vm11, %v17071_v6  ;;  %v17428_v30 = vcombine.low %v5769_v60, %v5772_v35  ;;  %v17432_v56 = vcombine.low %v5776_v14, %v5779_v9  ;;  %v5784_v22 = vrot.slane %v5782_v12, 4  ;;  %v5791_v11 = vrot.slane %v5789_v15, 4  ;;  %v21328_v34 = vld [vmem:[#allocation25_spill] sm:$0xff] }
 0x473   : > { %v5785_v8 = vrot.slane %v21320_v28, 5  ;;  %v11851_v58 = vrot.slane %v21321_v24, 9  ;;  %v5796_v48 = vrot.slane %v21323_v0, 5  ;;  %v5803_v57 = vrot.slane %v21324_v49, 5  ;;  %v21335_v49 = vld [vmem:[#allocation47_spill] sm:$0xff] }
 0x474   : > { %13291 = vmatmul.mubr.msk.bf16.vlgmr.msra.gmra.mxu1 %vm1388_vm11, %v17372_v37  ;;  %v11852_v5 = vrot.slane %v21326_v44, 9  ;;  %v5799_v20 = vrot.slane %v21327_v33, 5  ;;  %v11853_v35 = vrot.slane %v21328_v34, 9  ;;  %v5810_v60 = vrot.slane %v17149_v36, 5  ;;  %v21331_v36 = vld [vmem:[#allocation46_spill] sm:$0xff] }
 0x475   : > { %13359 = vmatpush3.bf16.msra.mxu1 %v17062_v21  ;;  %13294 = vmatprep.mubr.msk.bf16.mxu1 %vm1388_vm11, %v17376_v7  ;;  %v5758_v21 = vsel %vm14833_vm0, %v5756_v4, %v5757_v27  ;;  %v5786_v4 = vsel %vm14833_vm0, %v5784_v22, %v5785_v8  ;;  %v5790_v38 = vsel %vm14833_vm0, %v11851_v58, %v5789_v15  ;;  %v5805_v23 = vrot.slane %v5803_v57, 4  ;;  %v21330_v22 = vld [vmem:[#allocation20_spill] sm:$0xff] }
 0x476   : > { %13360 = vmatprep.subr.bf16.mxu1 %v13987_v32  ;;  %v17401_v52 = vcombine.low %v5755_v45, %v5758_v21  ;;  %v5783_v21 = vsel %vm14833_vm0, %v11850_v61, %v5782_v12  ;;  %v5798_v45 = vrot.slane %v5796_v48, 4  ;;  %v21329_v12 = vld [vmem:[#allocation40_spill] sm:$0xff]  ;;  %v5797_v1 = vsel %vm14833_vm0, %v11852_v5, %v5796_v48  ;;  %v21334_v48 = vld [vmem:[#allocation21_spill] sm:$0xff] }
 0x477   : > { %v17454_v39 = vcombine.low %v5783_v21, %v5786_v4  ;;  %v5806_v9 = vrot.slane %v21329_v12, 5  ;;  %v5804_v28 = vsel %vm14833_vm0, %v11853_v35, %v5803_v57  ;;  %v5812_v24 = vrot.slane %v5810_v60, 4  ;;  %v21333_v4 = vld [vmem:[#allocation43_spill] sm:$0xff] }
 0x478   : > { %v5800_v15 = vsel %vm14833_vm0, %v5798_v45, %v5799_v20  ;;  %v5813_v0 = vrot.slane %v21333_v4, 5  ;;  %v5820_v57 = vrot.slane %v21335_v49, 5  ;;  %v17502_v45 = vld [vmem:[#allocation2 + $0xc4] sm:$0xf]  ;;  %v5831_v5 = vrot.slane %v17231_v50, 5 }
 0x479   : > { %13361 = vmatpush3.bf16.msra.mxu1 %v13987_v32  ;;  %13339 = vmatmul.mubr.msk.bf16.gmra.mxu0 %vm1388_vm11, %v17099_v63  ;;  %v5792_v32 = vrot.slane %v21322_v26, 5  ;;  %v5807_v14 = vsel %vm14833_vm0, %v5805_v23, %v5806_v9  ;;  %v17480_v61 = vcombine.low %v5797_v1, %v5800_v15  ;;  %v21332_v26 = vld [vmem:[#allocation18_spill] sm:$0xff]  ;;  %v5824_v23 = vrot.slane %v17204_v47, 5  ;;  %v21336_v9 = vld [vmem:[#allocation41_spill] sm:$0xff]  ;;  %v21339_v1 = vld [vmem:[#allocation52_spill] sm:$0xff] }
 0x47a   : > { %13430 = vmatprep.subr.bf16.mxu1 %v17391_v2  ;;  %13342 = vmatprep.mubr.msk.bf16.mxu0 %vm1388_vm11, %v17118_v43  ;;  %v17484_v8 = vcombine.low %v5804_v28, %v5807_v14  ;;  %v5814_v21 = vsel %vm14833_vm0, %v5812_v24, %v5813_v0  ;;  %v5833_v50 = vrot.slane %v5831_v5, 4  ;;  %v11856_v15 = vrot.slane %v21336_v9, 9  ;;  %v21349_v9 = vld [vmem:[#allocation30_spill] sm:$0xff] }
 0x47b   : > { %v5793_v27 = vsel %vm14833_vm0, %v5791_v11, %v5792_v32  ;;  %v5817_v11 = vrot.slane %v21330_v22, 5  ;;  %v11854_v32 = vrot.slane %v21332_v26, 9  ;;  %v5826_v47 = vrot.slane %v5824_v23, 4  ;;  %v21338_v22 = vld [vmem:[#allocation44_spill] sm:$0xff] }
 0x47c   : > { %13295 = vmatmul.mubr.msk.bf16.gmra.mxu1 %vm1388_vm11, %v17401_v52  ;;  %v17458_v42 = vcombine.low %v5790_v38, %v5793_v27  ;;  %v11855_v27 = vrot.slane %v21334_v48, 9  ;;  %v17500_v38 = vld [vmem:[#allocation2 + $0xc0] sm:$0xf]  ;;  %v5834_v28 = vrot.slane %v21339_v1, 5 }
 0x47d   : > { %13298 = vmatprep.mubr.msk.bf16.mxu1 %vm1388_vm11, %v17406_v16  ;;  %v5819_v58 = vrot.slane %v5817_v11, 4  ;;  %v5811_v33 = vsel %vm14833_vm0, %v11854_v32, %v5810_v60  ;;  %v17516_v35 = vcombine.low %v17500_v38, %v17502_v45  ;;  %v21337_v60 = vld [vmem:[#allocation50_spill] sm:$0xff]  ;;  %v5825_v32 = vsel %vm14833_vm0, %v11856_v15, %v5824_v23  ;;  %v21351_v15 = vld [vmem:[#allocation17_spill] sm:$0xff] }
 0x47e   : > { %v17510_v20 = vcombine.low %v5811_v33, %v5814_v21  ;;  %v5818_v34 = vsel %vm14833_vm0, %v11855_v27, %v5817_v11  ;;  %v5827_v14 = vrot.slane %v21337_v60, 5  ;;  %v11857_v11 = vrot.slane %v21338_v22, 9  ;;  %v13994_v27 = vld [vmem:[#allocation6 + $0x100] sm:$0xff]   ;;  %v21346_v33 = vld [vmem:[#allocation31_spill] sm:$0xff]  ;;  %v21352_v60 = vld [vmem:[#allocation42_spill] sm:$0xff] }
 0x47f   : > { %v5821_v44 = vsel %vm14833_vm0, %v5819_v58, %v5820_v57  ;;  %v5838_v58 = vrot.slane %v17249_v53, 5  ;;  %v5835_v26 = vsel %vm14833_vm0, %v5833_v50, %v5834_v28  ;;  %v21342_v53 = vld [vmem:[#allocation48_spill] sm:$0xff]  ;;  %v5841_v57 = vrot.slane %v17313_v55, 5  ;;  %v21345_v55 = vld [vmem:[#allocation26_spill] sm:$0xff]  ;;  %v21354_v28 = vld [vmem:[#allocation49_spill] sm:$0xff] }
 0x480   : > { %v17518_v12 = vcombine.low %v5818_v34, %v5821_v44  ;;  %v5828_v24 = vsel %vm14833_vm0, %v5826_v47, %v5827_v14  ;;  %v11858_v49 = vrot.slane %v21342_v53, 9  ;;  %v21347_v34 = vld [vmem:[#allocation29_spill] sm:$0xff]  ;;  %v17580_v47 = vld [vmem:[#allocation6 + $0x118] sm:$0xff]   ;;  %v21348_v50 = vld [vmem:[#allocation34_spill] sm:$0xff]  ;;  %v6610_v22 = vrot.slane %v17502_v45, 5 }
 0x481   : > { %13343 = vmatmul.mubr.msk.bf16.gmra.mxu0 %vm1388_vm11, %v21318_v62  ;;  %v17539_v4 = vcombine.low %v5825_v32, %v5828_v24  ;;  %v5840_v48 = vrot.slane %v5838_v58, 4  ;;  %v21353_v14 = vld [vmem:[#allocation45_spill] sm:$0xff]  ;;  %v21355_v24 = vld [vmem:[#allocation51_spill] sm:$0xff]  ;;  %v6368_v32 = vshrl.u32 %v17500_v38, 16  ;;  %v6381_v53 = vshrl.u32 %v17502_v45, 16 }
 0x482   : > { %13346 = vmatprep.mubr.msk.bf16.mxu0 %vm1388_vm11, %v17170_v3  ;;  %v5839_v23 = vsel %vm14833_vm0, %v11858_v49, %v5838_v58  ;;  %v6612_v1 = vrot.slane %v6610_v22, 4  ;;  %v11931_v58 = vrot.slane %v17500_v38, 9 }
 0x483   : > { %21340 = vst [vmem:[#allocation23_spill] sm:$0xff] %v17539_v4  ;;  %v5842_v21 = vsel %vm14833_vm0, %v5840_v48, %v5841_v57  ;;  %v6371_v48 = vshll.u32 %v17500_v38, 16 }
 0x484   : > { %13299 = vmatmul.mubr.msk.bf16.gmra.mxu1 %vm1388_vm11, %v17428_v30  ;;  %v17560_v44 = vcombine.low %v5839_v23, %v5842_v21  ;;  %v6611_v49 = vsel %vm14833_vm0, %v11931_v58, %v6610_v22  ;;  %v6370_v21 = vrot.slane %v6368_v32, 4 }
 0x485   : > { %13302 = vmatprep.mubr.msk.bf16.mxu1 %vm1388_vm11, %v17432_v56  ;;  %v6373_v23 = vrot.slane %v6371_v48, 5 }
 0x486   : > { %21343 = vst [vmem:[#allocation19_spill] sm:$0xff] %v17560_v44 }
 0x487   : > { %v6374_v38 = vor.u32 %v6373_v23, %v6370_v21  ;;  %v17665_v23 = vld [vmem:[#allocation2 + $0xcc] sm:$0xf] }
 0x489   : > { %13347 = vmatmul.mubr.msk.bf16.gmra.mxu0 %vm1388_vm11, %v21325_v59 }
 0x48a   : > { %13350 = vmatprep.mubr.msk.bf16.mxu0 %vm1388_vm11, %v17220_v19 }
 0x48c   : > { %13303 = vmatmul.mubr.msk.bf16.gmra.mxu1 %vm1388_vm11, %v17454_v39 }
 0x48d   : > { %13306 = vmatprep.mubr.msk.bf16.mxu1 %vm1388_vm11, %v17458_v42 }
 0x491   : > { %13351 = vmatmul.mubr.msk.bf16.gmra.mxu0 %vm1388_vm11, %v21331_v36 }
 0x492   : > { %13354 = vmatprep.mubr.msk.bf16.mxu0 %vm1388_vm11, %v17274_v51 }
 0x494   : > { %13307 = vmatmul.mubr.msk.bf16.gmra.mxu1 %vm1388_vm11, %v17480_v61 }
 0x495   : > { %13310 = vmatprep.mubr.msk.bf16.mxu1 %vm1388_vm11, %v17484_v8 }
 0x499   : > { %13355 = vmatmul.mubr.msk.bf16.gmra.mxu0 %vm1388_vm11, %v17516_v35 }
 0x49a   : > { %13398 = vmatprep.mubr.msk.bf16.mxu0 %vm1388_vm11, %v17372_v37  ;;  %v5832_v37 = vsel %vm14833_vm0, %v11857_v11, %v5831_v5  ;;  %v21344_v5 = vmov 0.0   ;;  %v4747_v11 = vld [vmem:[#allocation2 + $0xc8] sm:$0x1] }
 0x49b   : > { %v17543_v0 = vcombine.low %v5832_v37, %v5835_v26  ;;  %v6613_v26 = vrot.slane %v4747_v11, 5  ;;  %v6387_v22 = vshll.u32 %v4747_v11, 16  ;;  %v14064_v11 = vld [vmem:[%s20884_s5 + $0x18] sm:$0xff] }
 0x49c   : > { %13311 = vmatmul.mubr.msk.bf16.gmra.mxu1 %vm1388_vm11, %v17510_v20 }
 0x49d   : > { %13314 = vmatprep.mubr.msk.bf16.mxu1 %vm1388_vm11, %v17518_v12  ;;  %21341 = vst [vmem:[#allocation33_spill] sm:$0xff] %v17543_v0  ;;  %v6614_v37 = vsel %vm14833_vm0, %v6612_v1, %v6613_v26  ;;  %v6375_v1 = vrot.slane %v6374_v38, 4  ;;  %v6389_v32 = vrot.slane %v6387_v22, 5  ;;  %v11989_v38 = vrot.slane %v17665_v23, 9 }
 0x49e   : > { %v17625_v57 = vcombine.low %v6611_v49, %v6614_v37  ;;  %v14066_v49 = vld [vmem:[%s20884_s5 + $0x8] sm:$0xff] }
 0x4a0   : > { %21356 = vst [vmem:[#allocation24_spill] sm:$0xff] %v17625_v57 }
 0x4a1   : > { %13399 = vmatmul.mubr.msk.bf16.vlgmr.msra.gmra.mxu0 %vm1388_vm11, %v17376_v7 }
 0x4a2   : > { %13402 = vmatprep.mubr.msk.bf16.mxu0 %vm1388_vm11, %v17401_v52  ;;  %13467 = vmatpush3.bf16.msra.mxu0 %v17338_v18  ;;  %v13992_v18 = vld [vmem:[#allocation6 + $0xf0] sm:$0xff]  }
 0x4a3   : > { %13468 = vmatprep.subr.bf16.mxu0 %v13994_v27 }
 0x4a4   : > { %13315 = vmatmul.mubr.msk.bf16.gmra.mxu1 %vm1388_vm11, %v17539_v4 }
 0x4a5   : > { %13318 = vmatprep.mubr.msk.bf16.mxu1 %vm1388_vm11, %v17543_v0 }
 0x4a6   : > { %13469 = vmatpush3.bf16.msra.mxu0 %v13994_v27  ;;  %v6377_v27 = vshll.u32 %v17502_v45, 16 }
 0x4a7   : > { %13538 = vmatprep.subr.mxu0 %v21344_v5 }
 0x4a9   : > { %13403 = vmatmul.mubr.msk.bf16.gmra.mxu0 %vm1388_vm11, %v17406_v16 }
 0x4aa   : > { %13406 = vmatprep.mubr.msk.bf16.mxu0 %vm1388_vm11, %v17428_v30 }
 0x4ac   : > { %13319 = vmatmul.mubr.msk.bf16.gmra.mxu1 %vm1388_vm11, %v17560_v44 }
 0x4ad   : > { %13362 = vmatprep.mubr.msk.bf16.mxu1 %vm1388_vm11, %v21345_v55  ;;  %v6379_v55 = vrot.slane %v6377_v27, 5  ;;  %v14065_v27 = vld [vmem:[%s20884_s5 + $0x10] sm:$0xff] }
 0x4af   : > { %v6380_v37 = vsel %vm14458_vm7, %v6375_v1, %v6379_v55 }
 0x4b1   : > { %13407 = vmatmul.mubr.msk.bf16.gmra.mxu0 %vm1388_vm11, %v17432_v56 }
 0x4b2   : > { %13410 = vmatprep.mubr.msk.bf16.mxu0 %vm1388_vm11, %v17454_v39 }
 0x4b4   : > { %13363 = vmatmul.mubr.msk.bf16.vlgmr.msra.gmra.mxu1 %vm1388_vm11, %v21346_v33 }
 0x4b5   : > { %13431 = vmatpush3.bf16.msra.mxu1 %v17391_v2  ;;  %13366 = vmatprep.mubr.msk.bf16.mxu1 %vm1388_vm11, %v21347_v34  ;;  %v21350_v2 = vld [vmem:[#allocation36_spill] sm:$0xff] }
 0x4b6   : > { %13432 = vmatprep.subr.bf16.mxu1 %v13992_v18 }
 0x4b9   : > { %13433 = vmatpush3.bf16.msra.mxu1 %v13992_v18  ;;  %13411 = vmatmul.mubr.msk.bf16.gmra.mxu0 %vm1388_vm11, %v17458_v42  ;;  %v6383_v18 = vrot.slane %v6381_v53, 4 }
 0x4ba   : > { %13502 = vmatprep.subr.bf16.mxu1 %v17580_v47  ;;  %13414 = vmatprep.mubr.msk.bf16.mxu0 %vm1388_vm11, %v17480_v61 }
 0x4bb   : > { %v6384_v45 = vor.u32 %v6383_v18, %v6379_v55  ;;  %v17667_v55 = vld [vmem:[#allocation2 + $0xd0] sm:$0xf]  ;;  %v17669_v18 = vld [vmem:[#allocation2 + $0xd4] sm:$0x1] }
 0x4bc   : > { %13367 = vmatmul.mubr.msk.bf16.gmra.mxu1 %vm1388_vm11, %v21348_v50  ;;  %v7295_v22 = vrot.slane %v17669_v18, 5 }
 0x4bd   : > { %13370 = vmatprep.mubr.msk.bf16.mxu1 %vm1388_vm11, %v21349_v9  ;;  %v6385_v58 = vrot.slane %v6384_v45, 4  ;;  %v7292_v45 = vrot.slane %v17667_v55, 5 }
 0x4bf   : > { %v6390_v48 = vsel %vm14458_vm7, %v6385_v58, %v6389_v32  ;;  %v14067_v58 = vld [vmem:[%s20884_s5] sm:$0xff] }
 0x4c1   : > { %13415 = vmatmul.mubr.msk.bf16.gmra.mxu0 %vm1388_vm11, %v17484_v8 }
 0x4c2   : > { %13418 = vmatprep.mubr.msk.bf16.mxu0 %vm1388_vm11, %v17510_v20 }
 0x4c4   : > { %13371 = vmatmul.mubr.msk.bf16.gmra.mxu1 %vm1388_vm11, %v21350_v2 }
 0x4c5   : > { %13374 = vmatprep.mubr.msk.bf16.mxu1 %vm1388_vm11, %v21351_v15 }
 0x4c9   : > { %13419 = vmatmul.mubr.msk.bf16.gmra.mxu0 %vm1388_vm11, %v17518_v12 }
 0x4ca   : > { %13422 = vmatprep.mubr.msk.bf16.mxu0 %vm1388_vm11, %v17539_v4 }
 0x4cc   : > { %13375 = vmatmul.mubr.msk.bf16.gmra.mxu1 %vm1388_vm11, %v21352_v60 }
 0x4cd   : > { %13378 = vmatprep.mubr.msk.bf16.mxu1 %vm1388_vm11, %v21353_v14 }
 0x4d1   : > { %13423 = vmatmul.mubr.msk.bf16.gmra.mxu0 %vm1388_vm11, %v17543_v0  ;;  %v13996_v0 = vld [vmem:[#allocation6 + $0x110] sm:$0xff]  }
 0x4d2   : > { %13426 = vmatprep.mubr.msk.bf16.mxu0 %vm1388_vm11, %v17560_v44  ;;  %v21357_v44 = vld [vmem:[#allocation53_spill] sm:$0xff] }
 0x4d4   : > { %13379 = vmatmul.mubr.msk.bf16.gmra.mxu1 %vm1388_vm11, %v21354_v28 }
 0x4d5   : > { %13382 = vmatprep.mubr.msk.bf16.mxu1 %vm1388_vm11, %v21355_v24 }
 0x4d9   : > { %13427 = vmatmul.mubr.msk.bf16.gmra.mxu0 %vm1388_vm11, %v17625_v57 }
 0x4da   : > { %13470 = vmatprep.mubr.msk.bf16.mxu0 %vm1388_vm11, %v21346_v33 }
 0x4dc   : > { %13383 = vmatmul.mubr.msk.bf16.gmra.mxu1 %vm1388_vm11, %v21357_v44 }
 0x4dd   : > { %13386 = vmatprep.mubr.msk.bf16.mxu1 %vm1388_vm11, %v17320_v40 }
 0x4e0   : > { %v13256_v26 = vpop.f32.mrf.mxu0 }
 0x4e1   : > { %13471 = vmatmul.mubr.msk.bf16.vlgmr.msra.gmra.mxu0 %vm1388_vm11, %v21347_v34 }
 0x4e2   : > { %13474 = vmatprep.mubr.msk.bf16.mxu0 %vm1388_vm11, %v21348_v50  ;;  %v5588_v33 = vpop.f32.mrf.mxu0  ;;  %13539 = vmatpush3.msra.mxu0 %v14064_v11  ;;  %v17655_v50 = vcombine.low %v6380_v37, %v6390_v48 }
 0x4e3   : > { %13540 = vmatprep.subr.mxu0 %v21344_v5 }
 0x4e4   : > { %13387 = vmatmul.mubr.msk.bf16.gmra.mxu1 %vm1388_vm11, %v17331_v46  ;;  %v13257_v34 = vpop.f32.mrf.mxu0  ;;  %13541 = vmatpush3.msra.mxu0 %v14065_v27 }
 0x4e5   : > { %13390 = vmatprep.mubr.msk.bf16.mxu1 %vm1388_vm11, %v17350_v29  ;;  %13542 = vmatprep.subr.mxu0 %v21344_v5 }
 0x4e6   : > { %v5591_v53 = vpop.f32.mrf.mxu0  ;;  %13543 = vmatpush3.msra.mxu0 %v14066_v49 }
 0x4e7   : > { %13544 = vmatprep.subr.mxu0 %v21344_v5 }
 0x4e8   : > { %v13260_v21 = vpop.f32.mrf.mxu0  ;;  %13545 = vmatpush3.msra.mxu0 %v14067_v58 }
 0x4e9   : > { %13475 = vmatmul.mubr.msk.bf16.gmra.mxu0 %vm1388_vm11, %v21349_v9 }
 0x4ea   : > { %13478 = vmatprep.mubr.msk.bf16.mxu0 %vm1388_vm11, %v21350_v2  ;;  %v5604_v9 = vpop.f32.mrf.mxu0  ;;  %v7294_v2 = vrot.slane %v7292_v45, 4 }
 0x4ec   : > { %13391 = vmatmul.mubr.msk.bf16.gmra.mxu1 %vm1388_vm11, %v17655_v50  ;;  %v13261_v37 = vpop.f32.mrf.mxu0  ;;  %v17691_v27 = vsel %vm14833_vm0, %v7294_v2, %v7295_v22 }
 0x4ed   : > { %13434 = vmatprep.mubr.msk.bf16.mxu1 %vm1388_vm11, %v16977_v10  ;;  %v17685_v10 = vsel %vm14833_vm0, %v11989_v38, %v7292_v45  ;;  %21359 = vst [vmem:[#allocation35_spill] sm:$0xff] %v17691_v27 }
 0x4ee   : > { %v13220_v1 = vpop.f32.mrf.mxu1  ;;  %21358 = vst [vmem:[#allocation27_spill] sm:$0xff] %v17685_v10  ;;  %v5607_v57 = vpop.f32.mrf.mxu0 }
 0x4ef   : > { %v17681_v32 = vadd.f32 %v13256_v26, %v13220_v1 }
 0x4f0   : > { %v5287_v11 = vpop.f32.mrf.mxu1  ;;  %v13264_v45 = vpop.f32.mrf.mxu0 }
 0x4f1   : > { %v17687_v48 = vadd.f32 %v5588_v33, %v5287_v11  ;;  %13479 = vmatmul.mubr.msk.bf16.gmra.mxu0 %vm1388_vm11, %v21351_v15 }
 0x4f2   : > { %v13221_v49 = vpop.f32.mrf.mxu1  ;;  %13482 = vmatprep.mubr.msk.bf16.mxu0 %vm1388_vm11, %v21352_v60 }
 0x4f3   : > { %v17695_v1 = vadd.f32 %v13257_v34, %v13221_v49  ;;  %v5620_v34 = vpop.f32.mrf.mxu0 }
 0x4f4   : > { %13435 = vmatmul.mubr.msk.bf16.vlgmr.msra.gmra.mxu1 %vm1388_vm11, %v16994_v41  ;;  %v5290_v38 = vpop.f32.mrf.mxu1 }
 0x4f5   : > { %13503 = vmatpush3.bf16.msra.mxu1 %v17580_v47  ;;  %13438 = vmatprep.mubr.msk.bf16.mxu1 %vm1388_vm11, %v16998_v17  ;;  %v17704_v33 = vadd.f32 %v5591_v53, %v5290_v38  ;;  %v13265_v2 = vpop.f32.mrf.mxu0 }
 0x4f6   : > { %v13224_v22 = vpop.f32.mrf.mxu1  ;;  %13504 = vmatprep.subr.bf16.mxu1 %v13996_v0 }
 0x4f7   : > { %v17708_v58 = vadd.f32 %v13260_v21, %v13224_v22  ;;  %v5623_v47 = vpop.f32.mrf.mxu0 }
 0x4f8   : > { %v5303_v41 = vpop.f32.mrf.mxu1 }
 0x4f9   : > { %v17710_v11 = vadd.f32 %v5604_v9, %v5303_v41  ;;  %13505 = vmatpush3.bf16.msra.mxu1 %v13996_v0  ;;  %v13268_v53 = vpop.f32.mrf.mxu0  ;;  %13483 = vmatmul.mubr.msk.bf16.gmra.mxu0 %vm1388_vm11, %v21353_v14 }
 0x4fa   : > { %v13225_v15 = vpop.f32.mrf.mxu1  ;;  %13486 = vmatprep.mubr.msk.bf16.mxu0 %vm1388_vm11, %v21354_v28 }
 0x4fb   : > { %v17712_v49 = vadd.f32 %v13261_v37, %v13225_v15  ;;  %v5636_v0 = vpop.f32.mrf.mxu0 }
 0x4fc   : > { %13439 = vmatmul.mubr.msk.bf16.gmra.mxu1 %vm1388_vm11, %v17016_v54  ;;  %v5306_v17 = vpop.f32.mrf.mxu1 }
 0x4fd   : > { %13442 = vmatprep.mubr.msk.bf16.mxu1 %vm1388_vm11, %v17042_v13  ;;  %v17720_v60 = vadd.f32 %v5607_v57, %v5306_v17  ;;  %v13269_v9 = vpop.f32.mrf.mxu0  ;;  %v7050_v13 = vshrl.u32 %v17665_v23, 16  ;;  %v7053_v57 = vshll.u32 %v17665_v23, 16 }
 0x4ff   : > { %v5639_v54 = vpop.f32.mrf.mxu0 }
 0x500   : > { %v13228_v21 = vpop.f32.mrf.mxu1 }
 0x501   : > { %v17724_v37 = vadd.f32 %v13264_v45, %v13228_v21  ;;  %v13272_v41 = vpop.f32.mrf.mxu0  ;;  %13487 = vmatmul.mubr.msk.bf16.gmra.mxu0 %vm1388_vm11, %v21355_v24  ;;  %v7063_v45 = vshrl.u32 %v17667_v55, 16 }
 0x502   : > { %v5319_v38 = vpop.f32.mrf.mxu1  ;;  %13490 = vmatprep.mubr.msk.bf16.mxu0 %vm1388_vm11, %v21357_v44 }
 0x503   : > { %v17726_v22 = vadd.f32 %v5620_v34, %v5319_v38  ;;  %v17742_v15 = vpop.f32.mrf.mxu0  ;;  %v7052_v38 = vrot.slane %v7050_v13, 4  ;;  %v7065_v26 = vrot.slane %v7063_v45, 4 }
 0x504   : > { %13443 = vmatmul.mubr.msk.bf16.gmra.mxu1 %vm1388_vm11, %v17071_v6  ;;  %v13229_v14 = vpop.f32.mrf.mxu1  ;;  %v7059_v6 = vshll.u32 %v17667_v55, 16 }
 0x505   : > { %13446 = vmatprep.mubr.msk.bf16.mxu1 %vm1388_vm11, %v17099_v63  ;;  %v17735_v28 = vadd.f32 %v13265_v2, %v13229_v14  ;;  %v13273_v21 = vpop.f32.mrf.mxu0  ;;  %v7055_v2 = vrot.slane %v7053_v57, 5 }
 0x506   : > { %v5322_v34 = vpop.f32.mrf.mxu1  ;;  %v7061_v14 = vrot.slane %v7059_v6, 5 }
 0x507   : > { %v17744_v24 = vadd.f32 %v5623_v47, %v5322_v34  ;;  %v5655_v31 = vpop.f32.mrf.mxu0 }
 0x508   : > { %v13232_v17 = vpop.f32.mrf.mxu1  ;;  %v7066_v13 = vor.u32 %v7065_v26, %v7061_v14 }
 0x509   : > { %v17746_v63 = vadd.f32 %v13268_v53, %v13232_v17  ;;  %v13276_v4 = vpop.f32.mrf.mxu0  ;;  %13491 = vmatmul.mubr.msk.bf16.gmra.mxu0 %vm1388_vm11, %v17320_v40  ;;  %v7056_v53 = vor.u32 %v7055_v2, %v7052_v38 }
 0x50a   : > { %v5335_v44 = vpop.f32.mrf.mxu1  ;;  %13494 = vmatprep.mubr.msk.bf16.mxu0 %vm1388_vm11, %v17331_v46  ;;  %v7067_v40 = vrot.slane %v7066_v13, 4 }
 0x50b   : > { %v17748_v27 = vadd.f32 %v5636_v0, %v5335_v44  ;;  %v7069_v0 = vshll.u32 %v17669_v18, 16  ;;  %v17761_v45 = vpop.f32.mrf.mxu0  ;;  %v7057_v34 = vrot.slane %v7056_v53, 4 }
 0x50c   : > { %13447 = vmatmul.mubr.msk.bf16.gmra.mxu1 %vm1388_vm11, %v17118_v43  ;;  %v13233_v10 = vpop.f32.mrf.mxu1 }
 0x50d   : > { %13450 = vmatprep.mubr.msk.bf16.mxu1 %vm1388_vm11, %v21318_v62  ;;  %v17756_v47 = vadd.f32 %v13269_v9, %v13233_v10  ;;  %v13277_v6 = vpop.f32.mrf.mxu0  ;;  %v7071_v17 = vrot.slane %v7069_v0, 5  ;;  %v7062_v18 = vsel %vm14458_vm7, %v7057_v34, %v7061_v14 }
 0x50e   : > { %v5338_v57 = vpop.f32.mrf.mxu1 }
 0x50f   : > { %v17763_v43 = vadd.f32 %v5639_v54, %v5338_v57  ;;  %v5671_v62 = vpop.f32.mrf.mxu0  ;;  %v7072_v9 = vsel %vm14458_vm7, %v7067_v40, %v7071_v17 }
 0x511   : > { %v13280_v26 = vpop.f32.mrf.mxu0  ;;  %13495 = vmatmul.mubr.msk.bf16.gmra.mxu0 %vm1388_vm11, %v17350_v29  ;;  %v11970_v29 = vcombine.low %v7062_v18, %v7072_v9 }
 0x512   : > { %v13236_v44 = vpop.f32.mrf.mxu1  ;;  %13498 = vmatprep.mubr.msk.bf16.mxu0 %vm1388_vm11, %v17655_v50 }
 0x513   : > { %v17765_v10 = vadd.f32 %v13272_v41, %v13236_v44 }
 0x514   : > { %13451 = vmatmul.mubr.msk.bf16.gmra.mxu1 %vm1388_vm11, %v17170_v3  ;;  %v17769_v46 = vpop.f32.mrf.mxu1  ;;  %v17781_v3 = vpop.f32.mrf.mxu0 }
 0x515   : > { %13454 = vmatprep.mubr.msk.bf16.mxu1 %vm1388_vm11, %v21325_v59 }
 0x516   : > { %v13237_v54 = vpop.f32.mrf.mxu1  ;;  %v13281_v2 = vpop.f32.mrf.mxu0 }
 0x517   : > { %v17783_v41 = vadd.f32 %v13273_v21, %v13237_v54 }
 0x518   : > { %v5354_v38 = vpop.f32.mrf.mxu1  ;;  %v5687_v13 = vpop.f32.mrf.mxu0 }
 0x519   : > { %v17785_v53 = vadd.f32 %v5655_v31, %v5354_v38  ;;  %13499 = vmatmul.mubr.msk.bf16.gmra.mxu0 %vm1388_vm11, %v11970_v29 }
 0x51a   : > { %v13240_v59 = vpop.f32.mrf.mxu1  ;;  %v13284_v14 = vpop.f32.mrf.mxu0  ;;  %13546 = vmatprep.mubr.msk.f32.mxu0 %vm14202_vm1, %v21344_v5 }
 0x51b   : > { %v17787_v0 = vadd.f32 %v13276_v4, %v13240_v59 }
 0x51c   : > { %13455 = vmatmul.mubr.msk.bf16.gmra.mxu1 %vm1388_vm11, %v17220_v19  ;;  %v17791_v50 = vpop.f32.mrf.mxu1  ;;  %v17798_v21 = vpop.f32.mrf.mxu0 }
 0x51d   : > { %13458 = vmatprep.mubr.msk.bf16.mxu1 %vm1388_vm11, %v21331_v36 }
 0x51e   : > { %v13241_v31 = vpop.f32.mrf.mxu1  ;;  %v13285_v34 = vpop.f32.mrf.mxu0 }
 0x51f   : > { %v17800_v57 = vadd.f32 %v13277_v6, %v13241_v31 }
 0x520   : > { %v5370_v4 = vpop.f32.mrf.mxu1  ;;  %v5703_v19 = vpop.f32.mrf.mxu0 }
 0x521   : > { %v17802_v40 = vadd.f32 %v5671_v62, %v5370_v4  ;;  %v11951_v62 = vcombine.low %v17665_v23, %v17667_v55 }
 0x522   : > { %v13328_v44 = vpop.f32.mrf.mxu0 }
 0x524   : > { %v13244_v17 = vpop.f32.mrf.mxu1  ;;  %13459 = vmatmul.mubr.msk.bf16.gmra.mxu1 %vm1388_vm11, %v17274_v51  ;;  %v17812_v5 = vpop.f32.mrf.mxu0 }
 0x525   : > { %v17806_v18 = vadd.f32 %v13280_v26, %v13244_v17  ;;  %13462 = vmatprep.mubr.msk.bf16.mxu1 %vm1388_vm11, %v17516_v35  ;;  %21360 = vst [vmem:[#allocation22_spill] sm:$0xff] %v17812_v5 }
 0x526   : > { %v17810_v36 = vpop.f32.mrf.mxu1  ;;  %v13329_v9 = vpop.f32.mrf.mxu0 }
 0x528   : > { %v13245_v6 = vpop.f32.mrf.mxu1  ;;  %v6211_v29 = vpop.f32.mrf.mxu0 }
 0x529   : > { %v17816_v54 = vadd.f32 %v13281_v2, %v13245_v6 }
 0x52a   : > { %v5386_v38 = vpop.f32.mrf.mxu1  ;;  %v13332_v59 = vpop.f32.mrf.mxu0 }
 0x52b   : > { %v17818_v51 = vadd.f32 %v5687_v13, %v5386_v38 }
 0x52c   : > { %v13248_v26 = vpop.f32.mrf.mxu1  ;;  %13463 = vmatmul.mubr.msk.bf16.gmra.mxu1 %vm1388_vm11, %v11951_v62  ;;  %v17827_v4 = vpop.f32.mrf.mxu0 }
 0x52d   : > { %v17821_v35 = vadd.f32 %v13284_v14, %v13248_v26  ;;  %13506 = vmatprep.mubr.msk.bf16.mxu1 %vm1388_vm11, %v17376_v7  ;;  %21361 = vst [vmem:[#allocation39_spill] sm:$0xff] %v17827_v4 }
 0x52e   : > { %v17825_v31 = vpop.f32.mrf.mxu1  ;;  %v13333_v55 = vpop.f32.mrf.mxu0 }
 0x530   : > { %v13249_v23 = vpop.f32.mrf.mxu1  ;;  %v6227_v13 = vpop.f32.mrf.mxu0 }
 0x531   : > { %v17829_v2 = vadd.f32 %v13285_v34, %v13249_v23 }
 0x532   : > { %v5402_v17 = vpop.f32.mrf.mxu1  ;;  %v13336_v14 = vpop.f32.mrf.mxu0 }
 0x533   : > { %v17831_v6 = vadd.f32 %v5703_v19, %v5402_v17 }
 0x534   : > { %v13292_v38 = vpop.f32.mrf.mxu1  ;;  %13507 = vmatmul.mubr.msk.bf16.vlgmr.msra.gmra.mxu1 %vm1388_vm11, %v17401_v52  ;;  %v17838_v26 = vpop.f32.mrf.mxu0 }
 0x535   : > { %v6119_v62 = vadd.f32 %v13292_v38, %v17681_v32  ;;  %13510 = vmatprep.mubr.msk.bf16.mxu1 %vm1388_vm11, %v17406_v16 }
 0x536   : > { %v5990_v7 = vpop.f32.mrf.mxu1  ;;  %v13337_v17 = vpop.f32.mrf.mxu0 }
 0x537   : > { %v17841_v34 = vadd.f32 %v5990_v7, %v17687_v48  ;;  %v17843_v23 = vadd.f32 %v13328_v44, %v6119_v62 }
 0x538   : > { %v13293_v19 = vpop.f32.mrf.mxu1  ;;  %v6243_v52 = vpop.f32.mrf.mxu0 }
 0x539   : > { %v6120_v25 = vadd.f32 %v13293_v19, %v17695_v1 }
 0x53a   : > { %v5993_v4 = vpop.f32.mrf.mxu1  ;;  %v13340_v16 = vpop.f32.mrf.mxu0 }
 0x53b   : > { %v6118_v5 = vadd.f32 %v5993_v4, %v17704_v33  ;;  %v17847_v32 = vadd.f32 %v13329_v9, %v6120_v25 }
 0x53c   : > { %v13296_v38 = vpop.f32.mrf.mxu1  ;;  %13511 = vmatmul.mubr.msk.bf16.gmra.mxu1 %vm1388_vm11, %v17428_v30  ;;  %v17856_v1 = vpop.f32.mrf.mxu0 }
 0x53d   : > { %v6123_v48 = vadd.f32 %v13296_v38, %v17708_v58  ;;  %13514 = vmatprep.mubr.msk.bf16.mxu1 %vm1388_vm11, %v17432_v56  ;;  %v17854_v44 = vadd.f32 %v6211_v29, %v6118_v5 }
 0x53e   : > { %v6006_v62 = vpop.f32.mrf.mxu1  ;;  %v13341_v9 = vpop.f32.mrf.mxu0 }
 0x53f   : > { %v17859_v7 = vadd.f32 %v6006_v62, %v17710_v11  ;;  %v17861_v25 = vadd.f32 %v13332_v59, %v6123_v48 }
 0x540   : > { %v13297_v33 = vpop.f32.mrf.mxu1  ;;  %v6259_v19 = vpop.f32.mrf.mxu0 }
 0x541   : > { %v6124_v30 = vadd.f32 %v13297_v33, %v17712_v49 }
 0x542   : > { %v6009_v4 = vpop.f32.mrf.mxu1  ;;  %v13344_v5 = vpop.f32.mrf.mxu0 }
 0x543   : > { %v6122_v58 = vadd.f32 %v6009_v4, %v17720_v60  ;;  %v17865_v38 = vadd.f32 %v13333_v55, %v6124_v30 }
 0x544   : > { %v13300_v56 = vpop.f32.mrf.mxu1  ;;  %13515 = vmatmul.mubr.msk.bf16.gmra.mxu1 %vm1388_vm11, %v17454_v39  ;;  %v17874_v49 = vpop.f32.mrf.mxu0 }
 0x545   : > { %v6127_v11 = vadd.f32 %v13300_v56, %v17724_v37  ;;  %13518 = vmatprep.mubr.msk.bf16.mxu1 %vm1388_vm11, %v17458_v42  ;;  %v17872_v29 = vadd.f32 %v6227_v13, %v6122_v58 }
 0x546   : > { %v6022_v59 = vpop.f32.mrf.mxu1  ;;  %v13345_v62 = vpop.f32.mrf.mxu0 }
 0x547   : > { %v17877_v48 = vadd.f32 %v6022_v59, %v17726_v22  ;;  %v17879_v60 = vadd.f32 %v13336_v14, %v6127_v11 }
 0x548   : > { %v13301_v55 = vpop.f32.mrf.mxu1  ;;  %v6275_v30 = vpop.f32.mrf.mxu0 }
 0x549   : > { %v6128_v39 = vadd.f32 %v13301_v55, %v17735_v28 }
 0x54a   : > { %v6025_v33 = vpop.f32.mrf.mxu1  ;;  %v13348_v13 = vpop.f32.mrf.mxu0 }
 0x54b   : > { %v6126_v37 = vadd.f32 %v6025_v33, %v17744_v24  ;;  %v17883_v4 = vadd.f32 %v13337_v17, %v6128_v39 }
 0x54c   : > { %v13304_v42 = vpop.f32.mrf.mxu1  ;;  %13519 = vmatmul.mubr.msk.bf16.gmra.mxu1 %vm1388_vm11, %v17480_v61  ;;  %v17892_v28 = vpop.f32.mrf.mxu0 }
 0x54d   : > { %v6131_v22 = vadd.f32 %v13304_v42, %v17746_v63  ;;  %13522 = vmatprep.mubr.msk.bf16.mxu1 %vm1388_vm11, %v17484_v8  ;;  %v17890_v14 = vadd.f32 %v6243_v52, %v6126_v37 }
 0x54e   : > { %v6038_v58 = vpop.f32.mrf.mxu1  ;;  %v13349_v11 = vpop.f32.mrf.mxu0 }
 0x54f   : > { %v17895_v56 = vadd.f32 %v6038_v58, %v17748_v27  ;;  %v17897_v24 = vadd.f32 %v13340_v16, %v6131_v22  ;;  %v5653_v27 = vadd.f32 %v17742_v15, %v17769_v46 }
 0x550   : > { %v13305_v17 = vpop.f32.mrf.mxu1  ;;  %v6291_v55 = vpop.f32.mrf.mxu0 }
 0x551   : > { %v6132_v61 = vadd.f32 %v13305_v17, %v17756_v47 }
 0x552   : > { %v6041_v59 = vpop.f32.mrf.mxu1  ;;  %v13352_v52 = vpop.f32.mrf.mxu0 }
 0x553   : > { %v6130_v63 = vadd.f32 %v6041_v59, %v17763_v43  ;;  %v17901_v39 = vadd.f32 %v13341_v9, %v6132_v61  ;;  %v5669_v61 = vadd.f32 %v17761_v45, %v17791_v50  ;;  %v21363_v59 = vld [vmem:[#allocation33_spill] sm:$0xff] }
 0x554   : > { %v13308_v8 = vpop.f32.mrf.mxu1  ;;  %13523 = vmatmul.mubr.msk.bf16.gmra.mxu1 %vm1388_vm11, %v17510_v20  ;;  %v17912_v37 = vpop.f32.mrf.mxu0 }
 0x555   : > { %v6135_v16 = vadd.f32 %v13308_v8, %v17765_v10  ;;  %13526 = vmatprep.mubr.msk.bf16.mxu1 %vm1388_vm11, %v17518_v12  ;;  %v17910_v47 = vadd.f32 %v6259_v19, %v6130_v63  ;;  %v21362_v19 = vld [vmem:[#allocation23_spill] sm:$0xff] }
 0x556   : > { %v6054_v33 = vpop.f32.mrf.mxu1  ;;  %v13353_v20 = vpop.f32.mrf.mxu0 }
 0x557   : > { %v17914_v43 = vadd.f32 %v6054_v33, %v5653_v27  ;;  %v17916_v9 = vadd.f32 %v13344_v5, %v6135_v16 }
 0x558   : > { %v13309_v42 = vpop.f32.mrf.mxu1  ;;  %v6307_v15 = vpop.f32.mrf.mxu0 }
 0x559   : > { %v6136_v22 = vadd.f32 %v13309_v42, %v17783_v41 }
 0x55a   : > { %v6057_v58 = vpop.f32.mrf.mxu1  ;;  %v13356_v17 = vpop.f32.mrf.mxu0 }
 0x55b   : > { %v6134_v10 = vadd.f32 %v6057_v58, %v17785_v53  ;;  %v17920_v46 = vadd.f32 %v13345_v62, %v6136_v22 }
 0x55c   : > { %v13312_v12 = vpop.f32.mrf.mxu1  ;;  %13527 = vmatmul.mubr.msk.bf16.gmra.mxu1 %vm1388_vm11, %v21362_v19  ;;  %v17931_v8 = vpop.f32.mrf.mxu0 }
 0x55d   : > { %v6139_v5 = vadd.f32 %v13312_v12, %v17787_v0  ;;  %13530 = vmatprep.mubr.msk.bf16.mxu1 %vm1388_vm11, %v21363_v59  ;;  %v17929_v41 = vadd.f32 %v6275_v30, %v6134_v10  ;;  %v21364_v30 = vld [vmem:[#allocation19_spill] sm:$0xff]  ;;  %v5685_v10 = vadd.f32 %v17781_v3, %v17810_v36  ;;  %v21365_v12 = vld [vmem:[#allocation24_spill] sm:$0xff] }
 0x55e   : > { %v6070_v63 = vpop.f32.mrf.mxu1  ;;  %v13357_v16 = vpop.f32.mrf.mxu0 }
 0x55f   : > { %v17933_v53 = vadd.f32 %v6070_v63, %v5669_v61  ;;  %v17935_v62 = vadd.f32 %v13348_v13, %v6139_v5 }
 0x560   : > { %v13313_v27 = vpop.f32.mrf.mxu1  ;;  %v6323_v45 = vpop.f32.mrf.mxu0 }
 0x561   : > { %v6140_v33 = vadd.f32 %v13313_v27, %v17800_v57 }
 0x562   : > { %v6073_v42 = vpop.f32.mrf.mxu1  ;;  %v13400_v58 = vpop.f32.mrf.mxu0 }
 0x563   : > { %v6138_v0 = vadd.f32 %v6073_v42, %v17802_v40  ;;  %v17939_v50 = vadd.f32 %v13349_v11, %v6140_v33  ;;  %v21366_v33 = vld [vmem:[#allocation27_spill] sm:$0xff] }
 0x564   : > { %v13316_v22 = vpop.f32.mrf.mxu1  ;;  %13531 = vmatmul.mubr.msk.bf16.gmra.mxu1 %vm1388_vm11, %v21364_v30  ;;  %v17950_v61 = vpop.f32.mrf.mxu0  ;;  %v21367_v42 = vld [vmem:[#allocation35_spill] sm:$0xff] }
 0x565   : > { %v6143_v13 = vadd.f32 %v13316_v22, %v17806_v18  ;;  %13534 = vmatprep.mubr.msk.bf16.mxu1 %vm1388_vm11, %v21365_v12  ;;  %v17948_v57 = vadd.f32 %v6291_v55, %v6138_v0  ;;  %v21368_v0 = vcombine.low %v21366_v33, %v21367_v42 }
 0x566   : > { %v6086_v19 = vpop.f32.mrf.mxu1  ;;  %v13401_v59 = vpop.f32.mrf.mxu0 }
 0x567   : > { %v17952_v40 = vadd.f32 %v6086_v19, %v5685_v10  ;;  %v17954_v11 = vadd.f32 %v13352_v52, %v6143_v13  ;;  %v5701_v52 = vadd.f32 %v17798_v21, %v17825_v31 }
 0x568   : > { %v13317_v5 = vpop.f32.mrf.mxu1  ;;  %v17957_v3 = vpop.f32.mrf.mxu0 }
 0x569   : > { %v6144_v63 = vadd.f32 %v13317_v5, %v17816_v54 }
 0x56a   : > { %v6089_v27 = vpop.f32.mrf.mxu1  ;;  %v13404_v22 = vpop.f32.mrf.mxu0 }
 0x56b   : > { %v6142_v18 = vadd.f32 %v6089_v27, %v17818_v51  ;;  %v17960_v36 = vadd.f32 %v13353_v20, %v6144_v63 }
 0x56c   : > { %v13320_v55 = vpop.f32.mrf.mxu1  ;;  %13535 = vmatmul.mubr.msk.bf16.gmra.mxu1 %vm1388_vm11, %v21368_v0  ;;  %v17971_v13 = vpop.f32.mrf.mxu0 }
 0x56d   : > { %v6147_v30 = vadd.f32 %v13320_v55, %v17821_v35  ;;  %v17969_v54 = vadd.f32 %v6307_v15, %v6142_v18  ;;  %v21369_v55 = vld [vmem:[#allocation22_spill] sm:$0xff] }
 0x56e   : > { %v6102_v10 = vpop.f32.mrf.mxu1  ;;  %v13405_v19 = vpop.f32.mrf.mxu0  ;;  %v6335_v33 = vadd.f32 %v21369_v55, %v17841_v34 }
 0x56f   : > { %v17973_v51 = vadd.f32 %v6102_v10, %v5701_v52  ;;  %v17975_v20 = vadd.f32 %v13356_v17, %v6147_v30 }
 0x570   : > { %v13321_v12 = vpop.f32.mrf.mxu1  ;;  %v17978_v27 = vpop.f32.mrf.mxu0 }
 0x571   : > { %v6148_v5 = vadd.f32 %v13321_v12, %v17829_v2 }
 0x572   : > { %v6105_v63 = vpop.f32.mrf.mxu1  ;;  %v13408_v15 = vpop.f32.mrf.mxu0 }
 0x573   : > { %v6146_v21 = vadd.f32 %v6105_v63, %v17831_v6  ;;  %v17981_v31 = vadd.f32 %v13357_v16, %v6148_v5  ;;  %v21371_v63 = vld [vmem:[#allocation39_spill] sm:$0xff] }
 0x574   : > { %v13364_v35 = vpop.f32.mrf.mxu1  ;;  %v17988_v0 = vpop.f32.mrf.mxu0 }
 0x575   : > { %v6577_v18 = vadd.f32 %v13364_v35, %v17843_v23  ;;  %v17986_v17 = vadd.f32 %v6323_v45, %v6146_v21  ;;  %v6339_v21 = vadd.f32 %v21371_v63, %v17859_v7  ;;  %v6343_v63 = vadd.f32 %v17838_v26, %v17877_v48 }
 0x576   : > { %v6448_v42 = vpop.f32.mrf.mxu1  ;;  %v13409_v6 = vpop.f32.mrf.mxu0  ;;  %v6347_v48 = vadd.f32 %v17856_v1, %v17895_v56  ;;  %v6351_v56 = vadd.f32 %v17874_v49, %v17914_v43  ;;  %v6355_v49 = vadd.f32 %v17892_v28, %v17933_v53  ;;  %v6359_v28 = vadd.f32 %v17912_v37, %v17952_v40 }
 0x577   : > { %21370 = vst [vmem:[#allocation37_spill] sm:$0xff] %v17986_v17  ;;  %v17990_v2 = vadd.f32 %v6448_v42, %v6335_v33  ;;  %v17992_v52 = vadd.f32 %v13400_v58, %v6577_v18  ;;  %v6363_v37 = vadd.f32 %v17931_v8, %v17973_v51 }
 0x578   : > { %v13365_v30 = vpop.f32.mrf.mxu1  ;;  %v17997_v12 = vpop.f32.mrf.mxu0 }
 0x579   : > { %v6578_v16 = vadd.f32 %v13365_v30, %v17847_v32  ;;  %v6799_v8 = vadd.f32 %v17950_v61, %v17990_v2 }
 0x57a   : > { %v17995_v10 = vpop.f32.mrf.mxu1  ;;  %v13412_v45 = vpop.f32.mrf.mxu0 }
 0x57b   : > { %v17999_v23 = vadd.f32 %v13401_v59, %v6578_v16 }
 0x57c   : > { %v13368_v34 = vpop.f32.mrf.mxu1  ;;  %v18004_v58 = vpop.f32.mrf.mxu0 }
 0x57d   : > { %v6581_v5 = vadd.f32 %v13368_v34, %v17861_v25 }
 0x57e   : > { %v6464_v35 = vpop.f32.mrf.mxu1  ;;  %v13413_v33 = vpop.f32.mrf.mxu0 }
 0x57f   : > { %v18006_v18 = vadd.f32 %v6464_v35, %v6339_v21  ;;  %v18008_v55 = vadd.f32 %v13404_v22, %v6581_v5 }
 0x580   : > { %v13369_v32 = vpop.f32.mrf.mxu1  ;;  %v18013_v30 = vpop.f32.mrf.mxu0 }
 0x581   : > { %v6582_v42 = vadd.f32 %v13369_v32, %v17865_v38  ;;  %21372 = vst [vmem:[#allocation38_spill] sm:$0xff] %v18013_v30 }
 0x582   : > { %v18011_v59 = vpop.f32.mrf.mxu1  ;;  %v13416_v34 = vpop.f32.mrf.mxu0 }
 0x583   : > { %v18015_v16 = vadd.f32 %v13405_v19, %v6582_v42 }
 0x584   : > { %v13372_v25 = vpop.f32.mrf.mxu1  ;;  %v18020_v22 = vpop.f32.mrf.mxu0 }
 0x585   : > { %v6585_v7 = vadd.f32 %v13372_v25, %v17879_v60  ;;  %21373 = vst [vmem:[#allocation25_spill] sm:$0xff] %v18020_v22 }
 0x586   : > { %v6480_v21 = vpop.f32.mrf.mxu1  ;;  %v13417_v32 = vpop.f32.mrf.mxu0 }
 0x587   : > { %v18022_v5 = vadd.f32 %v6480_v21, %v6343_v63  ;;  %v18024_v35 = vadd.f32 %v13408_v15, %v6585_v7 }
 0x588   : > { %v13373_v38 = vpop.f32.mrf.mxu1  ;;  %v18029_v42 = vpop.f32.mrf.mxu0 }
 0x589   : > { %v6586_v17 = vadd.f32 %v13373_v38, %v17883_v4  ;;  %21374 = vst [vmem:[#allocation40_spill] sm:$0xff] %v18029_v42 }
 0x58a   : > { %v18027_v19 = vpop.f32.mrf.mxu1  ;;  %v13420_v25 = vpop.f32.mrf.mxu0 }
 0x58b   : > { %v18031_v30 = vadd.f32 %v13409_v6, %v6586_v17 }
 0x58c   : > { %v13376_v60 = vpop.f32.mrf.mxu1  ;;  %v18036_v15 = vpop.f32.mrf.mxu0 }
 0x58d   : > { %v6589_v26 = vadd.f32 %v13376_v60, %v17897_v24  ;;  %21375 = vst [vmem:[#allocation20_spill] sm:$0xff] %v18036_v15 }
 0x58e   : > { %v6496_v63 = vpop.f32.mrf.mxu1  ;;  %v13421_v38 = vpop.f32.mrf.mxu0 }
 0x58f   : > { %v18038_v7 = vadd.f32 %v6496_v63, %v6347_v48  ;;  %v18040_v21 = vadd.f32 %v13412_v45, %v6589_v26 }
 0x590   : > { %v13377_v4 = vpop.f32.mrf.mxu1  ;;  %v18045_v6 = vpop.f32.mrf.mxu0 }
 0x591   : > { %v6590_v42 = vadd.f32 %v13377_v4, %v17901_v39  ;;  %21376 = vst [vmem:[#allocation46_spill] sm:$0xff] %v18045_v6 }
 0x592   : > { %v18043_v17 = vpop.f32.mrf.mxu1  ;;  %v13424_v60 = vpop.f32.mrf.mxu0 }
 0x593   : > { %v18047_v22 = vadd.f32 %v13413_v33, %v6590_v42 }
 0x594   : > { %v13380_v24 = vpop.f32.mrf.mxu1  ;;  %v18056_v39 = vpop.f32.mrf.mxu0 }
 0x595   : > { %v6593_v1 = vadd.f32 %v13380_v24, %v17916_v9 }
 0x596   : > { %v6512_v48 = vpop.f32.mrf.mxu1  ;;  %v13425_v15 = vpop.f32.mrf.mxu0 }
 0x597   : > { %v18052_v45 = vadd.f32 %v6512_v48, %v6351_v56  ;;  %v18054_v26 = vadd.f32 %v13416_v34, %v6593_v1 }
 0x598   : > { %v13381_v63 = vpop.f32.mrf.mxu1  ;;  %v18070_v56 = vpop.f32.mrf.mxu0 }
 0x599   : > { %v6594_v4 = vadd.f32 %v13381_v63, %v17920_v46 }
 0x59a   : > { %v18059_v6 = vpop.f32.mrf.mxu1  ;;  %v13428_v63 = vpop.f32.mrf.mxu0 }
 0x59b   : > { %v18061_v33 = vadd.f32 %v13417_v32, %v6594_v4 }
 0x59c   : > { %v13384_v42 = vpop.f32.mrf.mxu1 }
 0x59d   : > { %v6597_v9 = vadd.f32 %v13384_v42, %v17935_v62 }
 0x59e   : > { %v6528_v43 = vpop.f32.mrf.mxu1 }
 0x59f   : > { %v18066_v24 = vadd.f32 %v6528_v43, %v6355_v49  ;;  %v18068_v34 = vadd.f32 %v13420_v25, %v6597_v9  ;;  %v18084_v9 = vpop.f32.mrf.mxu0 }
 0x5a0   : > { %v13385_v1 = vpop.f32.mrf.mxu1 }
 0x5a1   : > { %v6598_v46 = vadd.f32 %v13385_v1, %v17939_v50  ;;  %v13429_v1 = vpop.f32.mrf.mxu0 }
 0x5a2   : > { %v18073_v48 = vpop.f32.mrf.mxu1 }
 0x5a3   : > { %v18075_v32 = vadd.f32 %v13421_v38, %v6598_v46 }
 0x5a4   : > { %v13388_v4 = vpop.f32.mrf.mxu1 }
 0x5a5   : > { %v6601_v62 = vadd.f32 %v13388_v4, %v17954_v11 }
 0x5a6   : > { %v6544_v53 = vpop.f32.mrf.mxu1 }
 0x5a7   : > { %v18080_v42 = vadd.f32 %v6544_v53, %v6359_v28  ;;  %v18082_v25 = vadd.f32 %v13424_v60, %v6601_v62  ;;  %v18098_v62 = vpop.f32.mrf.mxu0 }
 0x5a8   : > { %v13389_v49 = vpop.f32.mrf.mxu1  ;;  %21377 = vst [vmem:[#allocation18_spill] sm:$0xff] %v18098_v62 }
 0x5a9   : > { %v6602_v50 = vadd.f32 %v13389_v49, %v17960_v36  ;;  %v18105_v49 = vpop.f32.mrf.mxu0 }
 0x5aa   : > { %v18087_v43 = vpop.f32.mrf.mxu1 }
 0x5ab   : > { %v18089_v38 = vadd.f32 %v13425_v15, %v6602_v50 }
 0x5ac   : > { %v13392_v46 = vpop.f32.mrf.mxu1 }
 0x5ad   : > { %v6605_v11 = vadd.f32 %v13392_v46, %v17975_v20  ;;  %v18114_v46 = vpop.f32.mrf.mxu0 }
 0x5ae   : > { %v6560_v40 = vpop.f32.mrf.mxu1 }
 0x5af   : > { %v18094_v4 = vadd.f32 %v6560_v40, %v6363_v37  ;;  %v18096_v60 = vadd.f32 %v13428_v63, %v6605_v11  ;;  %v18121_v37 = vpop.f32.mrf.mxu0 }
 0x5b0   : > { %v13393_v28 = vpop.f32.mrf.mxu1 }
 0x5b1   : > { %v6606_v36 = vadd.f32 %v13393_v28, %v17981_v31  ;;  %v18128_v61 = vpop.f32.mrf.mxu0 }
 0x5b2   : > { %v18101_v53 = vpop.f32.mrf.mxu1 }
 0x5b3   : > { %v18103_v15 = vadd.f32 %v13429_v1, %v6606_v36 }
 0x5b4   : > { %v13436_v20 = vpop.f32.mrf.mxu1 }
 0x5b5   : > { %v18108_v50 = vadd.f32 %v13436_v20, %v17992_v52 }
 0x5b6   : > { %v6890_v51 = vpop.f32.mrf.mxu1 }
 0x5b7   : > { %v18112_v63 = vadd.f32 %v6890_v51, %v6799_v8 }
 0x5b8   : > { %v13437_v11 = vpop.f32.mrf.mxu1 }
 0x5b9   : > { %v18117_v31 = vadd.f32 %v13437_v11, %v17999_v23  ;;  %v18135_v23 = vpop.f32.mrf.mxu0 }
 0x5ba   : > { %v18119_v1 = vpop.f32.mrf.mxu1  ;;  %21380 = vst [vmem:[#allocation47_spill] sm:$0xff] %v18135_v23 }
 0x5bc   : > { %v13440_v40 = vpop.f32.mrf.mxu1 }
 0x5bd   : > { %v18124_v52 = vadd.f32 %v13440_v40, %v18008_v55  ;;  %v18142_v55 = vpop.f32.mrf.mxu0 }
 0x5be   : > { %v18126_v28 = vpop.f32.mrf.mxu1  ;;  %21382 = vst [vmem:[#allocation50_spill] sm:$0xff] %v18142_v55 }
 0x5bf   : > { %21378 = vst [vmem:[#allocation43_spill] sm:$0xff] %v18124_v52 }
 0x5c0   : > { %v13441_v2 = vpop.f32.mrf.mxu1 }
 0x5c1   : > { %v18131_v36 = vadd.f32 %v13441_v2, %v18015_v16  ;;  %v18149_v16 = vpop.f32.mrf.mxu0 }
 0x5c2   : > { %v18133_v20 = vpop.f32.mrf.mxu1  ;;  %21384 = vst [vmem:[#allocation52_spill] sm:$0xff] %v18149_v16 }
 0x5c3   : > { %21379 = vst [vmem:[#allocation21_spill] sm:$0xff] %v18131_v36 }
 0x5c4   : > { %v13444_v8 = vpop.f32.mrf.mxu1 }
 0x5c5   : > { %v18138_v51 = vadd.f32 %v13444_v8, %v18024_v35  ;;  %v18156_v35 = vpop.f32.mrf.mxu0 }
 0x5c6   : > { %v18140_v11 = vpop.f32.mrf.mxu1  ;;  %21386 = vst [vmem:[#allocation26_spill] sm:$0xff] %v18156_v35 }
 0x5c7   : > { %21381 = vst [vmem:[#allocation41_spill] sm:$0xff] %v18138_v51 }
 0x5c8   : > { %v13445_v40 = vpop.f32.mrf.mxu1 }
 0x5c9   : > { %v18145_v52 = vadd.f32 %v13445_v40, %v18031_v30  ;;  %v18163_v30 = vpop.f32.mrf.mxu0 }
 0x5ca   : > { %v18147_v62 = vpop.f32.mrf.mxu1 }
 0x5cb   : > { %21383 = vst [vmem:[#allocation44_spill] sm:$0xff] %v18145_v52 }
 0x5cc   : > { %v13448_v2 = vpop.f32.mrf.mxu1 }
 0x5cd   : > { %v18152_v36 = vadd.f32 %v13448_v2, %v18040_v21  ;;  %v18170_v21 = vpop.f32.mrf.mxu0 }
 0x5ce   : > { %v18154_v23 = vpop.f32.mrf.mxu1 }
 0x5cf   : > { %21385 = vst [vmem:[#allocation48_spill] sm:$0xff] %v18152_v36 }
 0x5d0   : > { %v13449_v8 = vpop.f32.mrf.mxu1 }
 0x5d1   : > { %v18159_v51 = vadd.f32 %v13449_v8, %v18047_v22  ;;  %v18177_v22 = vpop.f32.mrf.mxu0 }
 0x5d2   : > { %v18161_v55 = vpop.f32.mrf.mxu1 }
 0x5d3   : > { %21387 = vst [vmem:[#allocation31_spill] sm:$0xff] %v18159_v51  ;;  %21388 = vst [vmem:[#allocation29_spill] sm:$0xff] %v18161_v55 }
 0x5d4   : > { %v13452_v40 = vpop.f32.mrf.mxu1 }
 0x5d5   : > { %v18166_v52 = vadd.f32 %v13452_v40, %v18054_v26  ;;  %v18184_v26 = vpop.f32.mrf.mxu0 }
 0x5d6   : > { %v18168_v16 = vpop.f32.mrf.mxu1 }
 0x5d7   : > { %21389 = vst [vmem:[#allocation34_spill] sm:$0xff] %v18166_v52  ;;  %21390 = vst [vmem:[#allocation30_spill] sm:$0xff] %v18168_v16 }
 0x5d8   : > { %v13453_v2 = vpop.f32.mrf.mxu1 }
 0x5d9   : > { %v18173_v36 = vadd.f32 %v13453_v2, %v18061_v33  ;;  %v18191_v33 = vpop.f32.mrf.mxu0 }
 0x5da   : > { %v18175_v35 = vpop.f32.mrf.mxu1 }
 0x5db   : > { %21391 = vst [vmem:[#allocation36_spill] sm:$0xff] %v18173_v36  ;;  %21392 = vst [vmem:[#allocation17_spill] sm:$0xff] %v18175_v35 }
 0x5dc   : > { %v13456_v8 = vpop.f32.mrf.mxu1 }
 0x5dd   : > { %v18180_v51 = vadd.f32 %v13456_v8, %v18068_v34  ;;  %v18198_v34 = vpop.f32.mrf.mxu0 }
 0x5de   : > { %v18182_v55 = vpop.f32.mrf.mxu1 }
 0x5df   : > { %21393 = vst [vmem:[#allocation42_spill] sm:$0xff] %v18180_v51  ;;  %21394 = vst [vmem:[#allocation45_spill] sm:$0xff] %v18182_v55 }
 0x5e0   : > { %v13457_v40 = vpop.f32.mrf.mxu1 }
 0x5e1   : > { %v18187_v52 = vadd.f32 %v13457_v40, %v18075_v32  ;;  %v18205_v32 = vpop.f32.mrf.mxu0 }
 0x5e2   : > { %v18189_v16 = vpop.f32.mrf.mxu1 }
 0x5e3   : > { %21395 = vst [vmem:[#allocation49_spill] sm:$0xff] %v18187_v52  ;;  %21396 = vst [vmem:[#allocation51_spill] sm:$0xff] %v18189_v16 }
 0x5e4   : > { %v13460_v2 = vpop.f32.mrf.mxu1 }
 0x5e5   : > { %v18194_v36 = vadd.f32 %v13460_v2, %v18082_v25  ;;  %v6576_v25 = vadd.f32 %v17995_v10, %v17854_v44  ;;  %v6580_v2 = vadd.f32 %v18011_v59, %v17872_v29  ;;  %v6596_v44 = vadd.f32 %v18073_v48, %v17948_v57  ;;  %v21403_v48 = vld [vmem:[#allocation20_spill] sm:$0xff] }
 0x5e6   : > { %v18196_v35 = vpop.f32.mrf.mxu1  ;;  %v6600_v57 = vadd.f32 %v18087_v43, %v17969_v54  ;;  %v7259_v54 = vadd.f32 %v18105_v49, %v18108_v50  ;;  %v21404_v43 = vld [vmem:[#allocation37_spill] sm:$0xff]  ;;  %v7260_v49 = vadd.f32 %v18121_v37, %v18117_v31 }
 0x5e7   : > { %v6800_v29 = vadd.f32 %v17957_v3, %v6576_v25  ;;  %v6804_v10 = vadd.f32 %v17978_v27, %v6580_v2  ;;  %v21400_v3 = vld [vmem:[#allocation38_spill] sm:$0xff]  ;;  %v7257_v27 = vadd.f32 %v18114_v46, %v18112_v63 }
 0x5e8   : > { %v13461_v8 = vpop.f32.mrf.mxu1  ;;  %v18277_v2 = vadd.f32 %v18070_v56, %v6600_v57  ;;  %v21406_v56 = vld [vmem:[#allocation18_spill] sm:$0xff] }
 0x5e9   : > { %v18201_v51 = vadd.f32 %v13461_v8, %v18089_v38  ;;  %v6584_v38 = vadd.f32 %v18027_v19, %v17890_v14  ;;  %v18218_v8 = vpop.f32.mrf.mxu0  ;;  %v6803_v14 = vadd.f32 %v17971_v13, %v18006_v18  ;;  %v21401_v13 = vld [vmem:[#allocation25_spill] sm:$0xff] }
 0x5ea   : > { %v18203_v55 = vpop.f32.mrf.mxu1  ;;  %v6815_v18 = vadd.f32 %v21401_v13, %v18052_v45 }
 0x5eb   : > { %21397 = vst [vmem:[#allocation53_spill] sm:$0xff] %v18201_v51  ;;  %21398 = vst [vmem:[#allocation23_spill] sm:$0xff] %v18203_v55  ;;  %v6588_v55 = vadd.f32 %v18043_v17, %v17910_v47  ;;  %v6807_v47 = vadd.f32 %v17988_v0, %v18022_v5  ;;  %v6808_v59 = vadd.f32 %v17997_v12, %v6584_v38  ;;  %v18238_v19 = vpop.f32.mrf.mxu0  ;;  %v21402_v12 = vld [vmem:[#allocation40_spill] sm:$0xff] }
 0x5ec   : > { %v13464_v40 = vpop.f32.mrf.mxu1  ;;  %v7018_v0 = vadd.f32 %v18119_v1, %v6800_v29  ;;  %v7021_v45 = vadd.f32 %v18126_v28, %v6803_v14  ;;  %v7022_v1 = vadd.f32 %v18133_v20, %v6804_v10  ;;  %v18281_v20 = vadd.f32 %v18084_v9, %v18094_v4  ;;  %v21408_v9 = vld [vmem:[#allocation47_spill] sm:$0xff]  ;;  %v21410_v14 = vld [vmem:[#allocation21_spill] sm:$0xff]  ;;  %v21411_v10 = vld [vmem:[#allocation52_spill] sm:$0xff] }
 0x5ed   : > { %v18208_v52 = vadd.f32 %v13464_v40, %v18096_v60  ;;  %v6592_v40 = vadd.f32 %v18059_v6, %v17929_v41  ;;  %v6811_v41 = vadd.f32 %v18004_v58, %v18038_v7  ;;  %v6812_v6 = vadd.f32 %v21400_v3, %v6588_v55  ;;  %v18266_v55 = vpop.f32.mrf.mxu0  ;;  %v21413_v3 = vld [vmem:[#allocation41_spill] sm:$0xff] }
 0x5ee   : > { %v18210_v16 = vpop.f32.mrf.mxu1  ;;  %v18255_v58 = vadd.f32 %v21403_v48, %v18066_v24  ;;  %v18270_v24 = vadd.f32 %v18056_v39, %v18080_v42  ;;  %v7026_v28 = vadd.f32 %v18147_v62, %v6808_v59  ;;  %v18286_v39 = vld [vmem:[%s20881_s2 + $0x1] ss:$0 sm:$0xff]  ;;  %v7258_v62 = vadd.f32 %v18128_v61, %v7018_v0  ;;  %v21414_v0 = vld [vmem:[#allocation44_spill] sm:$0xff] }
 0x5ef   : > { %21399 = vst [vmem:[#allocation33_spill] sm:$0xff] %v18208_v52  ;;  %v18251_v5 = vadd.f32 %v21402_v12, %v6592_v40  ;;  %v7029_v42 = vadd.f32 %v18154_v23, %v6811_v41  ;;  %v21407_v40 = vld [vmem:[#allocation43_spill] sm:$0xff]  ;;  %v18301_v59 = vpop.f32.mrf.mxu0  ;;  %v21412_v61 = vld [vmem:[#allocation26_spill] sm:$0xff]  ;;  %v7267_v13 = vadd.f32 %v18163_v30, %v21413_v3  ;;  %v18312_v12 = vadd.f32 %v18177_v22, %v21414_v0 }
 0x5f0   : > { %v13465_v51 = vpop.f32.mrf.mxu1  ;;  %v7263_v4 = vadd.f32 %v21408_v9, %v21407_v40  ;;  %v7262_v57 = vadd.f32 %v21412_v61, %v7022_v1  ;;  %v18315_v48 = vadd.f32 %v18184_v26, %v7026_v28  ;;  %v21417_v1 = vld [vmem:[#allocation31_spill] sm:$0xff]  ;;  %v21418_v28 = vld [vmem:[#allocation30_spill] sm:$0xff] }
 0x5f1   : > { %v18223_v60 = vadd.f32 %v13465_v51, %v18103_v15  ;;  %v6604_v15 = vadd.f32 %v18101_v53, %v21404_v43  ;;  %v21405_v51 = vld [vmem:[#allocation46_spill] sm:$0xff]  ;;  %v7025_v53 = vadd.f32 %v18140_v11, %v6807_v47  ;;  %v7264_v47 = vadd.f32 %v21411_v10, %v21410_v14 }
 0x5f2   : > { %v18227_v52 = vpop.f32.mrf.mxu1  ;;  %v18263_v63 = vadd.f32 %v21405_v51, %v6596_v44  ;;  %v21409_v44 = vld [vmem:[#allocation50_spill] sm:$0xff]  ;;  %v18330_v22 = vadd.f32 %v18198_v34, %v7029_v42  ;;  %v7033_v42 = vadd.f32 %v21418_v28, %v6815_v18 }
 0x5f3   : > { %v18294_v38 = vadd.f32 %v21406_v56, %v6604_v15  ;;  %v7261_v29 = vadd.f32 %v21409_v44, %v7021_v45  ;;  %v21416_v45 = vld [vmem:[#allocation29_spill] sm:$0xff] }
 0x5f4   : > { %v13508_v17 = vpop.f32.mrf.mxu1  ;;  %v7030_v26 = vadd.f32 %v21416_v45, %v6812_v6 }
 0x5f5   : > { %v7483_v25 = vadd.f32 %v13508_v17, %v7259_v54  ;;  %v21415_v54 = vld [vmem:[#allocation48_spill] sm:$0xff] }
 0x5f6   : > { %v7354_v7 = vpop.f32.mrf.mxu1  ;;  %v18361_v14 = vadd.f32 %v18218_v8, %v7030_v26  ;;  %v18375_v8 = vadd.f32 %v18266_v55, %v7033_v42 }
 0x5f7   : > { %v7481_v46 = vadd.f32 %v7354_v7, %v7257_v27  ;;  %v18304_v23 = vadd.f32 %v18286_v39, %v7483_v25  ;;  %v7265_v27 = vadd.f32 %v18170_v21, %v7025_v53  ;;  %v18319_v7 = vadd.f32 %v18191_v33, %v21415_v54  ;;  %v18337_v25 = vpop.f32.mrf.mxu0 }
 0x5f8   : > { %v13509_v50 = vpop.f32.mrf.mxu1  ;;  %v18335_v33 = vadd.f32 %v18205_v32, %v21417_v1 }
 0x5f9   : > { %v18290_v31 = vadd.f32 %v18286_v39, %v7481_v46  ;;  %v7484_v37 = vadd.f32 %v13509_v50, %v7260_v49  ;;  %v7621_v49 = vmul.f32 %v18304_v23, %v18304_v23  ;;  %v7553_v32 = vsel %vm1388_vm11, %v18304_v23, 0.0  ;;  %v18363_v10 = vpop.f32.mrf.mxu0 }
 0x5fa   : > { %v7357_v11 = vpop.f32.mrf.mxu1 }
 0x5fb   : > { %v7482_v41 = vadd.f32 %v7357_v11, %v7258_v62  ;;  %v7619_v43 = vmul.f32 %v18290_v31, %v18290_v31  ;;  %v18324_v15 = vadd.f32 %v18286_v39, %v7484_v37  ;;  %v7550_v50 = vsel %vm1388_vm11, %v18290_v31, 0.0  ;;  %v7210_v55 = vpop.f32.mrf.mxu0 }
 0x5fc   : > { %v13512_v17 = vpop.f32.mrf.mxu1 }
 0x5fd   : > { %v18327_v30 = vadd.f32 %v18286_v39, %v7482_v41  ;;  %v7487_v51 = vadd.f32 %v13512_v17, %v7263_v4  ;;  %v7651_v11 = vsel %vm1388_vm11, %v7619_v43, 0.0  ;;  %v7622_v56 = vmul.f32 %v18324_v15, %v18324_v15  ;;  %v21419_v43 = vld [vmem:[#allocation34_spill] sm:$0xff] }
 0x5fe   : > { %v7370_v21 = vpop.f32.mrf.mxu1  ;;  %v7654_v41 = vsel %vm1388_vm11, %v7621_v49, 0.0  ;;  %v7555_v17 = vsel %vm1388_vm11, %v18324_v15, 0.0 }
 0x5ff   : > { %v7485_v46 = vadd.f32 %v7370_v21, %v7261_v29  ;;  %v7551_v34 = vsel %vm1388_vm11, %v18327_v30, 0.0  ;;  %v7620_v6 = vmul.f32 %v18327_v30, %v18327_v30  ;;  %v18358_v18 = vadd.f32 %v18286_v39, %v7487_v51 }
 0x600   : > { %v13513_v53 = vpop.f32.mrf.mxu1  ;;  %v7552_v37 = vadd.f32 %v7551_v34, %v7550_v50  ;;  %v18372_v21 = vadd.f32 %v18238_v19, %v21419_v43  ;;  %v7656_v45 = vsel %vm1388_vm11, %v7622_v56, 0.0 }
 0x601   : > { %v18351_v62 = vadd.f32 %v18286_v39, %v7485_v46  ;;  %v7652_v40 = vsel %vm1388_vm11, %v7620_v6, 0.0  ;;  %v7488_v9 = vadd.f32 %v13513_v53, %v7264_v47  ;;  %v7625_v1 = vmul.f32 %v18358_v18, %v18358_v18 }
 0x602   : > { %v7373_v4 = vpop.f32.mrf.mxu1  ;;  %v7554_v44 = vadd.f32 %v7553_v32, %v7552_v37  ;;  %v7653_v29 = vadd.f32 %v7652_v40, %v7651_v11  ;;  %v21420_v32 = vld [vmem:[#allocation17_spill] sm:$0xff]  ;;  %v7561_v11 = vsel %vm1388_vm11, %v18358_v18, 0.0 }
 0x603   : > { %v7623_v61 = vmul.f32 %v18351_v62, %v18351_v62  ;;  %v7486_v47 = vadd.f32 %v7373_v4, %v7262_v57  ;;  %v7557_v26 = vsel %vm1388_vm11, %v18351_v62, 0.0  ;;  %v18381_v51 = vadd.f32 %v18286_v39, %v7488_v9 }
 0x604   : > { %v13516_v3 = vpop.f32.mrf.mxu1  ;;  %v7655_v0 = vadd.f32 %v7654_v41, %v7653_v29  ;;  %v7556_v54 = vadd.f32 %v7555_v17, %v7554_v44  ;;  %v7034_v37 = vadd.f32 %v21420_v32, %v18251_v5  ;;  %v21421_v17 = vld [vmem:[#allocation36_spill] sm:$0xff] }
 0x605   : > { %v18384_v57 = vadd.f32 %v18286_v39, %v7486_v47  ;;  %v7658_v34 = vsel %vm1388_vm11, %v7623_v61, 0.0  ;;  %v7491_v28 = vadd.f32 %v13516_v3, %v7267_v13  ;;  %v18407_v61 = vadd.f32 %v18301_v59, %v21421_v17  ;;  %v13493_v47 = vpop.f32.mrf.mxu0 }
 0x606   : > { %v7386_v46 = vpop.f32.mrf.mxu1  ;;  %v7558_v19 = vadd.f32 %v7557_v26, %v7556_v54  ;;  %v7657_v49 = vadd.f32 %v7656_v45, %v7655_v0  ;;  %v7662_v3 = vsel %vm1388_vm11, %v7625_v1, 0.0  ;;  %v7563_v0 = vsel %vm1388_vm11, %v18381_v51, 0.0 }
 0x607   : > { %v7489_v50 = vadd.f32 %v7386_v46, %v7265_v27  ;;  %v7559_v6 = vsel %vm1388_vm11, %v18384_v57, 0.0  ;;  %v7624_v53 = vmul.f32 %v18384_v57, %v18384_v57  ;;  %v7626_v27 = vmul.f32 %v18381_v51, %v18381_v51  ;;  %v21422_v46 = vld [vmem:[#allocation45_spill] sm:$0xff] }
 0x608   : > { %v13517_v42 = vpop.f32.mrf.mxu1  ;;  %v7659_v56 = vadd.f32 %v7658_v34, %v7657_v49  ;;  %v7560_v40 = vadd.f32 %v7559_v6, %v7558_v19  ;;  %v18413_v54 = vadd.f32 %v18286_v39, %v7491_v28  ;;  %v18421_v59 = vadd.f32 %v18337_v25, %v7034_v37 }
 0x609   : > { %v7660_v9 = vsel %vm1388_vm11, %v7624_v53, 0.0  ;;  %v18401_v4 = vadd.f32 %v18286_v39, %v7489_v50  ;;  %v7492_v44 = vadd.f32 %v13517_v42, %v18312_v12  ;;  %v7037_v1 = vadd.f32 %v21422_v46, %v18255_v58  ;;  %v7213_v42 = vpop.f32.mrf.mxu0 }
 0x60a   : > { %v7389_v13 = vpop.f32.mrf.mxu1  ;;  %v7562_v29 = vadd.f32 %v7561_v11, %v7560_v40  ;;  %v7661_v41 = vadd.f32 %v7660_v9, %v7659_v56  ;;  %v7664_v19 = vsel %vm1388_vm11, %v7626_v27, 0.0  ;;  %v7629_v58 = vmul.f32 %v18413_v54, %v18413_v54 }
 0x60b   : > { %v7490_v5 = vadd.f32 %v7389_v13, %v18315_v48  ;;  %v7627_v12 = vmul.f32 %v18401_v4, %v18401_v4  ;;  %v7565_v49 = vsel %vm1388_vm11, %v18401_v4, 0.0  ;;  %v18429_v50 = vadd.f32 %v18286_v39, %v7492_v44  ;;  %v21423_v44 = vld [vmem:[#allocation42_spill] sm:$0xff] }
 0x60c   : > { %v13520_v43 = vpop.f32.mrf.mxu1  ;;  %v7663_v45 = vadd.f32 %v7662_v3, %v7661_v41  ;;  %v7564_v26 = vadd.f32 %v7563_v0, %v7562_v29  ;;  %v18443_v13 = vadd.f32 %v18363_v10, %v21423_v44  ;;  %v7569_v29 = vsel %vm1388_vm11, %v18413_v54, 0.0 }
 0x60d   : > { %v18418_v48 = vadd.f32 %v18286_v39, %v7490_v5  ;;  %v7666_v32 = vsel %vm1388_vm11, %v7627_v12, 0.0  ;;  %v7495_v37 = vadd.f32 %v13520_v43, %v18319_v7  ;;  %v7630_v41 = vmul.f32 %v18429_v50, %v18429_v50  ;;  %v13496_v43 = vpop.f32.mrf.mxu0 }
 0x60e   : > { %v7402_v34 = vpop.f32.mrf.mxu1  ;;  %v7566_v6 = vadd.f32 %v7565_v49, %v7564_v26  ;;  %v7665_v53 = vadd.f32 %v7664_v19, %v7663_v45  ;;  %v7277_v12 = vadd.f32 %v7210_v55, %v7037_v1  ;;  %v7670_v10 = vsel %vm1388_vm11, %v7629_v58, 0.0 }
 0x60f   : > { %v7567_v28 = vsel %vm1388_vm11, %v18418_v48, 0.0  ;;  %v7628_v25 = vmul.f32 %v18418_v48, %v18418_v48  ;;  %v7493_v11 = vadd.f32 %v7402_v34, %v18330_v22  ;;  %v7571_v45 = vsel %vm1388_vm11, %v18429_v50, 0.0 }
 0x610   : > { %v13521_v56 = vpop.f32.mrf.mxu1  ;;  %v7667_v40 = vadd.f32 %v7666_v32, %v7665_v53  ;;  %v7568_v27 = vadd.f32 %v7567_v28, %v7566_v6  ;;  %v18458_v26 = vadd.f32 %v18286_v39, %v7495_v37  ;;  %v7672_v1 = vsel %vm1388_vm11, %v7630_v41, 0.0 }
 0x611   : > { %v7668_v9 = vsel %vm1388_vm11, %v7628_v25, 0.0  ;;  %v18450_v5 = vadd.f32 %v18286_v39, %v7493_v11  ;;  %v7496_v7 = vadd.f32 %v13521_v56, %v18335_v33  ;;  %v21424_v33 = vld [vmem:[#allocation51_spill] sm:$0xff]  ;;  %v7226_v56 = vpop.f32.mrf.mxu0 }
 0x612   : > { %v7405_v22 = vpop.f32.mrf.mxu1  ;;  %v7570_v17 = vadd.f32 %v7569_v29, %v7568_v27  ;;  %v7669_v3 = vadd.f32 %v7668_v9, %v7667_v40  ;;  %v7038_v49 = vadd.f32 %v21424_v33, %v18263_v63  ;;  %v7041_v29 = vadd.f32 %v18196_v35, %v18270_v24 }
 0x613   : > { %v7494_v0 = vadd.f32 %v7405_v22, %v18361_v14  ;;  %v7631_v46 = vmul.f32 %v18450_v5, %v18450_v5  ;;  %v21425_v14 = vld [vmem:[#allocation49_spill] sm:$0xff]  ;;  %v7573_v53 = vsel %vm1388_vm11, %v18450_v5, 0.0  ;;  %v18469_v28 = vadd.f32 %v18286_v39, %v7496_v7 }
 0x614   : > { %v13524_v19 = vpop.f32.mrf.mxu1  ;;  %v7671_v34 = vadd.f32 %v7670_v10, %v7669_v3  ;;  %v7572_v6 = vadd.f32 %v7571_v45, %v7570_v17  ;;  %v7280_v55 = vadd.f32 %v13493_v47, %v21425_v14  ;;  %v7633_v47 = vmul.f32 %v18458_v26, %v18458_v26 }
 0x615   : > { %v18472_v25 = vadd.f32 %v18286_v39, %v7494_v0  ;;  %v7499_v63 = vadd.f32 %v13524_v19, %v18372_v21  ;;  %v7674_v40 = vsel %vm1388_vm11, %v7631_v46, 0.0  ;;  %v7577_v7 = vsel %vm1388_vm11, %v18458_v26, 0.0  ;;  %v13497_v46 = vpop.f32.mrf.mxu0 }
 0x616   : > { %v7418_v58 = vpop.f32.mrf.mxu1  ;;  %v7574_v32 = vadd.f32 %v7573_v53, %v7572_v6  ;;  %v7673_v37 = vadd.f32 %v7672_v1, %v7671_v34  ;;  %v7634_v22 = vmul.f32 %v18469_v28, %v18469_v28  ;;  %v7278_v24 = vadd.f32 %v7213_v42, %v7038_v49 }
 0x617   : > { %v7497_v11 = vadd.f32 %v7418_v58, %v18375_v8  ;;  %v7575_v27 = vsel %vm1388_vm11, %v18472_v25, 0.0  ;;  %v7632_v9 = vmul.f32 %v18472_v25, %v18472_v25  ;;  %v18495_v35 = vadd.f32 %v18286_v39, %v7499_v63 }
 0x618   : > { %v13525_v44 = vpop.f32.mrf.mxu1  ;;  %v7675_v41 = vadd.f32 %v7674_v40, %v7673_v37  ;;  %v7576_v21 = vadd.f32 %v7575_v27, %v7574_v32  ;;  %v7678_v19 = vsel %vm1388_vm11, %v7633_v47, 0.0  ;;  %v7579_v33 = vsel %vm1388_vm11, %v18469_v28, 0.0 }
 0x619   : > { %v18486_v8 = vadd.f32 %v18286_v39, %v7497_v11  ;;  %v7676_v17 = vsel %vm1388_vm11, %v7632_v9, 0.0  ;;  %v7500_v3 = vadd.f32 %v13525_v44, %v18407_v61  ;;  %v7283_v53 = vadd.f32 %v13496_v43, %v18194_v36  ;;  %v7229_v36 = vpop.f32.mrf.mxu0 }
 0x61a   : > { %v7421_v0 = vpop.f32.mrf.mxu1  ;;  %v7578_v10 = vadd.f32 %v7577_v7, %v7576_v21  ;;  %v7677_v45 = vadd.f32 %v7676_v17, %v7675_v41  ;;  %v7281_v58 = vadd.f32 %v7226_v56, %v7041_v29  ;;  %v7680_v32 = vsel %vm1388_vm11, %v7634_v22, 0.0  ;;  %v21426_v29 = vld [vmem:[#allocation23_spill] sm:$0xff] }
 0x61b   : > { %v7635_v34 = vmul.f32 %v18486_v8, %v18486_v8  ;;  %v7498_v6 = vadd.f32 %v7421_v0, %v18421_v59  ;;  %v7581_v42 = vsel %vm1388_vm11, %v18486_v8, 0.0  ;;  %v18508_v49 = vadd.f32 %v18286_v39, %v7500_v3  ;;  %v13500_v22 = vpop.f32.mrf.mxu0 }
 0x61c   : > { %v13528_v14 = vpop.f32.mrf.mxu1  ;;  %v7679_v61 = vadd.f32 %v7678_v19, %v7677_v45  ;;  %v7580_v1 = vadd.f32 %v7579_v33, %v7578_v10  ;;  %v7637_v59 = vmul.f32 %v18495_v35, %v18495_v35  ;;  %v7042_v41 = vadd.f32 %v21426_v29, %v18277_v2  ;;  %v21427_v2 = vld [vmem:[#allocation53_spill] sm:$0xff] }
 0x61d   : > { %v18511_v37 = vadd.f32 %v18286_v39, %v7498_v6  ;;  %v7682_v43 = vsel %vm1388_vm11, %v7635_v34, 0.0  ;;  %v7503_v9 = vadd.f32 %v13528_v14, %v18443_v13  ;;  %v7585_v21 = vsel %vm1388_vm11, %v18495_v35, 0.0 }
 0x61e   : > { %v7434_v63 = vpop.f32.mrf.mxu1  ;;  %v7582_v11 = vadd.f32 %v7581_v42, %v7580_v1  ;;  %v7681_v47 = vadd.f32 %v7680_v32, %v7679_v61  ;;  %v7638_v17 = vmul.f32 %v18508_v49, %v18508_v49  ;;  %v7284_v34 = vadd.f32 %v13497_v46, %v21427_v2 }
 0x61f   : > { %v7501_v40 = vadd.f32 %v7434_v63, %v7277_v12  ;;  %v7583_v56 = vsel %vm1388_vm11, %v18511_v37, 0.0  ;;  %v7636_v27 = vmul.f32 %v18511_v37, %v18511_v37  ;;  %v7686_v6 = vsel %vm1388_vm11, %v7637_v59, 0.0 }
 0x620   : > { %v13529_v44 = vpop.f32.mrf.mxu1  ;;  %v7683_v7 = vadd.f32 %v7682_v43, %v7681_v47  ;;  %v7584_v12 = vadd.f32 %v7583_v56, %v7582_v11  ;;  %v7587_v14 = vsel %vm1388_vm11, %v18508_v49, 0.0  ;;  %v18536_v61 = vadd.f32 %v18286_v39, %v7503_v9  ;;  %v7242_v11 = vpop.f32.mrf.mxu0 }
 0x621   : > { %v7684_v3 = vsel %vm1388_vm11, %v7636_v27, 0.0  ;;  %v18529_v0 = vadd.f32 %v18286_v39, %v7501_v40  ;;  %v7504_v10 = vadd.f32 %v13529_v44, %v7280_v55  ;;  %v7688_v46 = vsel %vm1388_vm11, %v7638_v17, 0.0 }
 0x622   : > { %v7437_v13 = vpop.f32.mrf.mxu1  ;;  %v7586_v45 = vadd.f32 %v7585_v21, %v7584_v12  ;;  %v7685_v19 = vadd.f32 %v7684_v3, %v7683_v7  ;;  %v7641_v29 = vmul.f32 %v18536_v61, %v18536_v61 }
 0x623   : > { %v7502_v33 = vadd.f32 %v7437_v13, %v7278_v24  ;;  %v7639_v1 = vmul.f32 %v18529_v0, %v18529_v0  ;;  %v7282_v24 = vadd.f32 %v7229_v36, %v7042_v41  ;;  %v7589_v59 = vsel %vm1388_vm11, %v18529_v0, 0.0  ;;  %v13501_v13 = vpop.f32.mrf.mxu0 }
 0x624   : > { %v13532_v32 = vpop.f32.mrf.mxu1  ;;  %v7687_v42 = vadd.f32 %v7686_v6, %v7685_v19  ;;  %v7588_v55 = vadd.f32 %v7587_v14, %v7586_v45  ;;  %v18547_v47 = vadd.f32 %v18286_v39, %v7504_v10  ;;  %v7045_v36 = vadd.f32 %v18210_v16, %v18281_v20 }
 0x625   : > { %v18541_v63 = vadd.f32 %v18286_v39, %v7502_v33  ;;  %v7507_v40 = vadd.f32 %v13532_v32, %v7283_v53  ;;  %v7690_v41 = vsel %vm1388_vm11, %v7639_v1, 0.0  ;;  %v21428_v53 = vld [vmem:[#allocation33_spill] sm:$0xff]  ;;  %v7593_v45 = vsel %vm1388_vm11, %v18536_v61, 0.0 }
 0x626   : > { %v7450_v43 = vpop.f32.mrf.mxu1  ;;  %v7590_v56 = vadd.f32 %v7589_v59, %v7588_v55  ;;  %v7689_v27 = vadd.f32 %v7688_v46, %v7687_v42  ;;  %v7287_v12 = vadd.f32 %v13500_v22, %v21428_v53  ;;  %v7642_v16 = vmul.f32 %v18547_v47, %v18547_v47 }
 0x627   : > { %v7591_v9 = vsel %vm1388_vm11, %v18541_v63, 0.0  ;;  %v7640_v44 = vmul.f32 %v18541_v63, %v18541_v63  ;;  %v7505_v21 = vadd.f32 %v7450_v43, %v7281_v58  ;;  %v18568_v22 = vadd.f32 %v18286_v39, %v7507_v40  ;;  %v7245_v40 = vpop.f32.mrf.mxu0 }
 0x628   : > { %v13533_v7 = vpop.f32.mrf.mxu1  ;;  %v7691_v17 = vadd.f32 %v7690_v41, %v7689_v27  ;;  %v7592_v3 = vadd.f32 %v7591_v9, %v7590_v56  ;;  %v7285_v14 = vadd.f32 %v7242_v11, %v7045_v36  ;;  %v7694_v1 = vsel %vm1388_vm11, %v7641_v29, 0.0 }
 0x629   : > { %v7692_v10 = vsel %vm1388_vm11, %v7640_v44, 0.0  ;;  %v18565_v20 = vadd.f32 %v18286_v39, %v7505_v21  ;;  %v7508_v19 = vadd.f32 %v13533_v7, %v7284_v34  ;;  %v7595_v32 = vsel %vm1388_vm11, %v18547_v47, 0.0 }
 0x62a   : > { %v7453_v33 = vpop.f32.mrf.mxu1  ;;  %v7594_v58 = vadd.f32 %v7593_v45, %v7592_v3  ;;  %v7693_v2 = vadd.f32 %v7692_v10, %v7691_v17  ;;  %v7046_v34 = vadd.f32 %v18227_v52, %v18294_v38  ;;  %v7288_v46 = vadd.f32 %v13501_v13, %v18223_v60 }
 0x62b   : > { %v7506_v6 = vadd.f32 %v7453_v33, %v7282_v24  ;;  %v7643_v42 = vmul.f32 %v18565_v20, %v18565_v20  ;;  %v7696_v24 = vsel %vm1388_vm11, %v7642_v16, 0.0  ;;  %v7597_v11 = vsel %vm1388_vm11, %v18565_v20, 0.0 }
 0x62c   : > { %v13536_v55 = vpop.f32.mrf.mxu1  ;;  %v7695_v59 = vadd.f32 %v7694_v1, %v7693_v2  ;;  %v7596_v43 = vadd.f32 %v7595_v32, %v7594_v58  ;;  %v18582_v56 = vadd.f32 %v18286_v39, %v7508_v19  ;;  %v7645_v52 = vmul.f32 %v18568_v22, %v18568_v22 }
 0x62d   : > { %v18585_v27 = vadd.f32 %v18286_v39, %v7506_v6  ;;  %v7698_v36 = vsel %vm1388_vm11, %v7643_v42, 0.0  ;;  %v7511_v21 = vadd.f32 %v13536_v55, %v7287_v12  ;;  %v7286_v53 = vadd.f32 %v7245_v40, %v7046_v34 }
 0x62e   : > { %v7466_v9 = vpop.f32.mrf.mxu1  ;;  %v7598_v38 = vadd.f32 %v7597_v11, %v7596_v43  ;;  %v7697_v60 = vadd.f32 %v7696_v24, %v7695_v59  ;;  %v7601_v13 = vsel %vm1388_vm11, %v18568_v22, 0.0  ;;  %v7646_v45 = vmul.f32 %v18582_v56, %v18582_v56 }
 0x62f   : > { %v7509_v44 = vadd.f32 %v7466_v9, %v7285_v14  ;;  %v7599_v29 = vsel %vm1388_vm11, %v18585_v27, 0.0  ;;  %v7644_v41 = vmul.f32 %v18585_v27, %v18585_v27  ;;  %v7702_v58 = vsel %vm1388_vm11, %v7645_v52, 0.0 }
 0x630   : > { %v13537_v7 = vpop.f32.mrf.mxu1  ;;  %v7699_v17 = vadd.f32 %v7698_v36, %v7697_v60  ;;  %v7600_v3 = vadd.f32 %v7599_v29, %v7598_v38  ;;  %v7603_v6 = vsel %vm1388_vm11, %v18582_v56, 0.0  ;;  %v18606_v14 = vadd.f32 %v18286_v39, %v7511_v21 }
 0x631   : > { %v18595_v10 = vadd.f32 %v18286_v39, %v7509_v44  ;;  %v7700_v16 = vsel %vm1388_vm11, %v7644_v41, 0.0  ;;  %v7512_v19 = vadd.f32 %v13537_v7, %v7288_v46  ;;  %v7704_v34 = vsel %vm1388_vm11, %v7646_v45, 0.0 }
 0x632   : > { %v7469_v33 = vpop.f32.mrf.mxu1  ;;  %v7602_v12 = vadd.f32 %v7601_v13, %v7600_v3  ;;  %v7701_v2 = vadd.f32 %v7700_v16, %v7699_v17  ;;  %v7649_v11 = vmul.f32 %v18606_v14, %v18606_v14  ;;  %v7609_v36 = vsel %vm1388_vm11, %v18606_v14, 0.0 }
 0x633   : > { %v7647_v1 = vmul.f32 %v18595_v10, %v18595_v10  ;;  %v7510_v32 = vadd.f32 %v7469_v33, %v7286_v53  ;;  %v7605_v46 = vsel %vm1388_vm11, %v18595_v10, 0.0  ;;  %v18614_v59 = vadd.f32 %v18286_v39, %v7512_v19 }
 0x634   : > { %v7703_v42 = vadd.f32 %v7702_v58, %v7701_v2  ;;  %v7604_v55 = vadd.f32 %v7603_v6, %v7602_v12  ;;  %v7710_v7 = vsel %vm1388_vm11, %v7649_v11, 0.0  ;;  %v8509_v11 = vld [vmem:[#allocation2] sm:$0xf] }
 0x635   : > { %v18617_v43 = vadd.f32 %v18286_v39, %v7510_v32  ;;  %v7706_v9 = vsel %vm1388_vm11, %v7647_v1, 0.0  ;;  %v7650_v39 = vmul.f32 %v18614_v59, %v18614_v59  ;;  %v7611_v53 = vsel %vm1388_vm11, %v18614_v59, 0.0 }
 0x636   : > { %v7606_v40 = vadd.f32 %v7605_v46, %v7604_v55  ;;  %v7705_v24 = vadd.f32 %v7704_v34, %v7703_v42 }
 0x637   : > { %v7607_v52 = vsel %vm1388_vm11, %v18617_v43, 0.0  ;;  %v7648_v38 = vmul.f32 %v18617_v43, %v18617_v43  ;;  %v7712_v13 = vsel %vm1388_vm11, %v7650_v39, 0.0  ;;  %v14004_v39 = vld [vmem:[%s20885_s6 + $0x10] sm:$0xff]  }
 0x638   : > { %v7707_v60 = vadd.f32 %v7706_v9, %v7705_v24  ;;  %v7608_v44 = vadd.f32 %v7607_v52, %v7606_v40  ;;  %v13998_v40 = vld [vmem:[%s20885_s6 + $0x8] sm:$0xff]   ;;  %v13999_v24 = vld [vmem:[%s20885_s6] sm:$0xff]  }
 0x639   : > { %v7708_v29 = vsel %vm1388_vm11, %v7648_v38, 0.0  ;;  %13585 = vmatprep.subr.bf16.mxu1 %v13998_v40  ;;  %v8510_v9 = vld [vmem:[#allocation2 + $0x4] sm:$0xf]  ;;  %v14001_v38 = vld [vmem:[%s20885_s6 + $0x18] sm:$0xff]  }
 0x63a   : > { %v7610_v41 = vadd.f32 %v7609_v36, %v7608_v44  ;;  %v7709_v21 = vadd.f32 %v7708_v29, %v7707_v60  ;;  %13586 = vmatpush3.bf16.msra.mxu1 %v13998_v40  ;;  %v12083_v52 = vcombine.low %v8509_v11, %v8510_v9  ;;  %v8568_v60 = vshrl.u32 %v8509_v11, 16  ;;  %13549 = vmatprep.subr.bf16.mxu0 %v14001_v38 }
 0x63b   : > { %13587 = vmatprep.subr.bf16.mxu1 %v13999_v24  ;;  %v8571_v44 = vshll.u32 %v8509_v11, 16  ;;  %v8581_v36 = vshrl.u32 %v8510_v9, 16  ;;  %v8577_v29 = vshll.u32 %v8510_v9, 16  ;;  %v21430_v9 = vld [vmem:[#allocation32_spill] sm:$0xff] }
 0x63c   : > { %v7612_v17 = vadd.f32 %v7611_v53, %v7610_v41  ;;  %v7711_v3 = vadd.f32 %v7710_v7, %v7709_v21  ;;  %13589 = vmatprep.mubr.msk.bf16.mxu1 %vm1388_vm11, %v12083_v52  ;;  %v8570_v41 = vrot.slane %v8568_v60, 4  ;;  %v21431_v52 = vsub.s32 0, %v21430_v9 }
 0x63d   : > { %v8573_v21 = vrot.slane %v8571_v44, 5  ;;  %v8579_v7 = vrot.slane %v8577_v29, 5  ;;  %v8583_v53 = vrot.slane %v8581_v36, 4 }
 0x63e   : > { %v7613_v45 = vrot.slane %v7612_v17, 4  ;;  %v7713_v16 = vadd.f32 %v7712_v13, %v7711_v3  ;;  %13588 = vmatpush3.bf16.msra.mxu1 %v13999_v24  ;;  %v8511_v3 = vld [vmem:[#allocation2 + $0x8] sm:$0x1] }
 0x640   : > { %v7614_v19 = vadd.f32 %v7613_v45, %v7612_v17  ;;  %v7714_v33 = vrot.slane %v7713_v16, 4 }
 0x642   : > { %v7615_v58 = vrot.slane %v7614_v19, 2  ;;  %v7715_v12 = vadd.f32 %v7714_v33, %v7713_v16  ;;  %v8584_v33 = vor.u32 %v8583_v53, %v8579_v7 }
 0x644   : > { %v7616_v2 = vadd.f32 %v7615_v58, %v7614_v19  ;;  %v7716_v6 = vrot.slane %v7715_v12, 2  ;;  %v8574_v19 = vor.u32 %v8573_v21, %v8570_v41  ;;  %v8587_v58 = vshll.u32 %v8511_v3, 16 }
 0x646   : > { %v7617_v1 = vrot.slane %v7616_v2, 1  ;;  %v7717_v32 = vadd.f32 %v7716_v6, %v7715_v12  ;;  %v14006_v12 = vld [vmem:[%s20885_s6 + $0x28] sm:$0xff]  }
 0x648   : > { %v7718_v42 = vrot.slane %v7717_v32, 1  ;;  %v7618_v55 = vadd.f32 %v7617_v1, %v7616_v2  ;;  %v8575_v1 = vrot.slane %v8574_v19, 4 }
 0x64a   : > { %v7719_v34 = vadd.f32 %v7718_v42, %v7717_v32  ;;  %v8585_v32 = vrot.slane %v8584_v33, 4  ;;  %v8589_v42 = vrot.slane %v8587_v58, 5  ;;  %v8580_v40 = vsel %vm14458_vm7, %v8575_v1, %v8579_v7 }
 0x64c   : > { %v7720_v46 = vsel %vm3907_vm2, %v7618_v55, %v7719_v34  ;;  %v8590_v24 = vsel %vm14458_vm7, %v8585_v32, %v8589_v42 }
 0x64d   : > { %13547 = vmatmul.mubr.msk.f32.vlgmr.msra.gmra.mxu0 %vm1388_vm11, %v7720_v46  ;;  %v12049_v11 = vcombine.low %v8580_v40, %v8590_v24 }
 0x64e   : > { %13550 = vmatpush3.bf16.msra.mxu0 %v14001_v38 }
 0x64f   : > { %13551 = vmatprep.subr.bf16.mxu0 %v14004_v39  ;;  %13553 = vmatprep.mubr.msk.bf16.mxu0 %vm1388_vm11, %v12049_v11 }
 0x652   : > { %13552 = vmatpush3.bf16.msra.mxu0 %v14004_v39 }
 0x653   : > { %13621 = vmatprep.subr.bf16.mxu0 %v14006_v12 }
 0x70d   : > { %v7790_v17 = vpop.f32.mrf.mxu0 }
 0x70e   : > { %v7794_v13 = vmul.f32 0.0009765625, %v7790_v17 }
 0x70f   : > { %v13548_v45 = vpop.f32.mrf.mxu0 }
 0x710   : > { %v7795_v16 = vmul.f32 %v7794_v13, %v7794_v13  ;;  %v18659_v38 = vrot.slane %v7794_v13, %v21431_v52 }
 0x712   : > { %v7797_v2 = vrot.slane %v7795_v16, 7  ;;  %v7805_v60 = vsub.f32 %v18290_v31, %v18659_v38  ;;  %v7806_v44 = vsub.f32 %v18327_v30, %v18659_v38  ;;  %v7807_v36 = vsub.f32 %v18304_v23, %v18659_v38 }
 0x713   : > { %v7808_v39 = vsub.f32 %v18324_v15, %v18659_v38  ;;  %v7809_v29 = vsub.f32 %v18351_v62, %v18659_v38  ;;  %v7810_v41 = vsub.f32 %v18384_v57, %v18659_v38  ;;  %v7811_v21 = vsub.f32 %v18358_v18, %v18659_v38 }
 0x714   : > { %v7799_v6 = vsub.f32 %v7794_v13, %v7797_v2  ;;  %v7812_v31 = vsub.f32 %v18381_v51, %v18659_v38  ;;  %v7813_v30 = vsub.f32 %v18401_v4, %v18659_v38  ;;  %v7814_v23 = vsub.f32 %v18418_v48, %v18659_v38 }
 0x715   : > { %v7815_v15 = vsub.f32 %v18413_v54, %v18659_v38  ;;  %v7816_v62 = vsub.f32 %v18429_v50, %v18659_v38  ;;  %v7817_v57 = vsub.f32 %v18450_v5, %v18659_v38  ;;  %v7818_v18 = vsub.f32 %v18472_v25, %v18659_v38 }
 0x716   : > { %v7800_v55 = vmax.f32 %v7799_v6, 0.0  ;;  %v7819_v51 = vsub.f32 %v18458_v26, %v18659_v38  ;;  %v7820_v4 = vsub.f32 %v18469_v28, %v18659_v38  ;;  %v7821_v48 = vsub.f32 %v18486_v8, %v18659_v38 }
 0x717   : > { %v7822_v54 = vsub.f32 %v18511_v37, %v18659_v38  ;;  %v7823_v50 = vsub.f32 %v18495_v35, %v18659_v38  ;;  %v7824_v5 = vsub.f32 %v18508_v49, %v18659_v38  ;;  %v7825_v25 = vsub.f32 %v18529_v0, %v18659_v38 }
 0x718   : > { %v7837_v34 = vadd.f32 1e-05, %v7800_v55  ;;  %v7826_v26 = vsub.f32 %v18541_v63, %v18659_v38  ;;  %v7827_v28 = vsub.f32 %v18536_v61, %v18659_v38  ;;  %v7828_v8 = vsub.f32 %v18547_v47, %v18659_v38  ;;  %v12011_v55 = vld [vmem:[%s20882_s3 + $0x1] ss:$0 sm:$0xff] }
 0x719   : > { %v7829_v37 = vsub.f32 %v18565_v20, %v18659_v38  ;;  %v21432_v35 = vsub.s32 1, %v21430_v9  ;;  %v7830_v49 = vsub.f32 %v18585_v27, %v18659_v38  ;;  %v7831_v0 = vsub.f32 %v18568_v22, %v18659_v38 }
 0x71a   : > { %14036 = vrsqrt.f32 %v7837_v34  ;;  %v7832_v63 = vsub.f32 %v18582_v56, %v18659_v38  ;;  %v7833_v61 = vsub.f32 %v18595_v10, %v18659_v38  ;;  %v7834_v47 = vsub.f32 %v18617_v43, %v18659_v38 }
 0x71b   : > { %v7835_v20 = vsub.f32 %v18606_v14, %v18659_v38  ;;  %v7836_v17 = vsub.f32 %v18614_v59, %v18659_v38 }
 0x727   : > { %v14037_v7 = vpop.eup %14036 }
 0x728   : > { %v7842_v53 = vrot.slane %v14037_v7, %v21432_v35 }
 0x72a   : > { %v7843_v3 = vmul.f32 %v7842_v53, %v7805_v60  ;;  %v7844_v27 = vmul.f32 %v7842_v53, %v7806_v44  ;;  %v7845_v13 = vmul.f32 %v7842_v53, %v7807_v36  ;;  %v7846_v45 = vmul.f32 %v7842_v53, %v7808_v39 }
 0x72b   : > { %v7847_v22 = vmul.f32 %v7842_v53, %v7809_v29  ;;  %v7848_v16 = vmul.f32 %v7842_v53, %v7810_v41  ;;  %v7849_v19 = vmul.f32 %v7842_v53, %v7811_v21  ;;  %v7850_v56 = vmul.f32 %v7842_v53, %v7812_v31 }
 0x72c   : > { %v7851_v33 = vmul.f32 %v7842_v53, %v7813_v30  ;;  %v7852_v58 = vmul.f32 %v7842_v53, %v7814_v23  ;;  %v7853_v10 = vmul.f32 %v7842_v53, %v7815_v15  ;;  %v7854_v12 = vmul.f32 %v7842_v53, %v7816_v62 }
 0x72d   : > { %v7855_v2 = vmul.f32 %v7842_v53, %v7817_v57  ;;  %v7856_v43 = vmul.f32 %v7842_v53, %v7818_v18  ;;  %v7857_v6 = vmul.f32 %v7842_v53, %v7819_v51  ;;  %v7858_v1 = vmul.f32 %v7842_v53, %v7820_v4 }
 0x72e   : > { %v7859_v14 = vmul.f32 %v7842_v53, %v7821_v48  ;;  %v7860_v32 = vmul.f32 %v7842_v53, %v7822_v54  ;;  %v7861_v42 = vmul.f32 %v7842_v53, %v7823_v50  ;;  %v7862_v59 = vmul.f32 %v7842_v53, %v7824_v5 }
 0x72f   : > { %v7863_v34 = vmul.f32 %v7842_v53, %v7825_v25  ;;  %v7864_v40 = vmul.f32 %v7842_v53, %v7826_v26  ;;  %v7865_v24 = vmul.f32 %v7842_v53, %v7827_v28  ;;  %v7866_v11 = vmul.f32 %v7842_v53, %v7828_v8 }
 0x730   : > { %v7867_v9 = vmul.f32 %v7842_v53, %v7829_v37  ;;  %v7868_v52 = vmul.f32 %v7842_v53, %v7830_v49  ;;  %v7869_v38 = vmul.f32 %v7842_v53, %v7831_v0  ;;  %v7870_v60 = vmul.f32 %v7842_v53, %v7832_v63  ;;  %v12012_v37 = vld [vmem:[%s20883_s4 + $0x1] ss:$0 sm:$0xff] }
 0x731   : > { %v7871_v44 = vmul.f32 %v7842_v53, %v7833_v61  ;;  %v7872_v36 = vmul.f32 %v7842_v53, %v7834_v47  ;;  %v7873_v39 = vmul.f32 %v7842_v53, %v7835_v20  ;;  %v7874_v29 = vmul.f32 %v7842_v53, %v7836_v17 }
 0x732   : > { %v7880_v41 = vmul.f32 %v12011_v55, %v7843_v3  ;;  %v7881_v21 = vmul.f32 %v12011_v55, %v7844_v27  ;;  %v7882_v31 = vmul.f32 %v12011_v55, %v7845_v13  ;;  %v7883_v30 = vmul.f32 %v12011_v55, %v7846_v45 }
 0x733   : > { %v7884_v23 = vmul.f32 %v12011_v55, %v7847_v22  ;;  %v7885_v15 = vmul.f32 %v12011_v55, %v7848_v16  ;;  %v7886_v62 = vmul.f32 %v12011_v55, %v7849_v19  ;;  %v7887_v57 = vmul.f32 %v12011_v55, %v7850_v56 }
 0x734   : > { %v7888_v18 = vmul.f32 %v12011_v55, %v7851_v33  ;;  %v7889_v51 = vmul.f32 %v12011_v55, %v7852_v58  ;;  %v7890_v4 = vmul.f32 %v12011_v55, %v7853_v10  ;;  %v7891_v48 = vmul.f32 %v12011_v55, %v7854_v12 }
 0x735   : > { %v7892_v54 = vmul.f32 %v12011_v55, %v7855_v2  ;;  %v7893_v50 = vmul.f32 %v12011_v55, %v7856_v43  ;;  %v7894_v5 = vmul.f32 %v12011_v55, %v7857_v6  ;;  %v7895_v25 = vmul.f32 %v12011_v55, %v7858_v1 }
 0x736   : > { %v7896_v7 = vmul.f32 %v12011_v55, %v7859_v14  ;;  %v7897_v26 = vmul.f32 %v12011_v55, %v7860_v32  ;;  %v7898_v28 = vmul.f32 %v12011_v55, %v7861_v42  ;;  %v7899_v8 = vmul.f32 %v12011_v55, %v7862_v59 }
 0x737   : > { %v7900_v35 = vmul.f32 %v12011_v55, %v7863_v34  ;;  %v7901_v53 = vmul.f32 %v12011_v55, %v7864_v40  ;;  %v7902_v49 = vmul.f32 %v12011_v55, %v7865_v24  ;;  %v7903_v0 = vmul.f32 %v12011_v55, %v7866_v11 }
 0x738   : > { %v7904_v63 = vmul.f32 %v12011_v55, %v7867_v9  ;;  %v7905_v61 = vmul.f32 %v12011_v55, %v7868_v52  ;;  %v7906_v47 = vmul.f32 %v12011_v55, %v7869_v38  ;;  %v7907_v20 = vmul.f32 %v12011_v55, %v7870_v60 }
 0x739   : > { %v7908_v17 = vmul.f32 %v12011_v55, %v7871_v44  ;;  %v7909_v3 = vmul.f32 %v12011_v55, %v7872_v36  ;;  %v7910_v27 = vmul.f32 %v12011_v55, %v7873_v39  ;;  %v7911_v13 = vmul.f32 %v12011_v55, %v7874_v29 }
 0x73a   : > { %v18734_v45 = vadd.f32 %v12012_v37, %v7880_v41  ;;  %v18736_v22 = vadd.f32 %v12012_v37, %v7881_v21  ;;  %v18738_v16 = vadd.f32 %v12012_v37, %v7882_v31  ;;  %v18740_v19 = vadd.f32 %v12012_v37, %v7883_v30 }
 0x73b   : > { %v18742_v56 = vadd.f32 %v12012_v37, %v7884_v23  ;;  %v18744_v33 = vadd.f32 %v12012_v37, %v7885_v15  ;;  %v18746_v58 = vadd.f32 %v12012_v37, %v7886_v62  ;;  %v18748_v10 = vadd.f32 %v12012_v37, %v7887_v57 }
 0x73c   : > { %v18750_v12 = vadd.f32 %v12012_v37, %v7888_v18  ;;  %v18752_v2 = vadd.f32 %v12012_v37, %v7889_v51  ;;  %v18754_v43 = vadd.f32 %v12012_v37, %v7890_v4  ;;  %v18756_v6 = vadd.f32 %v12012_v37, %v7891_v48 }
 0x73d   : > { %v18758_v1 = vadd.f32 %v12012_v37, %v7892_v54  ;;  %v18760_v14 = vadd.f32 %v12012_v37, %v7893_v50  ;;  %v18762_v32 = vadd.f32 %v12012_v37, %v7894_v5  ;;  %v18764_v42 = vadd.f32 %v12012_v37, %v7895_v25 }
 0x73e   : > { %v18766_v59 = vadd.f32 %v12012_v37, %v7896_v7  ;;  %v18768_v55 = vadd.f32 %v12012_v37, %v7897_v26  ;;  %v18770_v34 = vadd.f32 %v12012_v37, %v7898_v28  ;;  %v18772_v40 = vadd.f32 %v12012_v37, %v7899_v8  ;;  %v18817_v28 = vld [vmem:[%s20885_s6 + $0x38] sm:$0xff]  }
 0x73f   : > { %v18774_v24 = vadd.f32 %v12012_v37, %v7900_v35  ;;  %v18776_v11 = vadd.f32 %v12012_v37, %v7901_v53  ;;  %v18778_v9 = vadd.f32 %v12012_v37, %v7902_v49  ;;  %v18780_v52 = vadd.f32 %v12012_v37, %v7903_v0  ;;  %13657 = vmatprep.subr.bf16.mxu1 %v18817_v28 }
 0x740   : > { %v18782_v38 = vadd.f32 %v12012_v37, %v7904_v63  ;;  %v18784_v60 = vadd.f32 %v12012_v37, %v7905_v61  ;;  %v18786_v44 = vadd.f32 %v12012_v37, %v7906_v47  ;;  %v18788_v36 = vadd.f32 %v12012_v37, %v7907_v20 }
 0x741   : > { %v18790_v39 = vadd.f32 %v12012_v37, %v7908_v17  ;;  %v18792_v29 = vadd.f32 %v12012_v37, %v7909_v3  ;;  %v18794_v41 = vadd.f32 %v12012_v37, %v7910_v27  ;;  %v18796_v21 = vadd.f32 %v12012_v37, %v7911_v13 }
 0x742   : > { %v7949_v31 = vmax.f32 %v18734_v45, 0.0  ;;  %v7950_v30 = vmax.f32 %v18736_v22, 0.0  ;;  %v7951_v23 = vmax.f32 %v18738_v16, 0.0  ;;  %v7952_v15 = vmax.f32 %v18740_v19, 0.0 }
 0x743   : > { %v7953_v62 = vmax.f32 %v18742_v56, 0.0  ;;  %v7954_v57 = vmax.f32 %v18744_v33, 0.0  ;;  %v7955_v18 = vmax.f32 %v18746_v58, 0.0  ;;  %v7956_v51 = vmax.f32 %v18748_v10, 0.0 }
 0x744   : > { %v7957_v4 = vmax.f32 %v18750_v12, 0.0  ;;  %v7958_v48 = vmax.f32 %v18752_v2, 0.0  ;;  %v7959_v54 = vmax.f32 %v18754_v43, 0.0  ;;  %v7960_v50 = vmax.f32 %v18756_v6, 0.0 }
 0x745   : > { %v7961_v5 = vmax.f32 %v18758_v1, 0.0  ;;  %v7962_v25 = vmax.f32 %v18760_v14, 0.0  ;;  %v7963_v7 = vmax.f32 %v18762_v32, 0.0  ;;  %v7964_v26 = vmax.f32 %v18764_v42, 0.0 }
 0x746   : > { %v7965_v8 = vmax.f32 %v18766_v59, 0.0  ;;  %v7966_v37 = vmax.f32 %v18768_v55, 0.0  ;;  %v7967_v35 = vmax.f32 %v18770_v34, 0.0  ;;  %v7968_v53 = vmax.f32 %v18772_v40, 0.0 }
 0x747   : > { %v7969_v49 = vmax.f32 %v18774_v24, 0.0  ;;  %v7970_v0 = vmax.f32 %v18776_v11, 0.0  ;;  %v7971_v63 = vmax.f32 %v18778_v9, 0.0  ;;  %v7972_v61 = vmax.f32 %v18780_v52, 0.0 }
 0x748   : > { %v7973_v47 = vmax.f32 %v18782_v38, 0.0  ;;  %v7974_v20 = vmax.f32 %v18784_v60, 0.0  ;;  %v7975_v17 = vmax.f32 %v18786_v44, 0.0  ;;  %v7976_v3 = vmax.f32 %v18788_v36, 0.0 }
 0x749   : > { %v7977_v27 = vmax.f32 %v18790_v39, 0.0  ;;  %v7978_v13 = vmax.f32 %v18792_v29, 0.0  ;;  %v7979_v45 = vmax.f32 %v18794_v41, 0.0  ;;  %v7980_v22 = vmax.f32 %v18796_v21, 0.0 }
 0x74a   : > { %v18836_v16 = vpack.c.bf16 %v7949_v31, %v7949_v31  ;;  %v18838_v19 = vpack.c.bf16 %v7950_v30, %v7950_v30  ;;  %v18840_v56 = vpack.c.bf16 %v7951_v23, %v7951_v23  ;;  %v18842_v33 = vpack.c.bf16 %v7952_v15, %v7952_v15 }
 0x74b   : > { %v18844_v58 = vpack.c.bf16 %v7953_v62, %v7953_v62  ;;  %v18846_v10 = vpack.c.bf16 %v7954_v57, %v7954_v57  ;;  %v18848_v12 = vpack.c.bf16 %v7955_v18, %v7955_v18  ;;  %v18850_v2 = vpack.c.bf16 %v7956_v51, %v7956_v51 }
 0x74c   : > { %v18852_v43 = vpack.c.bf16 %v7957_v4, %v7957_v4  ;;  %v18854_v6 = vpack.c.bf16 %v7958_v48, %v7958_v48  ;;  %v18856_v1 = vpack.c.bf16 %v7959_v54, %v7959_v54  ;;  %v18858_v14 = vpack.c.bf16 %v7960_v50, %v7960_v50 }
 0x74d   : > { %v18860_v32 = vpack.c.bf16 %v7961_v5, %v7961_v5  ;;  %v18862_v42 = vpack.c.bf16 %v7962_v25, %v7962_v25  ;;  %v18864_v59 = vpack.c.bf16 %v7963_v7, %v7963_v7  ;;  %v18866_v55 = vpack.c.bf16 %v7964_v26, %v7964_v26 }
 0x74e   : > { %v18868_v34 = vpack.c.bf16 %v7965_v8, %v7965_v8  ;;  %v18870_v40 = vpack.c.bf16 %v7966_v37, %v7966_v37  ;;  %v18872_v24 = vpack.c.bf16 %v7967_v35, %v7967_v35  ;;  %v18874_v11 = vpack.c.bf16 %v7968_v53, %v7968_v53 }
 0x74f   : > { %v18876_v9 = vpack.c.bf16 %v7969_v49, %v7969_v49  ;;  %v18878_v52 = vpack.c.bf16 %v7970_v0, %v7970_v0  ;;  %v18880_v38 = vpack.c.bf16 %v7971_v63, %v7971_v63  ;;  %v18882_v60 = vpack.c.bf16 %v7972_v61, %v7972_v61 }
 0x750   : > { %v18884_v44 = vpack.c.bf16 %v7973_v47, %v7973_v47  ;;  %v18886_v36 = vpack.c.bf16 %v7974_v20, %v7974_v20  ;;  %v18888_v39 = vpack.c.bf16 %v7975_v17, %v7975_v17  ;;  %v18890_v29 = vpack.c.bf16 %v7976_v3, %v7976_v3 }
 0x751   : > { %v18892_v41 = vpack.c.bf16 %v7977_v27, %v7977_v27  ;;  %v18894_v21 = vpack.c.bf16 %v7978_v13, %v7978_v13  ;;  %v18896_v31 = vpack.c.bf16 %v7979_v45, %v7979_v45  ;;  %v18898_v30 = vpack.c.bf16 %v7980_v22, %v7980_v22 }
 0x752   : > { %v8078_v23 = vshrl.u32 %v18836_v16, 16  ;;  %v8081_v15 = vshll.u32 %v18836_v16, 16  ;;  %v8086_v62 = vshrl.u32 %v18838_v19, 16  ;;  %v8089_v57 = vshll.u32 %v18838_v19, 16 }
 0x753   : > { %v8095_v18 = vshrl.u32 %v18840_v56, 16  ;;  %v8098_v51 = vshll.u32 %v18840_v56, 16  ;;  %v8103_v4 = vshrl.u32 %v18842_v33, 16  ;;  %v8106_v48 = vshll.u32 %v18842_v33, 16 }
 0x754   : > { %v8112_v54 = vshrl.u32 %v18844_v58, 16  ;;  %v8115_v50 = vshll.u32 %v18844_v58, 16  ;;  %v8120_v5 = vshrl.u32 %v18846_v10, 16  ;;  %v8123_v25 = vshll.u32 %v18846_v10, 16 }
 0x755   : > { %v8129_v7 = vshrl.u32 %v18848_v12, 16  ;;  %v8132_v26 = vshll.u32 %v18848_v12, 16  ;;  %v8137_v8 = vshrl.u32 %v18850_v2, 16  ;;  %v8140_v37 = vshll.u32 %v18850_v2, 16 }
 0x756   : > { %v8146_v35 = vshrl.u32 %v18852_v43, 16  ;;  %v8154_v49 = vshrl.u32 %v18854_v6, 16  ;;  %v8333_v0 = vshrl.u32 %v18896_v31, 16  ;;  %v8344_v20 = vshll.u32 %v18898_v30, 16 }
 0x757   : > { %v8080_v17 = vrot.slane %v8078_v23, 7  ;;  %v18966_v3 = vrot.slane %v8086_v62, 7  ;;  %v8097_v27 = vrot.slane %v8095_v18, 7  ;;  %v18968_v47 = vrot.slane %v8103_v4, 7 }
 0x758   : > { %v8114_v13 = vrot.slane %v8112_v54, 7  ;;  %v18970_v45 = vrot.slane %v8120_v5, 7  ;;  %v8131_v22 = vrot.slane %v8129_v7, 7  ;;  %v18972_v63 = vrot.slane %v8137_v8, 7 }
 0x759   : > { %v18976_v61 = vor.u32 %v8081_v15, %v8080_v17  ;;  %v8084_v53 = vrot.slane %v8080_v17, 4  ;;  %v8091_v23 = vor.u32 %v8089_v57, %v18966_v3  ;;  %v8093_v62 = vrot.slane %v18966_v3, 4  ;;  %v8446_v3 = vld [vmem:[#allocation2 + $0x60] sm:$0xf]  ;;  %v8471_v15 = vld [vmem:[#allocation2 + $0x8c] sm:$0x1] }
 0x75a   : > { %v18984_v18 = vor.u32 %v8098_v51, %v8097_v27  ;;  %v8101_v4 = vrot.slane %v8097_v27, 4  ;;  %v8108_v54 = vor.u32 %v8106_v48, %v18968_v47  ;;  %v8110_v16 = vrot.slane %v18968_v47, 4 }
 0x75b   : > { %v8092_v5 = vsel %vm14465_vm10, %v8084_v53, %v8091_v23  ;;  %v18994_v19 = vor.u32 %v8115_v50, %v8114_v13  ;;  %v8118_v57 = vrot.slane %v8114_v13, 4  ;;  %v8125_v56 = vor.u32 %v8123_v25, %v18970_v45  ;;  %v8429_v50 = vld [vmem:[#allocation2 + $0x44] sm:$0x1] }
 0x75c   : > { %v8109_v51 = vsel %vm14465_vm10, %v8101_v4, %v8108_v54  ;;  %v19004_v48 = vor.u32 %v8132_v26, %v8131_v22  ;;  %v8135_v7 = vrot.slane %v8131_v22, 4  ;;  %8400 = vst.msk [vmem:[#allocation2 + $0x10] sm:$0xf] %vm756_vm4, %v8092_v5  ;;  %v8142_v10 = vor.u32 %v8140_v37, %v18972_v63 }
 0x75d   : > { %v8126_v58 = vsel %vm14465_vm10, %v8118_v57, %v8125_v56  ;;  %v8148_v25 = vrot.slane %v8146_v35, 7  ;;  %8407 = vst.msk [vmem:[#allocation2 + $0x1c] sm:$0xf] %vm756_vm4, %v8109_v51  ;;  %v19018_v12 = vrot.slane %v8154_v49, 7  ;;  %v21434_v26 = vshrl.u32 %v18856_v1, 16 }
 0x75e   : > { %v21435_v53 = vshrl.u32 %v18858_v14, 16  ;;  %v21436_v2 = vshrl.u32 %v18860_v32, 16  ;;  %8414 = vst.msk [vmem:[#allocation2 + $0x28] sm:$0xf] %vm756_vm4, %v8126_v58  ;;  %v8143_v35 = vsel %vm14465_vm10, %v8135_v7, %v8142_v10  ;;  %v21437_v27 = vshll.u32 %v18852_v43, 16 }
 0x75f   : > { %v8165_v8 = vrot.slane %v21434_v26, 7  ;;  %v8152_v49 = vrot.slane %v8148_v25, 4  ;;  %v21438_v22 = vshrl.u32 %v18862_v42, 16  ;;  %v21439_v4 = vshll.u32 %v18854_v6, 16  ;;  %8421 = vst.msk [vmem:[#allocation2 + $0x34] sm:$0xf] %vm756_vm4, %v8143_v35 }
 0x760   : > { %v19024_v17 = vrot.slane %v21435_v53, 7  ;;  %v8182_v37 = vrot.slane %v21436_v2, 7  ;;  %v19033_v13 = vor.u32 %v21437_v27, %v8148_v25  ;;  %v21440_v57 = vshll.u32 %v18856_v1, 16  ;;  %v8425_v53 = vld [vmem:[#allocation2 + $0x3c] sm:$0xf] }
 0x761   : > { %v19037_v23 = vrot.slane %v21438_v22, 7  ;;  %v8159_v54 = vor.u32 %v21439_v4, %v19018_v12  ;;  %v8169_v51 = vrot.slane %v8165_v8, 4  ;;  %v21441_v43 = vshll.u32 %v18858_v14, 16 }
 0x762   : > { %v19045_v56 = vor.u32 %v21440_v57, %v8165_v8  ;;  %v21442_v10 = vshll.u32 %v18860_v32, 16  ;;  %v8186_v6 = vrot.slane %v8182_v37, 4  ;;  %v21443_v1 = vshll.u32 %v18862_v42, 16 }
 0x763   : > { %v8176_v7 = vor.u32 %v21441_v43, %v19024_v17  ;;  %v8160_v26 = vsel %vm14465_vm10, %v8152_v49, %v8159_v54  ;;  %v21444_v2 = vshrl.u32 %v18864_v59, 16  ;;  %v21445_v32 = vshrl.u32 %v18866_v55, 16 }
 0x764   : > { %v19054_v25 = vor.u32 %v21442_v10, %v8182_v37  ;;  %v8193_v8 = vor.u32 %v21443_v1, %v19037_v23  ;;  %v21446_v37 = vshrl.u32 %v18868_v34, 16  ;;  %v21447_v49 = vshrl.u32 %v18870_v40, 16  ;;  %8428 = vst.msk [vmem:[#allocation2 + $0x40] sm:$0xf] %vm756_vm4, %v8160_v26 }
 0x765   : > { %v8199_v14 = vrot.slane %v21444_v2, 7  ;;  %v8177_v35 = vsel %vm14465_vm10, %v8169_v51, %v8176_v7  ;;  %v19068_v27 = vrot.slane %v21445_v32, 7  ;;  %v21448_v54 = vshll.u32 %v18864_v59, 16 }
 0x766   : > { %v8216_v22 = vrot.slane %v21446_v37, 7  ;;  %v19074_v4 = vrot.slane %v21447_v49, 7  ;;  %v8194_v42 = vsel %vm14465_vm10, %v8186_v6, %v8193_v8  ;;  %v21449_v43 = vshrl.u32 %v18872_v24, 16  ;;  %8435 = vst.msk [vmem:[#allocation2 + $0x4c] sm:$0xf] %vm756_vm4, %v8177_v35 }
 0x767   : > { %v19081_v57 = vor.u32 %v21448_v54, %v8199_v14  ;;  %v8203_v51 = vrot.slane %v8199_v14, 4  ;;  %v21450_v10 = vshll.u32 %v18866_v55, 16  ;;  %v21451_v26 = vshll.u32 %v18868_v34, 16  ;;  %8442 = vst.msk [vmem:[#allocation2 + $0x58] sm:$0xf] %vm756_vm4, %v8194_v42 }
 0x768   : > { %v8233_v7 = vrot.slane %v21449_v43, 7  ;;  %v8220_v6 = vrot.slane %v8216_v22, 4  ;;  %v21452_v59 = vshll.u32 %v18870_v40, 16  ;;  %v21453_v35 = vshll.u32 %v18872_v24, 16 }
 0x769   : > { %v8210_v1 = vor.u32 %v21450_v10, %v19068_v27  ;;  %v19092_v32 = vor.u32 %v21451_v26, %v8216_v22  ;;  %v21454_v34 = vshrl.u32 %v18874_v11, 16  ;;  %v21455_v22 = vshrl.u32 %v18876_v9, 16 }
 0x76a   : > { %v8227_v8 = vor.u32 %v21452_v59, %v19074_v4  ;;  %v19101_v37 = vor.u32 %v21453_v35, %v8233_v7  ;;  %v8237_v55 = vrot.slane %v8233_v7, 4  ;;  %v21456_v40 = vshrl.u32 %v18878_v52, 16 }
 0x76b   : > { %v8211_v49 = vsel %vm14465_vm10, %v8203_v51, %v8210_v1  ;;  %v19107_v54 = vrot.slane %v21454_v34, 7  ;;  %v8250_v42 = vrot.slane %v21455_v22, 7  ;;  %v21457_v10 = vshrl.u32 %v18880_v38, 16  ;;  %v8408_v22 = vld [vmem:[#allocation2 + $0x20] sm:$0x1] }
 0x76c   : > { %v19113_v43 = vrot.slane %v21456_v40, 7  ;;  %v8228_v24 = vsel %vm14465_vm10, %v8220_v6, %v8227_v8  ;;  %v21458_v26 = vshrl.u32 %v18882_v60, 16  ;;  %v21459_v1 = vshrl.u32 %v18884_v44, 16  ;;  %8449 = vst.msk [vmem:[#allocation2 + $0x64] sm:$0xf] %vm756_vm4, %v8211_v49 }
 0x76d   : > { %v8267_v7 = vrot.slane %v21457_v10, 7  ;;  %v21460_v35 = vshll.u32 %v18874_v11, 16  ;;  %v21461_v6 = vshll.u32 %v18876_v9, 16  ;;  %v8254_v40 = vrot.slane %v8250_v42, 4  ;;  %8456 = vst.msk [vmem:[#allocation2 + $0x70] sm:$0xf] %vm756_vm4, %v8228_v24 }
 0x76e   : > { %v19121_v51 = vrot.slane %v21458_v26, 7  ;;  %v8284_v59 = vrot.slane %v21459_v1, 7  ;;  %v21462_v10 = vshll.u32 %v18878_v52, 16  ;;  %v21463_v49 = vshll.u32 %v18880_v38, 16  ;;  %v8397_v24 = vld [vmem:[#allocation2 + $0xc] sm:$0xf] }
 0x76f   : > { %v8244_v34 = vor.u32 %v21460_v35, %v19107_v54  ;;  %v19132_v8 = vor.u32 %v21461_v6, %v8250_v42  ;;  %v8271_v11 = vrot.slane %v8267_v7, 4  ;;  %v21464_v9 = vshll.u32 %v18882_v60, 16 }
 0x770   : > { %v8261_v26 = vor.u32 %v21462_v10, %v19113_v43  ;;  %v19141_v14 = vor.u32 %v21463_v49, %v8267_v7  ;;  %v21465_v6 = vshll.u32 %v18884_v44, 16  ;;  %v8288_v38 = vrot.slane %v8284_v59, 4 }
 0x771   : > { %v8245_v35 = vsel %vm14465_vm10, %v8237_v55, %v8244_v34  ;;  %v8278_v42 = vor.u32 %v21464_v9, %v19121_v51  ;;  %v21466_v49 = vshrl.u32 %v18886_v36, 16  ;;  %v21467_v55 = vshrl.u32 %v18888_v39, 16 }
 0x772   : > { %v19151_v52 = vor.u32 %v21465_v6, %v8284_v59  ;;  %v8262_v10 = vsel %vm14465_vm10, %v8254_v40, %v8261_v26  ;;  %8463 = vst.msk [vmem:[#allocation2 + $0x7c] sm:$0xf] %vm756_vm4, %v8245_v35  ;;  %v21468_v44 = vshrl.u32 %v18890_v29, 16  ;;  %v21469_v6 = vshrl.u32 %v18892_v41, 16 }
 0x773   : > { %v19157_v7 = vrot.slane %v21466_v49, 7  ;;  %v8301_v34 = vrot.slane %v21467_v55, 7  ;;  %v8279_v60 = vsel %vm14465_vm10, %v8271_v11, %v8278_v42  ;;  %v21470_v59 = vshrl.u32 %v18894_v21, 16  ;;  %8470 = vst.msk [vmem:[#allocation2 + $0x88] sm:$0xf] %vm756_vm4, %v8262_v10 }
 0x774   : > { %v19166_v9 = vrot.slane %v21468_v44, 7  ;;  %v8318_v40 = vrot.slane %v21469_v6, 7  ;;  %v21471_v49 = vshll.u32 %v18886_v36, 16  ;;  %v21472_v11 = vshll.u32 %v18888_v39, 16  ;;  %8477 = vst.msk [vmem:[#allocation2 + $0x94] sm:$0xf] %vm756_vm4, %v8279_v60 }
 0x775   : > { %v19172_v26 = vrot.slane %v21470_v59, 7  ;;  %v8305_v44 = vrot.slane %v8301_v34, 4  ;;  %v8404_v6 = vld [vmem:[#allocation2 + $0x18] sm:$0xf]  ;;  %v21473_v59 = vshll.u32 %v18890_v29, 16  ;;  %v21474_v36 = vshll.u32 %v18892_v41, 16 }
 0x776   : > { %v8295_v35 = vor.u32 %v21471_v49, %v19157_v7  ;;  %v19181_v42 = vor.u32 %v21472_v11, %v8301_v34  ;;  %v8322_v55 = vrot.slane %v8318_v40, 4  ;;  %v8401_v39 = vld [vmem:[#allocation2 + $0x14] sm:$0x1]  ;;  %v8411_v11 = vld [vmem:[#allocation2 + $0x24] sm:$0xf]  ;;  %v21475_v60 = vshll.u32 %v18894_v21, 16 }
 0x777   : > { %v8312_v1 = vor.u32 %v21473_v59, %v19166_v9  ;;  %v19190_v49 = vor.u32 %v21474_v36, %v8318_v40  ;;  %v8335_v59 = vrot.slane %v8333_v0, 7  ;;  %v8418_v10 = vld [vmem:[#allocation2 + $0x30] sm:$0xf]  ;;  %v8422_v41 = vld [vmem:[#allocation2 + $0x38] sm:$0x1]  ;;  %v21476_v58 = vshrl.u32 %v18898_v30, 16 }
 0x778   : > { %v8296_v34 = vsel %vm14465_vm10, %v8288_v38, %v8295_v35  ;;  %v8329_v2 = vor.u32 %v21475_v60, %v19172_v26  ;;  %v8415_v36 = vld [vmem:[#allocation2 + $0x2c] sm:$0x1]  ;;  %v8398_v21 = vsel %vm14472_vm12, %v18976_v61, %v8397_v24  ;;  %v8402_v0 = vsel %vm14481_vm13, %v8093_v62, %v8401_v39  ;;  %v8432_v60 = vld [vmem:[#allocation2 + $0x48] sm:$0xf]  ;;  %v8436_v29 = vld [vmem:[#allocation2 + $0x50] sm:$0x1] }
 0x779   : > { %v8313_v40 = vsel %vm14465_vm10, %v8305_v44, %v8312_v1  ;;  %v19204_v5 = vrot.slane %v21476_v58, 7  ;;  %8484 = vst.msk [vmem:[#allocation2 + $0xa0] sm:$0xf] %vm756_vm4, %v8296_v34  ;;  %v21479_v58 = vshll.u32 %v18896_v31, 16  ;;  %v8339_v33 = vrot.slane %v8335_v59, 4  ;;  %v14021_v35 = vld [vmem:[%s20885_s6 + $0x30] sm:$0xff]  }
 0x77a   : > { %v8330_v1 = vsel %vm14465_vm10, %v8322_v55, %v8329_v2  ;;  %8399 = vst [vmem:[#allocation2 + $0xc] sm:$0xf] %v8398_v21  ;;  %8403 = vst [vmem:[#allocation2 + $0x14] sm:$0x1] %v8402_v0  ;;  %v8405_v61 = vsel %vm14472_vm12, %v18984_v18, %v8404_v6  ;;  %v8439_v62 = vld [vmem:[#allocation2 + $0x54] sm:$0xf]  ;;  %v8409_v55 = vsel %vm14481_vm13, %v8110_v16, %v8408_v22 }
 0x77b   : > { %v19218_v44 = vor.u32 %v21479_v58, %v8335_v59  ;;  %8491 = vst.msk [vmem:[#allocation2 + $0xac] sm:$0xf] %vm756_vm4, %v8313_v40  ;;  %v8450_v24 = vld [vmem:[#allocation2 + $0x68] sm:$0x1]  ;;  %v8443_v39 = vld [vmem:[#allocation2 + $0x5c] sm:$0x1]  ;;  %v8346_v2 = vor.u32 %v8344_v20, %v19204_v5  ;;  %v8412_v18 = vsel %vm14472_vm12, %v18994_v19, %v8411_v11  ;;  %v8419_v20 = vsel %vm14472_vm12, %v19004_v48, %v8418_v10 }
 0x77c   : > { %v8348_v31 = vrot.slane %v19204_v5, 4  ;;  %8406 = vst [vmem:[#allocation2 + $0x18] sm:$0xf] %v8405_v61  ;;  %8498 = vst.msk [vmem:[#allocation2 + $0xb8] sm:$0xf] %vm756_vm4, %v8330_v1  ;;  %v21480_v30 = vrot.slane %v18970_v45, 4  ;;  %v8426_v22 = vsel %vm14472_vm12, %v19033_v13, %v8425_v53  ;;  %v8433_v10 = vsel %vm14472_vm12, %v19045_v56, %v8432_v60 }
 0x77d   : > { %v8460_v6 = vld [vmem:[#allocation2 + $0x78] sm:$0xf]  ;;  %v8453_v34 = vld [vmem:[#allocation2 + $0x6c] sm:$0xf]  ;;  %v8464_v59 = vld [vmem:[#allocation2 + $0x80] sm:$0x1]  ;;  %v8347_v45 = vsel %vm14465_vm10, %v8339_v33, %v8346_v2 }
 0x77e   : > { %v8457_v40 = vld [vmem:[#allocation2 + $0x74] sm:$0x1]  ;;  %8410 = vst [vmem:[#allocation2 + $0x20] sm:$0x1] %v8409_v55  ;;  %8413 = vst [vmem:[#allocation2 + $0x24] sm:$0xf] %v8412_v18  ;;  %v8416_v47 = vsel %vm14481_vm13, %v21480_v30, %v8415_v36 }
 0x77f   : > { %v21481_v16 = vrot.slane %v18972_v63, 4  ;;  %v8474_v11 = vld [vmem:[#allocation2 + $0x90] sm:$0xf]  ;;  %v8467_v21 = vld [vmem:[#allocation2 + $0x84] sm:$0xf]  ;;  %v21482_v48 = vrot.slane %v19018_v12, 4  ;;  %v8440_v12 = vsel %vm14472_vm12, %v19054_v25, %v8439_v62 }
 0x780   : > { %v8478_v0 = vld [vmem:[#allocation2 + $0x98] sm:$0x1]  ;;  %8417 = vst [vmem:[#allocation2 + $0x2c] sm:$0x1] %v8416_v47  ;;  %8420 = vst [vmem:[#allocation2 + $0x30] sm:$0xf] %v8419_v20 }
 0x781   : > { %v8423_v19 = vsel %vm14481_vm13, %v21481_v16, %v8422_v41  ;;  %8427 = vst [vmem:[#allocation2 + $0x3c] sm:$0xf] %v8426_v22  ;;  %v8430_v63 = vsel %vm14481_vm13, %v21482_v48, %v8429_v50  ;;  %v21483_v13 = vrot.slane %v19024_v17, 4  ;;  %v8488_v33 = vld [vmem:[#allocation2 + $0xa8] sm:$0xf]  ;;  %v21484_v50 = vrot.slane %v19037_v23, 4 }
 0x782   : > { %8424 = vst [vmem:[#allocation2 + $0x38] sm:$0x1] %v8423_v19  ;;  %v8481_v41 = vld [vmem:[#allocation2 + $0x9c] sm:$0xf]  ;;  %8431 = vst [vmem:[#allocation2 + $0x44] sm:$0x1] %v8430_v63  ;;  %v8447_v17 = vsel %vm14472_vm12, %v19081_v57, %v8446_v3  ;;  %v8454_v23 = vsel %vm14472_vm12, %v19092_v32, %v8453_v34  ;;  %v8461_v57 = vsel %vm14472_vm12, %v19101_v37, %v8460_v6 }
 0x783   : > { %v8437_v53 = vsel %vm14481_vm13, %v21483_v13, %v8436_v29  ;;  %8434 = vst [vmem:[#allocation2 + $0x48] sm:$0xf] %v8433_v10  ;;  %v8444_v56 = vsel %vm14481_vm13, %v21484_v50, %v8443_v39  ;;  %v21485_v29 = vrot.slane %v19068_v27, 4  ;;  %8505 = vst.msk [vmem:[#allocation2 + $0xc4] sm:$0xf] %vm756_vm4, %v8347_v45  ;;  %v21486_v25 = vrot.slane %v19074_v4, 4 }
 0x784   : > { %8438 = vst [vmem:[#allocation2 + $0x50] sm:$0x1] %v8437_v53  ;;  %v8492_v60 = vld [vmem:[#allocation2 + $0xb0] sm:$0x1]  ;;  %v8485_v1 = vld [vmem:[#allocation2 + $0xa4] sm:$0x1]  ;;  %v8468_v4 = vsel %vm14472_vm12, %v19132_v8, %v8467_v21 }
 0x785   : > { %v8451_v36 = vsel %vm14481_vm13, %v21485_v29, %v8450_v24  ;;  %v8502_v58 = vld [vmem:[#allocation2 + $0xc0] sm:$0xf]  ;;  %8441 = vst [vmem:[#allocation2 + $0x54] sm:$0xf] %v8440_v12  ;;  %8445 = vst [vmem:[#allocation2 + $0x5c] sm:$0x1] %v8444_v56  ;;  %v8458_v27 = vsel %vm14481_vm13, %v21486_v25, %v8457_v40 }
 0x786   : > { %8448 = vst [vmem:[#allocation2 + $0x60] sm:$0xf] %v8447_v17  ;;  %8452 = vst [vmem:[#allocation2 + $0x68] sm:$0x1] %v8451_v36  ;;  %v21487_v61 = vrot.slane %v19107_v54, 4  ;;  %v21488_v32 = vrot.slane %v19113_v43, 4  ;;  %v8475_v54 = vsel %vm14472_vm12, %v19141_v14, %v8474_v11  ;;  %v8482_v43 = vsel %vm14472_vm12, %v19151_v52, %v8481_v41 }
 0x787   : > { %v8495_v62 = vld [vmem:[#allocation2 + $0xb4] sm:$0xf]  ;;  %v8506_v24 = vld [vmem:[#allocation2 + $0xc8] sm:$0x1]  ;;  %8455 = vst [vmem:[#allocation2 + $0x6c] sm:$0xf] %v8454_v23 }
 0x788   : > { %v8465_v3 = vsel %vm14481_vm13, %v21487_v61, %v8464_v59  ;;  %8459 = vst [vmem:[#allocation2 + $0x74] sm:$0x1] %v8458_v27  ;;  %8462 = vst [vmem:[#allocation2 + $0x78] sm:$0xf] %v8461_v57  ;;  %v8472_v37 = vsel %vm14481_vm13, %v21488_v32, %v8471_v15  ;;  %v21489_v39 = vrot.slane %v19121_v51, 4  ;;  %v21490_v8 = vrot.slane %v19157_v7, 4 }
 0x789   : > { %8466 = vst [vmem:[#allocation2 + $0x80] sm:$0x1] %v8465_v3  ;;  %v19306_v55 = vld [vmem:[#allocation2 + $0x10] sm:$0xf]  ;;  %v8499_v18 = vld [vmem:[#allocation2 + $0xbc] sm:$0x1]  ;;  %v8489_v51 = vsel %vm14472_vm12, %v19181_v42, %v8488_v33  ;;  %v8496_v52 = vsel %vm14472_vm12, %v19190_v49, %v8495_v62  ;;  %v8503_v42 = vsel %vm14472_vm12, %v19218_v44, %v8502_v58  ;;  %v8507_v30 = vsel %vm14481_vm13, %v8348_v31, %v8506_v24 }
 0x78a   : > { %v8479_v2 = vsel %vm14481_vm13, %v21489_v39, %v8478_v0  ;;  %8469 = vst [vmem:[#allocation2 + $0x84] sm:$0xf] %v8468_v4  ;;  %8473 = vst [vmem:[#allocation2 + $0x8c] sm:$0x1] %v8472_v37  ;;  %v8486_v14 = vsel %vm14481_vm13, %v21490_v8, %v8485_v1  ;;  %v21491_v6 = vrot.slane %v19166_v9, 4  ;;  %v21492_v7 = vrot.slane %v19172_v26, 4 }
 0x78b   : > { %8476 = vst [vmem:[#allocation2 + $0x90] sm:$0xf] %v8475_v54  ;;  %8480 = vst [vmem:[#allocation2 + $0x98] sm:$0x1] %v8479_v2  ;;  %v19322_v59 = vld [vmem:[#allocation2 + $0xc] sm:$0xf] }
 0x78c   : > { %v8493_v34 = vsel %vm14481_vm13, %v21491_v6, %v8492_v60  ;;  %v19324_v40 = vld [vmem:[#allocation2 + $0x1c] sm:$0xf]  ;;  %8483 = vst [vmem:[#allocation2 + $0x9c] sm:$0xf] %v8482_v43  ;;  %8487 = vst [vmem:[#allocation2 + $0xa4] sm:$0x1] %v8486_v14  ;;  %v8500_v9 = vsel %vm14481_vm13, %v21492_v7, %v8499_v18  ;;  %v19346_v26 = vcombine.low %v19322_v59, %v19306_v55 }
 0x78d   : > { %8490 = vst [vmem:[#allocation2 + $0xa8] sm:$0xf] %v8489_v51  ;;  %8494 = vst [vmem:[#allocation2 + $0xb0] sm:$0x1] %v8493_v34  ;;  %v19340_v47 = vld [vmem:[#allocation2 + $0x18] sm:$0xf] }
 0x78e   : > { %v19342_v20 = vld [vmem:[#allocation2 + $0x28] sm:$0xf]  ;;  %8497 = vst [vmem:[#allocation2 + $0xb4] sm:$0xf] %v8496_v52  ;;  %8501 = vst [vmem:[#allocation2 + $0xbc] sm:$0x1] %v8500_v9  ;;  %v19360_v16 = vcombine.low %v19340_v47, %v19324_v40  ;;  %13590 = vmatmul.mubr.msk.bf16.vlgmr.msra.gmra.mxu1 %vm1388_vm11, %v19346_v26 }
 0x78f   : > { %8504 = vst [vmem:[#allocation2 + $0xc0] sm:$0xf] %v8503_v42  ;;  %8508 = vst [vmem:[#allocation2 + $0xc8] sm:$0x1] %v8507_v30  ;;  %v8616_v49 = vshrl.u32 %v19340_v47, 16  ;;  %v8619_v44 = vshll.u32 %v19340_v47, 16  ;;  %13658 = vmatpush3.bf16.msra.mxu1 %v18817_v28 }
 0x790   : > { %v19349_v38 = vld [vmem:[#allocation2 + $0x24] sm:$0xf]  ;;  %v19351_v5 = vld [vmem:[#allocation2 + $0x14] sm:$0x1]  ;;  %v8629_v31 = vshrl.u32 %v19324_v40, 16  ;;  %v8592_v21 = vshrl.u32 %v19322_v59, 16  ;;  %13593 = vmatprep.mubr.msk.bf16.mxu1 %vm1388_vm11, %v19360_v16  ;;  %13659 = vmatprep.subr.bf16.mxu1 %v14021_v35 }
 0x791   : > { %v8640_v19 = vshrl.u32 %v19349_v38, 16  ;;  %v19363_v22 = vld [vmem:[#allocation2 + $0x30] sm:$0xf]  ;;  %v8643_v11 = vshll.u32 %v19349_v38, 16  ;;  %v8595_v0 = vshll.u32 %v19322_v59, 16  ;;  %v8601_v45 = vshll.u32 %v19306_v55, 16 }
 0x792   : > { %v19371_v48 = vld [vmem:[#allocation2 + $0x34] sm:$0xf]  ;;  %v8653_v63 = vshrl.u32 %v19342_v20, 16  ;;  %v19378_v10 = vcombine.low %v19349_v38, %v19342_v20  ;;  %v8605_v13 = vshrl.u32 %v19306_v55, 16  ;;  %v8611_v53 = vshll.u32 %v19351_v5, 16  ;;  %v19386_v15 = vld [vmem:[%s20885_s6 + $0x58] sm:$0xff]  }
 0x793   : > { %v8594_v33 = vrot.slane %v8592_v21, 4  ;;  %v8597_v41 = vrot.slane %v8595_v0, 5  ;;  %v8603_v12 = vrot.slane %v8601_v45, 5  ;;  %v8664_v50 = vshrl.u32 %v19363_v22, 16  ;;  %v19389_v56 = vld [vmem:[#allocation2 + $0x20] sm:$0x1]  ;;  %13660 = vmatpush3.bf16.msra.mxu1 %v14021_v35 }
 0x794   : > { %v8607_v17 = vrot.slane %v8605_v13, 4  ;;  %v8613_v29 = vrot.slane %v8611_v53, 5  ;;  %v8667_v36 = vshll.u32 %v19363_v22, 16  ;;  %v8677_v60 = vshrl.u32 %v19371_v48, 16  ;;  %v19393_v28 = vld [vmem:[#allocation2 + $0x3c] sm:$0xf]  ;;  %13729 = vmatprep.subr.bf16.mxu1 %v19386_v15 }
 0x795   : > { %v8598_v1 = vor.u32 %v8597_v41, %v8594_v33  ;;  %v8618_v58 = vrot.slane %v8616_v49, 4  ;;  %v8621_v23 = vrot.slane %v8619_v44, 5  ;;  %v8625_v25 = vshll.u32 %v19324_v40, 16  ;;  %v19396_v27 = vld [vmem:[#allocation2 + $0x40] sm:$0xf] }
 0x796   : > { %v8608_v57 = vor.u32 %v8607_v17, %v8603_v12  ;;  %v19400_v61 = vcombine.low %v19363_v22, %v19371_v48  ;;  %v8631_v3 = vrot.slane %v8629_v31, 4  ;;  %v8635_v62 = vshll.u32 %v19389_v56, 16  ;;  %v19407_v43 = vld [vmem:[#allocation2 + $0x2c] sm:$0x1]  ;;  %13594 = vmatmul.mubr.msk.bf16.gmra.mxu1 %vm1388_vm11, %v19378_v10  ;;  %v19413_v34 = vld [vmem:[#allocation2 + $0x48] sm:$0xf] }
 0x797   : > { %v8599_v24 = vrot.slane %v8598_v1, 4  ;;  %v8622_v4 = vor.u32 %v8621_v23, %v8618_v58  ;;  %v8627_v32 = vrot.slane %v8625_v25, 5  ;;  %v8688_v37 = vshrl.u32 %v19393_v28, 16  ;;  %v19420_v30 = vld [vmem:[#allocation2 + $0x4c] sm:$0xf] }
 0x798   : > { %v8609_v54 = vrot.slane %v8608_v57, 4  ;;  %v8637_v39 = vrot.slane %v8635_v62, 5  ;;  %v8691_v2 = vshll.u32 %v19393_v28, 16  ;;  %v8701_v18 = vshrl.u32 %v19396_v27, 16  ;;  %13597 = vmatprep.mubr.msk.bf16.mxu1 %vm1388_vm11, %v19400_v61  ;;  %v14068_v17 = vld [vmem:[%s20885_s6 + $0x28] sm:$0xff]  }
 0x799   : > { %v8604_v8 = vsel %vm14458_vm7, %v8599_v24, %v8603_v12  ;;  %v8623_v14 = vrot.slane %v8622_v4, 4  ;;  %v8632_v51 = vor.u32 %v8631_v3, %v8627_v32  ;;  %v8642_v6 = vrot.slane %v8640_v19, 4  ;;  %v14015_v19 = vld [vmem:[%s20885_s6 + $0x20] sm:$0xff]   ;;  %v19443_v12 = vld [vmem:[#allocation2 + $0x54] sm:$0xf]  ;;  %v19453_v25 = vld [vmem:[%s20885_s6 + $0x48] sm:$0xff]  }
 0x79a   : > { %v8614_v52 = vsel %vm14458_vm7, %v8609_v54, %v8613_v29  ;;  %v8645_v7 = vrot.slane %v8643_v11, 5  ;;  %v8649_v9 = vshll.u32 %v19342_v20, 16  ;;  %v8655_v42 = vrot.slane %v8653_v63, 4  ;;  %v19435_v63 = vld [vmem:[#allocation2 + $0x38] sm:$0x1]  ;;  %21495 = vst [vmem:[#allocation27_spill] sm:$0xff] %v19453_v25 }
 0x79b   : > { %v19422_v49 = vcombine.low %v8604_v8, %v8614_v52  ;;  %v8628_v35 = vsel %vm14458_vm7, %v8623_v14, %v8627_v32  ;;  %v8633_v44 = vrot.slane %v8632_v51, 4  ;;  %v8659_v31 = vshll.u32 %v19407_v43, 16  ;;  %v19457_v4 = vld [vmem:[#allocation2 + $0x58] sm:$0xf]  ;;  %v19471_v51 = vld [vmem:[#allocation2 + $0x44] sm:$0x1] }
 0x79c   : > { %v19432_v11 = vcombine.low %v19393_v28, %v19396_v27  ;;  %v8646_v21 = vor.u32 %v8645_v7, %v8642_v6  ;;  %v8651_v0 = vrot.slane %v8649_v9, 5  ;;  %v8712_v45 = vshrl.u32 %v19413_v34, 16  ;;  %21496 = vst [vmem:[#allocation35_spill] sm:$0xff] %v19471_v51 }
 0x79d   : > { %21493 = vst [vmem:[#allocation19_spill] sm:$0xff] %v19422_v49  ;;  %13554 = vmatmul.mubr.msk.bf16.vlgmr.msra.gmra.mxu0 %vm1388_vm11, %v19422_v49  ;;  %v8638_v13 = vsel %vm14458_vm7, %v8633_v44, %v8637_v39  ;;  %v8661_v53 = vrot.slane %v8659_v31, 5  ;;  %v8715_v33 = vshll.u32 %v19413_v34, 16  ;;  %v8725_v41 = vshrl.u32 %v19420_v30, 16 }
 0x79e   : > { %13622 = vmatpush3.bf16.msra.mxu0 %v14068_v17  ;;  %v19448_v29 = vcombine.low %v8628_v35, %v8638_v13  ;;  %v8647_v1 = vrot.slane %v8646_v21, 4  ;;  %v8656_v58 = vor.u32 %v8655_v42, %v8651_v0  ;;  %v8666_v23 = vrot.slane %v8664_v50, 4  ;;  %13598 = vmatmul.mubr.msk.bf16.gmra.mxu1 %vm1388_vm11, %v19432_v11  ;;  %v19478_v42 = vld [vmem:[#allocation2 + $0x60] sm:$0xf] }
 0x79f   : > { %v8669_v57 = vrot.slane %v8667_v36, 5  ;;  %v8673_v3 = vshll.u32 %v19371_v48, 16  ;;  %v8679_v62 = vrot.slane %v8677_v60, 4  ;;  %v8683_v24 = vshll.u32 %v19435_v63, 16  ;;  %13623 = vmatprep.subr.bf16.mxu0 %v14015_v19 }
 0x7a0   : > { %21494 = vst [vmem:[#allocation24_spill] sm:$0xff] %v19448_v29  ;;  %13557 = vmatprep.mubr.msk.bf16.mxu0 %vm1388_vm11, %v19448_v29  ;;  %v8652_v50 = vsel %vm14458_vm7, %v8647_v1, %v8651_v0  ;;  %v8657_v32 = vrot.slane %v8656_v58, 4  ;;  %v19465_v54 = vcombine.low %v19413_v34, %v19420_v30  ;;  %v8736_v36 = vshrl.u32 %v19443_v12, 16  ;;  %v19483_v0 = vld [vmem:[#allocation2 + $0x64] sm:$0xf] }
 0x7a1   : > { %v8670_v60 = vor.u32 %v8669_v57, %v8666_v23  ;;  %v8675_v39 = vrot.slane %v8673_v3, 5  ;;  %v8685_v8 = vrot.slane %v8683_v24, 5  ;;  %v8739_v14 = vshll.u32 %v19443_v12, 16  ;;  %v19500_v24 = vld [vmem:[#allocation2 + $0x50] sm:$0x1] }
 0x7a2   : > { %v8662_v6 = vsel %vm14458_vm7, %v8657_v32, %v8661_v53  ;;  %13601 = vmatprep.mubr.msk.bf16.mxu1 %vm1388_vm11, %v19465_v54  ;;  %v8749_v52 = vshrl.u32 %v19457_v4, 16  ;;  %v8690_v7 = vrot.slane %v8688_v37, 4  ;;  %v8693_v9 = vrot.slane %v8691_v2, 5  ;;  %13624 = vmatpush3.bf16.msra.mxu0 %v14015_v19 }
 0x7a3   : > { %v19480_v35 = vcombine.low %v8652_v50, %v8662_v6  ;;  %v8671_v44 = vrot.slane %v8670_v60, 4  ;;  %v8680_v31 = vor.u32 %v8679_v62, %v8675_v39  ;;  %v8697_v21 = vshll.u32 %v19396_v27, 16  ;;  %13693 = vmatprep.subr.bf16.mxu0 %v19453_v25  ;;  %v19504_v6 = vld [vmem:[#allocation2 + $0x6c] sm:$0xf] }
 0x7a4   : > { %v19488_v13 = vcombine.low %v19443_v12, %v19457_v4  ;;  %v8694_v53 = vor.u32 %v8693_v9, %v8690_v7  ;;  %v8703_v37 = vrot.slane %v8701_v18, 4  ;;  %v8707_v2 = vshll.u32 %v19471_v51, 16 }
 0x7a5   : > { %21497 = vst [vmem:[#allocation22_spill] sm:$0xff] %v19480_v35  ;;  %13558 = vmatmul.mubr.msk.bf16.gmra.mxu0 %vm1388_vm11, %v19480_v35  ;;  %v8676_v19 = vsel %vm14458_vm7, %v8671_v44, %v8675_v39  ;;  %v8681_v17 = vrot.slane %v8680_v31, 4  ;;  %v8699_v1 = vrot.slane %v8697_v21, 5  ;;  %v8760_v58 = vshrl.u32 %v19478_v42, 16  ;;  %v19506_v39 = vld [vmem:[#allocation2 + $0x70] sm:$0xf] }
 0x7a6   : > { %21498 = vst [vmem:[#allocation39_spill] sm:$0xff] %v19488_v13  ;;  %v8695_v23 = vrot.slane %v8694_v53, 4  ;;  %v8709_v57 = vrot.slane %v8707_v2, 5  ;;  %v8763_v3 = vshll.u32 %v19478_v42, 16  ;;  %v8773_v62 = vshrl.u32 %v19483_v0, 16  ;;  %13602 = vmatmul.mubr.msk.bf16.gmra.mxu1 %vm1388_vm11, %v19488_v13 }
 0x7a7   : > { %v8686_v18 = vsel %vm14458_vm7, %v8681_v17, %v8685_v8  ;;  %v8704_v50 = vor.u32 %v8703_v37, %v8699_v1  ;;  %v8714_v32 = vrot.slane %v8712_v45, 4  ;;  %v8717_v60 = vrot.slane %v8715_v33, 5  ;;  %v19540_v35 = vld [vmem:[#allocation2 + $0x7c] sm:$0xf] }
 0x7a8   : > { %v19508_v7 = vcombine.low %v8676_v19, %v8686_v18  ;;  %v19512_v9 = vcombine.low %v19478_v42, %v19483_v0  ;;  %v8721_v44 = vshll.u32 %v19420_v30, 16  ;;  %v8727_v31 = vrot.slane %v8725_v41, 4  ;;  %v19527_v19 = vld [vmem:[#allocation2 + $0x5c] sm:$0x1]  ;;  %21504 = vst [vmem:[#allocation46_spill] sm:$0xff] %v19540_v35 }
 0x7a9   : > { %v8700_v45 = vsel %vm14458_vm7, %v8695_v23, %v8699_v1  ;;  %v8705_v33 = vrot.slane %v8704_v50, 4  ;;  %v8718_v8 = vor.u32 %v8717_v60, %v8714_v32  ;;  %v8731_v21 = vshll.u32 %v19500_v24, 16  ;;  %v19535_v50 = vld [vmem:[#allocation2 + $0x78] sm:$0xf] }
 0x7aa   : > { %21499 = vst [vmem:[#allocation38_spill] sm:$0xff] %v19508_v7  ;;  %21500 = vst [vmem:[#allocation25_spill] sm:$0xff] %v19512_v9  ;;  %13561 = vmatprep.mubr.msk.bf16.mxu0 %vm1388_vm11, %v19508_v7  ;;  %13605 = vmatprep.mubr.msk.bf16.mxu1 %vm1388_vm11, %v19512_v9  ;;  %v8723_v53 = vrot.slane %v8721_v44, 5  ;;  %v8784_v37 = vshrl.u32 %v19504_v6, 16  ;;  %v8787_v41 = vshll.u32 %v19504_v6, 16  ;;  %v8797_v2 = vshrl.u32 %v19506_v39, 16 }
 0x7ab   : > { %v8710_v17 = vsel %vm14458_vm7, %v8705_v33, %v8709_v57  ;;  %v8719_v1 = vrot.slane %v8718_v8, 4  ;;  %v19533_v23 = vcombine.low %v19504_v6, %v19506_v39  ;;  %v8738_v18 = vrot.slane %v8736_v36, 4  ;;  %21502 = vst [vmem:[#allocation20_spill] sm:$0xff] %v19535_v50 }
 0x7ac   : > { %v19537_v32 = vcombine.low %v8700_v45, %v8710_v17  ;;  %v8728_v60 = vor.u32 %v8727_v31, %v8723_v53  ;;  %v8741_v44 = vrot.slane %v8739_v14, 5  ;;  %v8745_v7 = vshll.u32 %v19457_v4, 16  ;;  %v19548_v14 = vld [vmem:[#allocation2 + $0x68] sm:$0x1] }
 0x7ad   : > { %21501 = vst [vmem:[#allocation40_spill] sm:$0xff] %v19533_v23  ;;  %v8724_v29 = vsel %vm14458_vm7, %v8719_v1, %v8723_v53  ;;  %v8733_v57 = vrot.slane %v8731_v21, 5  ;;  %v8751_v33 = vrot.slane %v8749_v52, 4  ;;  %v8755_v8 = vshll.u32 %v19527_v19, 16 }
 0x7ae   : > { %21503 = vst [vmem:[#allocation37_spill] sm:$0xff] %v19537_v32  ;;  %13562 = vmatmul.mubr.msk.bf16.gmra.mxu0 %vm1388_vm11, %v19537_v32  ;;  %v8729_v36 = vrot.slane %v8728_v60, 4  ;;  %v8742_v49 = vor.u32 %v8741_v44, %v8738_v18  ;;  %v8747_v45 = vrot.slane %v8745_v7, 5  ;;  %v8808_v31 = vshrl.u32 %v19535_v50, 16  ;;  %v19557_v18 = vld [vmem:[#allocation2 + $0x84] sm:$0xf]  ;;  %13606 = vmatmul.mubr.msk.bf16.gmra.mxu1 %vm1388_vm11, %v19533_v23 }
 0x7af   : > { %v8757_v17 = vrot.slane %v8755_v8, 5  ;;  %v8811_v9 = vshll.u32 %v19535_v50, 16  ;;  %v19553_v53 = vcombine.low %v19535_v50, %v19540_v35  ;;  %v8762_v52 = vrot.slane %v8760_v58, 4  ;;  %21506 = vst [vmem:[#allocation43_spill] sm:$0xff] %v19557_v18  ;;  %v19565_v50 = vld [vmem:[#allocation2 + $0x88] sm:$0xf] }
 0x7b0   : > { %v8734_v21 = vsel %vm14458_vm7, %v8729_v36, %v8733_v57  ;;  %v8743_v1 = vrot.slane %v8742_v49, 4  ;;  %v8752_v32 = vor.u32 %v8751_v33, %v8747_v45  ;;  %v8765_v60 = vrot.slane %v8763_v3, 5  ;;  %21508 = vst [vmem:[#allocation50_spill] sm:$0xff] %v19565_v50 }
 0x7b1   : > { %21505 = vst [vmem:[#allocation18_spill] sm:$0xff] %v19553_v53  ;;  %v19559_v7 = vcombine.low %v8724_v29, %v8734_v21  ;;  %v8769_v44 = vshll.u32 %v19483_v0, 16  ;;  %v8775_v8 = vrot.slane %v8773_v62, 4  ;;  %v8779_v51 = vshll.u32 %v19548_v14, 16  ;;  %13609 = vmatprep.mubr.msk.bf16.mxu1 %vm1388_vm11, %v19553_v53  ;;  %v19576_v21 = vld [vmem:[#allocation2 + $0x74] sm:$0x1] }
 0x7b2   : > { %v8748_v58 = vsel %vm14458_vm7, %v8743_v1, %v8747_v45  ;;  %v8753_v49 = vrot.slane %v8752_v32, 4  ;;  %v8821_v3 = vshrl.u32 %v19540_v35, 16  ;;  %v8766_v29 = vor.u32 %v8765_v60, %v8762_v52  ;;  %21509 = vst [vmem:[#allocation21_spill] sm:$0xff] %v19576_v21  ;;  %v19581_v53 = vld [vmem:[#allocation2 + $0x90] sm:$0xf] }
 0x7b3   : > { %21507 = vst [vmem:[#allocation47_spill] sm:$0xff] %v19559_v7  ;;  %13565 = vmatprep.mubr.msk.bf16.mxu0 %vm1388_vm11, %v19559_v7  ;;  %v8771_v57 = vrot.slane %v8769_v44, 5  ;;  %v8781_v33 = vrot.slane %v8779_v51, 5  ;;  %v8832_v62 = vshrl.u32 %v19557_v18, 16  ;;  %v8835_v36 = vshll.u32 %v19557_v18, 16  ;;  %21510 = vst [vmem:[#allocation52_spill] sm:$0xff] %v19581_v53 }
 0x7b4   : > { %v8758_v32 = vsel %vm14458_vm7, %v8753_v49, %v8757_v17  ;;  %v8767_v45 = vrot.slane %v8766_v29, 4  ;;  %v8845_v1 = vshrl.u32 %v19565_v50, 16  ;;  %v8786_v23 = vrot.slane %v8784_v37, 4  ;;  %v19586_v7 = vld [vmem:[#allocation2 + $0x94] sm:$0xf] }
 0x7b5   : > { %v19583_v52 = vcombine.low %v8748_v58, %v8758_v32  ;;  %v8776_v60 = vor.u32 %v8775_v8, %v8771_v57  ;;  %v8789_v44 = vrot.slane %v8787_v41, 5  ;;  %v8793_v51 = vshll.u32 %v19506_v39, 16  ;;  %21512 = vst [vmem:[#allocation41_spill] sm:$0xff] %v19586_v7  ;;  %v19598_v32 = vld [vmem:[#allocation2 + $0x80] sm:$0x1] }
 0x7b6   : > { %v8772_v25 = vsel %vm14458_vm7, %v8767_v45, %v8771_v57  ;;  %v19592_v17 = vcombine.low %v19557_v18, %v19565_v50  ;;  %v8799_v49 = vrot.slane %v8797_v2, 4  ;;  %v8803_v37 = vshll.u32 %v19576_v21, 16  ;;  %21514 = vst [vmem:[#allocation48_spill] sm:$0xff] %v19598_v32  ;;  %v19617_v21 = vld [vmem:[#allocation2 + $0xa0] sm:$0xf] }
 0x7b7   : > { %21511 = vst [vmem:[#allocation26_spill] sm:$0xff] %v19583_v52  ;;  %13566 = vmatmul.mubr.msk.bf16.gmra.mxu0 %vm1388_vm11, %v19583_v52  ;;  %v8777_v58 = vrot.slane %v8776_v60, 4  ;;  %v8790_v8 = vor.u32 %v8789_v44, %v8786_v23  ;;  %v8795_v41 = vrot.slane %v8793_v51, 5  ;;  %v8856_v29 = vshrl.u32 %v19581_v53, 16  ;;  %v19609_v51 = vld [vmem:[#allocation2 + $0x9c] sm:$0xf] }
 0x7b8   : > { %21513 = vst [vmem:[#allocation44_spill] sm:$0xff] %v19592_v17  ;;  %v8805_v13 = vrot.slane %v8803_v37, 5  ;;  %v8859_v57 = vshll.u32 %v19581_v53, 16  ;;  %v19603_v45 = vcombine.low %v19581_v53, %v19586_v7  ;;  %v8810_v2 = vrot.slane %v8808_v31, 4  ;;  %13610 = vmatmul.mubr.msk.bf16.gmra.mxu1 %vm1388_vm11, %v19592_v17  ;;  %21516 = vst [vmem:[#allocation31_spill] sm:$0xff] %v19609_v51 }
 0x7b9   : > { %v8782_v18 = vsel %vm14458_vm7, %v8777_v58, %v8781_v33  ;;  %v8791_v23 = vrot.slane %v8790_v8, 4  ;;  %v8800_v60 = vor.u32 %v8799_v49, %v8795_v41  ;;  %v8813_v44 = vrot.slane %v8811_v9, 5 }
 0x7ba   : > { %21515 = vst [vmem:[#allocation29_spill] sm:$0xff] %v19603_v45  ;;  %v19611_v52 = vcombine.low %v8772_v25, %v8782_v18  ;;  %13613 = vmatprep.mubr.msk.bf16.mxu1 %vm1388_vm11, %v19603_v45  ;;  %v8817_v37 = vshll.u32 %v19540_v35, 16  ;;  %v8823_v53 = vrot.slane %v8821_v3, 4  ;;  %v8827_v31 = vshll.u32 %v19598_v32, 16  ;;  %v19626_v45 = vld [vmem:[#allocation2 + $0x8c] sm:$0x1] }
 0x7bb   : > { %v8796_v33 = vsel %vm14458_vm7, %v8791_v23, %v8795_v41  ;;  %v8801_v58 = vrot.slane %v8800_v60, 4  ;;  %v8869_v9 = vshrl.u32 %v19586_v7, 16  ;;  %v8814_v49 = vor.u32 %v8813_v44, %v8810_v2  ;;  %21518 = vst [vmem:[#allocation34_spill] sm:$0xff] %v19626_v45  ;;  %v19631_v60 = vld [vmem:[#allocation2 + $0xa8] sm:$0xf] }
 0x7bc   : > { %21517 = vst [vmem:[#allocation30_spill] sm:$0xff] %v19611_v52  ;;  %13569 = vmatprep.mubr.msk.bf16.mxu0 %vm1388_vm11, %v19611_v52  ;;  %v8819_v25 = vrot.slane %v8817_v37, 5  ;;  %v8829_v18 = vrot.slane %v8827_v31, 5  ;;  %v8880_v8 = vshrl.u32 %v19609_v51, 16  ;;  %v8883_v3 = vshll.u32 %v19609_v51, 16  ;;  %21519 = vst [vmem:[#allocation17_spill] sm:$0xff] %v19631_v60 }
 0x7bd   : > { %v8806_v17 = vsel %vm14458_vm7, %v8801_v58, %v8805_v13  ;;  %v8815_v32 = vrot.slane %v8814_v49, 4  ;;  %v8893_v41 = vshrl.u32 %v19617_v21, 16  ;;  %v8834_v23 = vrot.slane %v8832_v62, 4  ;;  %v19636_v52 = vld [vmem:[#allocation2 + $0xac] sm:$0xf] }
 0x7be   : > { %v19633_v2 = vcombine.low %v8796_v33, %v8806_v17  ;;  %v8824_v44 = vor.u32 %v8823_v53, %v8819_v25  ;;  %v8837_v37 = vrot.slane %v8835_v36, 5  ;;  %v8841_v31 = vshll.u32 %v19565_v50, 16  ;;  %v19648_v49 = vld [vmem:[#allocation2 + $0x98] sm:$0x1] }
 0x7bf   : > { %v8820_v35 = vsel %vm14458_vm7, %v8815_v32, %v8819_v25  ;;  %v19642_v13 = vcombine.low %v19609_v51, %v19617_v21  ;;  %v8847_v58 = vrot.slane %v8845_v1, 4  ;;  %v8851_v62 = vshll.u32 %v19626_v45, 16  ;;  %21522 = vst [vmem:[#allocation42_spill] sm:$0xff] %v19648_v49  ;;  %v19667_v50 = vld [vmem:[#allocation2 + $0xb8] sm:$0xf] }
 0x7c0   : > { %21520 = vst [vmem:[#allocation36_spill] sm:$0xff] %v19633_v2  ;;  %13570 = vmatmul.mubr.msk.bf16.gmra.mxu0 %vm1388_vm11, %v19633_v2  ;;  %v8825_v17 = vrot.slane %v8824_v44, 4  ;;  %v8838_v53 = vor.u32 %v8837_v37, %v8834_v23  ;;  %v8843_v36 = vrot.slane %v8841_v31, 5  ;;  %v8904_v33 = vshrl.u32 %v19631_v60, 16  ;;  %v19659_v2 = vld [vmem:[#allocation2 + $0xb4] sm:$0xf] }
 0x7c1   : > { %21521 = vst [vmem:[#allocation45_spill] sm:$0xff] %v19642_v13  ;;  %13614 = vmatmul.mubr.msk.bf16.gmra.mxu1 %vm1388_vm11, %v19642_v13  ;;  %v8853_v32 = vrot.slane %v8851_v62, 5  ;;  %v8907_v25 = vshll.u32 %v19631_v60, 16  ;;  %v19655_v1 = vcombine.low %v19631_v60, %v19636_v52  ;;  %v8858_v51 = vrot.slane %v8856_v29, 4  ;;  %21524 = vst [vmem:[#allocation49_spill] sm:$0xff] %v19659_v2 }
 0x7c2   : > { %v8830_v44 = vsel %vm14458_vm7, %v8825_v17, %v8829_v18  ;;  %v8839_v23 = vrot.slane %v8838_v53, 4  ;;  %v8848_v37 = vor.u32 %v8847_v58, %v8843_v36  ;;  %v8861_v31 = vrot.slane %v8859_v57, 5 }
 0x7c3   : > { %21523 = vst [vmem:[#allocation51_spill] sm:$0xff] %v19655_v1  ;;  %v19661_v45 = vcombine.low %v8820_v35, %v8830_v44  ;;  %13617 = vmatprep.mubr.msk.bf16.mxu1 %vm1388_vm11, %v19655_v1  ;;  %v8865_v62 = vshll.u32 %v19586_v7, 16  ;;  %v8871_v13 = vrot.slane %v8869_v9, 4  ;;  %v8875_v60 = vshll.u32 %v19648_v49, 16  ;;  %v19676_v44 = vld [vmem:[#allocation2 + $0xa4] sm:$0x1] }
 0x7c4   : > { %v8844_v29 = vsel %vm14458_vm7, %v8839_v23, %v8843_v36  ;;  %v8849_v18 = vrot.slane %v8848_v37, 4  ;;  %v8917_v57 = vshrl.u32 %v19636_v52, 16  ;;  %v8862_v58 = vor.u32 %v8861_v31, %v8858_v51  ;;  %21526 = vst [vmem:[#allocation53_spill] sm:$0xff] %v19676_v44 }
 0x7c5   : > { %21525 = vst [vmem:[#allocation23_spill] sm:$0xff] %v19661_v45  ;;  %13573 = vmatprep.mubr.msk.bf16.mxu0 %vm1388_vm11, %v19661_v45  ;;  %v8867_v35 = vrot.slane %v8865_v62, 5  ;;  %v8877_v17 = vrot.slane %v8875_v60, 5  ;;  %v8928_v53 = vshrl.u32 %v19659_v2, 16  ;;  %v8931_v9 = vshll.u32 %v19659_v2, 16 }
 0x7c6   : > { %v8854_v1 = vsel %vm14458_vm7, %v8849_v18, %v8853_v32  ;;  %v8863_v49 = vrot.slane %v8862_v58, 4  ;;  %v19682_v36 = vcombine.low %v19659_v2, %v19667_v50  ;;  %v8882_v51 = vrot.slane %v8880_v8, 4  ;;  %v19687_v62 = vld [vmem:[#allocation2 + $0xb0] sm:$0x1] }
 0x7c7   : > { %v19684_v23 = vcombine.low %v8844_v29, %v8854_v1  ;;  %v8872_v37 = vor.u32 %v8871_v13, %v8867_v35  ;;  %v8885_v31 = vrot.slane %v8883_v3, 5  ;;  %v8889_v60 = vshll.u32 %v19617_v21, 16 }
 0x7c8   : > { %21527 = vst [vmem:[#allocation33_spill] sm:$0xff] %v19682_v36  ;;  %v8868_v45 = vsel %vm14458_vm7, %v8863_v49, %v8867_v35  ;;  %v8895_v7 = vrot.slane %v8893_v41, 4  ;;  %v8899_v32 = vshll.u32 %v19676_v44, 16  ;;  %v8906_v18 = vrot.slane %v8904_v33, 4 }
 0x7c9   : > { %21528 = vst [vmem:[#allocation13_spill] sm:$0xff] %v19684_v23  ;;  %13574 = vmatmul.mubr.msk.bf16.gmra.mxu0 %vm1388_vm11, %v19684_v23  ;;  %v8873_v58 = vrot.slane %v8872_v37, 4  ;;  %13618 = vmatmul.mubr.msk.bf16.gmra.mxu1 %vm1388_vm11, %v19682_v36  ;;  %v8886_v8 = vor.u32 %v8885_v31, %v8882_v51  ;;  %v8891_v3 = vrot.slane %v8889_v60, 5  ;;  %v8909_v13 = vrot.slane %v8907_v25, 5  ;;  %v19705_v31 = vld [vmem:[#allocation2 + $0xbc] sm:$0x1] }
 0x7ca   : > { %v8941_v1 = vshrl.u32 %v19667_v50, 16  ;;  %13661 = vmatprep.mubr.msk.bf16.mxu1 %vm1388_vm11, %v19346_v26  ;;  %v8913_v41 = vshll.u32 %v19636_v52, 16  ;;  %v8919_v49 = vrot.slane %v8917_v57, 4  ;;  %v8923_v33 = vshll.u32 %v19687_v62, 16 }
 0x7cb   : > { %v8878_v29 = vsel %vm14458_vm7, %v8873_v58, %v8877_v17  ;;  %v8887_v35 = vrot.slane %v8886_v8, 4  ;;  %v8896_v37 = vor.u32 %v8895_v7, %v8891_v3  ;;  %v8910_v23 = vor.u32 %v8909_v13, %v8906_v18  ;;  %v14069_v13 = vld [vmem:[#allocation2] sm:$0xf] }
 0x7cc   : > { %v19703_v36 = vcombine.low %v8868_v45, %v8878_v29  ;;  %v8901_v51 = vrot.slane %v8899_v32, 5  ;;  %v8915_v25 = vrot.slane %v8913_v41, 5  ;;  %v8930_v60 = vrot.slane %v8928_v53, 4  ;;  %v14071_v29 = vld [vmem:[#allocation2 + $0x8] sm:$0x1] }
 0x7cd   : > { %v8892_v26 = vsel %vm14458_vm7, %v8887_v35, %v8891_v3  ;;  %v8897_v44 = vrot.slane %v8896_v37, 4  ;;  %v8911_v57 = vrot.slane %v8910_v23, 4  ;;  %v8933_v2 = vrot.slane %v8931_v9, 5 }
 0x7ce   : > { %13577 = vmatprep.mubr.msk.bf16.mxu0 %vm1388_vm11, %v19703_v36  ;;  %v8920_v17 = vor.u32 %v8919_v49, %v8915_v25  ;;  %v8925_v58 = vrot.slane %v8923_v33, 5  ;;  %v8937_v7 = vshll.u32 %v19667_v50, 16  ;;  %v8943_v45 = vrot.slane %v8941_v1, 4  ;;  %v14026_v49 = vld [vmem:[%s20885_s6 + $0x50] sm:$0xff]   ;;  %v14070_v1 = vld [vmem:[#allocation2 + $0x4] sm:$0xf] }
 0x7cf   : > { %v8902_v32 = vsel %vm14458_vm7, %v8897_v44, %v8901_v51  ;;  %v8916_v53 = vsel %vm14458_vm7, %v8911_v57, %v8915_v25  ;;  %v8934_v18 = vor.u32 %v8933_v2, %v8930_v60  ;;  %v8947_v8 = vshll.u32 %v19705_v31, 16 }
 0x7d0   : > { %v19717_v3 = vcombine.low %v8892_v26, %v8902_v32  ;;  %v8921_v9 = vrot.slane %v8920_v17, 4  ;;  %v8939_v23 = vrot.slane %v8937_v7, 5  ;;  %v12117_v41 = vrot.slane %v14069_v13, 9 }
 0x7d1   : > { %13662 = vmatmul.mubr.msk.bf16.vlgmr.msra.gmra.mxu1 %vm1388_vm11, %v19360_v16  ;;  %v8935_v44 = vrot.slane %v8934_v18, 4  ;;  %v9544_v33 = vrot.slane %v14070_v1, 5  ;;  %v9547_v2 = vrot.slane %v14071_v29, 5  ;;  %v9551_v51 = vrot.slane %v19306_v55, 5  ;;  %v19742_v55 = vld [vmem:[%s20885_s6 + $0x78] sm:$0xff]  }
 0x7d2   : > { %13578 = vmatmul.mubr.msk.bf16.gmra.mxu0 %vm1388_vm11, %v19717_v3  ;;  %v8926_v35 = vsel %vm14458_vm7, %v8921_v9, %v8925_v58  ;;  %v8944_v37 = vor.u32 %v8943_v45, %v8939_v23  ;;  %13665 = vmatprep.mubr.msk.bf16.mxu1 %vm1388_vm11, %v19378_v10  ;;  %v8949_v26 = vrot.slane %v8947_v8, 5  ;;  %v9558_v45 = vrot.slane %v19324_v40, 5 }
 0x7d3   : > { %v19731_v25 = vcombine.low %v8916_v53, %v8926_v35  ;;  %v8940_v60 = vsel %vm14458_vm7, %v8935_v44, %v8939_v23  ;;  %v9546_v57 = vrot.slane %v9544_v33, 4  ;;  %13730 = vmatpush3.bf16.msra.mxu1 %v19386_v15  ;;  %v9545_v32 = vsel %vm14833_vm0, %v12117_v41, %v9544_v33 }
 0x7d4   : > { %v8945_v17 = vrot.slane %v8944_v37, 4  ;;  %v9553_v58 = vrot.slane %v9551_v51, 4  ;;  %13731 = vmatprep.subr.bf16.mxu1 %v14026_v49  ;;  %v9554_v53 = vrot.slane %v19351_v5, 5  ;;  %v12118_v18 = vrot.slane %v19322_v59, 9 }
 0x7d5   : > { %13581 = vmatprep.mubr.msk.bf16.mxu0 %vm1388_vm11, %v19731_v25  ;;  %v9548_v15 = vsel %vm14833_vm0, %v9546_v57, %v9547_v2  ;;  %v9565_v8 = vrot.slane %v19342_v20, 5  ;;  %v12119_v9 = vrot.slane %v19340_v47, 9  ;;  %v9561_v23 = vrot.slane %v19389_v56, 5 }
 0x7d6   : > { %v8950_v40 = vsel %vm14458_vm7, %v8945_v17, %v8949_v26  ;;  %v12120_v13 = vrot.slane %v19349_v38, 9  ;;  %v12137_v41 = vcombine.low %v9545_v32, %v9548_v15  ;;  %v9555_v44 = vsel %vm14833_vm0, %v9553_v58, %v9554_v53 }
 0x7d7   : > { %v19756_v5 = vcombine.low %v8940_v60, %v8950_v40  ;;  %v9560_v1 = vrot.slane %v9558_v45, 4  ;;  %13732 = vmatpush3.bf16.msra.mxu1 %v14026_v49  ;;  %v9567_v59 = vrot.slane %v9565_v8, 4  ;;  %v9568_v20 = vrot.slane %v19407_v43, 5 }
 0x7d8   : > { %v12121_v33 = vrot.slane %v19363_v22, 9  ;;  %v9572_v29 = vrot.slane %v19371_v48, 5  ;;  %13801 = vmatprep.subr.bf16.mxu1 %v19742_v55  ;;  %v9552_v47 = vsel %vm14833_vm0, %v12118_v18, %v9551_v51  ;;  %v9579_v56 = vrot.slane %v19396_v27, 5 }
 0x7d9   : > { %13666 = vmatmul.mubr.msk.bf16.gmra.mxu1 %vm1388_vm11, %v19400_v61  ;;  %v9562_v38 = vsel %vm14833_vm0, %v9560_v1, %v9561_v23  ;;  %v19773_v43 = vcombine.low %v9552_v47, %v9555_v44  ;;  %v9559_v22 = vsel %vm14833_vm0, %v12119_v9, %v9558_v45  ;;  %v9569_v48 = vsel %vm14833_vm0, %v9567_v59, %v9568_v20  ;;  %v14023_v9 = vld [vmem:[%s20885_s6 + $0x40] sm:$0xff]   ;;  %v21531_v44 = vld [vmem:[#allocation21_spill] sm:$0xff]  ;;  %v21532_v59 = vld [vmem:[#allocation27_spill] sm:$0xff] }
 0x7da   : > { %13582 = vmatmul.mubr.msk.bf16.gmra.mxu0 %vm1388_vm11, %v19756_v5  ;;  %13669 = vmatprep.mubr.msk.bf16.mxu1 %vm1388_vm11, %v19432_v11  ;;  %v9574_v49 = vrot.slane %v9572_v29, 4  ;;  %v19782_v2 = vcombine.low %v9559_v22, %v9562_v38  ;;  %v9566_v35 = vsel %vm14833_vm0, %v12120_v13, %v9565_v8  ;;  %v9575_v37 = vrot.slane %v19435_v63, 5  ;;  %v21530_v13 = vld [vmem:[#allocation39_spill] sm:$0xff]  ;;  %v21534_v47 = vld [vmem:[#allocation46_spill] sm:$0xff]  ;;  %v21535_v22 = vld [vmem:[#allocation48_spill] sm:$0xff] }
 0x7db   : > { %13625 = vmatprep.mubr.msk.bf16.mxu0 %vm1388_vm11, %v12137_v41  ;;  %v12122_v51 = vrot.slane %v19393_v28, 9  ;;  %v19788_v60 = vcombine.low %v9566_v35, %v9569_v48  ;;  %v9573_v26 = vsel %vm14833_vm0, %v12121_v33, %v9572_v29  ;;  %v12123_v57 = vrot.slane %v19413_v34, 9  ;;  %v21533_v33 = vld [vmem:[#allocation20_spill] sm:$0xff] }
 0x7dc   : > { %v9586_v17 = vrot.slane %v19420_v30, 5  ;;  %v9576_v32 = vsel %vm14833_vm0, %v9574_v49, %v9575_v37  ;;  %v9581_v58 = vrot.slane %v9579_v56, 4  ;;  %v12124_v45 = vrot.slane %v19443_v12, 9  ;;  %v21536_v37 = vld [vmem:[#allocation43_spill] sm:$0xff] }
 0x7dd   : > { %v9593_v63 = vrot.slane %v19457_v4, 5  ;;  %v9589_v15 = vrot.slane %v19500_v24, 5  ;;  %v9596_v34 = vrot.slane %v19527_v19, 5  ;;  %v12125_v8 = vrot.slane %v19478_v42, 9 }
 0x7de   : > { %v9587_v28 = vsel %vm14833_vm0, %v12123_v57, %v9586_v17  ;;  %v9588_v53 = vrot.slane %v9586_v17, 4  ;;  %v9600_v40 = vrot.slane %v19483_v0, 5  ;;  %v9603_v4 = vrot.slane %v19548_v14, 5  ;;  %v21537_v17 = vld [vmem:[#allocation50_spill] sm:$0xff] }
 0x7df   : > { %v9594_v30 = vsel %vm14833_vm0, %v12124_v45, %v9593_v63  ;;  %v9595_v18 = vrot.slane %v9593_v63, 4  ;;  %v12126_v24 = vrot.slane %v19504_v6, 9  ;;  %v9607_v19 = vrot.slane %v19506_v39, 5  ;;  %v19850_v63 = vld [vmem:[%s20885_s6 + $0x68] sm:$0xff]  }
 0x7e0   : > { %v9590_v12 = vsel %vm14833_vm0, %v9588_v53, %v9589_v15  ;;  %v9601_v0 = vsel %vm14833_vm0, %v12125_v8, %v9600_v40  ;;  %v9602_v14 = vrot.slane %v9600_v40, 4  ;;  %v9610_v1 = vrot.slane %v21531_v44, 5  ;;  %v21539_v40 = vld [vmem:[#allocation52_spill] sm:$0xff]  ;;  %v19869_v44 = vld [vmem:[#allocation2 + $0xc0] sm:$0xf] }
 0x7e1   : > { %13670 = vmatmul.mubr.msk.bf16.gmra.mxu1 %vm1388_vm11, %v19465_v54  ;;  %v19818_v23 = vcombine.low %v9587_v28, %v9590_v12  ;;  %v9597_v42 = vsel %vm14833_vm0, %v9595_v18, %v9596_v34  ;;  %v9608_v39 = vsel %vm14833_vm0, %v12126_v24, %v9607_v19  ;;  %v9609_v41 = vrot.slane %v9607_v19, 4  ;;  %v21538_v34 = vld [vmem:[#allocation34_spill] sm:$0xff] }
 0x7e2   : > { %13626 = vmatmul.mubr.msk.bf16.vlgmr.msra.gmra.mxu0 %vm1388_vm11, %v19773_v43  ;;  %13673 = vmatprep.mubr.msk.bf16.mxu1 %vm1388_vm11, %v21530_v13  ;;  %v19828_v6 = vcombine.low %v9594_v30, %v9597_v42  ;;  %v9604_v20 = vsel %vm14833_vm0, %v9602_v14, %v9603_v4  ;;  %v12127_v29 = vrot.slane %v21533_v33, 9  ;;  %v9614_v38 = vrot.slane %v21534_v47, 5  ;;  %v21540_v4 = vld [vmem:[#allocation41_spill] sm:$0xff]  ;;  %v21541_v42 = vld [vmem:[#allocation35_spill] sm:$0xff] }
 0x7e3   : > { %13694 = vmatpush3.bf16.msra.mxu0 %v21532_v59  ;;  %13629 = vmatprep.mubr.msk.bf16.mxu0 %vm1388_vm11, %v19782_v2  ;;  %v9617_v48 = vrot.slane %v21535_v22, 5  ;;  %v19841_v49 = vcombine.low %v9601_v0, %v9604_v20  ;;  %v9611_v35 = vsel %vm14833_vm0, %v9609_v41, %v9610_v1  ;;  %v12128_v57 = vrot.slane %v21536_v37, 9 }
 0x7e4   : > { %13695 = vmatprep.subr.bf16.mxu0 %v14023_v9  ;;  %v9621_v45 = vrot.slane %v21537_v17, 5  ;;  %v19852_v28 = vcombine.low %v9608_v39, %v9611_v35  ;;  %v9615_v53 = vsel %vm14833_vm0, %v12127_v29, %v9614_v38  ;;  %v9616_v15 = vrot.slane %v9614_v38, 4  ;;  %v21542_v39 = vld [vmem:[#allocation42_spill] sm:$0xff]  ;;  %v21544_v29 = vld [vmem:[#allocation31_spill] sm:$0xff]  ;;  %v21545_v38 = vld [vmem:[#allocation40_spill] sm:$0xff] }
 0x7e5   : > { %v9624_v30 = vrot.slane %v21538_v34, 5  ;;  %v12129_v12 = vrot.slane %v21539_v40, 9  ;;  %v9628_v24 = vrot.slane %v21540_v4, 5  ;;  %v9580_v19 = vsel %vm14833_vm0, %v12122_v51, %v9579_v56  ;;  %v21543_v51 = vld [vmem:[#allocation25_spill] sm:$0xff] }
 0x7e6   : > { %v9622_v18 = vsel %vm14833_vm0, %v12128_v57, %v9621_v45  ;;  %v9623_v8 = vrot.slane %v9621_v45, 4  ;;  %v9582_v0 = vrot.slane %v21541_v42, 5  ;;  %v9618_v14 = vsel %vm14833_vm0, %v9616_v15, %v9617_v48  ;;  %v21547_v45 = vld [vmem:[#allocation49_spill] sm:$0xff] }
 0x7e7   : > { %13696 = vmatpush3.bf16.msra.mxu0 %v14023_v9  ;;  %v9631_v41 = vrot.slane %v21542_v39, 5  ;;  %v19871_v1 = vcombine.low %v9615_v53, %v9618_v14  ;;  %v9629_v27 = vsel %vm14833_vm0, %v12129_v12, %v9628_v24  ;;  %v9630_v20 = vrot.slane %v9628_v24, 4 }
 0x7e8   : > { %v9625_v59 = vsel %vm14833_vm0, %v9623_v8, %v9624_v30  ;;  %13765 = vmatprep.subr.bf16.mxu0 %v19850_v63  ;;  %v19878_v56 = vcombine.low %v9573_v26, %v9576_v32  ;;  %v9583_v9 = vsel %vm14833_vm0, %v9581_v58, %v9582_v0  ;;  %v12130_v47 = vrot.slane %v21544_v29, 9  ;;  %v19893_v32 = vld [vmem:[#allocation2 + $0xc4] sm:$0xf]  ;;  %v21546_v58 = vld [vmem:[#allocation17_spill] sm:$0xff] }
 0x7e9   : > { %13674 = vmatmul.mubr.msk.bf16.gmra.mxu1 %vm1388_vm11, %v21543_v51  ;;  %v19884_v33 = vcombine.low %v9622_v18, %v9625_v59  ;;  %v9632_v26 = vsel %vm14833_vm0, %v9630_v20, %v9631_v41  ;;  %v10179_v22 = vshrl.u32 %v19869_v44, 16  ;;  %v9635_v48 = vrot.slane %v19617_v21, 5  ;;  %v21548_v30 = vld [vmem:[#allocation53_spill] sm:$0xff]  ;;  %v19928_v59 = vld [vmem:[#allocation2 + $0xc8] sm:$0x1]  ;;  %v21551_v29 = vld [vmem:[#allocation18_spill] sm:$0xff] }
 0x7ea   : > { %13630 = vmatmul.mubr.msk.bf16.gmra.mxu0 %vm1388_vm11, %v19788_v60  ;;  %13677 = vmatprep.mubr.msk.bf16.mxu1 %vm1388_vm11, %v21545_v38  ;;  %v12131_v35 = vrot.slane %v21546_v58, 9  ;;  %v19900_v37 = vcombine.low %v9629_v27, %v9632_v26  ;;  %v10182_v57 = vshll.u32 %v19869_v44, 16  ;;  %v9642_v17 = vrot.slane %v19636_v52, 5 }
 0x7eb   : > { %13633 = vmatprep.mubr.msk.bf16.mxu0 %vm1388_vm11, %v19878_v56  ;;  %v12132_v53 = vrot.slane %v21547_v45, 9  ;;  %v9636_v15 = vsel %vm14833_vm0, %v12130_v47, %v9635_v48  ;;  %v9637_v34 = vrot.slane %v9635_v48, 4  ;;  %v9638_v18 = vrot.slane %v21548_v30, 5  ;;  %v21553_v47 = vld [vmem:[#allocation44_spill] sm:$0xff] }
 0x7ec   : > { %v9649_v21 = vrot.slane %v19667_v50, 5  ;;  %v10192_v8 = vshrl.u32 %v19893_v32, 16  ;;  %v9643_v40 = vsel %vm14833_vm0, %v12131_v35, %v9642_v17  ;;  %v9644_v12 = vrot.slane %v9642_v17, 4 }
 0x7ed   : > { %v9645_v4 = vrot.slane %v19687_v62, 5  ;;  %v9639_v52 = vsel %vm14833_vm0, %v9637_v34, %v9638_v18  ;;  %v9652_v0 = vrot.slane %v19705_v31, 5  ;;  %v19918_v14 = vcombine.low %v9580_v19, %v9583_v9  ;;  %v21555_v34 = vld [vmem:[#allocation45_spill] sm:$0xff]  ;;  %v21556_v18 = vld [vmem:[#allocation51_spill] sm:$0xff] }
 0x7ee   : > { %v9650_v24 = vsel %vm14833_vm0, %v12132_v53, %v9649_v21  ;;  %v9651_v42 = vrot.slane %v9649_v21, 4  ;;  %v19920_v50 = vcombine.low %v9636_v15, %v9639_v52  ;;  %v10181_v27 = vrot.slane %v10179_v22, 4  ;;  %v21554_v53 = vld [vmem:[#allocation29_spill] sm:$0xff]  ;;  %v20011_v52 = vld [vmem:[%s20885_s6 + $0x88] sm:$0xff]  }
 0x7ef   : > { %v9646_v39 = vsel %vm14833_vm0, %v9644_v12, %v9645_v4  ;;  %v10184_v20 = vrot.slane %v10182_v57, 5  ;;  %v10188_v19 = vshll.u32 %v19893_v32, 16  ;;  %v10194_v9 = vrot.slane %v10192_v8, 4  ;;  %v21557_v21 = vld [vmem:[#allocation33_spill] sm:$0xff]  ;;  %v14028_v12 = vld [vmem:[%s20885_s6 + $0x60] sm:$0xff]  }
 0x7f0   : > { %21549 = vst [vmem:[#allocation32_spill] sm:$0xff] %v19920_v50  ;;  %v19924_v41 = vcombine.low %v9643_v40, %v9646_v39  ;;  %v9653_v62 = vsel %vm14833_vm0, %v9651_v42, %v9652_v0  ;;  %v10198_v48 = vshll.u32 %v19928_v59, 16  ;;  %v19966_v8 = vcombine.low %v19869_v44, %v19893_v32  ;;  %v14030_v40 = vld [vmem:[%s20885_s6 + $0x70] sm:$0xff]   ;;  %v21560_v4 = vld [vmem:[#allocation22_spill] sm:$0xff]  ;;  %v21563_v42 = vld [vmem:[#allocation47_spill] sm:$0xff] }
 0x7f1   : > { %13678 = vmatmul.mubr.msk.bf16.gmra.mxu1 %vm1388_vm11, %v21551_v29  ;;  %v19932_v31 = vcombine.low %v9650_v24, %v9653_v62  ;;  %v10185_v26 = vor.u32 %v10184_v20, %v10181_v27  ;;  %v10190_v22 = vrot.slane %v10188_v19, 5  ;;  %v21561_v24 = vld [vmem:[#allocation38_spill] sm:$0xff]  ;;  %v21566_v62 = vld [vmem:[#allocation36_spill] sm:$0xff]  ;;  %v10421_v27 = vrot.slane %v19893_v32, 5  ;;  %v21567_v19 = vld [vmem:[#allocation23_spill] sm:$0xff] }
 0x7f2   : > { %21550 = vst [vmem:[#allocation14_spill] sm:$0xff] %v19924_v41  ;;  %13634 = vmatmul.mubr.msk.bf16.gmra.mxu0 %vm1388_vm11, %v19918_v14  ;;  %13681 = vmatprep.mubr.msk.bf16.mxu1 %vm1388_vm11, %v21553_v47  ;;  %v10200_v45 = vrot.slane %v10198_v48, 5  ;;  %v21564_v0 = vld [vmem:[#allocation26_spill] sm:$0xff] }
 0x7f3   : > { %21552 = vst [vmem:[#allocation15_spill] sm:$0xff] %v19932_v31  ;;  %13637 = vmatprep.mubr.msk.bf16.mxu0 %vm1388_vm11, %v19818_v23  ;;  %v10186_v58 = vrot.slane %v10185_v26, 4  ;;  %v10195_v35 = vor.u32 %v10194_v9, %v10190_v22  ;;  %v21565_v39 = vld [vmem:[#allocation30_spill] sm:$0xff]  ;;  %v10423_v20 = vrot.slane %v10421_v27, 4  ;;  %v12217_v9 = vrot.slane %v19869_v44, 9 }
 0x7f4   : > { %v10424_v26 = vrot.slane %v19928_v59, 5 }
 0x7f5   : > { %v10191_v57 = vsel %vm14458_vm7, %v10186_v58, %v10190_v22  ;;  %v10196_v17 = vrot.slane %v10195_v35, 4  ;;  %v21568_v22 = vld [vmem:[#allocation13_spill] sm:$0xff]  ;;  %v10422_v48 = vsel %vm14833_vm0, %v12217_v9, %v10421_v27 }
 0x7f6   : > { %v10425_v32 = vsel %vm14833_vm0, %v10423_v20, %v10424_v26 }
 0x7f7   : > { %v10201_v15 = vsel %vm14458_vm7, %v10196_v17, %v10200_v45  ;;  %v20053_v58 = vcombine.low %v10422_v48, %v10425_v32  ;;  %v20077_v45 = vld [vmem:[#allocation2 + $0xcc] sm:$0xf]  ;;  %v14032_v48 = vld [vmem:[%s20885_s6 + $0x80] sm:$0xff]  }
 0x7f8   : > { %v19952_v30 = vcombine.low %v10191_v57, %v10201_v15  ;;  %v20079_v15 = vld [vmem:[#allocation2 + $0xd0] sm:$0xf] }
 0x7f9   : > { %13682 = vmatmul.mubr.msk.bf16.gmra.mxu1 %vm1388_vm11, %v21554_v53  ;;  %21569 = vst [vmem:[#allocation16_spill] sm:$0xff] %v20053_v58 }
 0x7fa   : > { %13638 = vmatmul.mubr.msk.bf16.gmra.mxu0 %vm1388_vm11, %v19828_v6  ;;  %13685 = vmatprep.mubr.msk.bf16.mxu1 %vm1388_vm11, %v21555_v34 }
 0x7fb   : > { %13641 = vmatprep.mubr.msk.bf16.mxu0 %vm1388_vm11, %v19841_v49 }
 0x801   : > { %13686 = vmatmul.mubr.msk.bf16.gmra.mxu1 %vm1388_vm11, %v21556_v18 }
 0x802   : > { %13642 = vmatmul.mubr.msk.bf16.gmra.mxu0 %vm1388_vm11, %v19852_v28  ;;  %13689 = vmatprep.mubr.msk.bf16.mxu1 %vm1388_vm11, %v21557_v21 }
 0x803   : > { %13645 = vmatprep.mubr.msk.bf16.mxu0 %vm1388_vm11, %v19871_v1 }
 0x809   : > { %13690 = vmatmul.mubr.msk.bf16.gmra.mxu1 %vm1388_vm11, %v19966_v8 }
 0x80a   : > { %13646 = vmatmul.mubr.msk.bf16.gmra.mxu0 %vm1388_vm11, %v19884_v33  ;;  %13733 = vmatprep.mubr.msk.bf16.mxu1 %vm1388_vm11, %v19773_v43  ;;  %v21558_v43 = vld [vmem:[#allocation19_spill] sm:$0xff] }
 0x80b   : > { %13649 = vmatprep.mubr.msk.bf16.mxu0 %vm1388_vm11, %v19900_v37 }
 0x811   : > { %13734 = vmatmul.mubr.msk.bf16.vlgmr.msra.gmra.mxu1 %vm1388_vm11, %v19782_v2 }
 0x812   : > { %13650 = vmatmul.mubr.msk.bf16.gmra.mxu0 %vm1388_vm11, %v19920_v50  ;;  %13737 = vmatprep.mubr.msk.bf16.mxu1 %vm1388_vm11, %v19788_v60 }
 0x813   : > { %13653 = vmatprep.mubr.msk.bf16.mxu0 %vm1388_vm11, %v19924_v41  ;;  %13802 = vmatpush3.bf16.msra.mxu1 %v19742_v55  ;;  %v21559_v55 = vld [vmem:[#allocation24_spill] sm:$0xff] }
 0x814   : > { %13803 = vmatprep.subr.bf16.mxu1 %v14030_v40 }
 0x817   : > { %13804 = vmatpush3.bf16.msra.mxu1 %v14030_v40  ;;  %v20081_v40 = vld [vmem:[#allocation2 + $0xd4] sm:$0x1] }
 0x819   : > { %13738 = vmatmul.mubr.msk.bf16.gmra.mxu1 %vm1388_vm11, %v19878_v56 }
 0x81a   : > { %13654 = vmatmul.mubr.msk.bf16.gmra.mxu0 %vm1388_vm11, %v19932_v31  ;;  %13741 = vmatprep.mubr.msk.bf16.mxu1 %vm1388_vm11, %v19918_v14 }
 0x81b   : > { %13697 = vmatprep.mubr.msk.bf16.mxu0 %vm1388_vm11, %v21558_v43 }
 0x821   : > { %13742 = vmatmul.mubr.msk.bf16.gmra.mxu1 %vm1388_vm11, %v19818_v23 }
 0x822   : > { %13698 = vmatmul.mubr.msk.bf16.vlgmr.msra.gmra.mxu0 %vm1388_vm11, %v21559_v55  ;;  %13745 = vmatprep.mubr.msk.bf16.mxu1 %vm1388_vm11, %v19828_v6 }
 0x823   : > { %13766 = vmatpush3.bf16.msra.mxu0 %v19850_v63  ;;  %13701 = vmatprep.mubr.msk.bf16.mxu0 %vm1388_vm11, %v21560_v4  ;;  %v21562_v63 = vld [vmem:[#allocation37_spill] sm:$0xff] }
 0x824   : > { %13767 = vmatprep.subr.bf16.mxu0 %v14028_v12 }
 0x827   : > { %13768 = vmatpush3.bf16.msra.mxu0 %v14028_v12  ;;  %v12287_v12 = vrot.slane %v20077_v45, 9 }
 0x828   : > { %13837 = vmatprep.subr.bf16.mxu0 %v20011_v52 }
 0x829   : > { %13746 = vmatmul.mubr.msk.bf16.gmra.mxu1 %vm1388_vm11, %v19841_v49 }
 0x82a   : > { %13702 = vmatmul.mubr.msk.bf16.gmra.mxu0 %vm1388_vm11, %v21561_v24  ;;  %13749 = vmatprep.mubr.msk.bf16.mxu1 %vm1388_vm11, %v19852_v28 }
 0x82b   : > { %13705 = vmatprep.mubr.msk.bf16.mxu0 %vm1388_vm11, %v21562_v63 }
 0x831   : > { %13750 = vmatmul.mubr.msk.bf16.gmra.mxu1 %vm1388_vm11, %v19871_v1 }
 0x832   : > { %13706 = vmatmul.mubr.msk.bf16.gmra.mxu0 %vm1388_vm11, %v21563_v42  ;;  %13753 = vmatprep.mubr.msk.bf16.mxu1 %vm1388_vm11, %v19884_v33 }
 0x833   : > { %13709 = vmatprep.mubr.msk.bf16.mxu0 %vm1388_vm11, %v21564_v0 }
 0x839   : > { %13754 = vmatmul.mubr.msk.bf16.gmra.mxu1 %vm1388_vm11, %v19900_v37 }
 0x83a   : > { %13710 = vmatmul.mubr.msk.bf16.gmra.mxu0 %vm1388_vm11, %v21565_v39  ;;  %13757 = vmatprep.mubr.msk.bf16.mxu1 %vm1388_vm11, %v19920_v50 }
 0x83b   : > { %13713 = vmatprep.mubr.msk.bf16.mxu0 %vm1388_vm11, %v21566_v62 }
 0x841   : > { %13758 = vmatmul.mubr.msk.bf16.gmra.mxu1 %vm1388_vm11, %v19924_v41 }
 0x842   : > { %13714 = vmatmul.mubr.msk.bf16.gmra.mxu0 %vm1388_vm11, %v21567_v19  ;;  %13761 = vmatprep.mubr.msk.bf16.mxu1 %vm1388_vm11, %v19932_v31 }
 0x843   : > { %13717 = vmatprep.mubr.msk.bf16.mxu0 %vm1388_vm11, %v21568_v22 }
 0x849   : > { %13762 = vmatmul.mubr.msk.bf16.gmra.mxu1 %vm1388_vm11, %v20053_v58 }
 0x84a   : > { %13718 = vmatmul.mubr.msk.bf16.gmra.mxu0 %vm1388_vm11, %v19703_v36  ;;  %13805 = vmatprep.mubr.msk.bf16.mxu1 %vm1388_vm11, %v21559_v55  ;;  %v11103_v55 = vrot.slane %v20079_v15, 5 }
 0x84b   : > { %13721 = vmatprep.mubr.msk.bf16.mxu0 %vm1388_vm11, %v19717_v3 }
 0x84c   : > { %v11105_v27 = vrot.slane %v11103_v55, 4 }
 0x84e   : > { %v13591_v44 = vpop.f32.mrf.mxu1 }
 0x850   : > { %v9399_v59 = vpop.f32.mrf.mxu1 }
 0x851   : > { %13806 = vmatmul.mubr.msk.bf16.vlgmr.msra.gmra.mxu1 %vm1388_vm11, %v21560_v4  ;;  %v11106_v4 = vrot.slane %v20081_v40, 5 }
 0x852   : > { %13722 = vmatmul.mubr.msk.bf16.gmra.mxu0 %vm1388_vm11, %v19731_v25  ;;  %13809 = vmatprep.mubr.msk.bf16.mxu1 %vm1388_vm11, %v21561_v24  ;;  %v13592_v35 = vpop.f32.mrf.mxu1 }
 0x853   : > { %13725 = vmatprep.mubr.msk.bf16.mxu0 %vm1388_vm11, %v19756_v5 }
 0x854   : > { %v9402_v57 = vpop.f32.mrf.mxu1 }
 0x856   : > { %v13595_v17 = vpop.f32.mrf.mxu1 }
 0x858   : > { %v9415_v43 = vpop.f32.mrf.mxu1 }
 0x859   : > { %13810 = vmatmul.mubr.msk.bf16.gmra.mxu1 %vm1388_vm11, %v21562_v63 }
 0x85a   : > { %13726 = vmatmul.mubr.msk.bf16.gmra.mxu0 %vm1388_vm11, %v19952_v30  ;;  %13813 = vmatprep.mubr.msk.bf16.mxu1 %vm1388_vm11, %v21563_v42  ;;  %v13596_v63 = vpop.f32.mrf.mxu1  ;;  %v20090_v42 = vsel %vm14833_vm0, %v12287_v12, %v11103_v55 }
 0x85b   : > { %13769 = vmatprep.mubr.msk.bf16.mxu0 %vm1388_vm11, %v19360_v16  ;;  %21570 = vst [vmem:[#allocation28_spill] sm:$0xff] %v20090_v42  ;;  %v20096_v16 = vsel %vm14833_vm0, %v11105_v27, %v11106_v4 }
 0x85c   : > { %v9418_v26 = vpop.f32.mrf.mxu1  ;;  %21571 = vst [vmem:[#allocation39_spill] sm:$0xff] %v20096_v16 }
 0x85d   : > { %v13555_v24 = vpop.f32.mrf.mxu0 }
 0x85e   : > { %v20092_v20 = vadd.f32 %v13591_v44, %v13555_v24  ;;  %v13599_v31 = vpop.f32.mrf.mxu1 }
 0x85f   : > { %v9098_v9 = vpop.f32.mrf.mxu0 }
 0x860   : > { %v20098_v32 = vadd.f32 %v9399_v59, %v9098_v9  ;;  %v9431_v59 = vpop.f32.mrf.mxu1 }
 0x861   : > { %v13556_v12 = vpop.f32.mrf.mxu0  ;;  %13814 = vmatmul.mubr.msk.bf16.gmra.mxu1 %vm1388_vm11, %v21564_v0 }
 0x862   : > { %13770 = vmatmul.mubr.msk.bf16.vlgmr.msra.gmra.mxu0 %vm1388_vm11, %v19378_v10  ;;  %v20109_v7 = vadd.f32 %v13592_v35, %v13556_v12  ;;  %13817 = vmatprep.mubr.msk.bf16.mxu1 %vm1388_vm11, %v21565_v39  ;;  %v13600_v0 = vpop.f32.mrf.mxu1 }
 0x863   : > { %13838 = vmatpush3.bf16.msra.mxu0 %v20011_v52  ;;  %13773 = vmatprep.mubr.msk.bf16.mxu0 %vm1388_vm11, %v19400_v61  ;;  %v9101_v44 = vpop.f32.mrf.mxu0 }
 0x864   : > { %v20116_v55 = vadd.f32 %v9402_v57, %v9101_v44  ;;  %13839 = vmatprep.subr.bf16.mxu0 %v14032_v48  ;;  %v9434_v35 = vpop.f32.mrf.mxu1 }
 0x865   : > { %v13559_v4 = vpop.f32.mrf.mxu0 }
 0x866   : > { %v20118_v24 = vadd.f32 %v13595_v17, %v13559_v4  ;;  %v13603_v9 = vpop.f32.mrf.mxu1 }
 0x867   : > { %v9114_v10 = vpop.f32.mrf.mxu0  ;;  %13840 = vmatpush3.bf16.msra.mxu0 %v14032_v48 }
 0x868   : > { %v20120_v27 = vadd.f32 %v9415_v43, %v9114_v10  ;;  %v9447_v57 = vpop.f32.mrf.mxu1 }
 0x869   : > { %v13560_v39 = vpop.f32.mrf.mxu0  ;;  %13818 = vmatmul.mubr.msk.bf16.gmra.mxu1 %vm1388_vm11, %v21566_v62 }
 0x86a   : > { %13774 = vmatmul.mubr.msk.bf16.gmra.mxu0 %vm1388_vm11, %v19432_v11  ;;  %v20126_v61 = vadd.f32 %v13596_v63, %v13560_v39  ;;  %13821 = vmatprep.mubr.msk.bf16.mxu1 %vm1388_vm11, %v21567_v19  ;;  %v13604_v43 = vpop.f32.mrf.mxu1  ;;  %v10861_v19 = vshrl.u32 %v20077_v45, 16  ;;  %v10874_v63 = vshrl.u32 %v20079_v15, 16 }
 0x86b   : > { %13777 = vmatprep.mubr.msk.bf16.mxu0 %vm1388_vm11, %v19465_v54  ;;  %v9117_v52 = vpop.f32.mrf.mxu0 }
 0x86c   : > { %v20132_v17 = vadd.f32 %v9418_v26, %v9117_v52  ;;  %v9450_v62 = vpop.f32.mrf.mxu1  ;;  %v10870_v26 = vshll.u32 %v20079_v15, 16  ;;  %v10863_v52 = vrot.slane %v10861_v19, 4 }
 0x86e   : > { %v13563_v48 = vpop.f32.mrf.mxu0  ;;  %v13607_v11 = vpop.f32.mrf.mxu1 }
 0x86f   : > { %v20134_v12 = vadd.f32 %v13599_v31, %v13563_v48  ;;  %v10864_v31 = vshll.u32 %v20077_v45, 16  ;;  %v10872_v48 = vrot.slane %v10870_v26, 5 }
 0x870   : > { %v9130_v44 = vpop.f32.mrf.mxu0 }
 0x871   : > { %v20136_v4 = vadd.f32 %v9431_v59, %v9130_v44  ;;  %13822 = vmatmul.mubr.msk.bf16.gmra.mxu1 %vm1388_vm11, %v21568_v22  ;;  %v9463_v22 = vpop.f32.mrf.mxu1  ;;  %v10876_v44 = vrot.slane %v10874_v63, 4 }
 0x872   : > { %13778 = vmatmul.mubr.msk.bf16.gmra.mxu0 %vm1388_vm11, %v21530_v13  ;;  %v13564_v54 = vpop.f32.mrf.mxu0  ;;  %13825 = vmatprep.mubr.msk.bf16.mxu1 %vm1388_vm11, %v19703_v36  ;;  %v10866_v36 = vrot.slane %v10864_v31, 5 }
 0x873   : > { %13781 = vmatprep.mubr.msk.bf16.mxu0 %vm1388_vm11, %v21543_v51  ;;  %v20150_v59 = vadd.f32 %v13600_v0, %v13564_v54  ;;  %v13608_v39 = vpop.f32.mrf.mxu1  ;;  %v10880_v54 = vshll.u32 %v20081_v40, 16 }
 0x874   : > { %v9133_v10 = vpop.f32.mrf.mxu0  ;;  %v10867_v0 = vor.u32 %v10866_v36, %v10863_v52 }
 0x875   : > { %v20152_v13 = vadd.f32 %v9434_v35, %v9133_v10  ;;  %v9466_v16 = vpop.f32.mrf.mxu1  ;;  %v10877_v35 = vor.u32 %v10876_v44, %v10872_v48 }
 0x877   : > { %v13567_v58 = vpop.f32.mrf.mxu0 }
 0x878   : > { %v20154_v42 = vadd.f32 %v13603_v9, %v13567_v58  ;;  %v13611_v50 = vpop.f32.mrf.mxu1 }
 0x879   : > { %v9146_v41 = vpop.f32.mrf.mxu0  ;;  %13826 = vmatmul.mubr.msk.bf16.gmra.mxu1 %vm1388_vm11, %v19717_v3 }
 0x87a   : > { %13782 = vmatmul.mubr.msk.bf16.gmra.mxu0 %vm1388_vm11, %v21545_v38  ;;  %v20160_v51 = vadd.f32 %v9447_v57, %v9146_v41  ;;  %13829 = vmatprep.mubr.msk.bf16.mxu1 %vm1388_vm11, %v19731_v25  ;;  %v9479_v9 = vpop.f32.mrf.mxu1  ;;  %v10868_v38 = vrot.slane %v10867_v0, 4  ;;  %v10878_v41 = vrot.slane %v10877_v35, 4  ;;  %v10882_v57 = vrot.slane %v10880_v54, 5 }
 0x87b   : > { %13785 = vmatprep.mubr.msk.bf16.mxu0 %vm1388_vm11, %v21551_v29  ;;  %v13568_v58 = vpop.f32.mrf.mxu0 }
 0x87c   : > { %v20167_v19 = vadd.f32 %v13604_v43, %v13568_v58  ;;  %v13612_v31 = vpop.f32.mrf.mxu1  ;;  %v10873_v40 = vsel %vm14458_vm7, %v10868_v38, %v10872_v48  ;;  %v10883_v43 = vsel %vm14458_vm7, %v10878_v41, %v10882_v57 }
 0x87d   : > { %v9149_v3 = vpop.f32.mrf.mxu0  ;;  %v12268_v44 = vcombine.low %v10873_v40, %v10883_v43 }
 0x87e   : > { %v20169_v63 = vadd.f32 %v9450_v62, %v9149_v3  ;;  %v9482_v26 = vpop.f32.mrf.mxu1 }
 0x880   : > { %v13571_v25 = vpop.f32.mrf.mxu0 }
 0x881   : > { %v20171_v10 = vadd.f32 %v13607_v11, %v13571_v25  ;;  %v13615_v52 = vpop.f32.mrf.mxu1  ;;  %13830 = vmatmul.mubr.msk.bf16.gmra.mxu1 %vm1388_vm11, %v19756_v5 }
 0x882   : > { %13786 = vmatmul.mubr.msk.bf16.gmra.mxu0 %vm1388_vm11, %v21553_v47  ;;  %v9162_v29 = vpop.f32.mrf.mxu0  ;;  %13833 = vmatprep.mubr.msk.bf16.mxu1 %vm1388_vm11, %v19952_v30 }
 0x883   : > { %13789 = vmatprep.mubr.msk.bf16.mxu0 %vm1388_vm11, %v21554_v53  ;;  %v20185_v62 = vadd.f32 %v9463_v22, %v9162_v29  ;;  %v9495_v11 = vpop.f32.mrf.mxu1 }
 0x884   : > { %v13572_v5 = vpop.f32.mrf.mxu0 }
 0x885   : > { %v20187_v36 = vadd.f32 %v13608_v39, %v13572_v5  ;;  %v13616_v47 = vpop.f32.mrf.mxu1 }
 0x886   : > { %v9165_v0 = vpop.f32.mrf.mxu0 }
 0x887   : > { %v20189_v35 = vadd.f32 %v9466_v16, %v9165_v0  ;;  %v9498_v30 = vpop.f32.mrf.mxu1 }
 0x889   : > { %v13575_v54 = vpop.f32.mrf.mxu0  ;;  %v13619_v48 = vpop.f32.mrf.mxu1  ;;  %13834 = vmatmul.mubr.msk.bf16.gmra.mxu1 %vm1388_vm11, %v12268_v44 }
 0x88a   : > { %v20192_v46 = vadd.f32 %v13611_v50, %v13575_v54  ;;  %13790 = vmatmul.mubr.msk.bf16.gmra.mxu0 %vm1388_vm11, %v21555_v34 }
 0x88b   : > { %13793 = vmatprep.mubr.msk.bf16.mxu0 %vm1388_vm11, %v21556_v18  ;;  %v9178_v53 = vpop.f32.mrf.mxu0  ;;  %v9511_v22 = vpop.f32.mrf.mxu1 }
 0x88c   : > { %v20198_v39 = vadd.f32 %v9479_v9, %v9178_v53 }
 0x88d   : > { %v13576_v58 = vpop.f32.mrf.mxu0  ;;  %v13620_v16 = vpop.f32.mrf.mxu1 }
 0x88e   : > { %v20200_v3 = vadd.f32 %v13612_v31, %v13576_v58 }
 0x88f   : > { %v9181_v38 = vpop.f32.mrf.mxu0  ;;  %v9514_v41 = vpop.f32.mrf.mxu1 }
 0x890   : > { %v20202_v57 = vadd.f32 %v9482_v26, %v9181_v38  ;;  %v12245_v26 = vcombine.low %v20077_v45, %v20079_v15 }
 0x891   : > { %v13663_v50 = vpop.f32.mrf.mxu1 }
 0x892   : > { %v13579_v25 = vpop.f32.mrf.mxu0  ;;  %13794 = vmatmul.mubr.msk.bf16.gmra.mxu0 %vm1388_vm11, %v21557_v21 }
 0x893   : > { %v20206_v34 = vadd.f32 %v13615_v52, %v13579_v25  ;;  %13797 = vmatprep.mubr.msk.bf16.mxu0 %vm1388_vm11, %v19966_v8  ;;  %v10019_v18 = vpop.f32.mrf.mxu1 }
 0x894   : > { %v9194_v9 = vpop.f32.mrf.mxu0 }
 0x895   : > { %v20210_v29 = vadd.f32 %v9495_v11, %v9194_v9  ;;  %v13664_v31 = vpop.f32.mrf.mxu1 }
 0x896   : > { %v13580_v40 = vpop.f32.mrf.mxu0 }
 0x897   : > { %v20214_v43 = vadd.f32 %v13616_v47, %v13580_v40  ;;  %v10022_v5 = vpop.f32.mrf.mxu1 }
 0x898   : > { %v9197_v44 = vpop.f32.mrf.mxu0 }
 0x899   : > { %v20216_v0 = vadd.f32 %v9498_v30, %v9197_v44  ;;  %v13667_v21 = vpop.f32.mrf.mxu1 }
 0x89a   : > { %v13583_v52 = vpop.f32.mrf.mxu0  ;;  %13798 = vmatmul.mubr.msk.bf16.gmra.mxu0 %vm1388_vm11, %v12245_v26 }
 0x89b   : > { %v20219_v8 = vadd.f32 %v13619_v48, %v13583_v52  ;;  %13841 = vmatprep.mubr.msk.bf16.mxu0 %vm1388_vm11, %v19782_v2  ;;  %v10035_v11 = vpop.f32.mrf.mxu1 }
 0x89c   : > { %v9210_v54 = vpop.f32.mrf.mxu0 }
 0x89d   : > { %v20223_v53 = vadd.f32 %v9511_v22, %v9210_v54  ;;  %v13668_v45 = vpop.f32.mrf.mxu1 }
 0x89e   : > { %v13584_v15 = vpop.f32.mrf.mxu0 }
 0x89f   : > { %v20225_v47 = vadd.f32 %v13620_v16, %v13584_v15  ;;  %v10038_v58 = vpop.f32.mrf.mxu1 }
 0x8a0   : > { %v9213_v30 = vpop.f32.mrf.mxu0 }
 0x8a1   : > { %v20227_v38 = vadd.f32 %v9514_v41, %v9213_v30  ;;  %v13671_v25 = vpop.f32.mrf.mxu1 }
 0x8a2   : > { %v13627_v9 = vpop.f32.mrf.mxu0  ;;  %13842 = vmatmul.mubr.msk.bf16.vlgmr.msra.gmra.mxu0 %vm1388_vm11, %v19788_v60 }
 0x8a3   : > { %v9930_v48 = vadd.f32 %v13627_v9, %v20092_v20  ;;  %13845 = vmatprep.mubr.msk.bf16.mxu0 %vm1388_vm11, %v19878_v56  ;;  %v10051_v2 = vpop.f32.mrf.mxu1 }
 0x8a4   : > { %v9801_v22 = vpop.f32.mrf.mxu0 }
 0x8a5   : > { %v9928_v40 = vadd.f32 %v9801_v22, %v20098_v32  ;;  %v13672_v16 = vpop.f32.mrf.mxu1  ;;  %v20235_v26 = vadd.f32 %v13663_v50, %v9930_v48 }
 0x8a6   : > { %v13628_v44 = vpop.f32.mrf.mxu0 }
 0x8a7   : > { %v9931_v41 = vadd.f32 %v13628_v44, %v20109_v7  ;;  %v10054_v52 = vpop.f32.mrf.mxu1  ;;  %v20238_v54 = vadd.f32 %v10019_v18, %v9928_v40 }
 0x8a8   : > { %v9804_v15 = vpop.f32.mrf.mxu0 }
 0x8a9   : > { %v9929_v60 = vadd.f32 %v9804_v15, %v20116_v55  ;;  %v13675_v20 = vpop.f32.mrf.mxu1  ;;  %v20241_v30 = vadd.f32 %v13664_v31, %v9931_v41 }
 0x8aa   : > { %v13631_v56 = vpop.f32.mrf.mxu0  ;;  %13846 = vmatmul.mubr.msk.bf16.gmra.mxu0 %vm1388_vm11, %v19918_v14 }
 0x8ab   : > { %v9934_v32 = vadd.f32 %v13631_v56, %v20118_v24  ;;  %13849 = vmatprep.mubr.msk.bf16.mxu0 %vm1388_vm11, %v19818_v23  ;;  %v10067_v50 = vpop.f32.mrf.mxu1  ;;  %v20248_v7 = vadd.f32 %v10022_v5, %v9929_v60 }
 0x8ac   : > { %v9817_v18 = vpop.f32.mrf.mxu0 }
 0x8ad   : > { %v9932_v9 = vadd.f32 %v9817_v18, %v20120_v27  ;;  %v13676_v48 = vpop.f32.mrf.mxu1  ;;  %v20251_v55 = vadd.f32 %v13667_v21, %v9934_v32 }
 0x8ae   : > { %v13632_v31 = vpop.f32.mrf.mxu0 }
 0x8af   : > { %v9935_v22 = vadd.f32 %v13632_v31, %v20126_v61  ;;  %v10070_v40 = vpop.f32.mrf.mxu1  ;;  %v20254_v44 = vadd.f32 %v10035_v11, %v9932_v9 }
 0x8b0   : > { %v9820_v14 = vpop.f32.mrf.mxu0 }
 0x8b1   : > { %v9933_v24 = vadd.f32 %v9820_v14, %v20132_v17  ;;  %v13679_v41 = vpop.f32.mrf.mxu1  ;;  %v20257_v23 = vadd.f32 %v13668_v45, %v9935_v22 }
 0x8b2   : > { %v13635_v5 = vpop.f32.mrf.mxu0  ;;  %13850 = vmatmul.mubr.msk.bf16.gmra.mxu0 %vm1388_vm11, %v19828_v6 }
 0x8b3   : > { %v9938_v27 = vadd.f32 %v13635_v5, %v20134_v12  ;;  %13853 = vmatprep.mubr.msk.bf16.mxu0 %vm1388_vm11, %v19841_v49  ;;  %v10083_v21 = vpop.f32.mrf.mxu1  ;;  %v20264_v61 = vadd.f32 %v10038_v58, %v9933_v24 }
 0x8b4   : > { %v9833_v11 = vpop.f32.mrf.mxu0 }
 0x8b5   : > { %v9936_v15 = vadd.f32 %v9833_v11, %v20136_v4  ;;  %v13680_v60 = vpop.f32.mrf.mxu1  ;;  %v20267_v17 = vadd.f32 %v13671_v25, %v9938_v27 }
 0x8b6   : > { %v13636_v45 = vpop.f32.mrf.mxu0 }
 0x8b7   : > { %v9939_v56 = vadd.f32 %v13636_v45, %v20150_v59  ;;  %v10086_v32 = vpop.f32.mrf.mxu1  ;;  %v20270_v18 = vadd.f32 %v10051_v2, %v9936_v15 }
 0x8b8   : > { %v9836_v6 = vpop.f32.mrf.mxu0 }
 0x8b9   : > { %v9937_v12 = vadd.f32 %v9836_v6, %v20152_v13  ;;  %v13683_v9 = vpop.f32.mrf.mxu1  ;;  %v20273_v49 = vadd.f32 %v13672_v16, %v9939_v56 }
 0x8ba   : > { %v13639_v58 = vpop.f32.mrf.mxu0  ;;  %13854 = vmatmul.mubr.msk.bf16.gmra.mxu0 %vm1388_vm11, %v19852_v28 }
 0x8bb   : > { %v9942_v4 = vadd.f32 %v13639_v58, %v20154_v42  ;;  %13857 = vmatprep.mubr.msk.bf16.mxu0 %vm1388_vm11, %v19871_v1  ;;  %v10099_v25 = vpop.f32.mrf.mxu1  ;;  %v20280_v59 = vadd.f32 %v10054_v52, %v9937_v12  ;;  %v21572_v58 = vld [vmem:[#allocation32_spill] sm:$0xff] }
 0x8bc   : > { %v9849_v2 = vpop.f32.mrf.mxu0 }
 0x8bd   : > { %v9940_v31 = vadd.f32 %v9849_v2, %v20160_v51  ;;  %v13684_v22 = vpop.f32.mrf.mxu1  ;;  %v20283_v13 = vadd.f32 %v13675_v20, %v9942_v4 }
 0x8be   : > { %v13640_v16 = vpop.f32.mrf.mxu0 }
 0x8bf   : > { %v9943_v14 = vadd.f32 %v13640_v16, %v20167_v19  ;;  %v10102_v24 = vpop.f32.mrf.mxu1  ;;  %v20286_v5 = vadd.f32 %v10067_v50, %v9940_v31 }
 0x8c0   : > { %v9852_v28 = vpop.f32.mrf.mxu0 }
 0x8c1   : > { %v9941_v42 = vadd.f32 %v9852_v28, %v20169_v63  ;;  %v13687_v27 = vpop.f32.mrf.mxu1  ;;  %v20289_v1 = vadd.f32 %v13676_v48, %v9943_v14 }
 0x8c2   : > { %v13643_v52 = vpop.f32.mrf.mxu0  ;;  %13858 = vmatmul.mubr.msk.bf16.gmra.mxu0 %vm1388_vm11, %v19884_v33 }
 0x8c3   : > { %v9946_v51 = vadd.f32 %v13643_v52, %v20171_v10  ;;  %13861 = vmatprep.mubr.msk.bf16.mxu0 %vm1388_vm11, %v19900_v37  ;;  %v10115_v20 = vpop.f32.mrf.mxu1  ;;  %v20296_v19 = vadd.f32 %v10070_v40, %v9941_v42 }
 0x8c4   : > { %v9865_v50 = vpop.f32.mrf.mxu0 }
 0x8c5   : > { %v9944_v11 = vadd.f32 %v9865_v50, %v20185_v62  ;;  %v13688_v15 = vpop.f32.mrf.mxu1  ;;  %v20299_v63 = vadd.f32 %v13679_v41, %v9946_v51  ;;  %v21573_v41 = vld [vmem:[#allocation14_spill] sm:$0xff]  ;;  %v21574_v50 = vld [vmem:[#allocation15_spill] sm:$0xff] }
 0x8c6   : > { %v13644_v48 = vpop.f32.mrf.mxu0 }
 0x8c7   : > { %v9947_v45 = vadd.f32 %v13644_v48, %v20187_v36  ;;  %v10118_v56 = vpop.f32.mrf.mxu1  ;;  %v20302_v6 = vadd.f32 %v10083_v21, %v9944_v11 }
 0x8c8   : > { %v9868_v33 = vpop.f32.mrf.mxu0 }
 0x8c9   : > { %v9945_v10 = vadd.f32 %v9868_v33, %v20189_v35  ;;  %v13691_v12 = vpop.f32.mrf.mxu1  ;;  %v20305_v37 = vadd.f32 %v13680_v60, %v9947_v45 }
 0x8ca   : > { %v13647_v40 = vpop.f32.mrf.mxu0  ;;  %13862 = vmatmul.mubr.msk.bf16.gmra.mxu0 %vm1388_vm11, %v21572_v58 }
 0x8cb   : > { %v9950_v62 = vadd.f32 %v13647_v40, %v20192_v46  ;;  %13865 = vmatprep.mubr.msk.bf16.mxu0 %vm1388_vm11, %v21573_v41  ;;  %v10131_v4 = vpop.f32.mrf.mxu1  ;;  %v20312_v36 = vadd.f32 %v10086_v32, %v9945_v10 }
 0x8cc   : > { %v9881_v21 = vpop.f32.mrf.mxu0 }
 0x8cd   : > { %v9948_v2 = vadd.f32 %v9881_v21, %v20198_v39  ;;  %v13692_v31 = vpop.f32.mrf.mxu1  ;;  %v20315_v35 = vadd.f32 %v13683_v9, %v9950_v62  ;;  %v21575_v9 = vld [vmem:[#allocation16_spill] sm:$0xff]  ;;  %v21577_v21 = vld [vmem:[#allocation39_spill] sm:$0xff] }
 0x8ce   : > { %v13648_v60 = vpop.f32.mrf.mxu0 }
 0x8cf   : > { %v9951_v16 = vadd.f32 %v13648_v60, %v20200_v3  ;;  %v10134_v14 = vpop.f32.mrf.mxu1  ;;  %v20318_v28 = vadd.f32 %v10099_v25, %v9948_v2 }
 0x8d0   : > { %v9884_v42 = vpop.f32.mrf.mxu0 }
 0x8d1   : > { %v9949_v46 = vadd.f32 %v9884_v42, %v20202_v57  ;;  %v20321_v52 = vpop.f32.mrf.mxu1  ;;  %v20323_v51 = vadd.f32 %v13684_v22, %v9951_v16 }
 0x8d2   : > { %v13651_v32 = vpop.f32.mrf.mxu0  ;;  %13866 = vmatmul.mubr.msk.bf16.gmra.mxu0 %vm1388_vm11, %v21574_v50 }
 0x8d3   : > { %v9954_v39 = vadd.f32 %v13651_v32, %v20206_v34  ;;  %13869 = vmatprep.mubr.msk.bf16.mxu0 %vm1388_vm11, %v21575_v9  ;;  %v20330_v3 = vpop.f32.mrf.mxu1  ;;  %v20332_v25 = vadd.f32 %v10102_v24, %v9949_v46 }
 0x8d4   : > { %v9897_v11 = vpop.f32.mrf.mxu0 }
 0x8d5   : > { %v9952_v57 = vadd.f32 %v9897_v11, %v20210_v29  ;;  %v20335_v48 = vpop.f32.mrf.mxu1  ;;  %v20337_v22 = vadd.f32 %v13687_v27, %v9954_v39  ;;  %v21576_v29 = vld [vmem:[#allocation28_spill] sm:$0xff] }
 0x8d6   : > { %v13652_v45 = vpop.f32.mrf.mxu0  ;;  %v21578_v2 = vcombine.low %v21576_v29, %v21577_v21 }
 0x8d7   : > { %v9955_v33 = vadd.f32 %v13652_v45, %v20214_v43  ;;  %v20340_v10 = vpop.f32.mrf.mxu1  ;;  %v20342_v34 = vadd.f32 %v10115_v20, %v9952_v57 }
 0x8d8   : > { %v9900_v40 = vpop.f32.mrf.mxu0 }
 0x8d9   : > { %v9953_v58 = vadd.f32 %v9900_v40, %v20216_v0  ;;  %v20345_v62 = vpop.f32.mrf.mxu1  ;;  %v20347_v24 = vadd.f32 %v13688_v15, %v9955_v33 }
 0x8da   : > { %v13655_v41 = vpop.f32.mrf.mxu0  ;;  %13870 = vmatmul.mubr.msk.bf16.gmra.mxu0 %vm1388_vm11, %v21578_v2 }
 0x8db   : > { %v9958_v27 = vadd.f32 %v13655_v41, %v20219_v8  ;;  %v20354_v43 = vpop.f32.mrf.mxu1  ;;  %v20356_v60 = vadd.f32 %v10118_v56, %v9953_v58 }
 0x8dc   : > { %v9913_v20 = vpop.f32.mrf.mxu0 }
 0x8dd   : > { %v9956_v16 = vadd.f32 %v9913_v20, %v20223_v53  ;;  %v20359_v0 = vpop.f32.mrf.mxu1  ;;  %v20361_v42 = vadd.f32 %v13691_v12, %v9958_v27 }
 0x8de   : > { %v13656_v15 = vpop.f32.mrf.mxu0 }
 0x8df   : > { %v9959_v46 = vadd.f32 %v13656_v15, %v20225_v47  ;;  %v20364_v32 = vpop.f32.mrf.mxu1  ;;  %v20366_v50 = vadd.f32 %v10131_v4, %v9956_v16 }
 0x8e0   : > { %v9916_v39 = vpop.f32.mrf.mxu0 }
 0x8e1   : > { %v9957_v8 = vadd.f32 %v9916_v39, %v20227_v38  ;;  %v20369_v9 = vpop.f32.mrf.mxu1  ;;  %v20371_v56 = vadd.f32 %v13692_v31, %v9959_v46 }
 0x8e2   : > { %v13699_v11 = vpop.f32.mrf.mxu0 }
 0x8e3   : > { %v20374_v53 = vadd.f32 %v13699_v11, %v20235_v26  ;;  %v20376_v12 = vpop.f32.mrf.mxu1  ;;  %v20378_v57 = vadd.f32 %v10134_v14, %v9957_v8 }
 0x8e4   : > { %v10259_v47 = vpop.f32.mrf.mxu0 }
 0x8e5   : > { %v20381_v45 = vadd.f32 %v10259_v47, %v20238_v54  ;;  %v20383_v4 = vpop.f32.mrf.mxu1 }
 0x8e6   : > { %v13700_v33 = vpop.f32.mrf.mxu0 }
 0x8e7   : > { %v20386_v38 = vadd.f32 %v13700_v33, %v20241_v30  ;;  %v20388_v31 = vpop.f32.mrf.mxu1 }
 0x8e8   : > { %v10262_v40 = vpop.f32.mrf.mxu0 }
 0x8e9   : > { %v20391_v26 = vadd.f32 %v10262_v40, %v20248_v7  ;;  %v20393_v58 = vpop.f32.mrf.mxu1 }
 0x8ea   : > { %v13703_v14 = vpop.f32.mrf.mxu0 }
 0x8eb   : > { %v20396_v41 = vadd.f32 %v13703_v14, %v20251_v55  ;;  %v20398_v54 = vpop.f32.mrf.mxu1 }
 0x8ec   : > { %v10275_v29 = vpop.f32.mrf.mxu0 }
 0x8ed   : > { %v20401_v21 = vadd.f32 %v10275_v29, %v20254_v44  ;;  %v20403_v30 = vpop.f32.mrf.mxu1 }
 0x8ee   : > { %21579 = vst [vmem:[#allocation21_spill] sm:$0xff] %v20403_v30  ;;  %v13704_v2 = vpop.f32.mrf.mxu0 }
 0x8ef   : > { %v20406_v27 = vadd.f32 %v13704_v2, %v20257_v23  ;;  %v20408_v7 = vpop.f32.mrf.mxu1 }
 0x8f0   : > { %21580 = vst [vmem:[#allocation27_spill] sm:$0xff] %v20408_v7  ;;  %v10278_v20 = vpop.f32.mrf.mxu0 }
 0x8f1   : > { %v20411_v16 = vadd.f32 %v10278_v20, %v20264_v61  ;;  %v20413_v55 = vpop.f32.mrf.mxu1 }
 0x8f2   : > { %21581 = vst [vmem:[#allocation20_spill] sm:$0xff] %v20413_v55  ;;  %v13707_v15 = vpop.f32.mrf.mxu0 }
 0x8f3   : > { %v20416_v46 = vadd.f32 %v13707_v15, %v20267_v17  ;;  %v20418_v44 = vpop.f32.mrf.mxu1 }
 0x8f4   : > { %21582 = vst [vmem:[#allocation46_spill] sm:$0xff] %v20418_v44  ;;  %v10291_v39 = vpop.f32.mrf.mxu0 }
 0x8f5   : > { %v20421_v8 = vadd.f32 %v10291_v39, %v20270_v18  ;;  %v20423_v23 = vpop.f32.mrf.mxu1 }
 0x8f6   : > { %21583 = vst [vmem:[#allocation48_spill] sm:$0xff] %v20423_v23  ;;  %v13708_v11 = vpop.f32.mrf.mxu0 }
 0x8f7   : > { %v20426_v47 = vadd.f32 %v13708_v11, %v20273_v49  ;;  %v20428_v61 = vpop.f32.mrf.mxu1 }
 0x8f8   : > { %21584 = vst [vmem:[#allocation43_spill] sm:$0xff] %v20428_v61  ;;  %v10294_v33 = vpop.f32.mrf.mxu0 }
 0x8f9   : > { %v20431_v40 = vadd.f32 %v10294_v33, %v20280_v59  ;;  %v20433_v17 = vpop.f32.mrf.mxu1 }
 0x8fa   : > { %21585 = vst [vmem:[#allocation50_spill] sm:$0xff] %v20433_v17  ;;  %v13711_v14 = vpop.f32.mrf.mxu0 }
 0x8fb   : > { %v20436_v29 = vadd.f32 %v13711_v14, %v20283_v13  ;;  %v20438_v18 = vpop.f32.mrf.mxu1 }
 0x8fc   : > { %21586 = vst [vmem:[#allocation34_spill] sm:$0xff] %v20438_v18  ;;  %v10307_v2 = vpop.f32.mrf.mxu0 }
 0x8fd   : > { %v20441_v20 = vadd.f32 %v10307_v2, %v20286_v5  ;;  %v20443_v49 = vpop.f32.mrf.mxu1 }
 0x8fe   : > { %21587 = vst [vmem:[#allocation52_spill] sm:$0xff] %v20443_v49  ;;  %v13712_v15 = vpop.f32.mrf.mxu0 }
 0x8ff   : > { %v20446_v39 = vadd.f32 %v13712_v15, %v20289_v1  ;;  %v20448_v59 = vpop.f32.mrf.mxu1 }
 0x900   : > { %21588 = vst [vmem:[#allocation41_spill] sm:$0xff] %v20448_v59  ;;  %v10310_v11 = vpop.f32.mrf.mxu0 }
 0x901   : > { %v20451_v33 = vadd.f32 %v10310_v11, %v20296_v19  ;;  %v20453_v14 = vpop.f32.mrf.mxu1 }
 0x902   : > { %v13715_v13 = vpop.f32.mrf.mxu0  ;;  %21590 = vst [vmem:[#allocation42_spill] sm:$0xff] %v20453_v14 }
 0x903   : > { %21589 = vst [vmem:[#allocation35_spill] sm:$0xff] %v20451_v33  ;;  %v20456_v18 = vadd.f32 %v13715_v13, %v20299_v63  ;;  %v20461_v17 = vpop.f32.mrf.mxu1 }
 0x904   : > { %v10323_v5 = vpop.f32.mrf.mxu0  ;;  %21593 = vst [vmem:[#allocation40_spill] sm:$0xff] %v20461_v17 }
 0x905   : > { %21591 = vst [vmem:[#allocation25_spill] sm:$0xff] %v20456_v18  ;;  %v20459_v2 = vadd.f32 %v10323_v5, %v20302_v6  ;;  %v20469_v59 = vpop.f32.mrf.mxu1 }
 0x906   : > { %v13716_v49 = vpop.f32.mrf.mxu0  ;;  %21596 = vst [vmem:[#allocation53_spill] sm:$0xff] %v20469_v59 }
 0x907   : > { %21592 = vst [vmem:[#allocation31_spill] sm:$0xff] %v20459_v2  ;;  %v20464_v1 = vadd.f32 %v13716_v49, %v20305_v37  ;;  %v20477_v14 = vpop.f32.mrf.mxu1 }
 0x908   : > { %v10326_v15 = vpop.f32.mrf.mxu0  ;;  %21599 = vst [vmem:[#allocation29_spill] sm:$0xff] %v20477_v14 }
 0x909   : > { %21594 = vst [vmem:[#allocation17_spill] sm:$0xff] %v20464_v1  ;;  %v20467_v19 = vadd.f32 %v10326_v15, %v20312_v36  ;;  %v20485_v15 = vpop.f32.mrf.mxu1 }
 0x90a   : > { %v13719_v11 = vpop.f32.mrf.mxu0  ;;  %21602 = vst [vmem:[#allocation33_spill] sm:$0xff] %v20485_v15 }
 0x90b   : > { %21595 = vst [vmem:[#allocation49_spill] sm:$0xff] %v20467_v19  ;;  %v20472_v63 = vadd.f32 %v13719_v11, %v20315_v35 }
 0x90c   : > { %v10339_v13 = vpop.f32.mrf.mxu0 }
 0x90d   : > { %21597 = vst [vmem:[#allocation18_spill] sm:$0xff] %v20472_v63  ;;  %v20475_v6 = vadd.f32 %v10339_v13, %v20318_v28  ;;  %v20493_v13 = vpop.f32.mrf.mxu1 }
 0x90e   : > { %v13720_v5 = vpop.f32.mrf.mxu0  ;;  %21605 = vst [vmem:[#allocation22_spill] sm:$0xff] %v20493_v13 }
 0x90f   : > { %21598 = vst [vmem:[#allocation44_spill] sm:$0xff] %v20475_v6  ;;  %v20480_v37 = vadd.f32 %v13720_v5, %v20323_v51 }
 0x910   : > { %v10342_v49 = vpop.f32.mrf.mxu0 }
 0x911   : > { %21600 = vst [vmem:[#allocation45_spill] sm:$0xff] %v20480_v37  ;;  %v20483_v36 = vadd.f32 %v10342_v49, %v20332_v25  ;;  %v20501_v49 = vpop.f32.mrf.mxu1 }
 0x912   : > { %v13723_v59 = vpop.f32.mrf.mxu0  ;;  %21608 = vst [vmem:[#allocation47_spill] sm:$0xff] %v20501_v49 }
 0x913   : > { %21601 = vst [vmem:[#allocation51_spill] sm:$0xff] %v20483_v36  ;;  %v20488_v35 = vadd.f32 %v13723_v59, %v20337_v22 }
 0x914   : > { %v10355_v11 = vpop.f32.mrf.mxu0 }
 0x915   : > { %21603 = vst [vmem:[#allocation19_spill] sm:$0xff] %v20488_v35  ;;  %v20491_v28 = vadd.f32 %v10355_v11, %v20342_v34  ;;  %v20509_v11 = vpop.f32.mrf.mxu1 }
 0x916   : > { %v13724_v14 = vpop.f32.mrf.mxu0  ;;  %21611 = vst [vmem:[#allocation36_spill] sm:$0xff] %v20509_v11 }
 0x917   : > { %21604 = vst [vmem:[#allocation24_spill] sm:$0xff] %v20491_v28  ;;  %v20496_v51 = vadd.f32 %v13724_v14, %v20347_v24 }
 0x918   : > { %v10358_v5 = vpop.f32.mrf.mxu0 }
 0x919   : > { %21606 = vst [vmem:[#allocation38_spill] sm:$0xff] %v20496_v51  ;;  %v20499_v25 = vadd.f32 %v10358_v5, %v20356_v60  ;;  %v13807_v5 = vpop.f32.mrf.mxu1 }
 0x91a   : > { %v13727_v15 = vpop.f32.mrf.mxu0 }
 0x91b   : > { %21607 = vst [vmem:[#allocation37_spill] sm:$0xff] %v20499_v25  ;;  %v20504_v22 = vadd.f32 %v13727_v15, %v20361_v42  ;;  %v10941_v51 = vpop.f32.mrf.mxu1 }
 0x91c   : > { %v10371_v59 = vpop.f32.mrf.mxu0 }
 0x91d   : > { %21609 = vst [vmem:[#allocation26_spill] sm:$0xff] %v20504_v22  ;;  %v20507_v34 = vadd.f32 %v10371_v59, %v20366_v50  ;;  %v20517_v22 = vpop.f32.mrf.mxu1 }
 0x91e   : > { %v13728_v13 = vpop.f32.mrf.mxu0 }
 0x91f   : > { %21610 = vst [vmem:[#allocation30_spill] sm:$0xff] %v20507_v34  ;;  %v20512_v24 = vadd.f32 %v13728_v13, %v20371_v56  ;;  %v20521_v11 = vpop.f32.mrf.mxu1 }
 0x920   : > { %v10374_v14 = vpop.f32.mrf.mxu0 }
 0x921   : > { %21612 = vst [vmem:[#allocation23_spill] sm:$0xff] %v20512_v24  ;;  %v20515_v60 = vadd.f32 %v10374_v14, %v20378_v57  ;;  %v20527_v13 = vpop.f32.mrf.mxu1 }
 0x922   : > { %v13771_v49 = vpop.f32.mrf.mxu0 }
 0x923   : > { %21613 = vst [vmem:[#allocation13_spill] sm:$0xff] %v20515_v60  ;;  %v20533_v60 = vpop.f32.mrf.mxu1 }
 0x924   : > { %v10701_v25 = vpop.f32.mrf.mxu0 }
 0x925   : > { %v20539_v28 = vpop.f32.mrf.mxu1 }
 0x926   : > { %v13772_v42 = vpop.f32.mrf.mxu0 }
 0x927   : > { %v20545_v37 = vpop.f32.mrf.mxu1 }
 0x928   : > { %v10704_v15 = vpop.f32.mrf.mxu0 }
 0x929   : > { %v20551_v61 = vpop.f32.mrf.mxu1 }
 0x92a   : > { %v13775_v50 = vpop.f32.mrf.mxu0 }
 0x92b   : > { %v20557_v1 = vpop.f32.mrf.mxu1 }
 0x92c   : > { %v20519_v59 = vpop.f32.mrf.mxu0 }
 0x92d   : > { %v20563_v55 = vpop.f32.mrf.mxu1 }
 0x92e   : > { %v20523_v34 = vpop.f32.mrf.mxu0 }
 0x930   : > { %v20525_v56 = vpop.f32.mrf.mxu0 }
 0x932   : > { %v20529_v57 = vpop.f32.mrf.mxu0 }
 0x934   : > { %v20531_v14 = vpop.f32.mrf.mxu0 }
 0x936   : > { %v20535_v24 = vpop.f32.mrf.mxu0 }
 0x938   : > { %v20537_v17 = vpop.f32.mrf.mxu0 }
 0x93a   : > { %v20541_v35 = vpop.f32.mrf.mxu0 }
 0x93c   : > { %v20543_v36 = vpop.f32.mrf.mxu0 }
 0x93d   : > { %21614 = vst [vmem:[#allocation32_spill] sm:$0xff] %v20543_v36 }
 0x93e   : > { %v20547_v6 = vpop.f32.mrf.mxu0 }
 0x93f   : > { %21615 = vst [vmem:[#allocation14_spill] sm:$0xff] %v20547_v6  ;;  %v20569_v6 = vpop.f32.mrf.mxu1 }
 0x940   : > { %v20549_v63 = vpop.f32.mrf.mxu0 }
 0x941   : > { %21616 = vst [vmem:[#allocation15_spill] sm:$0xff] %v20549_v63 }
 0x942   : > { %v20553_v19 = vpop.f32.mrf.mxu0 }
 0x943   : > { %21617 = vst [vmem:[#allocation16_spill] sm:$0xff] %v20553_v19  ;;  %v20575_v19 = vpop.f32.mrf.mxu1 }
 0x944   : > { %v20555_v23 = vpop.f32.mrf.mxu0  ;;  %21625 = vst [vmem:[#allocation59_spill] sm:$0xff] %v20575_v19 }
 0x945   : > { %21618 = vst [vmem:[#allocation28_spill] sm:$0xff] %v20555_v23 }
 0x946   : > { %v20559_v44 = vpop.f32.mrf.mxu0 }
 0x947   : > { %21619 = vst [vmem:[#allocation39_spill] sm:$0xff] %v20559_v44  ;;  %v20581_v44 = vpop.f32.mrf.mxu1 }
 0x948   : > { %v20561_v2 = vpop.f32.mrf.mxu0  ;;  %21628 = vst [vmem:[#allocation62_spill] sm:$0xff] %v20581_v44 }
 0x949   : > { %21620 = vst [vmem:[#allocation54_spill] sm:$0xff] %v20561_v2 }
 0x94a   : > { %v20565_v18 = vpop.f32.mrf.mxu0 }
 0x94b   : > { %21621 = vst [vmem:[#allocation55_spill] sm:$0xff] %v20565_v18  ;;  %v20587_v18 = vpop.f32.mrf.mxu1 }
 0x94c   : > { %v20567_v7 = vpop.f32.mrf.mxu0  ;;  %21631 = vst [vmem:[#allocation65_spill] sm:$0xff] %v20587_v18 }
 0x94d   : > { %21622 = vst [vmem:[#allocation56_spill] sm:$0xff] %v20567_v7 }
 0x94e   : > { %v20571_v63 = vpop.f32.mrf.mxu0 }
 0x94f   : > { %21623 = vst [vmem:[#allocation57_spill] sm:$0xff] %v20571_v63  ;;  %v10612_v63 = vadd.f32 %v20321_v52, %v20374_v53  ;;  %v10611_v52 = vadd.f32 %v20340_v10, %v20391_v26 }
 0x950   : > { %v20573_v33 = vpop.f32.mrf.mxu0 }
 0x951   : > { %21624 = vst [vmem:[#allocation58_spill] sm:$0xff] %v20573_v33  ;;  %v10830_v19 = vadd.f32 %v13771_v49, %v10612_v63 }
 0x952   : > { %v20577_v23 = vpop.f32.mrf.mxu0 }
 0x953   : > { %21626 = vst [vmem:[#allocation60_spill] sm:$0xff] %v20577_v23  ;;  %v10610_v23 = vadd.f32 %v20330_v3, %v20381_v45  ;;  %v11070_v53 = vadd.f32 %v13807_v5, %v10830_v19  ;;  %v20612_v3 = vld [vmem:[%s20886_s7] ss:$0 sm:$0xff]  ;;  %v10829_v45 = vadd.f32 %v10704_v15, %v10611_v52  ;;  %v10617_v5 = vadd.f32 %v20359_v0, %v20406_v27 }
 0x954   : > { %v20579_v36 = vpop.f32.mrf.mxu0 }
 0x955   : > { %21627 = vst [vmem:[#allocation61_spill] sm:$0xff] %v20579_v36  ;;  %v20597_v36 = vpop.f32.mrf.mxu1 }
 0x956   : > { %v20583_v2 = vpop.f32.mrf.mxu0 }
 0x957   : > { %21629 = vst [vmem:[#allocation63_spill] sm:$0xff] %v20583_v2  ;;  %v10828_v2 = vadd.f32 %v10701_v25, %v10610_v23 }
 0x958   : > { %v20585_v30 = vpop.f32.mrf.mxu0 }
 0x959   : > { %21630 = vst [vmem:[#allocation64_spill] sm:$0xff] %v20585_v30  ;;  %v10613_v30 = vadd.f32 %v20335_v48, %v20386_v38  ;;  %v10616_v48 = vadd.f32 %v20345_v62, %v20396_v41  ;;  %v11068_v23 = vadd.f32 %v10941_v51, %v10828_v2  ;;  %v11069_v2 = vadd.f32 %v20521_v11, %v10829_v45 }
 0x95a   : > { %v20589_v7 = vpop.f32.mrf.mxu0  ;;  %v10615_v51 = vadd.f32 %v20364_v32, %v20411_v16  ;;  %v10621_v45 = vadd.f32 %v20383_v4, %v20426_v47 }
 0x95b   : > { %21632 = vst [vmem:[#allocation66_spill] sm:$0xff] %v20589_v7  ;;  %v10831_v7 = vadd.f32 %v13772_v42, %v10613_v30  ;;  %v10614_v30 = vadd.f32 %v20354_v43, %v20401_v21  ;;  %v10834_v26 = vadd.f32 %v13775_v50, %v10616_v48  ;;  %v10620_v50 = vadd.f32 %v20369_v9, %v20416_v46 }
 0x95c   : > { %v20593_v33 = vpop.f32.mrf.mxu0  ;;  %v10833_v52 = vadd.f32 %v20525_v56, %v10615_v51  ;;  %v21637_v51 = vld [vmem:[#allocation27_spill] sm:$0xff] }
 0x95d   : > { %21633 = vst [vmem:[#allocation67_spill] sm:$0xff] %v20593_v33  ;;  %v20607_v33 = vpop.f32.mrf.mxu1  ;;  %v11071_v49 = vadd.f32 %v20517_v22, %v10831_v7  ;;  %v10832_v41 = vadd.f32 %v20519_v59, %v10614_v30  ;;  %v10835_v22 = vadd.f32 %v20523_v34, %v10617_v5  ;;  %v11074_v15 = vadd.f32 %v20527_v13, %v10834_v26  ;;  %v21634_v5 = vld [vmem:[#allocation21_spill] sm:$0xff] }
 0x95e   : > { %v20599_v44 = vpop.f32.mrf.mxu0  ;;  %v10839_v30 = vadd.f32 %v20535_v24, %v10621_v45  ;;  %v21645_v45 = vld [vmem:[#allocation46_spill] sm:$0xff] }
 0x95f   : > { %v20622_v42 = vpop.f32.mrf.mxu1  ;;  %v11072_v34 = vadd.f32 %v20533_v60, %v10832_v41  ;;  %v11075_v56 = vadd.f32 %v20539_v28, %v10835_v22  ;;  %v21638_v22 = vld [vmem:[#allocation14_spill] sm:$0xff] }
 0x960   : > { %v20603_v18 = vpop.f32.mrf.mxu0 }
 0x961   : > { %v20638_v59 = vpop.f32.mrf.mxu1 }
 0x962   : > { %v13843_v63 = vpop.f32.mrf.mxu0 }
 0x963   : > { %v11294_v38 = vadd.f32 %v13843_v63, %v11070_v53  ;;  %v10618_v53 = vadd.f32 %v20376_v12, %v20421_v8  ;;  %v10838_v63 = vadd.f32 %v20529_v57, %v10620_v50  ;;  %v20654_v48 = vpop.f32.mrf.mxu1  ;;  %v11073_v57 = vadd.f32 %v20545_v37, %v10833_v52  ;;  %v21641_v52 = vld [vmem:[#allocation20_spill] sm:$0xff] }
 0x964   : > { %v11165_v10 = vpop.f32.mrf.mxu0 }
 0x965   : > { %v11333_v19 = vadd.f32 %v20612_v3, %v11294_v38  ;;  %v11292_v25 = vadd.f32 %v11165_v10, %v11068_v23  ;;  %v10836_v38 = vadd.f32 %v20531_v14, %v10618_v53  ;;  %v10619_v23 = vadd.f32 %v20388_v31, %v20431_v40  ;;  %v20670_v26 = vpop.f32.mrf.mxu1 }
 0x966   : > { %v13844_v62 = vpop.f32.mrf.mxu0  ;;  %v11078_v14 = vadd.f32 %v20551_v61, %v10838_v63  ;;  %v10624_v10 = vadd.f32 %v20393_v58, %v20436_v29  ;;  %v11079_v29 = vadd.f32 %v20563_v55, %v10839_v30 }
 0x967   : > { %11366 = vst.msk [vmem:[%s14389_s23 + $0x10] sm:$0xff] %vm11363_vm3, %v11333_v19  ;;  %v11331_v43 = vadd.f32 %v20612_v3, %v11292_v25  ;;  %v11295_v21 = vadd.f32 %v13844_v62, %v11071_v49  ;;  %v10837_v19 = vadd.f32 %v20537_v17, %v10619_v23  ;;  %v11076_v24 = vadd.f32 %v20557_v1, %v10836_v38  ;;  %v20686_v41 = vpop.f32.mrf.mxu1 }
 0x968   : > { %v11168_v7 = vpop.f32.mrf.mxu0  ;;  %v10622_v25 = vadd.f32 %v20398_v54, %v20441_v20  ;;  %v10842_v49 = vadd.f32 %v20541_v35, %v10624_v10  ;;  %v10625_v62 = vadd.f32 %v21634_v5, %v20446_v39 }
 0x969   : > { %11364 = vst.msk [vmem:[%s14389_s23] sm:$0xff] %vm11363_vm3, %v11331_v43  ;;  %v11334_v0 = vadd.f32 %v20612_v3, %v11295_v21  ;;  %v11293_v27 = vadd.f32 %v11168_v7, %v11069_v2  ;;  %v21635_v43 = vld [vmem:[#allocation32_spill] sm:$0xff]  ;;  %v11077_v35 = vadd.f32 %v20569_v6, %v10837_v19  ;;  %v21636_v2 = vld [vmem:[#allocation35_spill] sm:$0xff] }
 0x96a   : > { %v13847_v11 = vpop.f32.mrf.mxu0  ;;  %v10840_v21 = vadd.f32 %v21635_v43, %v10622_v25  ;;  %v10623_v7 = vadd.f32 %v21637_v51, %v21636_v2  ;;  %v21650_v19 = vld [vmem:[#allocation28_spill] sm:$0xff] }
 0x96b   : > { %11367 = vst.msk [vmem:[%s14389_s23 + $0x18] sm:$0xff] %vm11363_vm3, %v11334_v0  ;;  %v11332_v32 = vadd.f32 %v20612_v3, %v11293_v27  ;;  %v11298_v16 = vadd.f32 %v13847_v11, %v11074_v15  ;;  %v10843_v0 = vadd.f32 %v21638_v22, %v10625_v62  ;;  %v21639_v15 = vld [vmem:[#allocation59_spill] sm:$0xff]  ;;  %v21640_v11 = vld [vmem:[#allocation25_spill] sm:$0xff] }
 0x96c   : > { %v11181_v13 = vpop.f32.mrf.mxu0  ;;  %v11082_v50 = vadd.f32 %v21639_v15, %v10842_v49  ;;  %v21652_v49 = vld [vmem:[#allocation43_spill] sm:$0xff] }
 0x96d   : > { %11365 = vst.msk [vmem:[%s14389_s23 + $0x8] sm:$0xff] %vm11363_vm3, %v11332_v32  ;;  %v11337_v9 = vadd.f32 %v20612_v3, %v11298_v16  ;;  %v11296_v46 = vadd.f32 %v11181_v13, %v11072_v34  ;;  %v10628_v32 = vadd.f32 %v21641_v52, %v21640_v11  ;;  %v20702_v16 = vpop.f32.mrf.mxu1  ;;  %v21642_v34 = vld [vmem:[#allocation15_spill] sm:$0xff] }
 0x96e   : > { %v13848_v60 = vpop.f32.mrf.mxu0  ;;  %v10841_v53 = vadd.f32 %v21642_v34, %v10623_v7  ;;  %v21660_v34 = vld [vmem:[#allocation45_spill] sm:$0xff] }
 0x96f   : > { %11370 = vst.msk [vmem:[%s14389_s23 + $0x30] sm:$0xff] %vm11363_vm3, %v11337_v9  ;;  %v11335_v12 = vadd.f32 %v20612_v3, %v11296_v46  ;;  %v11299_v8 = vadd.f32 %v13848_v60, %v11075_v56  ;;  %v21643_v9 = vld [vmem:[#allocation62_spill] sm:$0xff]  ;;  %v21644_v56 = vld [vmem:[#allocation31_spill] sm:$0xff]  ;;  %v20718_v10 = vpop.f32.mrf.mxu1 }
 0x970   : > { %v11184_v28 = vpop.f32.mrf.mxu0  ;;  %v11080_v46 = vadd.f32 %v21643_v9, %v10840_v21  ;;  %v10626_v60 = vadd.f32 %v21645_v45, %v21644_v56  ;;  %v11081_v25 = vadd.f32 %v20597_v36, %v10841_v53  ;;  %v21656_v36 = vld [vmem:[#allocation54_spill] sm:$0xff]  ;;  %v21661_v53 = vld [vmem:[#allocation52_spill] sm:$0xff] }
 0x971   : > { %11368 = vst.msk [vmem:[%s14389_s23 + $0x20] sm:$0xff] %vm11363_vm3, %v11335_v12  ;;  %v11338_v4 = vadd.f32 %v20612_v3, %v11299_v8  ;;  %v11297_v47 = vadd.f32 %v11184_v28, %v11073_v57  ;;  %v21646_v12 = vld [vmem:[#allocation16_spill] sm:$0xff]  ;;  %v21647_v28 = vld [vmem:[#allocation65_spill] sm:$0xff]  ;;  %v13831_v21 = vpop.f32.mrf.mxu1 }
 0x972   : > { %v13851_v37 = vpop.f32.mrf.mxu0  ;;  %v10846_v8 = vadd.f32 %v21646_v12, %v10628_v32  ;;  %v11083_v30 = vadd.f32 %v21647_v28, %v10843_v0  ;;  %v21657_v0 = vld [vmem:[#allocation44_spill] sm:$0xff] }
 0x973   : > { %11371 = vst.msk [vmem:[%s14389_s23 + $0x38] sm:$0xff] %vm11363_vm3, %v11338_v4  ;;  %v11336_v31 = vadd.f32 %v20612_v3, %v11297_v47  ;;  %v11302_v40 = vadd.f32 %v13851_v37, %v11078_v14  ;;  %v21648_v4 = vld [vmem:[#allocation17_spill] sm:$0xff]  ;;  %v21649_v47 = vld [vmem:[#allocation48_spill] sm:$0xff] }
 0x974   : > { %v11197_v61 = vpop.f32.mrf.mxu0  ;;  %v10629_v14 = vadd.f32 %v21649_v47, %v21648_v4  ;;  %v11086_v43 = vadd.f32 %v20607_v33, %v10846_v8  ;;  %v21659_v33 = vld [vmem:[#allocation55_spill] sm:$0xff] }
 0x975   : > { %11369 = vst.msk [vmem:[%s14389_s23 + $0x28] sm:$0xff] %vm11363_vm3, %v11336_v31  ;;  %v11341_v58 = vadd.f32 %v20612_v3, %v11302_v40  ;;  %v11300_v17 = vadd.f32 %v11197_v61, %v11076_v24  ;;  %v10844_v31 = vadd.f32 %v21650_v19, %v10626_v60  ;;  %v21651_v61 = vld [vmem:[#allocation49_spill] sm:$0xff]  ;;  %v21663_v60 = vld [vmem:[#allocation51_spill] sm:$0xff] }
 0x976   : > { %v13852_v1 = vpop.f32.mrf.mxu0  ;;  %v21666_v47 = vld [vmem:[#allocation19_spill] sm:$0xff] }
 0x977   : > { %11374 = vst.msk [vmem:[%s14389_s23 + $0x50] sm:$0xff] %vm11363_vm3, %v11341_v58  ;;  %v11339_v54 = vadd.f32 %v20612_v3, %v11300_v17  ;;  %v11303_v20 = vadd.f32 %v13852_v1, %v11079_v29  ;;  %v10627_v58 = vadd.f32 %v21652_v49, %v21651_v61  ;;  %v21653_v29 = vld [vmem:[#allocation39_spill] sm:$0xff]  ;;  %v11084_v22 = vadd.f32 %v20622_v42, %v10844_v31  ;;  %v21662_v42 = vld [vmem:[#allocation56_spill] sm:$0xff] }
 0x978   : > { %v11200_v55 = vpop.f32.mrf.mxu0  ;;  %v10847_v5 = vadd.f32 %v21653_v29, %v10629_v14  ;;  %v21667_v14 = vld [vmem:[#allocation42_spill] sm:$0xff]  ;;  %v21669_v61 = vld [vmem:[#allocation24_spill] sm:$0xff] }
 0x979   : > { %11372 = vst.msk [vmem:[%s14389_s23 + $0x40] sm:$0xff] %vm11363_vm3, %v11339_v54  ;;  %v11342_v39 = vadd.f32 %v20612_v3, %v11303_v20  ;;  %v11301_v27 = vadd.f32 %v11200_v55, %v11077_v35  ;;  %v21654_v54 = vld [vmem:[#allocation18_spill] sm:$0xff]  ;;  %v10845_v51 = vadd.f32 %v21656_v36, %v10627_v58  ;;  %v21670_v49 = vld [vmem:[#allocation40_spill] sm:$0xff] }
 0x97a   : > { %v13855_v6 = vpop.f32.mrf.mxu0  ;;  %v21655_v20 = vld [vmem:[#allocation50_spill] sm:$0xff]  ;;  %v11087_v32 = vadd.f32 %v20638_v59, %v10847_v5  ;;  %v21665_v59 = vld [vmem:[#allocation57_spill] sm:$0xff]  ;;  %v10634_v58 = vadd.f32 %v21670_v49, %v21669_v61 }
 0x97b   : > { %11375 = vst.msk [vmem:[%s14389_s23 + $0x58] sm:$0xff] %vm11363_vm3, %v11342_v39  ;;  %v11340_v13 = vadd.f32 %v20612_v3, %v11301_v27  ;;  %v11306_v63 = vadd.f32 %v13855_v6, %v11082_v50  ;;  %v10632_v35 = vadd.f32 %v21655_v20, %v21654_v54  ;;  %v21658_v39 = vld [vmem:[#allocation34_spill] sm:$0xff]  ;;  %v11037_v6 = vpop.f32.mrf.mxu1  ;;  %v11085_v45 = vadd.f32 %v20654_v48, %v10845_v51  ;;  %v21673_v20 = vld [vmem:[#allocation53_spill] sm:$0xff] }
 0x97c   : > { %v11213_v38 = vpop.f32.mrf.mxu0  ;;  %v10630_v27 = vadd.f32 %v21658_v39, %v21657_v0  ;;  %v21668_v48 = vld [vmem:[#allocation58_spill] sm:$0xff]  ;;  %v21676_v0 = vld [vmem:[#allocation29_spill] sm:$0xff] }
 0x97d   : > { %11373 = vst.msk [vmem:[%s14389_s23 + $0x48] sm:$0xff] %vm11363_vm3, %v11340_v13  ;;  %v11345_v57 = vadd.f32 %v20612_v3, %v11306_v63  ;;  %v11304_v23 = vadd.f32 %v11213_v38, %v11080_v46  ;;  %v10850_v50 = vadd.f32 %v21659_v33, %v10632_v35  ;;  %v10633_v13 = vadd.f32 %v21661_v53, %v21660_v34  ;;  %v21664_v38 = vld [vmem:[#allocation41_spill] sm:$0xff]  ;;  %v13832_v4 = vpop.f32.mrf.mxu1  ;;  %v21672_v54 = vld [vmem:[#allocation38_spill] sm:$0xff] }
 0x97e   : > { %v13856_v37 = vpop.f32.mrf.mxu0  ;;  %v10848_v9 = vadd.f32 %v21662_v42, %v10630_v27  ;;  %v10631_v12 = vadd.f32 %v21664_v38, %v21663_v60  ;;  %v10637_v35 = vadd.f32 %v21673_v20, %v21672_v54  ;;  %v21679_v34 = vld [vmem:[#allocation33_spill] sm:$0xff] }
 0x97f   : > { %11378 = vst.msk [vmem:[%s14389_s23 + $0x70] sm:$0xff] %vm11363_vm3, %v11345_v57  ;;  %v11343_v40 = vadd.f32 %v20612_v3, %v11304_v23  ;;  %v11307_v24 = vadd.f32 %v13856_v37, %v11083_v30  ;;  %v10851_v57 = vadd.f32 %v21665_v59, %v10633_v13  ;;  %v11090_v30 = vadd.f32 %v20670_v26, %v10850_v50  ;;  %v21671_v26 = vld [vmem:[#allocation60_spill] sm:$0xff] }
 0x980   : > { %v11216_v17 = vpop.f32.mrf.mxu0  ;;  %v10636_v37 = vadd.f32 %v21667_v14, %v21666_v47  ;;  %v10849_v31 = vadd.f32 %v21668_v48, %v10631_v12 }
 0x981   : > { %11376 = vst.msk [vmem:[%s14389_s23 + $0x60] sm:$0xff] %vm11363_vm3, %v11343_v40  ;;  %v11346_v62 = vadd.f32 %v20612_v3, %v11307_v24  ;;  %v11305_v1 = vadd.f32 %v11216_v17, %v11081_v25  ;;  %v11088_v25 = vadd.f32 %v20686_v41, %v10848_v9  ;;  %v21674_v41 = vld [vmem:[#allocation61_spill] sm:$0xff] }
 0x982   : > { %v13859_v2 = vpop.f32.mrf.mxu0  ;;  %v10854_v29 = vadd.f32 %v21671_v26, %v10636_v37  ;;  %v10852_v36 = vadd.f32 %v21674_v41, %v10634_v58  ;;  %v21686_v37 = vld [vmem:[#allocation67_spill] sm:$0xff] }
 0x983   : > { %11379 = vst.msk [vmem:[%s14389_s23 + $0x78] sm:$0xff] %vm11363_vm3, %v11346_v62  ;;  %v11344_v7 = vadd.f32 %v20612_v3, %v11305_v1  ;;  %v11310_v55 = vadd.f32 %v13859_v2, %v11086_v43  ;;  %v11091_v1 = vadd.f32 %v20702_v16, %v10851_v57  ;;  %v11040_v43 = vpop.f32.mrf.mxu1 }
 0x984   : > { %v11229_v15 = vpop.f32.mrf.mxu0 }
 0x985   : > { %11377 = vst.msk [vmem:[%s14389_s23 + $0x68] sm:$0xff] %vm11363_vm3, %v11344_v7  ;;  %v11349_v11 = vadd.f32 %v20612_v3, %v11310_v55  ;;  %v11308_v52 = vadd.f32 %v11229_v15, %v11084_v22  ;;  %v11089_v55 = vadd.f32 %v20718_v10, %v10849_v31  ;;  %v21675_v22 = vld [vmem:[#allocation37_spill] sm:$0xff]  ;;  %v13835_v27 = vpop.f32.mrf.mxu1  ;;  %v21677_v15 = vld [vmem:[#allocation63_spill] sm:$0xff] }
 0x986   : > { %v13860_v63 = vpop.f32.mrf.mxu0  ;;  %v10635_v39 = vadd.f32 %v21676_v0, %v21675_v22  ;;  %v10855_v33 = vadd.f32 %v21677_v15, %v10637_v35 }
 0x987   : > { %11382 = vst.msk [vmem:[%s14389_s23 + $0x90] sm:$0xff] %vm11363_vm3, %v11349_v11  ;;  %v11347_v46 = vadd.f32 %v20612_v3, %v11308_v52  ;;  %v11311_v56 = vadd.f32 %v13860_v63, %v11087_v32  ;;  %v11094_v52 = vadd.f32 %v13831_v21, %v10854_v29  ;;  %v21678_v32 = vld [vmem:[#allocation26_spill] sm:$0xff]  ;;  %v21680_v63 = vld [vmem:[#allocation64_spill] sm:$0xff]  ;;  %v11053_v38 = vpop.f32.mrf.mxu1 }
 0x988   : > { %v11232_v8 = vpop.f32.mrf.mxu0  ;;  %v10640_v53 = vadd.f32 %v21679_v34, %v21678_v32  ;;  %v10853_v10 = vadd.f32 %v21680_v63, %v10635_v39 }
 0x989   : > { %11380 = vst.msk [vmem:[%s14389_s23 + $0x80] sm:$0xff] %vm11363_vm3, %v11347_v46  ;;  %v11350_v23 = vadd.f32 %v20612_v3, %v11311_v56  ;;  %v11309_v28 = vadd.f32 %v11232_v8, %v11085_v45  ;;  %v11092_v46 = vadd.f32 %v11037_v6, %v10852_v36  ;;  %v21681_v56 = vld [vmem:[#allocation30_spill] sm:$0xff]  ;;  %v13836_v61 = vpop.f32.mrf.mxu1 }
 0x98a   : > { %v13863_v19 = vpop.f32.mrf.mxu0  ;;  %v21682_v45 = vld [vmem:[#allocation22_spill] sm:$0xff]  ;;  %v11093_v31 = vadd.f32 %v11040_v43, %v10853_v10 }
 0x98b   : > { %11383 = vst.msk [vmem:[%s14389_s23 + $0x98] sm:$0xff] %vm11363_vm3, %v11350_v23  ;;  %v11348_v40 = vadd.f32 %v20612_v3, %v11309_v28  ;;  %v11314_v24 = vadd.f32 %v13863_v19, %v11090_v30  ;;  %v10638_v60 = vadd.f32 %v21682_v45, %v21681_v56  ;;  %v21683_v8 = vld [vmem:[#allocation66_spill] sm:$0xff]  ;;  %v11095_v23 = vadd.f32 %v13832_v4, %v10855_v33  ;;  %v21684_v28 = vld [vmem:[#allocation23_spill] sm:$0xff]  ;;  %v11056_v54 = vpop.f32.mrf.mxu1 }
 0x98c   : > { %v11245_v17 = vpop.f32.mrf.mxu0  ;;  %v10858_v21 = vadd.f32 %v21683_v8, %v10640_v53  ;;  %v21685_v30 = vld [vmem:[#allocation47_spill] sm:$0xff] }
 0x98d   : > { %11381 = vst.msk [vmem:[%s14389_s23 + $0x88] sm:$0xff] %vm11363_vm3, %v11348_v40  ;;  %v11353_v5 = vadd.f32 %v20612_v3, %v11314_v24  ;;  %v11312_v62 = vadd.f32 %v11245_v17, %v11088_v25  ;;  %v10641_v47 = vadd.f32 %v21685_v30, %v21684_v28  ;;  %v10856_v6 = vadd.f32 %v21686_v37, %v10638_v60  ;;  %v21687_v40 = vld [vmem:[#allocation13_spill] sm:$0xff]  ;;  %v21688_v24 = vld [vmem:[#allocation36_spill] sm:$0xff] }
 0x98e   : > { %v13864_v2 = vpop.f32.mrf.mxu0  ;;  %v10639_v25 = vadd.f32 %v21688_v24, %v21687_v40  ;;  %v11098_v4 = vadd.f32 %v13835_v27, %v10858_v21 }
 0x98f   : > { %11386 = vst.msk [vmem:[%s14389_s23 + $0xb0] sm:$0xff] %vm11363_vm3, %v11353_v5  ;;  %v11351_v51 = vadd.f32 %v20612_v3, %v11312_v62  ;;  %v11315_v7 = vadd.f32 %v13864_v2, %v11091_v1  ;;  %v10859_v58 = vadd.f32 %v20599_v44, %v10641_v47  ;;  %v11096_v5 = vadd.f32 %v11053_v38, %v10856_v6 }
 0x990   : > { %v11248_v16 = vpop.f32.mrf.mxu0  ;;  %v10857_v62 = vadd.f32 %v20603_v18, %v10639_v25 }
 0x991   : > { %11384 = vst.msk [vmem:[%s14389_s23 + $0xa0] sm:$0xff] %vm11363_vm3, %v11351_v51  ;;  %v11354_v50 = vadd.f32 %v20612_v3, %v11315_v7  ;;  %v11313_v11 = vadd.f32 %v11248_v16, %v11089_v55  ;;  %v11099_v20 = vadd.f32 %v13836_v61, %v10859_v58 }
 0x992   : > { %v13867_v13 = vpop.f32.mrf.mxu0  ;;  %v11097_v18 = vadd.f32 %v11056_v54, %v10857_v62 }
 0x993   : > { %11387 = vst.msk [vmem:[%s14389_s23 + $0xb8] sm:$0xff] %vm11363_vm3, %v11354_v50  ;;  %v11352_v42 = vadd.f32 %v20612_v3, %v11313_v11  ;;  %v11318_v9 = vadd.f32 %v13867_v13, %v11094_v52 }
 0x994   : > { %v11261_v12 = vpop.f32.mrf.mxu0 }
 0x995   : > { %11385 = vst.msk [vmem:[%s14389_s23 + $0xa8] sm:$0xff] %vm11363_vm3, %v11352_v42  ;;  %v11357_v59 = vadd.f32 %v20612_v3, %v11318_v9  ;;  %v11316_v57 = vadd.f32 %v11261_v12, %v11092_v46 }
 0x996   : > { %v13868_v14 = vpop.f32.mrf.mxu0 }
 0x997   : > { %11390 = vst.msk [vmem:[%s14389_s23 + $0xd0] sm:$0xff] %vm11363_vm3, %v11357_v59  ;;  %v11355_v19 = vadd.f32 %v20612_v3, %v11316_v57  ;;  %v11319_v48 = vadd.f32 %v13868_v14, %v11095_v23 }
 0x998   : > { %v11264_v49 = vpop.f32.mrf.mxu0 }
 0x999   : > { %11388 = vst.msk [vmem:[%s14389_s23 + $0xc0] sm:$0xff] %vm11363_vm3, %v11355_v19  ;;  %v11358_v17 = vadd.f32 %v20612_v3, %v11319_v48  ;;  %v11317_v26 = vadd.f32 %v11264_v49, %v11093_v31 }
 0x99a   : > { %v13871_v29 = vpop.f32.mrf.mxu0 }
 0x99b   : > { %11391 = vst.msk [vmem:[%s14389_s23 + $0xd8] sm:$0xff] %vm11363_vm3, %v11358_v17  ;;  %v11356_v1 = vadd.f32 %v20612_v3, %v11317_v26  ;;  %v11322_v43 = vadd.f32 %v13871_v29, %v11098_v4 }
 0x99c   : > { %v11277_v44 = vpop.f32.mrf.mxu0 }
 0x99d   : > { %11389 = vst.msk [vmem:[%s14389_s23 + $0xc8] sm:$0xff] %vm11363_vm3, %v11356_v1  ;;  %v11361_v35 = vadd.f32 %v20612_v3, %v11322_v43  ;;  %v11320_v2 = vadd.f32 %v11277_v44, %v11096_v5 }
 0x99e   : > { %v13872_v41 = vpop.f32.mrf.mxu0 }
 0x99f   : > { %11394 = vst.msk [vmem:[%s14389_s23 + $0xf0] sm:$0xff] %vm11363_vm3, %v11361_v35  ;;  %v11359_v36 = vadd.f32 %v20612_v3, %v11320_v2  ;;  %v11323_v51 = vadd.f32 %v13872_v41, %v11099_v20 }
 0x9a0   : > { %v11280_v7 = vpop.f32.mrf.mxu0 }
 0x9a1   : > { %11392 = vst.msk [vmem:[%s14389_s23 + $0xe0] sm:$0xff] %vm11363_vm3, %v11359_v36  ;;  %v11362_v55 = vadd.f32 %v20612_v3, %v11323_v51  ;;  %v11321_v22 = vadd.f32 %v11280_v7, %v11097_v18 }
 0x9a3   : > { %11395 = vst.msk [vmem:[%s14389_s23 + $0xf8] sm:$0xff] %vm11363_vm3, %v11362_v55  ;;  %v11360_v0 = vadd.f32 %v20612_v3, %v11321_v22 }
 0x9a5   : > { %11393 = vst.msk [vmem:[%s14389_s23 + $0xe8] sm:$0xff] %vm11363_vm3, %v11360_v0 }
 0x9a6   : > { %14139 = shalt.err (!%p14136_p5)
}
 0x9a7   : > { %s14140_s23 = scalar_lea.hbm %s20829_s21, 4096  ;;  %s14144_s18 = scalar_lea.hbm %s20887_s8, 8192 }
 0x9a8   : > { %p14141_p2 = scmp.ne.s32.totalorder %s20829_s21, %s14140_s23  ;;  %p14145_p6 = scmp.lt.s32.totalorder %s20829_s21, %s20887_s8 }
 0x9a9   : > { %p14146_p9 = scmp.lt.s32.totalorder %s14144_s18, %s14140_s23 }
 0x9aa   : > { %p14142_p1 = pnand %p14141_p2, %p21689_p7 }
 0x9ab   : > { %p14147_p3 = por %p14146_p9, %p14145_p6 }
 0x9ac   : > { %p14143_p4 = pneg %p14142_p1 }
 0x9ae   : > { %p14148_p12 = pnand %p14147_p3, %p14143_p4 }
 0x9b0   : > { %14151 = shalt.err (!%p14148_p12)
}
 0x9b1   : > { %s14204_s10 = smov 128   ;;  %s14205_s17 = smov 8  }
 0x9b2   : > { %13883 = dma.vmem_to_hbm [thread:$0]  (%p21689_p7), %s20831_s15, 4096, %s20829_s21, %s11397_s9, %s14204_s10, %s14204_s10, %s14205_s17  }
 0x9b3 PF: > { %s11425_s14 = sand.u32 1, %s14182_s27   ;;  %p21690_p8 = scmp.ne.s32.totalorder %s21073_s12, 0 }
 0x9b4   : > { %p21691_p10 = scmp.ge.s32.totalorder %s14194_s30, 2  ;;  %s11426_s1 = scalar_lea.sflag [#allocation5], %s11425_s14 }
 0x9b6   : > { %p13894_p11 = pnand %p21691_p10, %p21690_p8 }
 0x9b8   : > { %p13895_p13 = pneg %p13894_p11 }
 0x9ba   : > { %14177 = dma.done.wait (%p13895_p13), %s11426_s1, 4096  }
 0x9bb   : > { %14179 = vsyncadd (%p13895_p13), %s11426_s1, 4294963200  ;;  %s21692_s30 = sld [smem:[#allocation12_spill]]  ;;  %s21693_s27 = smov %s14186_s28 }
 0x9bc   : > { %s21694_s28 = smov %s14190_s29  ;;  %s21695_s29 = smov %s14326_s25 }
 0x9c1   : > { %p22_p0 = scmp.ge.s32.totalorder %s21692_s30, 4  }
 0x9c3   :  { %24 = sbr.rel (!%p22_p0) target bundleno = 8 (0x8), region = 131 }
 0x9c8   :  { %11431 = vsyncpa [#allocation4], 1 }
 0x9c9   :  { %11433 = vsyncpa [#allocation4 + $0x1], 1 }
 0x9ca   :  { %11434 = vsyncpa [#allocation7], 1 }
 0x9cb   :  { %11435 = vsyncpa [#allocation5], 1 }
 0x9cc   :  { %11437 = vsyncpa [#allocation5 + $0x1], 1 }

</bundles_post_ra>
